<compile_context>
chip_gen: v5e
topology: v5e:2x2
jax: 0.10.0
libtpu: 0.0.40
codegen_flags: <defaults>
</compile_context>

<pallas_src>
import functools

import jax
import jax.numpy as jnp
from jax import lax
from jax.experimental import pallas as pl
from jax.experimental.pallas import tpu as pltpu


# ----------------------------------------------------------------------------
# Kernel 1: 4x4 / stride-2 / pad-1 conv + folded bias/BN affine + LeakyReLU.
# One image per grid step, NHWC, single im2col matmul on the MXU.
# Input is pre-arranged into 4 "parity planes" of the zero-padded image:
#   planes[p, i, j, c] == xpad[2*i + r, 2*j + s, c]   with p = 2*r + s.
# Tap (kh, kw) with kh = 2*a + r, kw = 2*b + s then reads
#   xpad[2*oh + kh, 2*ow + kw] == planes[p, oh + a, ow + b]
# i.e. a plain unit-stride window — no strided ref indexing needed.
# ----------------------------------------------------------------------------
def _disc_block_kernel(Hout, Wout, Cin, Cout,
                       planes_ref,     # (1, 4, Hout+1, Wout+1, Cin)  f32
                       w_ref,          # (16*Cin, Cout)               bf16
                       s_ref, b_ref,   # (1, Cout)                    f32 folded affine
                       o_ref):         # (1, Hout, Wout, Cout)        f32
    M = Hout * Wout
    taps = []
    for kh in range(4):
        a, r = kh // 2, kh % 2
        for kw in range(4):
            b, s = kw // 2, kw % 2
            p = 2 * r + s
            slab = planes_ref[0, p, a:a + Hout, b:b + Wout, :]   # (Hout, Wout, Cin)
            taps.append(slab.reshape(M, Cin).astype(jnp.bfloat16))
    patch = jnp.concatenate(taps, axis=1)                        # (M, 16*Cin) bf16

    # single MXU matmul, f32 accumulation
    acc = jnp.dot(patch, w_ref[...], preferred_element_type=jnp.float32)

    # folded conv-bias / BatchNorm affine + LeakyReLU(0.2)
    y = acc * s_ref[...] + b_ref[...]
    y = jnp.maximum(y, 0.2 * y)
    o_ref[0] = y.reshape(Hout, Wout, Cout).astype(o_ref.dtype)


# ----------------------------------------------------------------------------
# Kernel 2: 4x4 / stride-1 conv (256 -> 1, no bias) over the already
# zero-padded input (top=left=2, bottom=right=1, done in XLA).
# ----------------------------------------------------------------------------
def _disc_final_kernel(H4, W4, Cin,
                       x_ref,          # (1, H4+3, W4+3, Cin)   f32
                       w_ref,          # (16*Cin, 1)            bf16
                       o_ref):         # (1, H4, W4, 1)         f32
    M = H4 * W4
    taps = []
    for kh in range(4):
        for kw in range(4):
            slab = x_ref[0, kh:kh + H4, kw:kw + W4, :]           # (H4, W4, Cin)
            taps.append(slab.reshape(M, Cin).astype(jnp.bfloat16))
    patch = jnp.concatenate(taps, axis=1)                        # (M, 16*Cin) bf16
    acc = jnp.dot(patch, w_ref[...], preferred_element_type=jnp.float32)
    o_ref[0] = acc.reshape(H4, W4, 1).astype(o_ref.dtype)


# ----------------------------------------------------------------------------
# XLA-side layout prep (cheap, lane-dense): pad + space-to-depth parity split.
# ----------------------------------------------------------------------------
def _space_to_depth_pad(x):
    """(N, H, W, C) NHWC -> (N, 4, H//2+1, W//2+1, C) parity planes of the
    zero-padded (pad=1) image: planes[:, 2*r+s, i, j] == xpad[:, 2*i+r, 2*j+s]."""
    N, H, W, C = x.shape
    Hout, Wout = H // 2, W // 2
    xp = jnp.pad(x, ((0, 0), (1, 1), (1, 1), (0, 0)))
    xr = xp.reshape(N, Hout + 1, 2, Wout + 1, 2, C)
    planes = jnp.transpose(xr, (0, 2, 4, 1, 3, 5))               # (N, 2, 2, Hp2, Wp2, C)
    return planes.reshape(N, 4, Hout + 1, Wout + 1, C)


# ----------------------------------------------------------------------------
# pallas_call wrappers (grid over batch, "parallel" for megacore sharding)
# ----------------------------------------------------------------------------
def _run_block(planes, w_packed, scale, bias):
    N, _, Hp2, Wp2, Cin = planes.shape
    Hout, Wout = Hp2 - 1, Wp2 - 1
    Cout = w_packed.shape[1]
    kern = functools.partial(_disc_block_kernel, Hout, Wout, Cin, Cout)
    grid_spec = pltpu.PrefetchScalarGridSpec(
        num_scalar_prefetch=0,
        grid=(N,),
        in_specs=[
            pl.BlockSpec((1, 4, Hp2, Wp2, Cin), lambda n: (n, 0, 0, 0, 0)),
            pl.BlockSpec((16 * Cin, Cout), lambda n: (0, 0)),
            pl.BlockSpec((1, Cout), lambda n: (0, 0)),
            pl.BlockSpec((1, Cout), lambda n: (0, 0)),
        ],
        out_specs=pl.BlockSpec((1, Hout, Wout, Cout), lambda n: (n, 0, 0, 0)),
    )
    return pl.pallas_call(
        kern,
        out_shape=jax.ShapeDtypeStruct((N, Hout, Wout, Cout), jnp.float32),
        grid_spec=grid_spec,
        compiler_params=pltpu.CompilerParams(
            dimension_semantics=("parallel",),
            vmem_limit_bytes=32 * 1024 * 1024),
    )(planes, w_packed, scale, bias)


def _run_final(xp, w_packed):
    N, Hp, Wp, Cin = xp.shape
    H4, W4 = Hp - 3, Wp - 3
    kern = functools.partial(_disc_final_kernel, H4, W4, Cin)
    grid_spec = pltpu.PrefetchScalarGridSpec(
        num_scalar_prefetch=0,
        grid=(N,),
        in_specs=[
            pl.BlockSpec((1, Hp, Wp, Cin), lambda n: (n, 0, 0, 0)),
            pl.BlockSpec((16 * Cin, 1), lambda n: (0, 0)),
        ],
        out_specs=pl.BlockSpec((1, H4, W4, 1), lambda n: (n, 0, 0, 0)),
    )
    return pl.pallas_call(
        kern,
        out_shape=jax.ShapeDtypeStruct((N, H4, W4, 1), jnp.float32),
        grid_spec=grid_spec,
        compiler_params=pltpu.CompilerParams(
            dimension_semantics=("parallel",),
            vmem_limit_bytes=32 * 1024 * 1024),
    )(xp, w_packed)


def discriminator_forward(img_A, img_B, block_params, w_final):
    """block_params: list of (w_packed bf16 (16Cin,Cout), scale (1,Cout), bias (1,Cout))."""
    x = jnp.concatenate([img_A, img_B], axis=1)               # NCHW, C = 6
    x = jnp.transpose(x, (0, 2, 3, 1)).astype(jnp.float32)    # boundary-only NHWC
    for w_packed, scale, bias in block_params:
        planes = _space_to_depth_pad(x)                       # pad + parity split (XLA)
        x = _run_block(planes, w_packed, scale, bias)         # fused conv+affine+LReLU
    # ZeroPad2d((1,0,1,0)) followed by conv pad=1  ==>  total pad top=left=2, bottom=right=1
    xp = jnp.pad(x, ((0, 0), (2, 1), (2, 1), (0, 0)))
    y = _run_final(xp, w_final)                               # (N, H/16, W/16, 1)
    return jnp.transpose(y, (0, 3, 1, 2))                     # (N, 1, H/16, W/16)


# ----------------------------------------------------------------------------
# Deterministic parameter init + one-time packing (bf16 weights, folded BN)
# ----------------------------------------------------------------------------
def init_params(key, in_channels=3):
    chans = [2 * in_channels, 32, 64, 128, 256]
    keys = list(jax.random.split(key, 32))
    it = iter(keys)
    blocks = []
    for li in range(4):
        cin, cout = chans[li], chans[li + 1]
        std = (16 * cin) ** -0.5
        layer = {
            "w": std * jax.random.normal(next(it), (cout, cin, 4, 4), jnp.float32),
            "b": 0.05 * jax.random.normal(next(it), (cout,), jnp.float32),
            "bn": li > 0,
        }
        if layer["bn"]:
            layer["gamma"] = jax.random.uniform(next(it), (cout,), jnp.float32, 0.5, 1.5)
            layer["beta"] = 0.1 * jax.random.normal(next(it), (cout,), jnp.float32)
            layer["mean"] = 0.1 * jax.random.normal(next(it), (cout,), jnp.float32)
            layer["var"] = jax.random.uniform(next(it), (cout,), jnp.float32, 0.5, 1.5)
        blocks.append(layer)
    w_final = ((16 * 256) ** -0.5) * jax.random.normal(next(it), (1, 256, 4, 4), jnp.float32)
    return {"blocks": blocks, "w_final": w_final}


def _pack_conv(w_oihw):
    # row index (kh*4 + kw)*Cin + c  <->  w_oihw[o, c, kh, kw]
    cout, cin = w_oihw.shape[0], w_oihw.shape[1]
    return jnp.transpose(w_oihw, (2, 3, 1, 0)).reshape(16 * cin, cout).astype(jnp.bfloat16)


def pack_params(p, eps=1e-5):
    block_params = []
    for layer in p["blocks"]:
        cout = layer["w"].shape[0]
        if layer["bn"]:
            s = layer["gamma"] / jnp.sqrt(layer["var"] + eps)
            bias = (layer["b"] - layer["mean"]) * s + layer["beta"]
        else:
            s = jnp.ones((cout,), jnp.float32)
            bias = layer["b"]
        block_params.append((_pack_conv(layer["w"]),
                             s.reshape(1, cout).astype(jnp.float32),
                             bias.reshape(1, cout).astype(jnp.float32)))
    return block_params, _pack_conv(p["w_final"])


# ----------------------------------------------------------------------------
# Pure-JAX reference (XLA convs) for a sanity check
# ----------------------------------------------------------------------------
def reference_forward(img_A, img_B, p, eps=1e-5):
    x = jnp.concatenate([img_A, img_B], axis=1)

    def conv(t, w, stride, pad):
        return lax.conv_general_dilated(
            t, w, (stride, stride), ((pad, pad), (pad, pad)),
            dimension_numbers=("NCHW", "OIHW", "NCHW"))

    for layer in p["blocks"]:
        x = conv(x, layer["w"], 2, 1) + layer["b"][None, :, None, None]
        if layer["bn"]:
            s = layer["gamma"] / jnp.sqrt(layer["var"] + eps)
            x = (x - layer["mean"][None, :, None, None]) * s[None, :, None, None] \
                + layer["beta"][None, :, None, None]
        x = jnp.maximum(x, 0.2 * x)                           # LeakyReLU(0.2)
    x = jnp.pad(x, ((0, 0), (0, 0), (1, 0), (1, 0)))          # ZeroPad2d((1,0,1,0))
    return conv(x, p["w_final"], 1, 1)


if __name__ == "__main__":
    key = jax.random.PRNGKey(0)
    k_a, k_b, k_p = jax.random.split(key, 3)
    N, C, H, W = 2, 3, 32, 32

    img_A = jax.random.normal(k_a, (N, C, H, W), jnp.float32)
    img_B = jax.random.normal(k_b, (N, C, H, W), jnp.float32)
    params = init_params(k_p, in_channels=C)
    block_params, w_final = pack_params(params)

    forward = jax.jit(discriminator_forward)
    out = jax.block_until_ready(forward(img_A, img_B, block_params, w_final))

    assert out.shape == (N, 1, H // 16, W // 16), out.shape
    assert bool(jnp.all(jnp.isfinite(out)))

    ref = reference_forward(img_A, img_B, params)
    denom = float(jnp.maximum(jnp.max(jnp.abs(ref)), 1.0))
    rel_err = float(jnp.max(jnp.abs(out - ref))) / denom
    assert rel_err < 5e-2, f"relative error too large: {rel_err}"

    print("KERNEL_OK")
</pallas_src>

<mosaic_0001>
module attributes {stable_mosaic.version = 11 : i64} {
  func.func @_disc_block_kernel(%arg0: i32, %arg1: memref<1x4x17x17x6xf32, #tpu.memory_space<vmem>>, %arg2: memref<96x32xbf16, #tpu.memory_space<vmem>>, %arg3: memref<1x32xf32, #tpu.memory_space<vmem>>, %arg4: memref<1x32xf32, #tpu.memory_space<vmem>>, %arg5: memref<1x16x16x32xf32, #tpu.memory_space<vmem>>) attributes {dimension_semantics = [#tpu.dimension_semantics<parallel>], iteration_bounds = array<i64: 2>, scalar_prefetch = 0 : i64, scratch_operands = 0 : i64, tpu.core_type = #tpu.core_type<tc>, window_params = [{transform_indices = @transform_0, window_bounds = array<i64: 1, 4, 17, 17, 6>}, {pipeline_mode = #tpu.pipeline_mode<synchronous>, transform_indices = @transform_1, window_bounds = array<i64: 96, 32>}, {pipeline_mode = #tpu.pipeline_mode<synchronous>, transform_indices = @transform_2, window_bounds = array<i64: 1, 32>}, {pipeline_mode = #tpu.pipeline_mode<synchronous>, transform_indices = @transform_3, window_bounds = array<i64: 1, 32>}, {transform_indices = @transform_4, window_bounds = array<i64: 1, 16, 16, 32>}]} {
    %c0 = arith.constant 0 : index
    %c0_0 = arith.constant 0 : index
    %c0_1 = arith.constant 0 : index
    %c0_2 = arith.constant 0 : index
    %c0_3 = arith.constant 0 : index
    %0 = vector.load %arg1[%c0, %c0_0, %c0_1, %c0_2, %c0_3] : memref<1x4x17x17x6xf32, #tpu.memory_space<vmem>>, vector<1x1x16x16x6xf32>
    %1 = vector.shape_cast %0 : vector<1x1x16x16x6xf32> to vector<16x16x6xf32>
    %2 = vector.shape_cast %1 : vector<16x16x6xf32> to vector<256x6xf32>
    %3 = arith.truncf %2 : vector<256x6xf32> to vector<256x6xbf16>
    %c0_4 = arith.constant 0 : index
    %c1 = arith.constant 1 : index
    %c0_5 = arith.constant 0 : index
    %c0_6 = arith.constant 0 : index
    %c0_7 = arith.constant 0 : index
    %4 = vector.load %arg1[%c0_4, %c1, %c0_5, %c0_6, %c0_7] : memref<1x4x17x17x6xf32, #tpu.memory_space<vmem>>, vector<1x1x16x16x6xf32>
    %5 = vector.shape_cast %4 : vector<1x1x16x16x6xf32> to vector<16x16x6xf32>
    %6 = vector.shape_cast %5 : vector<16x16x6xf32> to vector<256x6xf32>
    %7 = arith.truncf %6 : vector<256x6xf32> to vector<256x6xbf16>
    %c0_8 = arith.constant 0 : index
    %c0_9 = arith.constant 0 : index
    %c0_10 = arith.constant 0 : index
    %c1_11 = arith.constant 1 : index
    %c0_12 = arith.constant 0 : index
    %8 = vector.load %arg1[%c0_8, %c0_9, %c0_10, %c1_11, %c0_12] : memref<1x4x17x17x6xf32, #tpu.memory_space<vmem>>, vector<1x1x16x16x6xf32>
    %9 = vector.shape_cast %8 : vector<1x1x16x16x6xf32> to vector<16x16x6xf32>
    %10 = vector.shape_cast %9 : vector<16x16x6xf32> to vector<256x6xf32>
    %11 = arith.truncf %10 : vector<256x6xf32> to vector<256x6xbf16>
    %c0_13 = arith.constant 0 : index
    %c1_14 = arith.constant 1 : index
    %c0_15 = arith.constant 0 : index
    %c1_16 = arith.constant 1 : index
    %c0_17 = arith.constant 0 : index
    %12 = vector.load %arg1[%c0_13, %c1_14, %c0_15, %c1_16, %c0_17] : memref<1x4x17x17x6xf32, #tpu.memory_space<vmem>>, vector<1x1x16x16x6xf32>
    %13 = vector.shape_cast %12 : vector<1x1x16x16x6xf32> to vector<16x16x6xf32>
    %14 = vector.shape_cast %13 : vector<16x16x6xf32> to vector<256x6xf32>
    %15 = arith.truncf %14 : vector<256x6xf32> to vector<256x6xbf16>
    %c0_18 = arith.constant 0 : index
    %c2 = arith.constant 2 : index
    %c0_19 = arith.constant 0 : index
    %c0_20 = arith.constant 0 : index
    %c0_21 = arith.constant 0 : index
    %16 = vector.load %arg1[%c0_18, %c2, %c0_19, %c0_20, %c0_21] : memref<1x4x17x17x6xf32, #tpu.memory_space<vmem>>, vector<1x1x16x16x6xf32>
    %17 = vector.shape_cast %16 : vector<1x1x16x16x6xf32> to vector<16x16x6xf32>
    %18 = vector.shape_cast %17 : vector<16x16x6xf32> to vector<256x6xf32>
    %19 = arith.truncf %18 : vector<256x6xf32> to vector<256x6xbf16>
    %c0_22 = arith.constant 0 : index
    %c3 = arith.constant 3 : index
    %c0_23 = arith.constant 0 : index
    %c0_24 = arith.constant 0 : index
    %c0_25 = arith.constant 0 : index
    %20 = vector.load %arg1[%c0_22, %c3, %c0_23, %c0_24, %c0_25] : memref<1x4x17x17x6xf32, #tpu.memory_space<vmem>>, vector<1x1x16x16x6xf32>
    %21 = vector.shape_cast %20 : vector<1x1x16x16x6xf32> to vector<16x16x6xf32>
    %22 = vector.shape_cast %21 : vector<16x16x6xf32> to vector<256x6xf32>
    %23 = arith.truncf %22 : vector<256x6xf32> to vector<256x6xbf16>
    %c0_26 = arith.constant 0 : index
    %c2_27 = arith.constant 2 : index
    %c0_28 = arith.constant 0 : index
    %c1_29 = arith.constant 1 : index
    %c0_30 = arith.constant 0 : index
    %24 = vector.load %arg1[%c0_26, %c2_27, %c0_28, %c1_29, %c0_30] : memref<1x4x17x17x6xf32, #tpu.memory_space<vmem>>, vector<1x1x16x16x6xf32>
    %25 = vector.shape_cast %24 : vector<1x1x16x16x6xf32> to vector<16x16x6xf32>
    %26 = vector.shape_cast %25 : vector<16x16x6xf32> to vector<256x6xf32>
    %27 = arith.truncf %26 : vector<256x6xf32> to vector<256x6xbf16>
    %c0_31 = arith.constant 0 : index
    %c3_32 = arith.constant 3 : index
    %c0_33 = arith.constant 0 : index
    %c1_34 = arith.constant 1 : index
    %c0_35 = arith.constant 0 : index
    %28 = vector.load %arg1[%c0_31, %c3_32, %c0_33, %c1_34, %c0_35] : memref<1x4x17x17x6xf32, #tpu.memory_space<vmem>>, vector<1x1x16x16x6xf32>
    %29 = vector.shape_cast %28 : vector<1x1x16x16x6xf32> to vector<16x16x6xf32>
    %30 = vector.shape_cast %29 : vector<16x16x6xf32> to vector<256x6xf32>
    %31 = arith.truncf %30 : vector<256x6xf32> to vector<256x6xbf16>
    %c0_36 = arith.constant 0 : index
    %c0_37 = arith.constant 0 : index
    %c1_38 = arith.constant 1 : index
    %c0_39 = arith.constant 0 : index
    %c0_40 = arith.constant 0 : index
    %32 = vector.load %arg1[%c0_36, %c0_37, %c1_38, %c0_39, %c0_40] : memref<1x4x17x17x6xf32, #tpu.memory_space<vmem>>, vector<1x1x16x16x6xf32>
    %33 = vector.shape_cast %32 : vector<1x1x16x16x6xf32> to vector<16x16x6xf32>
    %34 = vector.shape_cast %33 : vector<16x16x6xf32> to vector<256x6xf32>
    %35 = arith.truncf %34 : vector<256x6xf32> to vector<256x6xbf16>
    %c0_41 = arith.constant 0 : index
    %c1_42 = arith.constant 1 : index
    %c1_43 = arith.constant 1 : index
    %c0_44 = arith.constant 0 : index
    %c0_45 = arith.constant 0 : index
    %36 = vector.load %arg1[%c0_41, %c1_42, %c1_43, %c0_44, %c0_45] : memref<1x4x17x17x6xf32, #tpu.memory_space<vmem>>, vector<1x1x16x16x6xf32>
    %37 = vector.shape_cast %36 : vector<1x1x16x16x6xf32> to vector<16x16x6xf32>
    %38 = vector.shape_cast %37 : vector<16x16x6xf32> to vector<256x6xf32>
    %39 = arith.truncf %38 : vector<256x6xf32> to vector<256x6xbf16>
    %c0_46 = arith.constant 0 : index
    %c0_47 = arith.constant 0 : index
    %c1_48 = arith.constant 1 : index
    %c1_49 = arith.constant 1 : index
    %c0_50 = arith.constant 0 : index
    %40 = vector.load %arg1[%c0_46, %c0_47, %c1_48, %c1_49, %c0_50] : memref<1x4x17x17x6xf32, #tpu.memory_space<vmem>>, vector<1x1x16x16x6xf32>
    %41 = vector.shape_cast %40 : vector<1x1x16x16x6xf32> to vector<16x16x6xf32>
    %42 = vector.shape_cast %41 : vector<16x16x6xf32> to vector<256x6xf32>
    %43 = arith.truncf %42 : vector<256x6xf32> to vector<256x6xbf16>
    %c0_51 = arith.constant 0 : index
    %c1_52 = arith.constant 1 : index
    %c1_53 = arith.constant 1 : index
    %c1_54 = arith.constant 1 : index
    %c0_55 = arith.constant 0 : index
    %44 = vector.load %arg1[%c0_51, %c1_52, %c1_53, %c1_54, %c0_55] : memref<1x4x17x17x6xf32, #tpu.memory_space<vmem>>, vector<1x1x16x16x6xf32>
    %45 = vector.shape_cast %44 : vector<1x1x16x16x6xf32> to vector<16x16x6xf32>
    %46 = vector.shape_cast %45 : vector<16x16x6xf32> to vector<256x6xf32>
    %47 = arith.truncf %46 : vector<256x6xf32> to vector<256x6xbf16>
    %c0_56 = arith.constant 0 : index
    %c2_57 = arith.constant 2 : index
    %c1_58 = arith.constant 1 : index
    %c0_59 = arith.constant 0 : index
    %c0_60 = arith.constant 0 : index
    %48 = vector.load %arg1[%c0_56, %c2_57, %c1_58, %c0_59, %c0_60] : memref<1x4x17x17x6xf32, #tpu.memory_space<vmem>>, vector<1x1x16x16x6xf32>
    %49 = vector.shape_cast %48 : vector<1x1x16x16x6xf32> to vector<16x16x6xf32>
    %50 = vector.shape_cast %49 : vector<16x16x6xf32> to vector<256x6xf32>
    %51 = arith.truncf %50 : vector<256x6xf32> to vector<256x6xbf16>
    %c0_61 = arith.constant 0 : index
    %c3_62 = arith.constant 3 : index
    %c1_63 = arith.constant 1 : index
    %c0_64 = arith.constant 0 : index
    %c0_65 = arith.constant 0 : index
    %52 = vector.load %arg1[%c0_61, %c3_62, %c1_63, %c0_64, %c0_65] : memref<1x4x17x17x6xf32, #tpu.memory_space<vmem>>, vector<1x1x16x16x6xf32>
    %53 = vector.shape_cast %52 : vector<1x1x16x16x6xf32> to vector<16x16x6xf32>
    %54 = vector.shape_cast %53 : vector<16x16x6xf32> to vector<256x6xf32>
    %55 = arith.truncf %54 : vector<256x6xf32> to vector<256x6xbf16>
    %c0_66 = arith.constant 0 : index
    %c2_67 = arith.constant 2 : index
    %c1_68 = arith.constant 1 : index
    %c1_69 = arith.constant 1 : index
    %c0_70 = arith.constant 0 : index
    %56 = vector.load %arg1[%c0_66, %c2_67, %c1_68, %c1_69, %c0_70] : memref<1x4x17x17x6xf32, #tpu.memory_space<vmem>>, vector<1x1x16x16x6xf32>
    %57 = vector.shape_cast %56 : vector<1x1x16x16x6xf32> to vector<16x16x6xf32>
    %58 = vector.shape_cast %57 : vector<16x16x6xf32> to vector<256x6xf32>
    %59 = arith.truncf %58 : vector<256x6xf32> to vector<256x6xbf16>
    %c0_71 = arith.constant 0 : index
    %c3_72 = arith.constant 3 : index
    %c1_73 = arith.constant 1 : index
    %c1_74 = arith.constant 1 : index
    %c0_75 = arith.constant 0 : index
    %60 = vector.load %arg1[%c0_71, %c3_72, %c1_73, %c1_74, %c0_75] : memref<1x4x17x17x6xf32, #tpu.memory_space<vmem>>, vector<1x1x16x16x6xf32>
    %61 = vector.shape_cast %60 : vector<1x1x16x16x6xf32> to vector<16x16x6xf32>
    %62 = vector.shape_cast %61 : vector<16x16x6xf32> to vector<256x6xf32>
    %63 = arith.truncf %62 : vector<256x6xf32> to vector<256x6xbf16>
    %64 = tpu.concatenate %3, %7, %11, %15, %19, %23, %27, %31, %35, %39, %43, %47, %51, %55, %59, %63 in 1 : vector<256x6xbf16>, vector<256x6xbf16>, vector<256x6xbf16>, vector<256x6xbf16>, vector<256x6xbf16>, vector<256x6xbf16>, vector<256x6xbf16>, vector<256x6xbf16>, vector<256x6xbf16>, vector<256x6xbf16>, vector<256x6xbf16>, vector<256x6xbf16>, vector<256x6xbf16>, vector<256x6xbf16>, vector<256x6xbf16>, vector<256x6xbf16> -> vector<256x96xbf16>
    %c0_76 = arith.constant 0 : index
    %c0_77 = arith.constant 0 : index
    %65 = vector.load %arg2[%c0_76, %c0_77] : memref<96x32xbf16, #tpu.memory_space<vmem>>, vector<96x32xbf16>
    %cst = arith.constant dense<0.000000e+00> : vector<256x32xf32>
    %66 = tpu.matmul %64, %65, %cst {dimension_numbers = #tpu.dot_dimension_numbers<[1], [0], [0], [1], [0, 0, 1, 1], [], []>} : vector<256x96xbf16>, vector<96x32xbf16>, vector<256x32xf32> -> vector<256x32xf32>
    %c0_78 = arith.constant 0 : index
    %c0_79 = arith.constant 0 : index
    %67 = vector.load %arg3[%c0_78, %c0_79] : memref<1x32xf32, #tpu.memory_space<vmem>>, vector<1x32xf32>
    %68 = vector.broadcast %67 : vector<1x32xf32> to vector<256x32xf32>
    %69 = arith.mulf %66, %68 : vector<256x32xf32>
    %c0_80 = arith.constant 0 : index
    %c0_81 = arith.constant 0 : index
    %70 = vector.load %arg4[%c0_80, %c0_81] : memref<1x32xf32, #tpu.memory_space<vmem>>, vector<1x32xf32>
    %71 = vector.broadcast %70 : vector<1x32xf32> to vector<256x32xf32>
    %72 = arith.addf %69, %71 : vector<256x32xf32>
    %cst_82 = arith.constant 2.000000e-01 : f32
    %73 = vector.broadcast %cst_82 : f32 to vector<256x32xf32>
    %74 = arith.mulf %73, %72 : vector<256x32xf32>
    %75 = arith.maximumf %72, %74 : vector<256x32xf32>
    %76 = vector.shape_cast %75 : vector<256x32xf32> to vector<16x16x32xf32>
    %c0_83 = arith.constant 0 : index
    %c0_84 = arith.constant 0 : index
    %c0_85 = arith.constant 0 : index
    %c0_86 = arith.constant 0 : index
    %77 = vector.load %arg5[%c0_83, %c0_84, %c0_85, %c0_86] : memref<1x16x16x32xf32, #tpu.memory_space<vmem>>, vector<1x16x16x32xf32>
    %78 = vector.shape_cast %77 : vector<1x16x16x32xf32> to vector<16x16x32xf32>
    %79 = vector.shape_cast %76 : vector<16x16x32xf32> to vector<1x16x16x32xf32>
    tpu.vector_store %arg5[%c0_83, %c0_84, %c0_85, %c0_86], %79 {strides = array<i32>} : memref<1x16x16x32xf32, #tpu.memory_space<vmem>>, vector<1x16x16x32xf32>,
    return
  }
  func.func @transform_0(%arg0: i32) -> (i32, i32, i32, i32, i32) {
    %c0_i32 = arith.constant 0 : i32
    %c0_i32_0 = arith.constant 0 : i32
    %c0_i32_1 = arith.constant 0 : i32
    %c0_i32_2 = arith.constant 0 : i32
    %c0_i32_3 = arith.constant 0 : i32
    return %arg0, %c0_i32, %c0_i32_0, %c0_i32_1, %c0_i32_2 : i32, i32, i32, i32, i32
  }
  func.func @transform_1(%arg0: i32) -> (i32, i32) {
    %c0_i32 = arith.constant 0 : i32
    %c0_i32_0 = arith.constant 0 : i32
    %c0_i32_1 = arith.constant 0 : i32
    return %c0_i32, %c0_i32_0 : i32, i32
  }
  func.func @transform_2(%arg0: i32) -> (i32, i32) {
    %c0_i32 = arith.constant 0 : i32
    %c0_i32_0 = arith.constant 0 : i32
    %c0_i32_1 = arith.constant 0 : i32
    return %c0_i32, %c0_i32_0 : i32, i32
  }
  func.func @transform_3(%arg0: i32) -> (i32, i32) {
    %c0_i32 = arith.constant 0 : i32
    %c0_i32_0 = arith.constant 0 : i32
    %c0_i32_1 = arith.constant 0 : i32
    return %c0_i32, %c0_i32_0 : i32, i32
  }
  func.func @transform_4(%arg0: i32) -> (i32, i32, i32, i32) {
    %c0_i32 = arith.constant 0 : i32
    %c0_i32_0 = arith.constant 0 : i32
    %c0_i32_1 = arith.constant 0 : i32
    %c0_i32_2 = arith.constant 0 : i32
    return %arg0, %c0_i32, %c0_i32_0, %c0_i32_1 : i32, i32, i32, i32
  }
}

module attributes {stable_mosaic.version = 11 : i64} {
  func.func @_disc_block_kernel(%arg0: i32, %arg1: memref<1x4x9x9x32xf32, #tpu.memory_space<vmem>>, %arg2: memref<512x64xbf16, #tpu.memory_space<vmem>>, %arg3: memref<1x64xf32, #tpu.memory_space<vmem>>, %arg4: memref<1x64xf32, #tpu.memory_space<vmem>>, %arg5: memref<1x8x8x64xf32, #tpu.memory_space<vmem>>) attributes {dimension_semantics = [#tpu.dimension_semantics<parallel>], iteration_bounds = array<i64: 2>, scalar_prefetch = 0 : i64, scratch_operands = 0 : i64, tpu.core_type = #tpu.core_type<tc>, window_params = [{transform_indices = @transform_0, window_bounds = array<i64: 1, 4, 9, 9, 32>}, {pipeline_mode = #tpu.pipeline_mode<synchronous>, transform_indices = @transform_1, window_bounds = array<i64: 512, 64>}, {pipeline_mode = #tpu.pipeline_mode<synchronous>, transform_indices = @transform_2, window_bounds = array<i64: 1, 64>}, {pipeline_mode = #tpu.pipeline_mode<synchronous>, transform_indices = @transform_3, window_bounds = array<i64: 1, 64>}, {transform_indices = @transform_4, window_bounds = array<i64: 1, 8, 8, 64>}]} {
    %c0 = arith.constant 0 : index
    %c0_0 = arith.constant 0 : index
    %c0_1 = arith.constant 0 : index
    %c0_2 = arith.constant 0 : index
    %c0_3 = arith.constant 0 : index
    %0 = vector.load %arg1[%c0, %c0_0, %c0_1, %c0_2, %c0_3] : memref<1x4x9x9x32xf32, #tpu.memory_space<vmem>>, vector<1x1x8x8x32xf32>
    %1 = vector.shape_cast %0 : vector<1x1x8x8x32xf32> to vector<8x8x32xf32>
    %2 = vector.shape_cast %1 : vector<8x8x32xf32> to vector<64x32xf32>
    %3 = arith.truncf %2 : vector<64x32xf32> to vector<64x32xbf16>
    %c0_4 = arith.constant 0 : index
    %c1 = arith.constant 1 : index
    %c0_5 = arith.constant 0 : index
    %c0_6 = arith.constant 0 : index
    %c0_7 = arith.constant 0 : index
    %4 = vector.load %arg1[%c0_4, %c1, %c0_5, %c0_6, %c0_7] : memref<1x4x9x9x32xf32, #tpu.memory_space<vmem>>, vector<1x1x8x8x32xf32>
    %5 = vector.shape_cast %4 : vector<1x1x8x8x32xf32> to vector<8x8x32xf32>
    %6 = vector.shape_cast %5 : vector<8x8x32xf32> to vector<64x32xf32>
    %7 = arith.truncf %6 : vector<64x32xf32> to vector<64x32xbf16>
    %c0_8 = arith.constant 0 : index
    %c0_9 = arith.constant 0 : index
    %c0_10 = arith.constant 0 : index
    %c1_11 = arith.constant 1 : index
    %c0_12 = arith.constant 0 : index
    %8 = vector.load %arg1[%c0_8, %c0_9, %c0_10, %c1_11, %c0_12] : memref<1x4x9x9x32xf32, #tpu.memory_space<vmem>>, vector<1x1x8x8x32xf32>
    %9 = vector.shape_cast %8 : vector<1x1x8x8x32xf32> to vector<8x8x32xf32>
    %10 = vector.shape_cast %9 : vector<8x8x32xf32> to vector<64x32xf32>
    %11 = arith.truncf %10 : vector<64x32xf32> to vector<64x32xbf16>
    %c0_13 = arith.constant 0 : index
    %c1_14 = arith.constant 1 : index
    %c0_15 = arith.constant 0 : index
    %c1_16 = arith.constant 1 : index
    %c0_17 = arith.constant 0 : index
    %12 = vector.load %arg1[%c0_13, %c1_14, %c0_15, %c1_16, %c0_17] : memref<1x4x9x9x32xf32, #tpu.memory_space<vmem>>, vector<1x1x8x8x32xf32>
    %13 = vector.shape_cast %12 : vector<1x1x8x8x32xf32> to vector<8x8x32xf32>
    %14 = vector.shape_cast %13 : vector<8x8x32xf32> to vector<64x32xf32>
    %15 = arith.truncf %14 : vector<64x32xf32> to vector<64x32xbf16>
    %c0_18 = arith.constant 0 : index
    %c2 = arith.constant 2 : index
    %c0_19 = arith.constant 0 : index
    %c0_20 = arith.constant 0 : index
    %c0_21 = arith.constant 0 : index
    %16 = vector.load %arg1[%c0_18, %c2, %c0_19, %c0_20, %c0_21] : memref<1x4x9x9x32xf32, #tpu.memory_space<vmem>>, vector<1x1x8x8x32xf32>
    %17 = vector.shape_cast %16 : vector<1x1x8x8x32xf32> to vector<8x8x32xf32>
    %18 = vector.shape_cast %17 : vector<8x8x32xf32> to vector<64x32xf32>
    %19 = arith.truncf %18 : vector<64x32xf32> to vector<64x32xbf16>
    %c0_22 = arith.constant 0 : index
    %c3 = arith.constant 3 : index
    %c0_23 = arith.constant 0 : index
    %c0_24 = arith.constant 0 : index
    %c0_25 = arith.constant 0 : index
    %20 = vector.load %arg1[%c0_22, %c3, %c0_23, %c0_24, %c0_25] : memref<1x4x9x9x32xf32, #tpu.memory_space<vmem>>, vector<1x1x8x8x32xf32>
    %21 = vector.shape_cast %20 : vector<1x1x8x8x32xf32> to vector<8x8x32xf32>
    %22 = vector.shape_cast %21 : vector<8x8x32xf32> to vector<64x32xf32>
    %23 = arith.truncf %22 : vector<64x32xf32> to vector<64x32xbf16>
    %c0_26 = arith.constant 0 : index
    %c2_27 = arith.constant 2 : index
    %c0_28 = arith.constant 0 : index
    %c1_29 = arith.constant 1 : index
    %c0_30 = arith.constant 0 : index
    %24 = vector.load %arg1[%c0_26, %c2_27, %c0_28, %c1_29, %c0_30] : memref<1x4x9x9x32xf32, #tpu.memory_space<vmem>>, vector<1x1x8x8x32xf32>
    %25 = vector.shape_cast %24 : vector<1x1x8x8x32xf32> to vector<8x8x32xf32>
    %26 = vector.shape_cast %25 : vector<8x8x32xf32> to vector<64x32xf32>
    %27 = arith.truncf %26 : vector<64x32xf32> to vector<64x32xbf16>
    %c0_31 = arith.constant 0 : index
    %c3_32 = arith.constant 3 : index
    %c0_33 = arith.constant 0 : index
    %c1_34 = arith.constant 1 : index
    %c0_35 = arith.constant 0 : index
    %28 = vector.load %arg1[%c0_31, %c3_32, %c0_33, %c1_34, %c0_35] : memref<1x4x9x9x32xf32, #tpu.memory_space<vmem>>, vector<1x1x8x8x32xf32>
    %29 = vector.shape_cast %28 : vector<1x1x8x8x32xf32> to vector<8x8x32xf32>
    %30 = vector.shape_cast %29 : vector<8x8x32xf32> to vector<64x32xf32>
    %31 = arith.truncf %30 : vector<64x32xf32> to vector<64x32xbf16>
    %c0_36 = arith.constant 0 : index
    %c0_37 = arith.constant 0 : index
    %c1_38 = arith.constant 1 : index
    %c0_39 = arith.constant 0 : index
    %c0_40 = arith.constant 0 : index
    %32 = vector.load %arg1[%c0_36, %c0_37, %c1_38, %c0_39, %c0_40] : memref<1x4x9x9x32xf32, #tpu.memory_space<vmem>>, vector<1x1x8x8x32xf32>
    %33 = vector.shape_cast %32 : vector<1x1x8x8x32xf32> to vector<8x8x32xf32>
    %34 = vector.shape_cast %33 : vector<8x8x32xf32> to vector<64x32xf32>
    %35 = arith.truncf %34 : vector<64x32xf32> to vector<64x32xbf16>
    %c0_41 = arith.constant 0 : index
    %c1_42 = arith.constant 1 : index
    %c1_43 = arith.constant 1 : index
    %c0_44 = arith.constant 0 : index
    %c0_45 = arith.constant 0 : index
    %36 = vector.load %arg1[%c0_41, %c1_42, %c1_43, %c0_44, %c0_45] : memref<1x4x9x9x32xf32, #tpu.memory_space<vmem>>, vector<1x1x8x8x32xf32>
    %37 = vector.shape_cast %36 : vector<1x1x8x8x32xf32> to vector<8x8x32xf32>
    %38 = vector.shape_cast %37 : vector<8x8x32xf32> to vector<64x32xf32>
    %39 = arith.truncf %38 : vector<64x32xf32> to vector<64x32xbf16>
    %c0_46 = arith.constant 0 : index
    %c0_47 = arith.constant 0 : index
    %c1_48 = arith.constant 1 : index
    %c1_49 = arith.constant 1 : index
    %c0_50 = arith.constant 0 : index
    %40 = vector.load %arg1[%c0_46, %c0_47, %c1_48, %c1_49, %c0_50] : memref<1x4x9x9x32xf32, #tpu.memory_space<vmem>>, vector<1x1x8x8x32xf32>
    %41 = vector.shape_cast %40 : vector<1x1x8x8x32xf32> to vector<8x8x32xf32>
    %42 = vector.shape_cast %41 : vector<8x8x32xf32> to vector<64x32xf32>
    %43 = arith.truncf %42 : vector<64x32xf32> to vector<64x32xbf16>
    %c0_51 = arith.constant 0 : index
    %c1_52 = arith.constant 1 : index
    %c1_53 = arith.constant 1 : index
    %c1_54 = arith.constant 1 : index
    %c0_55 = arith.constant 0 : index
    %44 = vector.load %arg1[%c0_51, %c1_52, %c1_53, %c1_54, %c0_55] : memref<1x4x9x9x32xf32, #tpu.memory_space<vmem>>, vector<1x1x8x8x32xf32>
    %45 = vector.shape_cast %44 : vector<1x1x8x8x32xf32> to vector<8x8x32xf32>
    %46 = vector.shape_cast %45 : vector<8x8x32xf32> to vector<64x32xf32>
    %47 = arith.truncf %46 : vector<64x32xf32> to vector<64x32xbf16>
    %c0_56 = arith.constant 0 : index
    %c2_57 = arith.constant 2 : index
    %c1_58 = arith.constant 1 : index
    %c0_59 = arith.constant 0 : index
    %c0_60 = arith.constant 0 : index
    %48 = vector.load %arg1[%c0_56, %c2_57, %c1_58, %c0_59, %c0_60] : memref<1x4x9x9x32xf32, #tpu.memory_space<vmem>>, vector<1x1x8x8x32xf32>
    %49 = vector.shape_cast %48 : vector<1x1x8x8x32xf32> to vector<8x8x32xf32>
    %50 = vector.shape_cast %49 : vector<8x8x32xf32> to vector<64x32xf32>
    %51 = arith.truncf %50 : vector<64x32xf32> to vector<64x32xbf16>
    %c0_61 = arith.constant 0 : index
    %c3_62 = arith.constant 3 : index
    %c1_63 = arith.constant 1 : index
    %c0_64 = arith.constant 0 : index
    %c0_65 = arith.constant 0 : index
    %52 = vector.load %arg1[%c0_61, %c3_62, %c1_63, %c0_64, %c0_65] : memref<1x4x9x9x32xf32, #tpu.memory_space<vmem>>, vector<1x1x8x8x32xf32>
    %53 = vector.shape_cast %52 : vector<1x1x8x8x32xf32> to vector<8x8x32xf32>
    %54 = vector.shape_cast %53 : vector<8x8x32xf32> to vector<64x32xf32>
    %55 = arith.truncf %54 : vector<64x32xf32> to vector<64x32xbf16>
    %c0_66 = arith.constant 0 : index
    %c2_67 = arith.constant 2 : index
    %c1_68 = arith.constant 1 : index
    %c1_69 = arith.constant 1 : index
    %c0_70 = arith.constant 0 : index
    %56 = vector.load %arg1[%c0_66, %c2_67, %c1_68, %c1_69, %c0_70] : memref<1x4x9x9x32xf32, #tpu.memory_space<vmem>>, vector<1x1x8x8x32xf32>
    %57 = vector.shape_cast %56 : vector<1x1x8x8x32xf32> to vector<8x8x32xf32>
    %58 = vector.shape_cast %57 : vector<8x8x32xf32> to vector<64x32xf32>
    %59 = arith.truncf %58 : vector<64x32xf32> to vector<64x32xbf16>
    %c0_71 = arith.constant 0 : index
    %c3_72 = arith.constant 3 : index
    %c1_73 = arith.constant 1 : index
    %c1_74 = arith.constant 1 : index
    %c0_75 = arith.constant 0 : index
    %60 = vector.load %arg1[%c0_71, %c3_72, %c1_73, %c1_74, %c0_75] : memref<1x4x9x9x32xf32, #tpu.memory_space<vmem>>, vector<1x1x8x8x32xf32>
    %61 = vector.shape_cast %60 : vector<1x1x8x8x32xf32> to vector<8x8x32xf32>
    %62 = vector.shape_cast %61 : vector<8x8x32xf32> to vector<64x32xf32>
    %63 = arith.truncf %62 : vector<64x32xf32> to vector<64x32xbf16>
    %64 = tpu.concatenate %3, %7, %11, %15, %19, %23, %27, %31, %35, %39, %43, %47, %51, %55, %59, %63 in 1 : vector<64x32xbf16>, vector<64x32xbf16>, vector<64x32xbf16>, vector<64x32xbf16>, vector<64x32xbf16>, vector<64x32xbf16>, vector<64x32xbf16>, vector<64x32xbf16>, vector<64x32xbf16>, vector<64x32xbf16>, vector<64x32xbf16>, vector<64x32xbf16>, vector<64x32xbf16>, vector<64x32xbf16>, vector<64x32xbf16>, vector<64x32xbf16> -> vector<64x512xbf16>
    %c0_76 = arith.constant 0 : index
    %c0_77 = arith.constant 0 : index
    %65 = vector.load %arg2[%c0_76, %c0_77] : memref<512x64xbf16, #tpu.memory_space<vmem>>, vector<512x64xbf16>
    %cst = arith.constant dense<0.000000e+00> : vector<64x64xf32>
    %66 = tpu.matmul %64, %65, %cst {dimension_numbers = #tpu.dot_dimension_numbers<[1], [0], [0], [1], [0, 0, 1, 1], [], []>} : vector<64x512xbf16>, vector<512x64xbf16>, vector<64x64xf32> -> vector<64x64xf32>
    %c0_78 = arith.constant 0 : index
    %c0_79 = arith.constant 0 : index
    %67 = vector.load %arg3[%c0_78, %c0_79] : memref<1x64xf32, #tpu.memory_space<vmem>>, vector<1x64xf32>
    %68 = vector.broadcast %67 : vector<1x64xf32> to vector<64x64xf32>
    %69 = arith.mulf %66, %68 : vector<64x64xf32>
    %c0_80 = arith.constant 0 : index
    %c0_81 = arith.constant 0 : index
    %70 = vector.load %arg4[%c0_80, %c0_81] : memref<1x64xf32, #tpu.memory_space<vmem>>, vector<1x64xf32>
    %71 = vector.broadcast %70 : vector<1x64xf32> to vector<64x64xf32>
    %72 = arith.addf %69, %71 : vector<64x64xf32>
    %cst_82 = arith.constant 2.000000e-01 : f32
    %73 = vector.broadcast %cst_82 : f32 to vector<64x64xf32>
    %74 = arith.mulf %73, %72 : vector<64x64xf32>
    %75 = arith.maximumf %72, %74 : vector<64x64xf32>
    %76 = vector.shape_cast %75 : vector<64x64xf32> to vector<8x8x64xf32>
    %c0_83 = arith.constant 0 : index
    %c0_84 = arith.constant 0 : index
    %c0_85 = arith.constant 0 : index
    %c0_86 = arith.constant 0 : index
    %77 = vector.load %arg5[%c0_83, %c0_84, %c0_85, %c0_86] : memref<1x8x8x64xf32, #tpu.memory_space<vmem>>, vector<1x8x8x64xf32>
    %78 = vector.shape_cast %77 : vector<1x8x8x64xf32> to vector<8x8x64xf32>
    %79 = vector.shape_cast %76 : vector<8x8x64xf32> to vector<1x8x8x64xf32>
    tpu.vector_store %arg5[%c0_83, %c0_84, %c0_85, %c0_86], %79 {strides = array<i32>} : memref<1x8x8x64xf32, #tpu.memory_space<vmem>>, vector<1x8x8x64xf32>,
    return
  }
  func.func @transform_0(%arg0: i32) -> (i32, i32, i32, i32, i32) {
    %c0_i32 = arith.constant 0 : i32
    %c0_i32_0 = arith.constant 0 : i32
    %c0_i32_1 = arith.constant 0 : i32
    %c0_i32_2 = arith.constant 0 : i32
    %c0_i32_3 = arith.constant 0 : i32
    return %arg0, %c0_i32, %c0_i32_0, %c0_i32_1, %c0_i32_2 : i32, i32, i32, i32, i32
  }
  func.func @transform_1(%arg0: i32) -> (i32, i32) {
    %c0_i32 = arith.constant 0 : i32
    %c0_i32_0 = arith.constant 0 : i32
    %c0_i32_1 = arith.constant 0 : i32
    return %c0_i32, %c0_i32_0 : i32, i32
  }
  func.func @transform_2(%arg0: i32) -> (i32, i32) {
    %c0_i32 = arith.constant 0 : i32
    %c0_i32_0 = arith.constant 0 : i32
    %c0_i32_1 = arith.constant 0 : i32
    return %c0_i32, %c0_i32_0 : i32, i32
  }
  func.func @transform_3(%arg0: i32) -> (i32, i32) {
    %c0_i32 = arith.constant 0 : i32
    %c0_i32_0 = arith.constant 0 : i32
    %c0_i32_1 = arith.constant 0 : i32
    return %c0_i32, %c0_i32_0 : i32, i32
  }
  func.func @transform_4(%arg0: i32) -> (i32, i32, i32, i32) {
    %c0_i32 = arith.constant 0 : i32
    %c0_i32_0 = arith.constant 0 : i32
    %c0_i32_1 = arith.constant 0 : i32
    %c0_i32_2 = arith.constant 0 : i32
    return %arg0, %c0_i32, %c0_i32_0, %c0_i32_1 : i32, i32, i32, i32
  }
}

module attributes {stable_mosaic.version = 11 : i64} {
  func.func @_disc_block_kernel(%arg0: i32, %arg1: memref<1x4x5x5x64xf32, #tpu.memory_space<vmem>>, %arg2: memref<1024x128xbf16, #tpu.memory_space<vmem>>, %arg3: memref<1x128xf32, #tpu.memory_space<vmem>>, %arg4: memref<1x128xf32, #tpu.memory_space<vmem>>, %arg5: memref<1x4x4x128xf32, #tpu.memory_space<vmem>>) attributes {dimension_semantics = [#tpu.dimension_semantics<parallel>], iteration_bounds = array<i64: 2>, scalar_prefetch = 0 : i64, scratch_operands = 0 : i64, tpu.core_type = #tpu.core_type<tc>, window_params = [{transform_indices = @transform_0, window_bounds = array<i64: 1, 4, 5, 5, 64>}, {pipeline_mode = #tpu.pipeline_mode<synchronous>, transform_indices = @transform_1, window_bounds = array<i64: 1024, 128>}, {pipeline_mode = #tpu.pipeline_mode<synchronous>, transform_indices = @transform_2, window_bounds = array<i64: 1, 128>}, {pipeline_mode = #tpu.pipeline_mode<synchronous>, transform_indices = @transform_3, window_bounds = array<i64: 1, 128>}, {transform_indices = @transform_4, window_bounds = array<i64: 1, 4, 4, 128>}]} {
    %c0 = arith.constant 0 : index
    %c0_0 = arith.constant 0 : index
    %c0_1 = arith.constant 0 : index
    %c0_2 = arith.constant 0 : index
    %c0_3 = arith.constant 0 : index
    %0 = vector.load %arg1[%c0, %c0_0, %c0_1, %c0_2, %c0_3] : memref<1x4x5x5x64xf32, #tpu.memory_space<vmem>>, vector<1x1x4x4x64xf32>
    %1 = vector.shape_cast %0 : vector<1x1x4x4x64xf32> to vector<4x4x64xf32>
    %2 = vector.shape_cast %1 : vector<4x4x64xf32> to vector<16x64xf32>
    %3 = arith.truncf %2 : vector<16x64xf32> to vector<16x64xbf16>
    %c0_4 = arith.constant 0 : index
    %c1 = arith.constant 1 : index
    %c0_5 = arith.constant 0 : index
    %c0_6 = arith.constant 0 : index
    %c0_7 = arith.constant 0 : index
    %4 = vector.load %arg1[%c0_4, %c1, %c0_5, %c0_6, %c0_7] : memref<1x4x5x5x64xf32, #tpu.memory_space<vmem>>, vector<1x1x4x4x64xf32>
    %5 = vector.shape_cast %4 : vector<1x1x4x4x64xf32> to vector<4x4x64xf32>
    %6 = vector.shape_cast %5 : vector<4x4x64xf32> to vector<16x64xf32>
    %7 = arith.truncf %6 : vector<16x64xf32> to vector<16x64xbf16>
    %c0_8 = arith.constant 0 : index
    %c0_9 = arith.constant 0 : index
    %c0_10 = arith.constant 0 : index
    %c1_11 = arith.constant 1 : index
    %c0_12 = arith.constant 0 : index
    %8 = vector.load %arg1[%c0_8, %c0_9, %c0_10, %c1_11, %c0_12] : memref<1x4x5x5x64xf32, #tpu.memory_space<vmem>>, vector<1x1x4x4x64xf32>
    %9 = vector.shape_cast %8 : vector<1x1x4x4x64xf32> to vector<4x4x64xf32>
    %10 = vector.shape_cast %9 : vector<4x4x64xf32> to vector<16x64xf32>
    %11 = arith.truncf %10 : vector<16x64xf32> to vector<16x64xbf16>
    %c0_13 = arith.constant 0 : index
    %c1_14 = arith.constant 1 : index
    %c0_15 = arith.constant 0 : index
    %c1_16 = arith.constant 1 : index
    %c0_17 = arith.constant 0 : index
    %12 = vector.load %arg1[%c0_13, %c1_14, %c0_15, %c1_16, %c0_17] : memref<1x4x5x5x64xf32, #tpu.memory_space<vmem>>, vector<1x1x4x4x64xf32>
    %13 = vector.shape_cast %12 : vector<1x1x4x4x64xf32> to vector<4x4x64xf32>
    %14 = vector.shape_cast %13 : vector<4x4x64xf32> to vector<16x64xf32>
    %15 = arith.truncf %14 : vector<16x64xf32> to vector<16x64xbf16>
    %c0_18 = arith.constant 0 : index
    %c2 = arith.constant 2 : index
    %c0_19 = arith.constant 0 : index
    %c0_20 = arith.constant 0 : index
    %c0_21 = arith.constant 0 : index
    %16 = vector.load %arg1[%c0_18, %c2, %c0_19, %c0_20, %c0_21] : memref<1x4x5x5x64xf32, #tpu.memory_space<vmem>>, vector<1x1x4x4x64xf32>
    %17 = vector.shape_cast %16 : vector<1x1x4x4x64xf32> to vector<4x4x64xf32>
    %18 = vector.shape_cast %17 : vector<4x4x64xf32> to vector<16x64xf32>
    %19 = arith.truncf %18 : vector<16x64xf32> to vector<16x64xbf16>
    %c0_22 = arith.constant 0 : index
    %c3 = arith.constant 3 : index
    %c0_23 = arith.constant 0 : index
    %c0_24 = arith.constant 0 : index
    %c0_25 = arith.constant 0 : index
    %20 = vector.load %arg1[%c0_22, %c3, %c0_23, %c0_24, %c0_25] : memref<1x4x5x5x64xf32, #tpu.memory_space<vmem>>, vector<1x1x4x4x64xf32>
    %21 = vector.shape_cast %20 : vector<1x1x4x4x64xf32> to vector<4x4x64xf32>
    %22 = vector.shape_cast %21 : vector<4x4x64xf32> to vector<16x64xf32>
    %23 = arith.truncf %22 : vector<16x64xf32> to vector<16x64xbf16>
    %c0_26 = arith.constant 0 : index
    %c2_27 = arith.constant 2 : index
    %c0_28 = arith.constant 0 : index
    %c1_29 = arith.constant 1 : index
    %c0_30 = arith.constant 0 : index
    %24 = vector.load %arg1[%c0_26, %c2_27, %c0_28, %c1_29, %c0_30] : memref<1x4x5x5x64xf32, #tpu.memory_space<vmem>>, vector<1x1x4x4x64xf32>
    %25 = vector.shape_cast %24 : vector<1x1x4x4x64xf32> to vector<4x4x64xf32>
    %26 = vector.shape_cast %25 : vector<4x4x64xf32> to vector<16x64xf32>
    %27 = arith.truncf %26 : vector<16x64xf32> to vector<16x64xbf16>
    %c0_31 = arith.constant 0 : index
    %c3_32 = arith.constant 3 : index
    %c0_33 = arith.constant 0 : index
    %c1_34 = arith.constant 1 : index
    %c0_35 = arith.constant 0 : index
    %28 = vector.load %arg1[%c0_31, %c3_32, %c0_33, %c1_34, %c0_35] : memref<1x4x5x5x64xf32, #tpu.memory_space<vmem>>, vector<1x1x4x4x64xf32>
    %29 = vector.shape_cast %28 : vector<1x1x4x4x64xf32> to vector<4x4x64xf32>
    %30 = vector.shape_cast %29 : vector<4x4x64xf32> to vector<16x64xf32>
    %31 = arith.truncf %30 : vector<16x64xf32> to vector<16x64xbf16>
    %c0_36 = arith.constant 0 : index
    %c0_37 = arith.constant 0 : index
    %c1_38 = arith.constant 1 : index
    %c0_39 = arith.constant 0 : index
    %c0_40 = arith.constant 0 : index
    %32 = vector.load %arg1[%c0_36, %c0_37, %c1_38, %c0_39, %c0_40] : memref<1x4x5x5x64xf32, #tpu.memory_space<vmem>>, vector<1x1x4x4x64xf32>
    %33 = vector.shape_cast %32 : vector<1x1x4x4x64xf32> to vector<4x4x64xf32>
    %34 = vector.shape_cast %33 : vector<4x4x64xf32> to vector<16x64xf32>
    %35 = arith.truncf %34 : vector<16x64xf32> to vector<16x64xbf16>
    %c0_41 = arith.constant 0 : index
    %c1_42 = arith.constant 1 : index
    %c1_43 = arith.constant 1 : index
    %c0_44 = arith.constant 0 : index
    %c0_45 = arith.constant 0 : index
    %36 = vector.load %arg1[%c0_41, %c1_42, %c1_43, %c0_44, %c0_45] : memref<1x4x5x5x64xf32, #tpu.memory_space<vmem>>, vector<1x1x4x4x64xf32>
    %37 = vector.shape_cast %36 : vector<1x1x4x4x64xf32> to vector<4x4x64xf32>
    %38 = vector.shape_cast %37 : vector<4x4x64xf32> to vector<16x64xf32>
    %39 = arith.truncf %38 : vector<16x64xf32> to vector<16x64xbf16>
    %c0_46 = arith.constant 0 : index
    %c0_47 = arith.constant 0 : index
    %c1_48 = arith.constant 1 : index
    %c1_49 = arith.constant 1 : index
    %c0_50 = arith.constant 0 : index
    %40 = vector.load %arg1[%c0_46, %c0_47, %c1_48, %c1_49, %c0_50] : memref<1x4x5x5x64xf32, #tpu.memory_space<vmem>>, vector<1x1x4x4x64xf32>
    %41 = vector.shape_cast %40 : vector<1x1x4x4x64xf32> to vector<4x4x64xf32>
    %42 = vector.shape_cast %41 : vector<4x4x64xf32> to vector<16x64xf32>
    %43 = arith.truncf %42 : vector<16x64xf32> to vector<16x64xbf16>
    %c0_51 = arith.constant 0 : index
    %c1_52 = arith.constant 1 : index
    %c1_53 = arith.constant 1 : index
    %c1_54 = arith.constant 1 : index
    %c0_55 = arith.constant 0 : index
    %44 = vector.load %arg1[%c0_51, %c1_52, %c1_53, %c1_54, %c0_55] : memref<1x4x5x5x64xf32, #tpu.memory_space<vmem>>, vector<1x1x4x4x64xf32>
    %45 = vector.shape_cast %44 : vector<1x1x4x4x64xf32> to vector<4x4x64xf32>
    %46 = vector.shape_cast %45 : vector<4x4x64xf32> to vector<16x64xf32>
    %47 = arith.truncf %46 : vector<16x64xf32> to vector<16x64xbf16>
    %c0_56 = arith.constant 0 : index
    %c2_57 = arith.constant 2 : index
    %c1_58 = arith.constant 1 : index
    %c0_59 = arith.constant 0 : index
    %c0_60 = arith.constant 0 : index
    %48 = vector.load %arg1[%c0_56, %c2_57, %c1_58, %c0_59, %c0_60] : memref<1x4x5x5x64xf32, #tpu.memory_space<vmem>>, vector<1x1x4x4x64xf32>
    %49 = vector.shape_cast %48 : vector<1x1x4x4x64xf32> to vector<4x4x64xf32>
    %50 = vector.shape_cast %49 : vector<4x4x64xf32> to vector<16x64xf32>
    %51 = arith.truncf %50 : vector<16x64xf32> to vector<16x64xbf16>
    %c0_61 = arith.constant 0 : index
    %c3_62 = arith.constant 3 : index
    %c1_63 = arith.constant 1 : index
    %c0_64 = arith.constant 0 : index
    %c0_65 = arith.constant 0 : index
    %52 = vector.load %arg1[%c0_61, %c3_62, %c1_63, %c0_64, %c0_65] : memref<1x4x5x5x64xf32, #tpu.memory_space<vmem>>, vector<1x1x4x4x64xf32>
    %53 = vector.shape_cast %52 : vector<1x1x4x4x64xf32> to vector<4x4x64xf32>
    %54 = vector.shape_cast %53 : vector<4x4x64xf32> to vector<16x64xf32>
    %55 = arith.truncf %54 : vector<16x64xf32> to vector<16x64xbf16>
    %c0_66 = arith.constant 0 : index
    %c2_67 = arith.constant 2 : index
    %c1_68 = arith.constant 1 : index
    %c1_69 = arith.constant 1 : index
    %c0_70 = arith.constant 0 : index
    %56 = vector.load %arg1[%c0_66, %c2_67, %c1_68, %c1_69, %c0_70] : memref<1x4x5x5x64xf32, #tpu.memory_space<vmem>>, vector<1x1x4x4x64xf32>
    %57 = vector.shape_cast %56 : vector<1x1x4x4x64xf32> to vector<4x4x64xf32>
    %58 = vector.shape_cast %57 : vector<4x4x64xf32> to vector<16x64xf32>
    %59 = arith.truncf %58 : vector<16x64xf32> to vector<16x64xbf16>
    %c0_71 = arith.constant 0 : index
    %c3_72 = arith.constant 3 : index
    %c1_73 = arith.constant 1 : index
    %c1_74 = arith.constant 1 : index
    %c0_75 = arith.constant 0 : index
    %60 = vector.load %arg1[%c0_71, %c3_72, %c1_73, %c1_74, %c0_75] : memref<1x4x5x5x64xf32, #tpu.memory_space<vmem>>, vector<1x1x4x4x64xf32>
    %61 = vector.shape_cast %60 : vector<1x1x4x4x64xf32> to vector<4x4x64xf32>
    %62 = vector.shape_cast %61 : vector<4x4x64xf32> to vector<16x64xf32>
    %63 = arith.truncf %62 : vector<16x64xf32> to vector<16x64xbf16>
    %64 = tpu.concatenate %3, %7, %11, %15, %19, %23, %27, %31, %35, %39, %43, %47, %51, %55, %59, %63 in 1 : vector<16x64xbf16>, vector<16x64xbf16>, vector<16x64xbf16>, vector<16x64xbf16>, vector<16x64xbf16>, vector<16x64xbf16>, vector<16x64xbf16>, vector<16x64xbf16>, vector<16x64xbf16>, vector<16x64xbf16>, vector<16x64xbf16>, vector<16x64xbf16>, vector<16x64xbf16>, vector<16x64xbf16>, vector<16x64xbf16>, vector<16x64xbf16> -> vector<16x1024xbf16>
    %c0_76 = arith.constant 0 : index
    %c0_77 = arith.constant 0 : index
    %65 = vector.load %arg2[%c0_76, %c0_77] : memref<1024x128xbf16, #tpu.memory_space<vmem>>, vector<1024x128xbf16>
    %cst = arith.constant dense<0.000000e+00> : vector<16x128xf32>
    %66 = tpu.matmul %64, %65, %cst {dimension_numbers = #tpu.dot_dimension_numbers<[1], [0], [0], [1], [0, 0, 1, 1], [], []>} : vector<16x1024xbf16>, vector<1024x128xbf16>, vector<16x128xf32> -> vector<16x128xf32>
    %c0_78 = arith.constant 0 : index
    %c0_79 = arith.constant 0 : index
    %67 = vector.load %arg3[%c0_78, %c0_79] : memref<1x128xf32, #tpu.memory_space<vmem>>, vector<1x128xf32>
    %68 = vector.broadcast %67 : vector<1x128xf32> to vector<16x128xf32>
    %69 = arith.mulf %66, %68 : vector<16x128xf32>
    %c0_80 = arith.constant 0 : index
    %c0_81 = arith.constant 0 : index
    %70 = vector.load %arg4[%c0_80, %c0_81] : memref<1x128xf32, #tpu.memory_space<vmem>>, vector<1x128xf32>
    %71 = vector.broadcast %70 : vector<1x128xf32> to vector<16x128xf32>
    %72 = arith.addf %69, %71 : vector<16x128xf32>
    %cst_82 = arith.constant 2.000000e-01 : f32
    %73 = vector.broadcast %cst_82 : f32 to vector<16x128xf32>
    %74 = arith.mulf %73, %72 : vector<16x128xf32>
    %75 = arith.maximumf %72, %74 : vector<16x128xf32>
    %76 = vector.shape_cast %75 : vector<16x128xf32> to vector<4x4x128xf32>
    %c0_83 = arith.constant 0 : index
    %c0_84 = arith.constant 0 : index
    %c0_85 = arith.constant 0 : index
    %c0_86 = arith.constant 0 : index
    %77 = vector.load %arg5[%c0_83, %c0_84, %c0_85, %c0_86] : memref<1x4x4x128xf32, #tpu.memory_space<vmem>>, vector<1x4x4x128xf32>
    %78 = vector.shape_cast %77 : vector<1x4x4x128xf32> to vector<4x4x128xf32>
    %79 = vector.shape_cast %76 : vector<4x4x128xf32> to vector<1x4x4x128xf32>
    tpu.vector_store %arg5[%c0_83, %c0_84, %c0_85, %c0_86], %79 {strides = array<i32>} : memref<1x4x4x128xf32, #tpu.memory_space<vmem>>, vector<1x4x4x128xf32>,
    return
  }
  func.func @transform_0(%arg0: i32) -> (i32, i32, i32, i32, i32) {
    %c0_i32 = arith.constant 0 : i32
    %c0_i32_0 = arith.constant 0 : i32
    %c0_i32_1 = arith.constant 0 : i32
    %c0_i32_2 = arith.constant 0 : i32
    %c0_i32_3 = arith.constant 0 : i32
    return %arg0, %c0_i32, %c0_i32_0, %c0_i32_1, %c0_i32_2 : i32, i32, i32, i32, i32
  }
  func.func @transform_1(%arg0: i32) -> (i32, i32) {
    %c0_i32 = arith.constant 0 : i32
    %c0_i32_0 = arith.constant 0 : i32
    %c0_i32_1 = arith.constant 0 : i32
    return %c0_i32, %c0_i32_0 : i32, i32
  }
  func.func @transform_2(%arg0: i32) -> (i32, i32) {
    %c0_i32 = arith.constant 0 : i32
    %c0_i32_0 = arith.constant 0 : i32
    %c0_i32_1 = arith.constant 0 : i32
    return %c0_i32, %c0_i32_0 : i32, i32
  }
  func.func @transform_3(%arg0: i32) -> (i32, i32) {
    %c0_i32 = arith.constant 0 : i32
    %c0_i32_0 = arith.constant 0 : i32
    %c0_i32_1 = arith.constant 0 : i32
    return %c0_i32, %c0_i32_0 : i32, i32
  }
  func.func @transform_4(%arg0: i32) -> (i32, i32, i32, i32) {
    %c0_i32 = arith.constant 0 : i32
    %c0_i32_0 = arith.constant 0 : i32
    %c0_i32_1 = arith.constant 0 : i32
    %c0_i32_2 = arith.constant 0 : i32
    return %arg0, %c0_i32, %c0_i32_0, %c0_i32_1 : i32, i32, i32, i32
  }
}

module attributes {stable_mosaic.version = 11 : i64} {
  func.func @_disc_block_kernel(%arg0: i32, %arg1: memref<1x4x3x3x128xf32, #tpu.memory_space<vmem>>, %arg2: memref<2048x256xbf16, #tpu.memory_space<vmem>>, %arg3: memref<1x256xf32, #tpu.memory_space<vmem>>, %arg4: memref<1x256xf32, #tpu.memory_space<vmem>>, %arg5: memref<1x2x2x256xf32, #tpu.memory_space<vmem>>) attributes {dimension_semantics = [#tpu.dimension_semantics<parallel>], iteration_bounds = array<i64: 2>, scalar_prefetch = 0 : i64, scratch_operands = 0 : i64, tpu.core_type = #tpu.core_type<tc>, window_params = [{transform_indices = @transform_0, window_bounds = array<i64: 1, 4, 3, 3, 128>}, {pipeline_mode = #tpu.pipeline_mode<synchronous>, transform_indices = @transform_1, window_bounds = array<i64: 2048, 256>}, {pipeline_mode = #tpu.pipeline_mode<synchronous>, transform_indices = @transform_2, window_bounds = array<i64: 1, 256>}, {pipeline_mode = #tpu.pipeline_mode<synchronous>, transform_indices = @transform_3, window_bounds = array<i64: 1, 256>}, {transform_indices = @transform_4, window_bounds = array<i64: 1, 2, 2, 256>}]} {
    %c0 = arith.constant 0 : index
    %c0_0 = arith.constant 0 : index
    %c0_1 = arith.constant 0 : index
    %c0_2 = arith.constant 0 : index
    %c0_3 = arith.constant 0 : index
    %0 = vector.load %arg1[%c0, %c0_0, %c0_1, %c0_2, %c0_3] : memref<1x4x3x3x128xf32, #tpu.memory_space<vmem>>, vector<1x1x2x2x128xf32>
    %1 = vector.shape_cast %0 : vector<1x1x2x2x128xf32> to vector<2x2x128xf32>
    %2 = vector.shape_cast %1 : vector<2x2x128xf32> to vector<4x128xf32>
    %3 = arith.truncf %2 : vector<4x128xf32> to vector<4x128xbf16>
    %c0_4 = arith.constant 0 : index
    %c1 = arith.constant 1 : index
    %c0_5 = arith.constant 0 : index
    %c0_6 = arith.constant 0 : index
    %c0_7 = arith.constant 0 : index
    %4 = vector.load %arg1[%c0_4, %c1, %c0_5, %c0_6, %c0_7] : memref<1x4x3x3x128xf32, #tpu.memory_space<vmem>>, vector<1x1x2x2x128xf32>
    %5 = vector.shape_cast %4 : vector<1x1x2x2x128xf32> to vector<2x2x128xf32>
    %6 = vector.shape_cast %5 : vector<2x2x128xf32> to vector<4x128xf32>
    %7 = arith.truncf %6 : vector<4x128xf32> to vector<4x128xbf16>
    %c0_8 = arith.constant 0 : index
    %c0_9 = arith.constant 0 : index
    %c0_10 = arith.constant 0 : index
    %c1_11 = arith.constant 1 : index
    %c0_12 = arith.constant 0 : index
    %8 = vector.load %arg1[%c0_8, %c0_9, %c0_10, %c1_11, %c0_12] : memref<1x4x3x3x128xf32, #tpu.memory_space<vmem>>, vector<1x1x2x2x128xf32>
    %9 = vector.shape_cast %8 : vector<1x1x2x2x128xf32> to vector<2x2x128xf32>
    %10 = vector.shape_cast %9 : vector<2x2x128xf32> to vector<4x128xf32>
    %11 = arith.truncf %10 : vector<4x128xf32> to vector<4x128xbf16>
    %c0_13 = arith.constant 0 : index
    %c1_14 = arith.constant 1 : index
    %c0_15 = arith.constant 0 : index
    %c1_16 = arith.constant 1 : index
    %c0_17 = arith.constant 0 : index
    %12 = vector.load %arg1[%c0_13, %c1_14, %c0_15, %c1_16, %c0_17] : memref<1x4x3x3x128xf32, #tpu.memory_space<vmem>>, vector<1x1x2x2x128xf32>
    %13 = vector.shape_cast %12 : vector<1x1x2x2x128xf32> to vector<2x2x128xf32>
    %14 = vector.shape_cast %13 : vector<2x2x128xf32> to vector<4x128xf32>
    %15 = arith.truncf %14 : vector<4x128xf32> to vector<4x128xbf16>
    %c0_18 = arith.constant 0 : index
    %c2 = arith.constant 2 : index
    %c0_19 = arith.constant 0 : index
    %c0_20 = arith.constant 0 : index
    %c0_21 = arith.constant 0 : index
    %16 = vector.load %arg1[%c0_18, %c2, %c0_19, %c0_20, %c0_21] : memref<1x4x3x3x128xf32, #tpu.memory_space<vmem>>, vector<1x1x2x2x128xf32>
    %17 = vector.shape_cast %16 : vector<1x1x2x2x128xf32> to vector<2x2x128xf32>
    %18 = vector.shape_cast %17 : vector<2x2x128xf32> to vector<4x128xf32>
    %19 = arith.truncf %18 : vector<4x128xf32> to vector<4x128xbf16>
    %c0_22 = arith.constant 0 : index
    %c3 = arith.constant 3 : index
    %c0_23 = arith.constant 0 : index
    %c0_24 = arith.constant 0 : index
    %c0_25 = arith.constant 0 : index
    %20 = vector.load %arg1[%c0_22, %c3, %c0_23, %c0_24, %c0_25] : memref<1x4x3x3x128xf32, #tpu.memory_space<vmem>>, vector<1x1x2x2x128xf32>
    %21 = vector.shape_cast %20 : vector<1x1x2x2x128xf32> to vector<2x2x128xf32>
    %22 = vector.shape_cast %21 : vector<2x2x128xf32> to vector<4x128xf32>
    %23 = arith.truncf %22 : vector<4x128xf32> to vector<4x128xbf16>
    %c0_26 = arith.constant 0 : index
    %c2_27 = arith.constant 2 : index
    %c0_28 = arith.constant 0 : index
    %c1_29 = arith.constant 1 : index
    %c0_30 = arith.constant 0 : index
    %24 = vector.load %arg1[%c0_26, %c2_27, %c0_28, %c1_29, %c0_30] : memref<1x4x3x3x128xf32, #tpu.memory_space<vmem>>, vector<1x1x2x2x128xf32>
    %25 = vector.shape_cast %24 : vector<1x1x2x2x128xf32> to vector<2x2x128xf32>
    %26 = vector.shape_cast %25 : vector<2x2x128xf32> to vector<4x128xf32>
    %27 = arith.truncf %26 : vector<4x128xf32> to vector<4x128xbf16>
    %c0_31 = arith.constant 0 : index
    %c3_32 = arith.constant 3 : index
    %c0_33 = arith.constant 0 : index
    %c1_34 = arith.constant 1 : index
    %c0_35 = arith.constant 0 : index
    %28 = vector.load %arg1[%c0_31, %c3_32, %c0_33, %c1_34, %c0_35] : memref<1x4x3x3x128xf32, #tpu.memory_space<vmem>>, vector<1x1x2x2x128xf32>
    %29 = vector.shape_cast %28 : vector<1x1x2x2x128xf32> to vector<2x2x128xf32>
    %30 = vector.shape_cast %29 : vector<2x2x128xf32> to vector<4x128xf32>
    %31 = arith.truncf %30 : vector<4x128xf32> to vector<4x128xbf16>
    %c0_36 = arith.constant 0 : index
    %c0_37 = arith.constant 0 : index
    %c1_38 = arith.constant 1 : index
    %c0_39 = arith.constant 0 : index
    %c0_40 = arith.constant 0 : index
    %32 = vector.load %arg1[%c0_36, %c0_37, %c1_38, %c0_39, %c0_40] : memref<1x4x3x3x128xf32, #tpu.memory_space<vmem>>, vector<1x1x2x2x128xf32>
    %33 = vector.shape_cast %32 : vector<1x1x2x2x128xf32> to vector<2x2x128xf32>
    %34 = vector.shape_cast %33 : vector<2x2x128xf32> to vector<4x128xf32>
    %35 = arith.truncf %34 : vector<4x128xf32> to vector<4x128xbf16>
    %c0_41 = arith.constant 0 : index
    %c1_42 = arith.constant 1 : index
    %c1_43 = arith.constant 1 : index
    %c0_44 = arith.constant 0 : index
    %c0_45 = arith.constant 0 : index
    %36 = vector.load %arg1[%c0_41, %c1_42, %c1_43, %c0_44, %c0_45] : memref<1x4x3x3x128xf32, #tpu.memory_space<vmem>>, vector<1x1x2x2x128xf32>
    %37 = vector.shape_cast %36 : vector<1x1x2x2x128xf32> to vector<2x2x128xf32>
    %38 = vector.shape_cast %37 : vector<2x2x128xf32> to vector<4x128xf32>
    %39 = arith.truncf %38 : vector<4x128xf32> to vector<4x128xbf16>
    %c0_46 = arith.constant 0 : index
    %c0_47 = arith.constant 0 : index
    %c1_48 = arith.constant 1 : index
    %c1_49 = arith.constant 1 : index
    %c0_50 = arith.constant 0 : index
    %40 = vector.load %arg1[%c0_46, %c0_47, %c1_48, %c1_49, %c0_50] : memref<1x4x3x3x128xf32, #tpu.memory_space<vmem>>, vector<1x1x2x2x128xf32>
    %41 = vector.shape_cast %40 : vector<1x1x2x2x128xf32> to vector<2x2x128xf32>
    %42 = vector.shape_cast %41 : vector<2x2x128xf32> to vector<4x128xf32>
    %43 = arith.truncf %42 : vector<4x128xf32> to vector<4x128xbf16>
    %c0_51 = arith.constant 0 : index
    %c1_52 = arith.constant 1 : index
    %c1_53 = arith.constant 1 : index
    %c1_54 = arith.constant 1 : index
    %c0_55 = arith.constant 0 : index
    %44 = vector.load %arg1[%c0_51, %c1_52, %c1_53, %c1_54, %c0_55] : memref<1x4x3x3x128xf32, #tpu.memory_space<vmem>>, vector<1x1x2x2x128xf32>
    %45 = vector.shape_cast %44 : vector<1x1x2x2x128xf32> to vector<2x2x128xf32>
    %46 = vector.shape_cast %45 : vector<2x2x128xf32> to vector<4x128xf32>
    %47 = arith.truncf %46 : vector<4x128xf32> to vector<4x128xbf16>
    %c0_56 = arith.constant 0 : index
    %c2_57 = arith.constant 2 : index
    %c1_58 = arith.constant 1 : index
    %c0_59 = arith.constant 0 : index
    %c0_60 = arith.constant 0 : index
    %48 = vector.load %arg1[%c0_56, %c2_57, %c1_58, %c0_59, %c0_60] : memref<1x4x3x3x128xf32, #tpu.memory_space<vmem>>, vector<1x1x2x2x128xf32>
    %49 = vector.shape_cast %48 : vector<1x1x2x2x128xf32> to vector<2x2x128xf32>
    %50 = vector.shape_cast %49 : vector<2x2x128xf32> to vector<4x128xf32>
    %51 = arith.truncf %50 : vector<4x128xf32> to vector<4x128xbf16>
    %c0_61 = arith.constant 0 : index
    %c3_62 = arith.constant 3 : index
    %c1_63 = arith.constant 1 : index
    %c0_64 = arith.constant 0 : index
    %c0_65 = arith.constant 0 : index
    %52 = vector.load %arg1[%c0_61, %c3_62, %c1_63, %c0_64, %c0_65] : memref<1x4x3x3x128xf32, #tpu.memory_space<vmem>>, vector<1x1x2x2x128xf32>
    %53 = vector.shape_cast %52 : vector<1x1x2x2x128xf32> to vector<2x2x128xf32>
    %54 = vector.shape_cast %53 : vector<2x2x128xf32> to vector<4x128xf32>
    %55 = arith.truncf %54 : vector<4x128xf32> to vector<4x128xbf16>
    %c0_66 = arith.constant 0 : index
    %c2_67 = arith.constant 2 : index
    %c1_68 = arith.constant 1 : index
    %c1_69 = arith.constant 1 : index
    %c0_70 = arith.constant 0 : index
    %56 = vector.load %arg1[%c0_66, %c2_67, %c1_68, %c1_69, %c0_70] : memref<1x4x3x3x128xf32, #tpu.memory_space<vmem>>, vector<1x1x2x2x128xf32>
    %57 = vector.shape_cast %56 : vector<1x1x2x2x128xf32> to vector<2x2x128xf32>
    %58 = vector.shape_cast %57 : vector<2x2x128xf32> to vector<4x128xf32>
    %59 = arith.truncf %58 : vector<4x128xf32> to vector<4x128xbf16>
    %c0_71 = arith.constant 0 : index
    %c3_72 = arith.constant 3 : index
    %c1_73 = arith.constant 1 : index
    %c1_74 = arith.constant 1 : index
    %c0_75 = arith.constant 0 : index
    %60 = vector.load %arg1[%c0_71, %c3_72, %c1_73, %c1_74, %c0_75] : memref<1x4x3x3x128xf32, #tpu.memory_space<vmem>>, vector<1x1x2x2x128xf32>
    %61 = vector.shape_cast %60 : vector<1x1x2x2x128xf32> to vector<2x2x128xf32>
    %62 = vector.shape_cast %61 : vector<2x2x128xf32> to vector<4x128xf32>
    %63 = arith.truncf %62 : vector<4x128xf32> to vector<4x128xbf16>
    %64 = tpu.concatenate %3, %7, %11, %15, %19, %23, %27, %31, %35, %39, %43, %47, %51, %55, %59, %63 in 1 : vector<4x128xbf16>, vector<4x128xbf16>, vector<4x128xbf16>, vector<4x128xbf16>, vector<4x128xbf16>, vector<4x128xbf16>, vector<4x128xbf16>, vector<4x128xbf16>, vector<4x128xbf16>, vector<4x128xbf16>, vector<4x128xbf16>, vector<4x128xbf16>, vector<4x128xbf16>, vector<4x128xbf16>, vector<4x128xbf16>, vector<4x128xbf16> -> vector<4x2048xbf16>
    %c0_76 = arith.constant 0 : index
    %c0_77 = arith.constant 0 : index
    %65 = vector.load %arg2[%c0_76, %c0_77] : memref<2048x256xbf16, #tpu.memory_space<vmem>>, vector<2048x256xbf16>
    %cst = arith.constant dense<0.000000e+00> : vector<4x256xf32>
    %66 = tpu.matmul %64, %65, %cst {dimension_numbers = #tpu.dot_dimension_numbers<[1], [0], [0], [1], [0, 0, 1, 1], [], []>} : vector<4x2048xbf16>, vector<2048x256xbf16>, vector<4x256xf32> -> vector<4x256xf32>
    %c0_78 = arith.constant 0 : index
    %c0_79 = arith.constant 0 : index
    %67 = vector.load %arg3[%c0_78, %c0_79] : memref<1x256xf32, #tpu.memory_space<vmem>>, vector<1x256xf32>
    %68 = vector.broadcast %67 : vector<1x256xf32> to vector<4x256xf32>
    %69 = arith.mulf %66, %68 : vector<4x256xf32>
    %c0_80 = arith.constant 0 : index
    %c0_81 = arith.constant 0 : index
    %70 = vector.load %arg4[%c0_80, %c0_81] : memref<1x256xf32, #tpu.memory_space<vmem>>, vector<1x256xf32>
    %71 = vector.broadcast %70 : vector<1x256xf32> to vector<4x256xf32>
    %72 = arith.addf %69, %71 : vector<4x256xf32>
    %cst_82 = arith.constant 2.000000e-01 : f32
    %73 = vector.broadcast %cst_82 : f32 to vector<4x256xf32>
    %74 = arith.mulf %73, %72 : vector<4x256xf32>
    %75 = arith.maximumf %72, %74 : vector<4x256xf32>
    %76 = vector.shape_cast %75 : vector<4x256xf32> to vector<2x2x256xf32>
    %c0_83 = arith.constant 0 : index
    %c0_84 = arith.constant 0 : index
    %c0_85 = arith.constant 0 : index
    %c0_86 = arith.constant 0 : index
    %77 = vector.load %arg5[%c0_83, %c0_84, %c0_85, %c0_86] : memref<1x2x2x256xf32, #tpu.memory_space<vmem>>, vector<1x2x2x256xf32>
    %78 = vector.shape_cast %77 : vector<1x2x2x256xf32> to vector<2x2x256xf32>
    %79 = vector.shape_cast %76 : vector<2x2x256xf32> to vector<1x2x2x256xf32>
    tpu.vector_store %arg5[%c0_83, %c0_84, %c0_85, %c0_86], %79 {strides = array<i32>} : memref<1x2x2x256xf32, #tpu.memory_space<vmem>>, vector<1x2x2x256xf32>,
    return
  }
  func.func @transform_0(%arg0: i32) -> (i32, i32, i32, i32, i32) {
    %c0_i32 = arith.constant 0 : i32
    %c0_i32_0 = arith.constant 0 : i32
    %c0_i32_1 = arith.constant 0 : i32
    %c0_i32_2 = arith.constant 0 : i32
    %c0_i32_3 = arith.constant 0 : i32
    return %arg0, %c0_i32, %c0_i32_0, %c0_i32_1, %c0_i32_2 : i32, i32, i32, i32, i32
  }
  func.func @transform_1(%arg0: i32) -> (i32, i32) {
    %c0_i32 = arith.constant 0 : i32
    %c0_i32_0 = arith.constant 0 : i32
    %c0_i32_1 = arith.constant 0 : i32
    return %c0_i32, %c0_i32_0 : i32, i32
  }
  func.func @transform_2(%arg0: i32) -> (i32, i32) {
    %c0_i32 = arith.constant 0 : i32
    %c0_i32_0 = arith.constant 0 : i32
    %c0_i32_1 = arith.constant 0 : i32
    return %c0_i32, %c0_i32_0 : i32, i32
  }
  func.func @transform_3(%arg0: i32) -> (i32, i32) {
    %c0_i32 = arith.constant 0 : i32
    %c0_i32_0 = arith.constant 0 : i32
    %c0_i32_1 = arith.constant 0 : i32
    return %c0_i32, %c0_i32_0 : i32, i32
  }
  func.func @transform_4(%arg0: i32) -> (i32, i32, i32, i32) {
    %c0_i32 = arith.constant 0 : i32
    %c0_i32_0 = arith.constant 0 : i32
    %c0_i32_1 = arith.constant 0 : i32
    %c0_i32_2 = arith.constant 0 : i32
    return %arg0, %c0_i32, %c0_i32_0, %c0_i32_1 : i32, i32, i32, i32
  }
}

module attributes {stable_mosaic.version = 11 : i64} {
  func.func @_disc_final_kernel(%arg0: i32, %arg1: memref<1x5x5x256xf32, #tpu.memory_space<vmem>>, %arg2: memref<4096x1xbf16, #tpu.memory_space<vmem>>, %arg3: memref<1x2x2x1xf32, #tpu.memory_space<vmem>>) attributes {dimension_semantics = [#tpu.dimension_semantics<parallel>], iteration_bounds = array<i64: 2>, scalar_prefetch = 0 : i64, scratch_operands = 0 : i64, tpu.core_type = #tpu.core_type<tc>, window_params = [{transform_indices = @transform_0, window_bounds = array<i64: 1, 5, 5, 256>}, {pipeline_mode = #tpu.pipeline_mode<synchronous>, transform_indices = @transform_1, window_bounds = array<i64: 4096, 1>}, {transform_indices = @transform_2, window_bounds = array<i64: 1, 2, 2, 1>}]} {
    %c0 = arith.constant 0 : index
    %c0_0 = arith.constant 0 : index
    %c0_1 = arith.constant 0 : index
    %c0_2 = arith.constant 0 : index
    %0 = vector.load %arg1[%c0, %c0_0, %c0_1, %c0_2] : memref<1x5x5x256xf32, #tpu.memory_space<vmem>>, vector<1x2x2x256xf32>
    %1 = vector.shape_cast %0 : vector<1x2x2x256xf32> to vector<2x2x256xf32>
    %2 = vector.shape_cast %1 : vector<2x2x256xf32> to vector<4x256xf32>
    %3 = arith.truncf %2 : vector<4x256xf32> to vector<4x256xbf16>
    %c0_3 = arith.constant 0 : index
    %c0_4 = arith.constant 0 : index
    %c1 = arith.constant 1 : index
    %c0_5 = arith.constant 0 : index
    %4 = vector.load %arg1[%c0_3, %c0_4, %c1, %c0_5] : memref<1x5x5x256xf32, #tpu.memory_space<vmem>>, vector<1x2x2x256xf32>
    %5 = vector.shape_cast %4 : vector<1x2x2x256xf32> to vector<2x2x256xf32>
    %6 = vector.shape_cast %5 : vector<2x2x256xf32> to vector<4x256xf32>
    %7 = arith.truncf %6 : vector<4x256xf32> to vector<4x256xbf16>
    %c0_6 = arith.constant 0 : index
    %c0_7 = arith.constant 0 : index
    %c2 = arith.constant 2 : index
    %c0_8 = arith.constant 0 : index
    %8 = vector.load %arg1[%c0_6, %c0_7, %c2, %c0_8] : memref<1x5x5x256xf32, #tpu.memory_space<vmem>>, vector<1x2x2x256xf32>
    %9 = vector.shape_cast %8 : vector<1x2x2x256xf32> to vector<2x2x256xf32>
    %10 = vector.shape_cast %9 : vector<2x2x256xf32> to vector<4x256xf32>
    %11 = arith.truncf %10 : vector<4x256xf32> to vector<4x256xbf16>
    %c0_9 = arith.constant 0 : index
    %c0_10 = arith.constant 0 : index
    %c3 = arith.constant 3 : index
    %c0_11 = arith.constant 0 : index
    %12 = vector.load %arg1[%c0_9, %c0_10, %c3, %c0_11] : memref<1x5x5x256xf32, #tpu.memory_space<vmem>>, vector<1x2x2x256xf32>
    %13 = vector.shape_cast %12 : vector<1x2x2x256xf32> to vector<2x2x256xf32>
    %14 = vector.shape_cast %13 : vector<2x2x256xf32> to vector<4x256xf32>
    %15 = arith.truncf %14 : vector<4x256xf32> to vector<4x256xbf16>
    %c0_12 = arith.constant 0 : index
    %c1_13 = arith.constant 1 : index
    %c0_14 = arith.constant 0 : index
    %c0_15 = arith.constant 0 : index
    %16 = vector.load %arg1[%c0_12, %c1_13, %c0_14, %c0_15] : memref<1x5x5x256xf32, #tpu.memory_space<vmem>>, vector<1x2x2x256xf32>
    %17 = vector.shape_cast %16 : vector<1x2x2x256xf32> to vector<2x2x256xf32>
    %18 = vector.shape_cast %17 : vector<2x2x256xf32> to vector<4x256xf32>
    %19 = arith.truncf %18 : vector<4x256xf32> to vector<4x256xbf16>
    %c0_16 = arith.constant 0 : index
    %c1_17 = arith.constant 1 : index
    %c1_18 = arith.constant 1 : index
    %c0_19 = arith.constant 0 : index
    %20 = vector.load %arg1[%c0_16, %c1_17, %c1_18, %c0_19] : memref<1x5x5x256xf32, #tpu.memory_space<vmem>>, vector<1x2x2x256xf32>
    %21 = vector.shape_cast %20 : vector<1x2x2x256xf32> to vector<2x2x256xf32>
    %22 = vector.shape_cast %21 : vector<2x2x256xf32> to vector<4x256xf32>
    %23 = arith.truncf %22 : vector<4x256xf32> to vector<4x256xbf16>
    %c0_20 = arith.constant 0 : index
    %c1_21 = arith.constant 1 : index
    %c2_22 = arith.constant 2 : index
    %c0_23 = arith.constant 0 : index
    %24 = vector.load %arg1[%c0_20, %c1_21, %c2_22, %c0_23] : memref<1x5x5x256xf32, #tpu.memory_space<vmem>>, vector<1x2x2x256xf32>
    %25 = vector.shape_cast %24 : vector<1x2x2x256xf32> to vector<2x2x256xf32>
    %26 = vector.shape_cast %25 : vector<2x2x256xf32> to vector<4x256xf32>
    %27 = arith.truncf %26 : vector<4x256xf32> to vector<4x256xbf16>
    %c0_24 = arith.constant 0 : index
    %c1_25 = arith.constant 1 : index
    %c3_26 = arith.constant 3 : index
    %c0_27 = arith.constant 0 : index
    %28 = vector.load %arg1[%c0_24, %c1_25, %c3_26, %c0_27] : memref<1x5x5x256xf32, #tpu.memory_space<vmem>>, vector<1x2x2x256xf32>
    %29 = vector.shape_cast %28 : vector<1x2x2x256xf32> to vector<2x2x256xf32>
    %30 = vector.shape_cast %29 : vector<2x2x256xf32> to vector<4x256xf32>
    %31 = arith.truncf %30 : vector<4x256xf32> to vector<4x256xbf16>
    %c0_28 = arith.constant 0 : index
    %c2_29 = arith.constant 2 : index
    %c0_30 = arith.constant 0 : index
    %c0_31 = arith.constant 0 : index
    %32 = vector.load %arg1[%c0_28, %c2_29, %c0_30, %c0_31] : memref<1x5x5x256xf32, #tpu.memory_space<vmem>>, vector<1x2x2x256xf32>
    %33 = vector.shape_cast %32 : vector<1x2x2x256xf32> to vector<2x2x256xf32>
    %34 = vector.shape_cast %33 : vector<2x2x256xf32> to vector<4x256xf32>
    %35 = arith.truncf %34 : vector<4x256xf32> to vector<4x256xbf16>
    %c0_32 = arith.constant 0 : index
    %c2_33 = arith.constant 2 : index
    %c1_34 = arith.constant 1 : index
    %c0_35 = arith.constant 0 : index
    %36 = vector.load %arg1[%c0_32, %c2_33, %c1_34, %c0_35] : memref<1x5x5x256xf32, #tpu.memory_space<vmem>>, vector<1x2x2x256xf32>
    %37 = vector.shape_cast %36 : vector<1x2x2x256xf32> to vector<2x2x256xf32>
    %38 = vector.shape_cast %37 : vector<2x2x256xf32> to vector<4x256xf32>
    %39 = arith.truncf %38 : vector<4x256xf32> to vector<4x256xbf16>
    %c0_36 = arith.constant 0 : index
    %c2_37 = arith.constant 2 : index
    %c2_38 = arith.constant 2 : index
    %c0_39 = arith.constant 0 : index
    %40 = vector.load %arg1[%c0_36, %c2_37, %c2_38, %c0_39] : memref<1x5x5x256xf32, #tpu.memory_space<vmem>>, vector<1x2x2x256xf32>
    %41 = vector.shape_cast %40 : vector<1x2x2x256xf32> to vector<2x2x256xf32>
    %42 = vector.shape_cast %41 : vector<2x2x256xf32> to vector<4x256xf32>
    %43 = arith.truncf %42 : vector<4x256xf32> to vector<4x256xbf16>
    %c0_40 = arith.constant 0 : index
    %c2_41 = arith.constant 2 : index
    %c3_42 = arith.constant 3 : index
    %c0_43 = arith.constant 0 : index
    %44 = vector.load %arg1[%c0_40, %c2_41, %c3_42, %c0_43] : memref<1x5x5x256xf32, #tpu.memory_space<vmem>>, vector<1x2x2x256xf32>
    %45 = vector.shape_cast %44 : vector<1x2x2x256xf32> to vector<2x2x256xf32>
    %46 = vector.shape_cast %45 : vector<2x2x256xf32> to vector<4x256xf32>
    %47 = arith.truncf %46 : vector<4x256xf32> to vector<4x256xbf16>
    %c0_44 = arith.constant 0 : index
    %c3_45 = arith.constant 3 : index
    %c0_46 = arith.constant 0 : index
    %c0_47 = arith.constant 0 : index
    %48 = vector.load %arg1[%c0_44, %c3_45, %c0_46, %c0_47] : memref<1x5x5x256xf32, #tpu.memory_space<vmem>>, vector<1x2x2x256xf32>
    %49 = vector.shape_cast %48 : vector<1x2x2x256xf32> to vector<2x2x256xf32>
    %50 = vector.shape_cast %49 : vector<2x2x256xf32> to vector<4x256xf32>
    %51 = arith.truncf %50 : vector<4x256xf32> to vector<4x256xbf16>
    %c0_48 = arith.constant 0 : index
    %c3_49 = arith.constant 3 : index
    %c1_50 = arith.constant 1 : index
    %c0_51 = arith.constant 0 : index
    %52 = vector.load %arg1[%c0_48, %c3_49, %c1_50, %c0_51] : memref<1x5x5x256xf32, #tpu.memory_space<vmem>>, vector<1x2x2x256xf32>
    %53 = vector.shape_cast %52 : vector<1x2x2x256xf32> to vector<2x2x256xf32>
    %54 = vector.shape_cast %53 : vector<2x2x256xf32> to vector<4x256xf32>
    %55 = arith.truncf %54 : vector<4x256xf32> to vector<4x256xbf16>
    %c0_52 = arith.constant 0 : index
    %c3_53 = arith.constant 3 : index
    %c2_54 = arith.constant 2 : index
    %c0_55 = arith.constant 0 : index
    %56 = vector.load %arg1[%c0_52, %c3_53, %c2_54, %c0_55] : memref<1x5x5x256xf32, #tpu.memory_space<vmem>>, vector<1x2x2x256xf32>
    %57 = vector.shape_cast %56 : vector<1x2x2x256xf32> to vector<2x2x256xf32>
    %58 = vector.shape_cast %57 : vector<2x2x256xf32> to vector<4x256xf32>
    %59 = arith.truncf %58 : vector<4x256xf32> to vector<4x256xbf16>
    %c0_56 = arith.constant 0 : index
    %c3_57 = arith.constant 3 : index
    %c3_58 = arith.constant 3 : index
    %c0_59 = arith.constant 0 : index
    %60 = vector.load %arg1[%c0_56, %c3_57, %c3_58, %c0_59] : memref<1x5x5x256xf32, #tpu.memory_space<vmem>>, vector<1x2x2x256xf32>
    %61 = vector.shape_cast %60 : vector<1x2x2x256xf32> to vector<2x2x256xf32>
    %62 = vector.shape_cast %61 : vector<2x2x256xf32> to vector<4x256xf32>
    %63 = arith.truncf %62 : vector<4x256xf32> to vector<4x256xbf16>
    %64 = tpu.concatenate %3, %7, %11, %15, %19, %23, %27, %31, %35, %39, %43, %47, %51, %55, %59, %63 in 1 : vector<4x256xbf16>, vector<4x256xbf16>, vector<4x256xbf16>, vector<4x256xbf16>, vector<4x256xbf16>, vector<4x256xbf16>, vector<4x256xbf16>, vector<4x256xbf16>, vector<4x256xbf16>, vector<4x256xbf16>, vector<4x256xbf16>, vector<4x256xbf16>, vector<4x256xbf16>, vector<4x256xbf16>, vector<4x256xbf16>, vector<4x256xbf16> -> vector<4x4096xbf16>
    %c0_60 = arith.constant 0 : index
    %c0_61 = arith.constant 0 : index
    %65 = vector.load %arg2[%c0_60, %c0_61] : memref<4096x1xbf16, #tpu.memory_space<vmem>>, vector<4096x1xbf16>
    %cst = arith.constant dense<0.000000e+00> : vector<4x1xf32>
    %66 = tpu.matmul %64, %65, %cst {dimension_numbers = #tpu.dot_dimension_numbers<[1], [0], [0], [1], [0, 0, 1, 1], [], []>} : vector<4x4096xbf16>, vector<4096x1xbf16>, vector<4x1xf32> -> vector<4x1xf32>
    %67 = vector.shape_cast %66 : vector<4x1xf32> to vector<2x2x1xf32>
    %c0_62 = arith.constant 0 : index
    %c0_63 = arith.constant 0 : index
    %c0_64 = arith.constant 0 : index
    %c0_65 = arith.constant 0 : index
    %68 = vector.load %arg3[%c0_62, %c0_63, %c0_64, %c0_65] : memref<1x2x2x1xf32, #tpu.memory_space<vmem>>, vector<1x2x2x1xf32>
    %69 = vector.shape_cast %68 : vector<1x2x2x1xf32> to vector<2x2x1xf32>
    %70 = vector.shape_cast %67 : vector<2x2x1xf32> to vector<1x2x2x1xf32>
    tpu.vector_store %arg3[%c0_62, %c0_63, %c0_64, %c0_65], %70 {strides = array<i32>} : memref<1x2x2x1xf32, #tpu.memory_space<vmem>>, vector<1x2x2x1xf32>,
    return
  }
  func.func @transform_0(%arg0: i32) -> (i32, i32, i32, i32) {
    %c0_i32 = arith.constant 0 : i32
    %c0_i32_0 = arith.constant 0 : i32
    %c0_i32_1 = arith.constant 0 : i32
    %c0_i32_2 = arith.constant 0 : i32
    return %arg0, %c0_i32, %c0_i32_0, %c0_i32_1 : i32, i32, i32, i32
  }
  func.func @transform_1(%arg0: i32) -> (i32, i32) {
    %c0_i32 = arith.constant 0 : i32
    %c0_i32_0 = arith.constant 0 : i32
    %c0_i32_1 = arith.constant 0 : i32
    return %c0_i32, %c0_i32_0 : i32, i32
  }
  func.func @transform_2(%arg0: i32) -> (i32, i32, i32, i32) {
    %c0_i32 = arith.constant 0 : i32
    %c0_i32_0 = arith.constant 0 : i32
    %c0_i32_1 = arith.constant 0 : i32
    %c0_i32_2 = arith.constant 0 : i32
    return %arg0, %c0_i32, %c0_i32_0, %c0_i32_1 : i32, i32, i32, i32
  }
}

</mosaic_0001>

<bundles_post_ra>
// kernel: discriminator_forward.6
= control target key start
LH: loop header
LB: loop body
LE: loop exit
PB: predicated region body
PF: predicated region fallthrough
CT: control target
= control target key end

     0   :  { %s1816_s15 = smov 0   ;;  %s2278_s0 = inlined_call_operand.vmem [shape: f32[2,4,9,9,32], index: 0, kind: input, shape index: {}]   ;;  %s2279_s1 = inlined_call_operand.vmem [shape: bf16[512,64], index: 1, kind: input, shape index: {}]   ;;  %s2280_s2 = inlined_call_operand.vmem [shape: f32[1,64], index: 2, kind: input, shape index: {}]   ;;  %s2281_s3 = inlined_call_operand.vmem [shape: f32[1,64], index: 3, kind: input, shape index: {}]   ;;  %s2282_s4 = inlined_call_operand.vmem [shape: f32[2,8,8,64], index: 4, kind: output, shape index: {}]  }
   0x1 LB: > { %s1483_s16 = sadd.s32 4294967295, %s1786_s15   ;;  %p1487_p0 = scmp.ge.s32.totalorder %s1786_s15, 1  ;;  %s1786_s15 = sphi %s1816_s15, %s14_s15  }
   0x2   : > { %p162_p1 = scmp.lt.s32.totalorder %s1786_s15, 3 }
   0x4   : > { %p163_p2 = pnand %p1487_p0, %p162_p1 }
   0x5   : > { %p188_p3 = scmp.lt.s32.totalorder (!%p163_p2), %s1483_s16, 1  ;;  %s1788_s21 = smov (!%p163_p2), 96  }
   0x6   : > { %166 = sbr.rel (%p163_p2) target bundleno = 409 (0x199), region = 36  ;;  %s1789_s22 = smov (!%p163_p2), 32  }
   0x7   : > { %s1790_s23 = smov (!%p163_p2), 64  }
   0xb   : > { %s2284_s16 = smov (!%p188_p3, %s1483_s16), 1  ;;  %vm877_vm0 = vcmask 261120   ;;  %vm890_vm1 = vcmask 523264   ;;  %vm899_vm2 = vcmask 785408  }
   0xc   : > { %s1766_s17 = smul.u32 576, %s2284_s16  ;;  %s1733_s28 = sshll.u32 %s2284_s16, 6 }
   0xd   : > { %s2243_s5 = scalar_lea.vmem %s2282_s4, %s1733_s28 }
   0xe   : > { %s1830_s20 = scalar_lea.vmem %s2278_s0, %s1766_s17 }
   0xf   : > { %v1563_v0 = vld [vmem:[%s1830_s20 + $0xa1] sm:$0xff]  ;;  %v1564_v1 = vld [vmem:[%s1830_s20 + $0xb1] sm:$0xff] }
  0x10   : > { %v1547_v2 = vld [vmem:[%s1830_s20 + $0xa0] sm:$0xff]  ;;  %v387_v3 = vpack.c.bf16 %v1563_v0, %v1563_v0  ;;  %v388_v4 = vpack.c.bf16 %v1564_v1, %v1564_v1  ;;  %v1548_v5 = vld [vmem:[%s1830_s20 + $0xb0] sm:$0xff] }
  0x11   : > { %v355_v6 = vpack.c.bf16 %v1547_v2, %v1547_v2  ;;  %v1579_v7 = vld [vmem:[%s1830_s20 + $0x1c0] sm:$0xff]  ;;  %v1580_v8 = vld [vmem:[%s1830_s20 + $0x1d0] sm:$0xff]  ;;  %v356_v9 = vpack.c.bf16 %v1548_v5, %v1548_v5 }
  0x12   : > { %v421_v10 = vpack.c.bf16 %v1579_v7, %v1579_v7  ;;  %v1555_v11 = vld [vmem:[%s1830_s20 + $0x11] sm:$0xff]  ;;  %v1556_v12 = vld [vmem:[%s1830_s20 + $0x21] sm:$0xff]  ;;  %v1840_v13 = vunpack.c.l.b16 %v387_v3  ;;  %v1842_v14 = vunpack.c.l.b16 %v388_v4  ;;  %v422_v16 = vpack.c.bf16 %v1580_v8, %v1580_v8 }
  0x13   : > { %v697_v15 = vunpack.c.l.b16 %v355_v6  ;;  %v1844_v17 = vunpack.c.l.b16 %v356_v9  ;;  %v371_v18 = vpack.c.bf16 %v1555_v11, %v1555_v11  ;;  %v372_v19 = vpack.c.bf16 %v1556_v12, %v1556_v12  ;;  %v1587_v20 = vld [vmem:[%s1830_s20 + $0x131] sm:$0xff]  ;;  %v1588_v21 = vld [vmem:[%s1830_s20 + $0x141] sm:$0xff] }
  0x14   : > { %v761_v22 = vpack.c.b16 %v1842_v14, %v1840_v13  ;;  %v1491_v24 = vld [vmem:[%s1830_s20 + $0x90] sm:$0xff]  ;;  %v801_v25 = vunpack.c.l.b16 %v421_v10  ;;  %v1853_v26 = vunpack.c.l.b16 %v422_v16  ;;  %v437_v27 = vpack.c.bf16 %v1587_v20, %v1587_v20  ;;  %v1595_v31 = vld [vmem:[%s1830_s20 + $0x1c1] sm:$0xff] }
  0x15   : > { %v705_v23 = vpack.c.b16 %v1844_v17, %v697_v15  ;;  %v438_v28 = vpack.c.bf16 %v1588_v21, %v1588_v21  ;;  %v725_v29 = vunpack.c.l.b16 %v371_v18  ;;  %v1856_v30 = vunpack.c.l.b16 %v372_v19  ;;  %v1596_v32 = vld [vmem:[%s1830_s20 + $0x1d1] sm:$0xff]  ;;  %v231_v44 = vld [vmem:[%s1830_s20 + $0x1] sm:$0xff] }
  0x16   : > { %765 = vrot.lane.b32.xlu1 %v761_v22, %s1788_s21  ;;  %v1515_v33 = vld [vmem:[%s1830_s20 + $0x1b0] sm:$0xff]  ;;  %v829_v34 = vunpack.c.l.b16 %v437_v27  ;;  %v223_v36 = vpack.c.bf16 %v1491_v24, %v1491_v24  ;;  %v809_v37 = vpack.c.b16 %v1853_v26, %v801_v25  ;;  %v453_v38 = vpack.c.bf16 %v1595_v31, %v1595_v31  ;;  %v1523_v49 = vld [vmem:[%s1830_s20 + $0x121] sm:$0xff] }
  0x17   : > { %709 = vrot.lane.b32.xlu0 %v705_v23, %s1789_s22  ;;  %v1861_v35 = vunpack.c.l.b16 %v438_v28  ;;  %v454_v39 = vpack.c.bf16 %v1596_v32, %v1596_v32  ;;  %v733_v41 = vpack.c.b16 %v1856_v30, %v725_v29  ;;  %v289_v42 = vpack.c.bf16 %v1515_v33, %v1515_v33  ;;  %v1499_v48 = vld [vmem:[%s1830_s20 + $0x91] sm:$0xff]  ;;  %v1558_v61 = vld [vmem:[%s1830_s20 + $0x41] sm:$0xff] }
  0x18   : > { %v489_v43 = vunpack.c.l.b16 %v223_v36  ;;  %v857_v45 = vunpack.c.l.b16 %v453_v38  ;;  %v239_v51 = vpack.c.bf16 %v231_v44, %v231_v44  ;;  %v255_v53 = vpack.c.bf16 %v1499_v48, %v1499_v48  ;;  %v1531_v57 = vld [vmem:[%s1830_s20 + $0x1b1] sm:$0xff]  ;;  %v1549_v62 = vld [vmem:[%s1830_s20 + $0xc0] sm:$0xff] }
  0x19   : > { %v837_v40 = vpack.c.b16 %v1861_v35, %v829_v34  ;;  %v1869_v46 = vunpack.c.l.b16 %v454_v39  ;;  %v593_v47 = vunpack.c.l.b16 %v289_v42  ;;  %v305_v55 = vpack.c.bf16 %v1523_v49, %v1523_v49  ;;  %v1557_v60 = vld [vmem:[%s1830_s20 + $0x31] sm:$0xff]  ;;  %v1565_v9 = vld [vmem:[%s1830_s20 + $0xc1] sm:$0xff] }
  0x1a   : > { %v497_v50 = vpack.c.b16 %v697_v15, %v489_v43  ;;  %v517_v56 = vunpack.c.l.b16 %v239_v51  ;;  %v545_v58 = vunpack.c.l.b16 %v255_v53  ;;  %v1550_v63 = vld [vmem:[%s1830_s20 + $0xd0] sm:$0xff]  ;;  %v321_v1 = vpack.c.bf16 %v1531_v57, %v1531_v57  ;;  %v1590_v18 = vld [vmem:[%s1830_s20 + $0x161] sm:$0xff] }
  0x1b   : > { %841 = vrot.lane.b32.xlu2 %v837_v40, %s1790_s23  ;;  %v865_v52 = vpack.c.b16 %v1869_v46, %v857_v45  ;;  %v601_v54 = vpack.c.b16 %v801_v25, %v593_v47  ;;  %v621_v59 = vunpack.c.l.b16 %v305_v55  ;;  %v373_v3 = vpack.c.bf16 %v1557_v60, %v1557_v60  ;;  %v1566_v10 = vld [vmem:[%s1830_s20 + $0xd1] sm:$0xff]  ;;  %v1581_v19 = vld [vmem:[%s1830_s20 + $0x1e0] sm:$0xff] }
  0x1c   : > { %v525_v0 = vpack.c.b16 %v725_v29, %v517_v56  ;;  %v553_v2 = vpack.c.b16 %v1840_v13, %v545_v58  ;;  %v374_v4 = vpack.c.bf16 %v1558_v61, %v1558_v61  ;;  %v357_v6 = vpack.c.bf16 %v1549_v62, %v1549_v62  ;;  %v1589_v16 = vld [vmem:[%s1830_s20 + $0x151] sm:$0xff]  ;;  %v1597_v39 = vld [vmem:[%s1830_s20 + $0x1e1] sm:$0xff] }
  0x1d   : > { %v629_v5 = vpack.c.b16 %v829_v34, %v621_v59  ;;  %v358_v7 = vpack.c.bf16 %v1550_v63, %v1550_v63  ;;  %v649_v8 = vunpack.c.l.b16 %v321_v1  ;;  %v727_v11 = vunpack.c.l.b16 %v373_v3  ;;  %v1582_v20 = vld [vmem:[%s1830_s20 + $0x1f0] sm:$0xff]  ;;  %v1560_v53 = vld [vmem:[%s1830_s20 + $0x61] sm:$0xff] }
  0x1e   : > { %813 = vrot.lane.b32.xlu1 %v809_v37, %s1789_s22  ;;  %v1888_v12 = vunpack.c.l.b16 %v374_v4  ;;  %v699_v13 = vunpack.c.l.b16 %v357_v6  ;;  %v389_v22 = vpack.c.bf16 %v1565_v9, %v1565_v9  ;;  %v390_v23 = vpack.c.bf16 %v1566_v10, %v1566_v10  ;;  %v1598_v40 = vld [vmem:[%s1830_s20 + $0x1f1] sm:$0xff]  ;;  %v1567_v61 = vld [vmem:[%s1830_s20 + $0xe1] sm:$0xff] }
  0x1f   : > { %737 = vrot.lane.b32.xlu0 %v733_v41, %s1790_s23  ;;  %v1891_v15 = vunpack.c.l.b16 %v358_v7  ;;  %v657_v21 = vpack.c.b16 %v857_v45, %v649_v8  ;;  %v439_v25 = vpack.c.bf16 %v1589_v16, %v1589_v16  ;;  %v440_v27 = vpack.c.bf16 %v1590_v18, %v1590_v18  ;;  %v1552_v55 = vld [vmem:[%s1830_s20 + $0xf0] sm:$0xff]  ;;  %v1583_v3 = vld [vmem:[%s1830_s20 + $0x200] sm:$0xff] }
  0x20   : > { %v734_v24 = vpack.c.b16 %v1888_v12, %v727_v11  ;;  %v423_v29 = vpack.c.bf16 %v1581_v19, %v1581_v19  ;;  %v424_v31 = vpack.c.bf16 %v1582_v20, %v1582_v20  ;;  %v755_v32 = vunpack.c.l.b16 %v389_v22  ;;  %v1568_v62 = vld [vmem:[%s1830_s20 + $0xf1] sm:$0xff] }
  0x21   : > { %v706_v28 = vpack.c.b16 %v1891_v15, %v699_v13  ;;  %v1900_v33 = vunpack.c.l.b16 %v390_v23  ;;  %v831_v34 = vunpack.c.l.b16 %v439_v25  ;;  %v1903_v36 = vunpack.c.l.b16 %v440_v27  ;;  %v1591_v1 = vld [vmem:[%s1830_s20 + $0x171] sm:$0xff] }
  0x22   : > { %v803_v37 = vunpack.c.l.b16 %v423_v29  ;;  %v1906_v38 = vunpack.c.l.b16 %v424_v31  ;;  %v455_v43 = vpack.c.bf16 %v1597_v39, %v1597_v39  ;;  %v456_v44 = vpack.c.bf16 %v1598_v40, %v1598_v40  ;;  %v1584_v4 = vld [vmem:[%s1830_s20 + $0x210] sm:$0xff]  ;;  %v1765_v27 = vld [vmem:[%s2279_s1 + $0xf8] sm:$0xff]  ;;  %v1755_v29 = vld [vmem:[%s2279_s1 + $0xa8] sm:$0xff] }
  0x23   : > { %501 = vrot.lane.b32.xlu2 %v497_v50, %s1789_s22  ;;  %v762_v41 = vpack.c.b16 %v1900_v33, %v755_v32  ;;  %v838_v42 = vpack.c.b16 %v1903_v36, %v831_v34  ;;  %v498_v49 = vpack.c.b16 %v699_v13, %v1844_v17  ;;  %v526_v56 = vpack.c.b16 %v727_v11, %v1856_v30  ;;  %v1756_v25 = vld [vmem:[%s2279_s1 + $0xb0] sm:$0xff] }
  0x24   : > { %v810_v45 = vpack.c.b16 %v1906_v38, %v803_v37  ;;  %v859_v47 = vunpack.c.l.b16 %v455_v43  ;;  %v1915_v48 = vunpack.c.l.b16 %v456_v44  ;;  %v602_v51 = vpack.c.b16 %v803_v37, %v1853_v26  ;;  %1351 = vmatpush.bf16.msra.mxu3 %v1765_v27  ;;  %v1741_v43 = vld [vmem:[%s2279_s1 + $0x38] sm:$0xff]  ;;  %v1759_v27 = vld [vmem:[%s2279_s1 + $0xc8] sm:$0xff] }
  0x25   : > { %v554_v17 = vpack.c.b16 %v755_v32, %v1842_v14  ;;  %v376_v26 = vpack.c.bf16 %v1560_v53, %v1560_v53  ;;  %v630_v58 = vpack.c.b16 %v831_v34, %v1861_v35  ;;  %v360_v60 = vpack.c.bf16 %v1552_v55, %v1552_v55  ;;  %v1592_v35 = vld [vmem:[%s1830_s20 + $0x181] sm:$0xff]  ;;  %1264 = vmatpush.bf16.msra.mxu0 %v1741_v43  ;;  %v1752_v55 = vld [vmem:[%s2279_s1 + $0x90] sm:$0xff] }
  0x26   : > { %869 = vrot.lane.b32.xlu1 %v865_v52, %s1788_s21  ;;  %v866_v50 = vpack.c.b16 %v1915_v48, %v859_v47  ;;  %v1559_v52 = vld [vmem:[%s1830_s20 + $0x51] sm:$0xff]  ;;  %v391_v6 = vpack.c.bf16 %v1567_v61, %v1567_v61  ;;  %v392_v7 = vpack.c.bf16 %v1568_v62, %v1568_v62  ;;  %v441_v9 = vpack.c.bf16 %v1591_v1, %v1591_v1  ;;  %v1762_v53 = vld [vmem:[%s2279_s1 + $0xe0] sm:$0xff] }
  0x27   : > { %605 = vrot.lane.b32.xlu0 %v601_v54, %s1789_s22  ;;  %v1551_v54 = vld [vmem:[%s1830_s20 + $0xe0] sm:$0xff]  ;;  %v375_v57 = vpack.c.bf16 %v1559_v52, %v1559_v52  ;;  %v1937_v30 = vunpack.c.l.b16 %v376_v26  ;;  %v442_v10 = vpack.c.bf16 %v1592_v35, %v1592_v35  ;;  %v425_v13 = vpack.c.bf16 %v1583_v3, %v1583_v3  ;;  %v1740_v52 = vld [vmem:[%s2279_s1 + $0x30] sm:$0xff] }
  0x28   : > { %v359_v59 = vpack.c.bf16 %v1551_v54, %v1551_v54  ;;  %v426_v16 = vpack.c.bf16 %v1584_v4, %v1584_v4  ;;  %v1954_v18 = vunpack.c.l.b16 %v391_v6  ;;  %v1956_v19 = vunpack.c.l.b16 %v392_v7  ;;  %v1562_v54 = vld [vmem:[%s1830_s20 + $0x81] sm:$0xff]  ;;  %v1570_v35 = vld [vmem:[%s1830_s20 + $0x111] sm:$0xff] }
  0x29   : > { %v1935_v63 = vunpack.c.l.b16 %v375_v57  ;;  %v1961_v20 = vunpack.c.l.b16 %v442_v10  ;;  %v805_v22 = vunpack.c.l.b16 %v425_v13  ;;  %1265 = vmatpush.bf16.msra.mxu0 %v1740_v52  ;;  %v1569_v1 = vld [vmem:[%s1830_s20 + $0x101] sm:$0xff]  ;;  %v1593_v3 = vld [vmem:[%s1830_s20 + $0x191] sm:$0xff] }
  0x2a   : > { %v701_v14 = vunpack.c.l.b16 %v359_v59  ;;  %v1965_v23 = vunpack.c.l.b16 %v426_v16  ;;  %v555_v26 = vpack.c.b16 %v1954_v18, %v1900_v33  ;;  %v378_v59 = vpack.c.bf16 %v1562_v54, %v1562_v54  ;;  %v1747_v33 = vld [vmem:[%s2279_s1 + $0x68] sm:$0xff]  ;;  %v1738_v4 = vld [vmem:[%s2279_s1 + $0x20] sm:$0xff]  ;;  %v1586_v13 = vld [vmem:[%s1830_s20 + $0x230] sm:$0xff] }
  0x2b   : > { %529 = vrot.lane.b32.xlu2 %v525_v0, %s1790_s23  ;;  %v1940_v0 = vunpack.c.l.b16 %v360_v60  ;;  %v735_v8 = vpack.c.b16 %v1937_v30, %v1935_v63  ;;  %v527_v57 = vpack.c.b16 %v1935_v63, %v1888_v12  ;;  %v1739_v60 = vld [vmem:[%s2279_s1 + $0x28] sm:$0xff]  ;;  %v1761_v12 = vld [vmem:[%s2279_s1 + $0xd8] sm:$0xff]  ;;  %v1750_v10 = vld [vmem:[%s2279_s1 + $0x80] sm:$0xff] }
  0x2c   : > { %v811_v37 = vpack.c.b16 %v1965_v23, %v805_v22  ;;  %v499_v44 = vpack.c.b16 %v701_v14, %v1891_v15  ;;  %v1735_v54 = vld [vmem:[%s2279_s1 + $0x8] sm:$0xff] }
  0x2d   : > { %v707_v11 = vpack.c.b16 %v1940_v0, %v701_v14  ;;  %v1751_v14 = vld [vmem:[%s2279_s1 + $0x88] sm:$0xff]  ;;  %1266 = vmatpush.bf16.msra.mxu0 %v1739_v60 }
  0x2e   : > { %557 = vrot.lane.b32.xlu1 %v553_v2, %s1788_s21  ;;  %v1757_v2 = vld [vmem:[%s2279_s1 + $0xb8] sm:$0xff] }
  0x2f   : > { %633 = vrot.lane.b32.xlu0 %v629_v5, %s1790_s23  ;;  %v658_v5 = vpack.c.b16 %v859_v47, %v1869_v46  ;;  %1322 = vmatpush.bf16.msra.mxu2 %v1757_v2  ;;  %v1959_v46 = vunpack.c.l.b16 %v441_v9  ;;  %v1749_v47 = vld [vmem:[%s2279_s1 + $0x78] sm:$0xff]  ;;  %v732_v2 = vunpack.c.l.b16 %v378_v59  ;;  %v1746_v9 = vld [vmem:[%s2279_s1 + $0x60] sm:$0xff] }
  0x30   : > { %1293 = vmatpush.bf16.msra.mxu1 %v1749_v47 }
  0x31   : > { %v839_v31 = vpack.c.b16 %v1961_v20, %v1959_v46  ;;  %v631_v61 = vpack.c.b16 %v1959_v46, %v1903_v36  ;;  %v394_v46 = vpack.c.bf16 %v1570_v35, %v1570_v35  ;;  %1267 = vmatpush.bf16.msra.mxu0 %v1738_v4 }
  0x33   : > { %661 = vrot.lane.b32.xlu2 %v657_v21, %s1788_s21  ;;  %v1599_v21 = vld [vmem:[%s1830_s20 + $0x201] sm:$0xff]  ;;  %1323 = vmatpush.bf16.msra.mxu2 %v1756_v25  ;;  %v1737_v25 = vld [vmem:[%s2279_s1 + $0x18] sm:$0xff] }
  0x34   : > { %v457_v32 = vpack.c.bf16 %v1599_v21, %v1599_v21 }
  0x35   : > { %1268 = vmatpush.bf16.msra.mxu0 %v1737_v25 }
  0x36   : > { %739 = vrot.lane.b32.xlu1 %v734_v24, %s1790_s23  ;;  %v1600_v24 = vld [vmem:[%s1830_s20 + $0x211] sm:$0xff]  ;;  %v1984_v39 = vunpack.c.l.b16 %v457_v32 }
  0x37   : > { %711 = vrot.lane.b32.xlu0 %v706_v28, %s1789_s22  ;;  %v763_v28 = vpack.c.b16 %v1956_v19, %v1954_v18  ;;  %v458_v34 = vpack.c.bf16 %v1600_v24, %v1600_v24  ;;  %1324 = vmatpush.bf16.msra.mxu2 %v1755_v29  ;;  %v393_v18 = vpack.c.bf16 %v1569_v1, %v1569_v1  ;;  %v1572_v1 = vld [vmem:[%s1830_s20 + $0x140] sm:$0xff] }
  0x38   : > { %v659_v16 = vpack.c.b16 %v1984_v39, %v1915_v48  ;;  %v428_v29 = vpack.c.bf16 %v1586_v13, %v1586_v13 }
  0x39   : > { %v1986_v40 = vunpack.c.l.b16 %v458_v34  ;;  %v2087_v32 = vunpack.c.l.b16 %v393_v18  ;;  %v760_v34 = vunpack.c.l.b16 %v394_v46 }
  0x3a   : > { %v808_v47 = vunpack.c.l.b16 %v428_v29 }
  0x3b   : > { %767 = vrot.lane.b32.xlu2 %v762_v41, %s1788_s21  ;;  %v1764_v41 = vld [vmem:[%s2279_s1 + $0xf0] sm:$0xff]  ;;  %v867_v15 = vpack.c.b16 %v1986_v40, %v1984_v39  ;;  %v1758_v39 = vld [vmem:[%s2279_s1 + $0xc0] sm:$0xff] }
  0x3c   : > { %1352 = vmatpush.bf16.msra.mxu3 %v1764_v41  ;;  %v1744_v41 = vld [vmem:[%s2279_s1 + $0x50] sm:$0xff] }
  0x3e   : > { %843 = vrot.lane.b32.xlu1 %v838_v42, %s1790_s23  ;;  %v1754_v42 = vld [vmem:[%s2279_s1 + $0xa0] sm:$0xff] }
  0x3f   : > { %815 = vrot.lane.b32.xlu0 %v810_v45, %s1789_s22  ;;  %v1763_v45 = vld [vmem:[%s2279_s1 + $0xe8] sm:$0xff]  ;;  %1325 = vmatpush.bf16.msra.mxu2 %v1754_v42 }
  0x40   : > { %1353 = vmatpush.bf16.msra.mxu3 %v1763_v45 }
  0x43   : > { %503 = vrot.lane.b32.xlu2 %v498_v49, %s1789_s22  ;;  %v1753_v49 = vld [vmem:[%s2279_s1 + $0x98] sm:$0xff] }
  0x44   : > { %1326 = vmatpush.bf16.msra.mxu2 %v1753_v49  ;;  %1354 = vmatpush.bf16.msra.mxu3 %v1762_v53  ;;  %v1601_v49 = vld [vmem:[%s1830_s20 + $0x221] sm:$0xff] }
  0x45   : > { %v459_v52 = vpack.c.bf16 %v1601_v49, %v1601_v49 }
  0x46   : > { %871 = vrot.lane.b32.xlu1 %v866_v50, %s1788_s21  ;;  %v603_v50 = vpack.c.b16 %v805_v22, %v1906_v38  ;;  %v1748_v38 = vld [vmem:[%s2279_s1 + $0x70] sm:$0xff]  ;;  %v443_v22 = vpack.c.bf16 %v1593_v3, %v1593_v3 }
  0x47   : > { %607 = vrot.lane.b32.xlu0 %v602_v51, %s1789_s22  ;;  %v1561_v51 = vld [vmem:[%s1830_s20 + $0x71] sm:$0xff]  ;;  %1294 = vmatpush.bf16.msra.mxu1 %v1748_v38  ;;  %v1743_v38 = vld [vmem:[%s2279_s1 + $0x48] sm:$0xff] }
  0x48   : > { %1327 = vmatpush.bf16.msra.mxu2 %v1752_v55  ;;  %1355 = vmatpush.bf16.msra.mxu3 %v1761_v12  ;;  %v835_v42 = vunpack.c.l.b16 %v443_v22  ;;  %v1539_v12 = vld [vmem:[%s1830_s20 + $0x10] sm:$0xff]  ;;  %v1507_v22 = vld [vmem:[%s1830_s20 + $0x120] sm:$0xff] }
  0x4b   : > { %531 = vrot.lane.b32.xlu2 %v526_v56, %s1790_s23  ;;  %v1553_v56 = vld [vmem:[%s1830_s20 + $0x100] sm:$0xff]  ;;  %1295 = vmatpush.bf16.msra.mxu1 %v1747_v33 }
  0x4c   : > { %v361_v62 = vpack.c.bf16 %v1553_v56, %v1553_v56  ;;  %1328 = vmatpush.bf16.msra.mxu2 %v1751_v14  ;;  %v1734_v56 = vld [vmem:[%s2279_s1] sm:$0xff]  ;;  %v1571_v14 = vld [vmem:[%s1830_s20 + $0x130] sm:$0xff] }
  0x4e   : > { %559 = vrot.lane.b32.xlu1 %v554_v17, %s1788_s21  ;;  %v1554_v17 = vld [vmem:[%s1830_s20 + $0x110] sm:$0xff]  ;;  %v2062_v6 = vunpack.c.l.b16 %v361_v62 }
  0x4f   : > { %635 = vrot.lane.b32.xlu0 %v630_v58, %s1790_s23  ;;  %v377_v58 = vpack.c.bf16 %v1561_v51, %v1561_v51  ;;  %v362_v63 = vpack.c.bf16 %v1554_v17, %v1554_v17  ;;  %1296 = vmatpush.bf16.msra.mxu1 %v1746_v9  ;;  %v1742_v17 = vld [vmem:[%s2279_s1 + $0x40] sm:$0xff] }
  0x50   : > { %1329 = vmatpush.bf16.msra.mxu2 %v1750_v10  ;;  %v500_v59 = vpack.c.b16 %v2062_v6, %v1940_v0 }
  0x51   : > { %v2052_v36 = vunpack.c.l.b16 %v377_v58  ;;  %v704_v7 = vunpack.c.l.b16 %v362_v63  ;;  %v338_v63 = vpack.c.bf16 %v1539_v12, %v1539_v12 }
  0x53   : > { %663 = vrot.lane.b32.xlu2 %v658_v5, %s1788_s21  ;;  %v1760_v5 = vld [vmem:[%s2279_s1 + $0xd0] sm:$0xff]  ;;  %v736_v21 = vpack.c.b16 %v732_v2, %v2052_v36  ;;  %v708_v48 = vpack.c.b16 %v704_v7, %v2062_v6  ;;  %v528_v2 = vpack.c.b16 %v2052_v36, %v1937_v30  ;;  %v677_v4 = vunpack.c.l.b16 %v338_v63  ;;  %v198_v30 = vld [vmem:[%s1830_s20] sm:$0xff] }
  0x54   : > { %1356 = vmatpush.bf16.msra.mxu3 %v1760_v5  ;;  %v405_v6 = vpack.c.bf16 %v1572_v1, %v1572_v1  ;;  %v556_v7 = vpack.c.b16 %v2087_v32, %v1956_v19 }
  0x56   : > { %741 = vrot.lane.b32.xlu1 %v735_v8, %s1790_s23  ;;  %v1594_v8 = vld [vmem:[%s1830_s20 + $0x1a1] sm:$0xff] }
  0x57   : > { %713 = vrot.lane.b32.xlu0 %v707_v11, %s1789_s22  ;;  %v1585_v11 = vld [vmem:[%s1830_s20 + $0x220] sm:$0xff]  ;;  %v444_v24 = vpack.c.bf16 %v1594_v8, %v1594_v8  ;;  %v632_v8 = vpack.c.b16 %v835_v42, %v1961_v20 }
  0x58   : > { %1357 = vmatpush.bf16.msra.mxu3 %v1759_v27 }
  0x59   : > { %v836_v43 = vunpack.c.l.b16 %v444_v24 }
  0x5b   : > { %769 = vrot.lane.b32.xlu2 %v763_v28, %s1788_s21  ;;  %v427_v28 = vpack.c.bf16 %v1585_v11, %v1585_v11  ;;  %v840_v51 = vpack.c.b16 %v836_v43, %v835_v42  ;;  %v2139_v11 = vunpack.c.l.b16 %v405_v6 }
  0x5c   : > { %1358 = vmatpush.bf16.msra.mxu3 %v1758_v39  ;;  %v1541_v39 = vld [vmem:[%s1830_s20 + $0x30] sm:$0xff] }
  0x5d   : > { %v807_v45 = vunpack.c.l.b16 %v427_v28 }
  0x5e   : > { %845 = vrot.lane.b32.xlu1 %v839_v31, %s1790_s23  ;;  %v1745_v31 = vld [vmem:[%s2279_s1 + $0x58] sm:$0xff] }
  0x5f   : > { %817 = vrot.lane.b32.xlu0 %v811_v37, %s1789_s22  ;;  %v1736_v37 = vld [vmem:[%s2279_s1 + $0x10] sm:$0xff]  ;;  %1297 = vmatpush.bf16.msra.mxu1 %v1745_v31  ;;  %v812_v55 = vpack.c.b16 %v808_v47, %v807_v45  ;;  %v604_v62 = vpack.c.b16 %v807_v45, %v1965_v23  ;;  %v404_v23 = vpack.c.bf16 %v1571_v14, %v1571_v14 }
  0x60   : > { %1269 = vmatpush.bf16.msra.mxu0 %v1736_v37  ;;  %v340_v45 = vpack.c.bf16 %v1541_v39, %v1541_v39 }
  0x61   : > { %v781_v10 = vunpack.c.l.b16 %v404_v23 }
  0x63   : > { %505 = vrot.lane.b32.xlu2 %v499_v44, %s1789_s22  ;;  %1298 = vmatpush.bf16.msra.mxu1 %v1744_v41  ;;  %v789_v18 = vpack.c.b16 %v2139_v11, %v781_v10  ;;  %v1542_v41 = vld [vmem:[%s1830_s20 + $0x40] sm:$0xff] }
  0x64   : > { %1270 = vmatpush.bf16.msra.mxu0 %v1735_v54  ;;  %v341_v47 = vpack.c.bf16 %v1542_v41, %v1542_v41  ;;  %v679_v54 = vunpack.c.l.b16 %v340_v45 }
  0x66   : > { %873 = vrot.lane.b32.xlu1 %v867_v15, %s1788_s21  ;;  %v1602_v15 = vld [vmem:[%s1830_s20 + $0x231] sm:$0xff] }
  0x67   : > { %609 = vrot.lane.b32.xlu0 %v603_v50, %s1789_s22  ;;  %v764_v50 = vpack.c.b16 %v760_v34, %v2087_v32  ;;  %v460_v53 = vpack.c.bf16 %v1602_v15, %v1602_v15  ;;  %1299 = vmatpush.bf16.msra.mxu1 %v1743_v38  ;;  %v2162_v38 = vunpack.c.l.b16 %v341_v47 }
  0x68   : > { %1271 = vmatpush.bf16.msra.mxu0 %v1734_v56 }
  0x69   : > { %v686_v56 = vpack.c.b16 %v2162_v38, %v679_v54 }
  0x6b   : > { %533 = vrot.lane.b32.xlu2 %v527_v57, %s1790_s23  ;;  %v863_v57 = vunpack.c.l.b16 %v459_v52  ;;  %1300 = vmatpush.bf16.msra.mxu1 %v1742_v17  ;;  %v1573_v17 = vld [vmem:[%s1830_s20 + $0x150] sm:$0xff] }
  0x6d   : > { %v660_v19 = vpack.c.b16 %v863_v57, %v1986_v40  ;;  %v272_v40 = vpack.c.bf16 %v1507_v22, %v1507_v22 }
  0x6e   : > { %561 = vrot.lane.b32.xlu1 %v555_v26, %s1788_s21  ;;  %v864_v26 = vunpack.c.l.b16 %v460_v53 }
  0x6f   : > { %637 = vrot.lane.b32.xlu0 %v631_v61, %s1790_s23  ;;  %v1540_v61 = vld [vmem:[%s1830_s20 + $0x20] sm:$0xff]  ;;  %v573_v34 = vunpack.c.l.b16 %v272_v40 }
  0x70   : > { %v868_v60 = vpack.c.b16 %v864_v26, %v863_v57  ;;  %v339_v33 = vpack.c.bf16 %v1540_v61, %v1540_v61  ;;  %v1574_v57 = vld [vmem:[%s1830_s20 + $0x160] sm:$0xff] }
  0x71   : > { %v581_v43 = vpack.c.b16 %v781_v10, %v573_v34  ;;  %v407_v12 = vpack.c.bf16 %v1574_v57, %v1574_v57  ;;  %v1544_v10 = vld [vmem:[%s1830_s20 + $0x60] sm:$0xff] }
  0x72   : > { %v2132_v5 = vunpack.c.l.b16 %v339_v33 }
  0x73   : > { %665 = vrot.lane.b32.xlu2 %v659_v16, %s1788_s21  ;;  %v206_v16 = vpack.c.bf16 %v198_v30, %v198_v30  ;;  %v2171_v14 = vunpack.c.l.b16 %v407_v12 }
  0x74   : > { %v685_v9 = vpack.c.b16 %v2132_v5, %v677_v4  ;;  %v478_v6 = vpack.c.b16 %v679_v54, %v2132_v5 }
  0x75   : > { %v2099_v44 = vpop.permute.xlu2 %841  ;;  %v469_v25 = vunpack.c.l.b16 %v206_v16 }
  0x76   : > { %743 = vrot.lane.b32.xlu1 %v736_v21, %s1790_s23 }
  0x77   : > { %715 = vrot.lane.b32.xlu0 %v708_v48, %s1789_s22  ;;  %v477_v31 = vpack.c.b16 %v677_v4, %v469_v25 }
  0x7b   : > { %771 = vrot.lane.b32.xlu2 %v764_v50, %s1788_s21 }
  0x7d   : > { %v502_v58 = vpop.permute.xlu2 %501 }
  0x7e   : > { %847 = vrot.lane.b32.xlu1 %v840_v51, %s1790_s23  ;;  %v880_v42 = vsel %vm877_vm0, %v477_v31, %v502_v58 }
  0x7f   : > { %819 = vrot.lane.b32.xlu0 %v812_v55, %s1789_s22 }
  0x83   : > { %507 = vrot.lane.b32.xlu2 %v500_v59, %s1789_s22 }
  0x85   : > { %v530_v35 = vpop.permute.xlu2 %529 }
  0x86   : > { %875 = vrot.lane.b32.xlu1 %v868_v60, %s1788_s21  ;;  %v892_v15 = vsel %vm890_vm1, %v880_v42, %v530_v35  ;;  %v406_v60 = vpack.c.bf16 %v1573_v17, %v1573_v17  ;;  %v1546_v17 = vld [vmem:[%s1830_s20 + $0x80] sm:$0xff] }
  0x87   : > { %611 = vrot.lane.b32.xlu0 %v604_v62, %s1789_s22 }
  0x88   : > { %v766_v0 = vpop.permute.xlu1 %765  ;;  %v783_v33 = vunpack.c.l.b16 %v406_v60 }
  0x89   : > { %v710_v3 = vpop.permute.xlu0 %709 }
  0x8a   : > { %v946_v20 = vsel %vm877_vm0, %v685_v9, %v710_v3  ;;  %v790_v35 = vpack.c.b16 %v2171_v14, %v783_v33  ;;  %v1543_v9 = vld [vmem:[%s1830_s20 + $0x50] sm:$0xff] }
  0x8b   : > { %535 = vrot.lane.b32.xlu2 %v528_v2, %s1790_s23 }
  0x8d   : > { %v662_v36 = vpop.permute.xlu2 %661 }
  0x8e   : > { %563 = vrot.lane.b32.xlu1 %v556_v7, %s1788_s21 }
  0x8f   : > { %639 = vrot.lane.b32.xlu0 %v632_v8, %s1790_s23 }
  0x90   : > { %v814_v13 = vpop.permute.xlu1 %813 }
  0x91   : > { %v738_v46 = vpop.permute.xlu0 %737  ;;  %v978_v27 = vsel %vm877_vm0, %v789_v18, %v814_v13  ;;  %v582_v13 = vpack.c.b16 %v783_v33, %v2139_v11 }
  0x92   : > { %v957_v21 = vsel %vm890_vm1, %v946_v20, %v738_v46  ;;  %v989_v29 = vsel %vm890_vm1, %v978_v27, %v2099_v44  ;;  %v343_v20 = vpack.c.bf16 %v1544_v10, %v1544_v10 }
  0x93   : > { %v965_v24 = vsel %vm899_vm2, %v957_v21, %v766_v0  ;;  %667 = vrot.lane.b32.xlu2 %v660_v19, %s1788_s21  ;;  %v342_v19 = vpack.c.bf16 %v1543_v9, %v1543_v9 }
  0x94   : > { %1330 = vmatmul.bf16.vlgmr.msra.gmra.mxu2 %v965_v24  ;;  %v2186_v25 = vunpack.c.l.b16 %v343_v20 }
  0x95   : > { %v768_v48 = vpop.permute.xlu2 %767  ;;  %v681_v24 = vunpack.c.l.b16 %v342_v19 }
  0x97   : > { %v687_v27 = vpack.c.b16 %v2186_v25, %v681_v24 }
  0x98   : > { %v870_v28 = vpop.permute.xlu1 %869 }
  0x99   : > { %v606_v32 = vpop.permute.xlu0 %605  ;;  %v997_v37 = vsel %vm899_vm2, %v989_v29, %v870_v28  ;;  %v1576_v28 = vld [vmem:[%s1830_s20 + $0x180] sm:$0xff] }
  0x9a   : > { %1359 = vmatmul.bf16.vlgmr.msra.gmra.mxu3 %v997_v37  ;;  %v914_v44 = vsel %vm877_vm0, %v581_v43, %v606_v32  ;;  %v409_v34 = vpack.c.bf16 %v1576_v28, %v1576_v28 }
  0x9c   : > { %v2195_v43 = vunpack.c.l.b16 %v409_v34 }
  0x9d   : > { %v504_v49 = vpop.permute.xlu2 %503 }
  0xa0   : > { %v558_v50 = vpop.permute.xlu1 %557 }
  0xa1   : > { %v634_v51 = vpop.permute.xlu0 %633  ;;  %v901_v52 = vsel %vm899_vm2, %v892_v15, %v558_v50 }
  0xa2   : > { %v925_v53 = vsel %vm890_vm1, %v914_v44, %v634_v51  ;;  %1272 = vmatmul.bf16.vlgmr.msra.gmra.mxu0 %v901_v52  ;;  %v479_v52 = vpack.c.b16 %v681_v24, %v2162_v38 }
  0xa3   : > { %v933_v55 = vsel %vm899_vm2, %v925_v53, %v662_v36  ;;  %v883_v36 = vsel %vm877_vm0, %v478_v6, %v504_v49 }
  0xa4   : > { %1301 = vmatmul.bf16.vlgmr.msra.gmra.mxu1 %v933_v55 }
  0xa5   : > { %v532_v58 = vpop.permute.xlu2 %531 }
  0xa6   : > { %v894_v16 = vsel %vm890_vm1, %v883_v36, %v532_v58 }
  0xa8   : > { %v740_v26 = vpop.permute.xlu1 %739 }
  0xa9   : > { %v712_v59 = vpop.permute.xlu0 %711 }
  0xaa   : > { %v949_v61 = vsel %vm877_vm0, %v686_v56, %v712_v59  ;;  %v1545_v56 = vld [vmem:[%s1830_s20 + $0x70] sm:$0xff]  ;;  %v345_v59 = vpack.c.bf16 %v1546_v17, %v1546_v17 }
  0xab   : > { %v959_v62 = vsel %vm890_vm1, %v949_v61, %v740_v26  ;;  %v344_v58 = vpack.c.bf16 %v1545_v56, %v1545_v56 }
  0xac   : > { %v968_v63 = vsel %vm899_vm2, %v959_v62, %v768_v48  ;;  %v1575_v48 = vld [vmem:[%s1830_s20 + $0x170] sm:$0xff] }
  0xad   : > { %1335 = vmatmul.bf16.gmra.mxu2 %v968_v63  ;;  %v664_v2 = vpop.permute.xlu2 %663  ;;  %v408_v32 = vpack.c.bf16 %v1575_v48, %v1575_v48  ;;  %v683_v33 = vunpack.c.l.b16 %v344_v58 }
  0xaf   : > { %v785_v42 = vunpack.c.l.b16 %v408_v32 }
  0xb0   : > { %v844_v1 = vpop.permute.xlu1 %843 }
  0xb1   : > { %v816_v0 = vpop.permute.xlu0 %815  ;;  %v791_v49 = vpack.c.b16 %v2195_v43, %v785_v42  ;;  %v583_v26 = vpack.c.b16 %v785_v42, %v2171_v14 }
  0xb2   : > { %v981_v3 = vsel %vm877_vm0, %v790_v35, %v816_v0 }
  0xb3   : > { %v991_v4 = vsel %vm890_vm1, %v981_v3, %v844_v1  ;;  %v684_v1 = vunpack.c.l.b16 %v345_v59  ;;  %v1578_v3 = vld [vmem:[%s1830_s20 + $0x1a0] sm:$0xff] }
  0xb5   : > { %v770_v30 = vpop.permute.xlu2 %769  ;;  %v688_v0 = vpack.c.b16 %v684_v1, %v683_v33 }
  0xb8   : > { %v872_v23 = vpop.permute.xlu1 %871 }
  0xb9   : > { %v608_v7 = vpop.permute.xlu0 %607  ;;  %v1000_v8 = vsel %vm899_vm2, %v991_v4, %v872_v23 }
  0xba   : > { %1364 = vmatmul.bf16.gmra.mxu3 %v1000_v8  ;;  %v917_v5 = vsel %vm877_vm0, %v582_v13, %v608_v7  ;;  %v411_v7 = vpack.c.bf16 %v1578_v3, %v1578_v3 }
  0xbc   : > { %v788_v36 = vunpack.c.l.b16 %v411_v7 }
  0xbd   : > { %v506_v40 = vpop.permute.xlu2 %505 }
  0xbe   : > { %v886_v57 = vsel %vm877_vm0, %v479_v52, %v506_v40 }
  0xc0   : > { %v560_v18 = vpop.permute.xlu1 %559 }
  0xc1   : > { %v636_v46 = vpop.permute.xlu0 %635  ;;  %v904_v21 = vsel %vm899_vm2, %v894_v16, %v560_v18 }
  0xc2   : > { %v927_v22 = vsel %vm890_vm1, %v917_v5, %v636_v46  ;;  %1277 = vmatmul.bf16.gmra.mxu0 %v904_v21 }
  0xc3   : > { %v936_v11 = vsel %vm899_vm2, %v927_v22, %v664_v2  ;;  %v1577_v2 = vld [vmem:[%s1830_s20 + $0x190] sm:$0xff]  ;;  %v480_v22 = vpack.c.b16 %v683_v33, %v2186_v25 }
  0xc4   : > { %1306 = vmatmul.bf16.gmra.mxu1 %v936_v11  ;;  %v410_v6 = vpack.c.bf16 %v1577_v2, %v1577_v2 }
  0xc5   : > { %v534_v47 = vpop.permute.xlu2 %533 }
  0xc6   : > { %v896_v60 = vsel %vm890_vm1, %v886_v57, %v534_v47 }
  0xc8   : > { %v742_v29 = vpop.permute.xlu1 %741 }
  0xc9   : > { %v714_v31 = vpop.permute.xlu0 %713 }
  0xca   : > { %v952_v37 = vsel %vm877_vm0, %v687_v27, %v714_v31 }
  0xcb   : > { %v961_v39 = vsel %vm890_vm1, %v952_v37, %v742_v29 }
  0xcc   : > { %v971_v41 = vsel %vm899_vm2, %v961_v39, %v770_v30  ;;  %v787_v30 = vunpack.c.l.b16 %v410_v6 }
  0xcd   : > { %1340 = vmatmul.bf16.gmra.mxu2 %v971_v41  ;;  %v666_v55 = vpop.permute.xlu2 %665 }
  0xce   : > { %v792_v20 = vpack.c.b16 %v788_v36, %v787_v30  ;;  %v584_v40 = vpack.c.b16 %v787_v30, %v2195_v43 }
  0xd0   : > { %v846_v45 = vpop.permute.xlu1 %845 }
  0xd1   : > { %v818_v15 = vpop.permute.xlu0 %817 }
  0xd2   : > { %v984_v50 = vsel %vm877_vm0, %v791_v49, %v818_v15  ;;  %v2230_v49 = vld [vmem:[%s2280_s2] ss:$0 sm:$0xff] }
  0xd3   : > { %v993_v44 = vsel %vm890_vm1, %v984_v50, %v846_v45  ;;  %v2235_v50 = vld [vmem:[%s2281_s3] ss:$0 sm:$0xff] }
  0xd5   : > { %v772_v14 = vpop.permute.xlu2 %771 }
  0xd8   : > { %v874_v51 = vpop.permute.xlu1 %873 }
  0xd9   : > { %v610_v53 = vpop.permute.xlu0 %609  ;;  %v1003_v54 = vsel %vm899_vm2, %v993_v44, %v874_v51 }
  0xda   : > { %1369 = vmatmul.bf16.gmra.mxu3 %v1003_v54  ;;  %v920_v38 = vsel %vm877_vm0, %v583_v26, %v610_v53 }
  0xdd   : > { %v508_v13 = vpop.permute.xlu2 %507 }
  0xde   : > { %v889_v27 = vsel %vm877_vm0, %v480_v22, %v508_v13 }
  0xe0   : > { %v562_v12 = vpop.permute.xlu1 %561 }
  0xe1   : > { %v638_v61 = vpop.permute.xlu0 %637  ;;  %v907_v62 = vsel %vm899_vm2, %v896_v60, %v562_v12 }
  0xe2   : > { %v929_v63 = vsel %vm890_vm1, %v920_v38, %v638_v61  ;;  %1282 = vmatmul.bf16.gmra.mxu0 %v907_v62 }
  0xe3   : > { %v939_v35 = vsel %vm899_vm2, %v929_v63, %v666_v55 }
  0xe4   : > { %1311 = vmatmul.bf16.gmra.mxu1 %v939_v35 }
  0xe5   : > { %v536_v46 = vpop.permute.xlu2 %535 }
  0xe6   : > { %v898_v48 = vsel %vm890_vm1, %v889_v27, %v536_v46 }
  0xe8   : > { %v744_v4 = vpop.permute.xlu1 %743 }
  0xe9   : > { %v716_v23 = vpop.permute.xlu0 %715 }
  0xea   : > { %v955_v8 = vsel %vm877_vm0, %v688_v0, %v716_v23 }
  0xeb   : > { %v963_v9 = vsel %vm890_vm1, %v955_v8, %v744_v4 }
  0xec   : > { %v974_v10 = vsel %vm899_vm2, %v963_v9, %v772_v14 }
  0xed   : > { %1345 = vmatmul.bf16.gmra.mxu2 %v974_v10  ;;  %v668_v29 = vpop.permute.xlu2 %667 }
  0xf0   : > { %v848_v19 = vpop.permute.xlu1 %847 }
  0xf1   : > { %v820_v16 = vpop.permute.xlu0 %819 }
  0xf2   : > { %v987_v18 = vsel %vm877_vm0, %v792_v20, %v820_v16 }
  0xf3   : > { %v995_v5 = vsel %vm890_vm1, %v987_v18, %v848_v19 }
  0xf8   : > { %v876_v21 = vpop.permute.xlu1 %875 }
  0xf9   : > { %v612_v24 = vpop.permute.xlu0 %611  ;;  %v1006_v11 = vsel %vm899_vm2, %v995_v5, %v876_v21 }
  0xfa   : > { %1374 = vmatmul.bf16.gmra.mxu3 %v1006_v11  ;;  %v923_v31 = vsel %vm877_vm0, %v584_v40, %v612_v24 }
 0x100   : > { %v564_v28 = vpop.permute.xlu1 %563 }
 0x101   : > { %v640_v32 = vpop.permute.xlu0 %639  ;;  %v910_v34 = vsel %vm899_vm2, %v898_v48, %v564_v28 }
 0x102   : > { %v931_v37 = vsel %vm890_vm1, %v923_v31, %v640_v32  ;;  %1287 = vmatmul.bf16.gmra.mxu0 %v910_v34 }
 0x103   : > { %v942_v25 = vsel %vm899_vm2, %v931_v37, %v668_v29 }
 0x104   : > { %1316 = vmatmul.bf16.gmra.mxu1 %v942_v25 }
 0x117   : > { %v1331_v41 = vpop.f32.mrf.mxu2 }
 0x11d   : > { %v1360_v45 = vpop.f32.mrf.mxu3 }
 0x11f   : > { %v1273_v39 = vpop.f32.mrf.mxu0  ;;  %v1333_v55 = vpop.f32.mrf.mxu2 }
 0x121   : > { %v1302_v42 = vpop.f32.mrf.mxu1 }
 0x122   : > { %v1303_v43 = vadd.f32 %v1302_v42, %v1273_v39 }
 0x124   : > { %v1332_v47 = vadd.f32 %v1331_v41, %v1303_v43 }
 0x125   : > { %v1362_v57 = vpop.f32.mrf.mxu3 }
 0x126   : > { %v1361_v15 = vadd.f32 %v1360_v45, %v1332_v47 }
 0x127   : > { %v1275_v44 = vpop.f32.mrf.mxu0 }
 0x128   : > { %v1384_v51 = vmul.f32 %v2230_v49, %v1361_v15 }
 0x129   : > { %v1304_v52 = vpop.f32.mrf.mxu1 }
 0x12a   : > { %v1396_v53 = vadd.f32 %v2235_v50, %v1384_v51  ;;  %v1305_v54 = vadd.f32 %v1304_v52, %v1275_v44 }
 0x12c   : > { %v1404_v56 = vmul.f32 0.2, %v1396_v53  ;;  %v1334_v17 = vadd.f32 %v1333_v55, %v1305_v54 }
 0x12e   : > { %v1412_v26 = vmax.f32 %v1396_v53, %v1404_v56  ;;  %v1363_v58 = vadd.f32 %v1362_v57, %v1334_v17 }
 0x130   : > { %1420 = vst.msk [vmem:[%s2243_s5] sm:$0xff] %vm890_vm1, %v1412_v26  ;;  %v1385_v59 = vmul.f32 %v2230_v49, %v1363_v58  ;;  %v1336_v62 = vpop.f32.mrf.mxu2 }
 0x132   : > { %v1397_v60 = vadd.f32 %v2235_v50, %v1385_v59 }
 0x134   : > { %v1405_v12 = vmul.f32 0.2, %v1397_v60 }
 0x136   : > { %v1413_v38 = vmax.f32 %v1397_v60, %v1405_v12 }
 0x138   : > { %1421 = vst.msk [vmem:[%s2243_s5 + $0x8] sm:$0xff] %vm890_vm1, %v1413_v38  ;;  %v1338_v6 = vpop.f32.mrf.mxu2 }
 0x13d   : > { %v1365_v1 = vpop.f32.mrf.mxu3 }
 0x13f   : > { %v1278_v61 = vpop.f32.mrf.mxu0 }
 0x141   : > { %v1307_v63 = vpop.f32.mrf.mxu1 }
 0x142   : > { %v1308_v33 = vadd.f32 %v1307_v63, %v1278_v61 }
 0x144   : > { %v1337_v35 = vadd.f32 %v1336_v62, %v1308_v33 }
 0x145   : > { %v1367_v9 = vpop.f32.mrf.mxu3 }
 0x146   : > { %v1366_v14 = vadd.f32 %v1365_v1, %v1337_v35 }
 0x147   : > { %v1280_v0 = vpop.f32.mrf.mxu0 }
 0x148   : > { %v1386_v2 = vmul.f32 %v2230_v49, %v1366_v14 }
 0x149   : > { %v1309_v3 = vpop.f32.mrf.mxu1 }
 0x14a   : > { %v1398_v4 = vadd.f32 %v2235_v50, %v1386_v2  ;;  %v1310_v23 = vadd.f32 %v1309_v3, %v1280_v0 }
 0x14c   : > { %v1406_v7 = vmul.f32 0.2, %v1398_v4  ;;  %v1339_v8 = vadd.f32 %v1338_v6, %v1310_v23 }
 0x14e   : > { %v1414_v10 = vmax.f32 %v1398_v4, %v1406_v7  ;;  %v1368_v30 = vadd.f32 %v1367_v9, %v1339_v8 }
 0x150   : > { %1422 = vst.msk [vmem:[%s2243_s5 + $0x10] sm:$0xff] %vm890_vm1, %v1414_v10  ;;  %v1387_v36 = vmul.f32 %v2230_v49, %v1368_v30  ;;  %v1341_v18 = vpop.f32.mrf.mxu2 }
 0x152   : > { %v1399_v13 = vadd.f32 %v2235_v50, %v1387_v36 }
 0x154   : > { %v1407_v19 = vmul.f32 0.2, %v1399_v13 }
 0x156   : > { %v1415_v20 = vmax.f32 %v1399_v13, %v1407_v19 }
 0x158   : > { %1423 = vst.msk [vmem:[%s2243_s5 + $0x18] sm:$0xff] %vm890_vm1, %v1415_v20  ;;  %v1343_v29 = vpop.f32.mrf.mxu2 }
 0x15d   : > { %v1370_v21 = vpop.f32.mrf.mxu3 }
 0x15f   : > { %v1283_v16 = vpop.f32.mrf.mxu0 }
 0x161   : > { %v1312_v5 = vpop.f32.mrf.mxu1 }
 0x162   : > { %v1313_v46 = vadd.f32 %v1312_v5, %v1283_v16 }
 0x164   : > { %v1342_v22 = vadd.f32 %v1341_v18, %v1313_v46 }
 0x165   : > { %v1372_v34 = vpop.f32.mrf.mxu3 }
 0x166   : > { %v1371_v24 = vadd.f32 %v1370_v21, %v1342_v22 }
 0x167   : > { %v1285_v11 = vpop.f32.mrf.mxu0 }
 0x168   : > { %v1388_v27 = vmul.f32 %v2230_v49, %v1371_v24 }
 0x169   : > { %v1314_v40 = vpop.f32.mrf.mxu1 }
 0x16a   : > { %v1400_v48 = vadd.f32 %v2235_v50, %v1388_v27  ;;  %v1315_v28 = vadd.f32 %v1314_v40, %v1285_v11 }
 0x16c   : > { %v1408_v31 = vmul.f32 0.2, %v1400_v48  ;;  %v1344_v32 = vadd.f32 %v1343_v29, %v1315_v28 }
 0x16e   : > { %v1416_v37 = vmax.f32 %v1400_v48, %v1408_v31  ;;  %v1373_v25 = vadd.f32 %v1372_v34, %v1344_v32 }
 0x170   : > { %1424 = vst.msk [vmem:[%s2243_s5 + $0x20] sm:$0xff] %vm890_vm1, %v1416_v37  ;;  %v1389_v39 = vmul.f32 %v2230_v49, %v1373_v25  ;;  %v1346_v47 = vpop.f32.mrf.mxu2 }
 0x172   : > { %v1401_v41 = vadd.f32 %v2235_v50, %v1389_v39 }
 0x174   : > { %v1409_v42 = vmul.f32 0.2, %v1401_v41 }
 0x176   : > { %v1417_v43 = vmax.f32 %v1401_v41, %v1409_v42 }
 0x178   : > { %1425 = vst.msk [vmem:[%s2243_s5 + $0x28] sm:$0xff] %vm890_vm1, %v1417_v43  ;;  %v1348_v26 = vpop.f32.mrf.mxu2 }
 0x17d   : > { %v1375_v51 = vpop.f32.mrf.mxu3 }
 0x17f   : > { %v1288_v45 = vpop.f32.mrf.mxu0 }
 0x181   : > { %v1317_v15 = vpop.f32.mrf.mxu1 }
 0x182   : > { %v1318_v44 = vadd.f32 %v1317_v15, %v1288_v45 }
 0x184   : > { %v1347_v52 = vadd.f32 %v1346_v47, %v1318_v44 }
 0x185   : > { %v1377_v60 = vpop.f32.mrf.mxu3 }
 0x186   : > { %v1376_v53 = vadd.f32 %v1375_v51, %v1347_v52 }
 0x187   : > { %v1290_v54 = vpop.f32.mrf.mxu0 }
 0x188   : > { %v1390_v55 = vmul.f32 %v2230_v49, %v1376_v53 }
 0x189   : > { %v1319_v56 = vpop.f32.mrf.mxu1 }
 0x18a   : > { %v1402_v17 = vadd.f32 %v2235_v50, %v1390_v55  ;;  %v1320_v57 = vadd.f32 %v1319_v56, %v1290_v54 }
 0x18c   : > { %v1410_v58 = vmul.f32 0.2, %v1402_v17  ;;  %v1349_v59 = vadd.f32 %v1348_v26, %v1320_v57 }
 0x18e   : > { %v1418_v12 = vmax.f32 %v1402_v17, %v1410_v58  ;;  %v1378_v38 = vadd.f32 %v1377_v60, %v1349_v59 }
 0x190   : > { %1426 = vst.msk [vmem:[%s2243_s5 + $0x30] sm:$0xff] %vm890_vm1, %v1418_v12  ;;  %v1391_v61 = vmul.f32 %v2230_v49, %v1378_v38 }
 0x192   : > { %v1403_v62 = vadd.f32 %v2235_v50, %v1391_v61 }
 0x194   : > { %v1411_v63 = vmul.f32 0.2, %v1403_v62 }
 0x196   : > { %v1419_v33 = vmax.f32 %v1403_v62, %v1411_v63 }
 0x198   : > { %1427 = vst.msk [vmem:[%s2243_s5 + $0x38] sm:$0xff] %vm890_vm1, %v1419_v33 }
 0x199 PF: > { %s14_s15 = sadd.s32 1, %s1786_s15  }
 0x19a   : > { %p11_p4 = scmp.ge.s32.totalorder %s14_s15, 4  }
 0x19c   :  { %13 = sbr.rel (!%p11_p4) target bundleno = 1 (0x1), region = 73 }

// kernel: discriminator_forward.5
= control target key start
LH: loop header
LB: loop body
LE: loop exit
PB: predicated region body
PF: predicated region fallthrough
CT: control target
= control target key end

     0   :  { %s4492_s15 = smov 0   ;;  %s6337_s0 = inlined_call_operand.vmem [shape: f32[2,4,17,17,6], index: 0, kind: input, shape index: {}]   ;;  %s6338_s1 = inlined_call_operand.vmem [shape: bf16[96,32], index: 1, kind: input, shape index: {}]   ;;  %s6339_s2 = inlined_call_operand.vmem [shape: f32[1,32], index: 2, kind: input, shape index: {}]   ;;  %s6340_s3 = inlined_call_operand.vmem [shape: f32[1,32], index: 3, kind: input, shape index: {}]   ;;  %s6341_s4 = inlined_call_operand.vmem [shape: f32[2,16,16,32], index: 4, kind: output, shape index: {}]  }
   0x1 LB: > { %s3895_s16 = sadd.s32 4294967295, %s4450_s15   ;;  %p3899_p0 = scmp.ge.s32.totalorder %s4450_s15, 1  ;;  %s4450_s15 = sphi %s4492_s15, %s14_s15  }
   0x2   : > { %p162_p1 = scmp.lt.s32.totalorder %s4450_s15, 3 }
   0x4   : > { %p163_p2 = pnand %p3899_p0, %p162_p1 }
   0x6   : > { %166 = sbr.rel (%p163_p2) target bundleno = 917 (0x395), region = 36 }
   0xb   : > { %p188_p3 = scmp.lt.s32.totalorder %s3895_s16, 1  ;;  %s4452_s21 = smov 6   ;;  %vm2990_vm0 = vcmask 48128   ;;  %vm3039_vm1 = vcmask 97280   ;;  %vm3072_vm2 = vcmask 146432   ;;  %vm3105_vm3 = vcmask 195584  }
   0xc   : > { %s4453_s22 = smov 12   ;;  %s4454_s23 = smov 18   ;;  %vm3138_vm4 = vcmask 244736   ;;  %vm3171_vm5 = vcmask 293888   ;;  %vm3204_vm6 = vcmask 343040   ;;  %vm3237_vm7 = vcmask 392192  }
   0xd   : > { %s6524_s16 = smov (!%p188_p3, %s3895_s16), 1  ;;  %s4455_s24 = smov 24   ;;  %vm3270_vm8 = vcmask 441344   ;;  %vm3303_vm9 = vcmask 490496   ;;  %vm3336_vm10 = vcmask 539648   ;;  %vm3369_vm11 = vcmask 588800  }
   0xe   : > { %s4418_s17 = smul.u32 1632, %s6524_s16  ;;  %s4456_s25 = smov 30   ;;  %vm3402_vm12 = vcmask 637952   ;;  %vm3435_vm13 = vcmask 687104   ;;  %vm3468_vm14 = vcmask 736256   ;;  %vm3549_vm15 = vcmask 785408  }
   0xf   : > { %s4457_s26 = smov 36   ;;  %s4458_s27 = smov 42  }
  0x10   : > { %s4506_s20 = scalar_lea.vmem %s6337_s0, %s4418_s17  ;;  %s4459_s28 = smov 48  }
  0x11   : > { %v3911_v0 = vld [vmem:[%s4506_s20 + $0x1f8] sm:$0xff]  ;;  %v3912_v1 = vld [vmem:[%s4506_s20 + $0x200] sm:$0xff]  ;;  %v3907_v2 = vld [vmem:[%s4506_s20 + $0x1c8] sm:$0xff]  ;;  %s4460_s29 = smov 54   ;;  %s4461_s30 = smov 60  }
  0x12   : > { %v304_v3 = vpack.c.bf16 %v3911_v0, %v3911_v0  ;;  %v305_v4 = vpack.c.bf16 %v3912_v1, %v3912_v1  ;;  %v3908_v5 = vld [vmem:[%s4506_s20 + $0x1d0] sm:$0xff]  ;;  %v300_v6 = vpack.c.bf16 %v3907_v2, %v3907_v2  ;;  %v3903_v7 = vld [vmem:[%s4506_s20 + $0x198] sm:$0xff]  ;;  %v3904_v8 = vld [vmem:[%s4506_s20 + $0x1a0] sm:$0xff]  ;;  %s4462_s5 = smov 66   ;;  %s4463_s6 = smov 78  }
  0x13   : > { %v301_v9 = vpack.c.bf16 %v3908_v5, %v3908_v5  ;;  %v296_v10 = vpack.c.bf16 %v3903_v7, %v3903_v7  ;;  %v297_v11 = vpack.c.bf16 %v3904_v8, %v3904_v8  ;;  %v3913_v12 = vld [vmem:[%s4506_s20 + $0x210] sm:$0xff]  ;;  %v3914_v13 = vld [vmem:[%s4506_s20 + $0x218] sm:$0xff]  ;;  %v3909_v14 = vld [vmem:[%s4506_s20 + $0x1e0] sm:$0xff]  ;;  %s4464_s7 = smov 72   ;;  %s4465_s8 = smov 84  }
  0x14   : > { %v1350_v15 = vunpack.c.l.b16 %v304_v3  ;;  %v1351_v16 = vunpack.c.l.b16 %v305_v4  ;;  %v1346_v17 = vunpack.c.l.b16 %v300_v6  ;;  %v306_v18 = vpack.c.bf16 %v3913_v12, %v3913_v12  ;;  %v3910_v19 = vld [vmem:[%s4506_s20 + $0x1e8] sm:$0xff]  ;;  %v3905_v20 = vld [vmem:[%s4506_s20 + $0x1b0] sm:$0xff]  ;;  %v3906_v25 = vld [vmem:[%s4506_s20 + $0x1b8] sm:$0xff]  ;;  %s4466_s9 = smov 90  }
  0x15   : > { %v1347_v21 = vunpack.c.l.b16 %v301_v9  ;;  %v1342_v22 = vunpack.c.l.b16 %v296_v10  ;;  %v1343_v23 = vunpack.c.l.b16 %v297_v11  ;;  %v307_v24 = vpack.c.bf16 %v3914_v13, %v3914_v13  ;;  %v3919_v35 = vld [vmem:[%s4506_s20 + $0x258] sm:$0xff]  ;;  %v3920_v36 = vld [vmem:[%s4506_s20 + $0x260] sm:$0xff]  ;;  %v3918_v41 = vld [vmem:[%s4506_s20 + $0x248] sm:$0xff] }
  0x16   : > { %v1378_v26 = vpack.c.b16 %v1351_v16, %v1350_v15  ;;  %v302_v27 = vpack.c.bf16 %v3909_v14, %v3909_v14  ;;  %v303_v28 = vpack.c.bf16 %v3910_v19, %v3910_v19  ;;  %v298_v31 = vpack.c.bf16 %v3905_v20, %v3905_v20  ;;  %v3917_v40 = vld [vmem:[%s4506_s20 + $0x240] sm:$0xff]  ;;  %v3915_v43 = vld [vmem:[%s4506_s20 + $0x228] sm:$0xff]  ;;  %v3916_v44 = vld [vmem:[%s4506_s20 + $0x230] sm:$0xff] }
  0x17   : > { %v1376_v29 = vpack.c.b16 %v1347_v21, %v1346_v17  ;;  %v1374_v30 = vpack.c.b16 %v1343_v23, %v1342_v22  ;;  %v1352_v32 = vunpack.c.l.b16 %v306_v18  ;;  %v1353_v33 = vunpack.c.l.b16 %v307_v24  ;;  %v3925_v58 = vld [vmem:[%s4506_s20 + $0x2a0] sm:$0xff]  ;;  %v3926_v61 = vld [vmem:[%s4506_s20 + $0x2a8] sm:$0xff]  ;;  %v3924_v63 = vld [vmem:[%s4506_s20 + $0x290] sm:$0xff] }
  0x18   : > { %1398 = vrot.lane.b32.xlu2 %v1378_v26, %s4452_s21  ;;  %v299_v34 = vpack.c.bf16 %v3906_v25, %v3906_v25  ;;  %v1348_v37 = vunpack.c.l.b16 %v302_v27  ;;  %v1349_v38 = vunpack.c.l.b16 %v303_v28  ;;  %v1344_v39 = vunpack.c.l.b16 %v298_v31  ;;  %v3923_v62 = vld [vmem:[%s4506_s20 + $0x288] sm:$0xff]  ;;  %v3921_v0 = vld [vmem:[%s4506_s20 + $0x270] sm:$0xff]  ;;  %v3922_v1 = vld [vmem:[%s4506_s20 + $0x278] sm:$0xff] }
  0x19   : > { %1394 = vrot.lane.b32.xlu1 %v1376_v29, %s4452_s21  ;;  %1390 = vrot.lane.b32.xlu0 %v1374_v30, %s4452_s21  ;;  %v312_v45 = vpack.c.bf16 %v3919_v35, %v3919_v35  ;;  %v1379_v46 = vpack.c.b16 %v1353_v33, %v1352_v32  ;;  %v313_v47 = vpack.c.bf16 %v3920_v36, %v3920_v36  ;;  %v3931_v13 = vld [vmem:[%s4506_s20 + $0x2e8] sm:$0xff]  ;;  %v3932_v14 = vld [vmem:[%s4506_s20 + $0x2f0] sm:$0xff] }
  0x1a   : > { %v1345_v42 = vunpack.c.l.b16 %v299_v34  ;;  %v310_v48 = vpack.c.bf16 %v3917_v40, %v3917_v40  ;;  %v311_v49 = vpack.c.bf16 %v3918_v41, %v3918_v41  ;;  %v1377_v50 = vpack.c.b16 %v1349_v38, %v1348_v37  ;;  %v3929_v19 = vld [vmem:[%s4506_s20 + $0x2d0] sm:$0xff]  ;;  %v3930_v20 = vld [vmem:[%s4506_s20 + $0x2d8] sm:$0xff]  ;;  %v3928_v22 = vld [vmem:[%s4506_s20 + $0x2c0] sm:$0xff] }
  0x1b   : > { %v308_v52 = vpack.c.bf16 %v3915_v43, %v3915_v43  ;;  %v309_v53 = vpack.c.bf16 %v3916_v44, %v3916_v44  ;;  %v1358_v54 = vunpack.c.l.b16 %v312_v45  ;;  %v1359_v55 = vunpack.c.l.b16 %v313_v47  ;;  %v3927_v21 = vld [vmem:[%s4506_s20 + $0x2b8] sm:$0xff]  ;;  %v328_v40 = vld [vmem:[%s4506_s20 + $0x1] sm:$0xff]  ;;  %v329_v41 = vld [vmem:[%s4506_s20 + $0x9] sm:$0xff] }
  0x1c   : > { %v1375_v51 = vpack.c.b16 %v1345_v42, %v1344_v39  ;;  %v1356_v56 = vunpack.c.l.b16 %v310_v48  ;;  %v1357_v57 = vunpack.c.l.b16 %v311_v49  ;;  %v318_v2 = vpack.c.bf16 %v3925_v58, %v3925_v58  ;;  %v330_v36 = vld [vmem:[%s4506_s20 + $0x19] sm:$0xff]  ;;  %v331_v39 = vld [vmem:[%s4506_s20 + $0x21] sm:$0xff] }
  0x1d   : > { %v1354_v59 = vunpack.c.l.b16 %v308_v52  ;;  %v1355_v60 = vunpack.c.l.b16 %v309_v53  ;;  %v1382_v3 = vpack.c.b16 %v1359_v55, %v1358_v54  ;;  %v319_v5 = vpack.c.bf16 %v3926_v61, %v3926_v61  ;;  %v3933_v42 = vld [vmem:[%s4506_s20 + $0x300] sm:$0xff]  ;;  %v3934_v43 = vld [vmem:[%s4506_s20 + $0x308] sm:$0xff] }
  0x1e   : > { %v1381_v4 = vpack.c.b16 %v1357_v57, %v1356_v56  ;;  %v316_v6 = vpack.c.bf16 %v3923_v62, %v3923_v62  ;;  %v317_v8 = vpack.c.bf16 %v3924_v63, %v3924_v63  ;;  %v314_v9 = vpack.c.bf16 %v3921_v0, %v3921_v0  ;;  %v336_v55 = vld [vmem:[%s4506_s20 + $0x61] sm:$0xff]  ;;  %v337_v56 = vld [vmem:[%s4506_s20 + $0x69] sm:$0xff]  ;;  %v335_v62 = vld [vmem:[%s4506_s20 + $0x51] sm:$0xff] }
  0x1f   : > { %v1380_v7 = vpack.c.b16 %v1355_v60, %v1354_v59  ;;  %v315_v10 = vpack.c.bf16 %v3922_v1, %v3922_v1  ;;  %v1364_v11 = vunpack.c.l.b16 %v318_v2  ;;  %v1365_v12 = vunpack.c.l.b16 %v319_v5  ;;  %v334_v61 = vld [vmem:[%s4506_s20 + $0x49] sm:$0xff]  ;;  %v332_v63 = vld [vmem:[%s4506_s20 + $0x31] sm:$0xff]  ;;  %v333_v0 = vld [vmem:[%s4506_s20 + $0x39] sm:$0xff] }
  0x20   : > { %1400 = vrot.lane.b32.xlu2 %v1379_v46, %s4452_s21  ;;  %v1362_v15 = vunpack.c.l.b16 %v316_v6  ;;  %v1363_v16 = vunpack.c.l.b16 %v317_v8  ;;  %v1360_v17 = vunpack.c.l.b16 %v314_v9  ;;  %v324_v23 = vpack.c.bf16 %v3931_v13, %v3931_v13 }
  0x21   : > { %1396 = vrot.lane.b32.xlu1 %v1377_v50, %s4452_s21  ;;  %1392 = vrot.lane.b32.xlu0 %v1375_v51, %s4452_s21  ;;  %v1361_v18 = vunpack.c.l.b16 %v315_v10  ;;  %v325_v24 = vpack.c.bf16 %v3932_v14, %v3932_v14  ;;  %v1385_v25 = vpack.c.b16 %v1365_v12, %v1364_v11  ;;  %v322_v26 = vpack.c.bf16 %v3929_v19, %v3929_v19  ;;  %v342_v14 = vld [vmem:[%s4506_s20 + $0xa9] sm:$0xff]  ;;  %v341_v19 = vld [vmem:[%s4506_s20 + $0x99] sm:$0xff] }
  0x22   : > { %v323_v27 = vpack.c.bf16 %v3930_v20, %v3930_v20  ;;  %v1384_v28 = vpack.c.b16 %v1363_v16, %v1362_v15  ;;  %v320_v30 = vpack.c.bf16 %v3927_v21, %v3927_v21  ;;  %v321_v31 = vpack.c.bf16 %v3928_v22, %v3928_v22  ;;  %v343_v15 = vld [vmem:[%s4506_s20 + $0xb1] sm:$0xff]  ;;  %v338_v20 = vld [vmem:[%s4506_s20 + $0x79] sm:$0xff]  ;;  %v339_v21 = vld [vmem:[%s4506_s20 + $0x81] sm:$0xff] }
  0x23   : > { %v1383_v29 = vpack.c.b16 %v1361_v18, %v1360_v17  ;;  %v1370_v32 = vunpack.c.l.b16 %v324_v23  ;;  %v1371_v33 = vunpack.c.l.b16 %v325_v24  ;;  %v1368_v34 = vunpack.c.l.b16 %v322_v26  ;;  %v340_v18 = vld [vmem:[%s4506_s20 + $0x91] sm:$0xff] }
  0x24   : > { %v1369_v35 = vunpack.c.l.b16 %v323_v27  ;;  %v1366_v37 = vunpack.c.l.b16 %v320_v30  ;;  %v1367_v38 = vunpack.c.l.b16 %v321_v31  ;;  %v362_v46 = vpack.c.bf16 %v330_v36, %v330_v36  ;;  %v347_v36 = vld [vmem:[%s4506_s20 + $0xe1] sm:$0xff] }
  0x25   : > { %v1388_v44 = vpack.c.b16 %v1371_v33, %v1370_v32  ;;  %v363_v47 = vpack.c.bf16 %v331_v39, %v331_v39  ;;  %v360_v48 = vpack.c.bf16 %v328_v40, %v328_v40  ;;  %v361_v50 = vpack.c.bf16 %v329_v41, %v329_v41  ;;  %v348_v33 = vld [vmem:[%s4506_s20 + $0xf1] sm:$0xff]  ;;  %v344_v41 = vld [vmem:[%s4506_s20 + $0xc1] sm:$0xff] }
  0x26   : > { %v1387_v45 = vpack.c.b16 %v1369_v35, %v1368_v34  ;;  %v1386_v49 = vpack.c.b16 %v1367_v38, %v1366_v37  ;;  %v326_v51 = vpack.c.bf16 %v3933_v42, %v3933_v42  ;;  %v327_v52 = vpack.c.bf16 %v3934_v43, %v3934_v43  ;;  %v349_v34 = vld [vmem:[%s4506_s20 + $0xf9] sm:$0xff]  ;;  %v345_v42 = vld [vmem:[%s4506_s20 + $0xc9] sm:$0xff] }
  0x27   : > { %v1456_v53 = vunpack.c.l.b16 %v362_v46  ;;  %v1457_v54 = vunpack.c.l.b16 %v363_v47  ;;  %v1454_v57 = vunpack.c.l.b16 %v360_v48  ;;  %v1455_v58 = vunpack.c.l.b16 %v361_v50  ;;  %v346_v35 = vld [vmem:[%s4506_s20 + $0xd9] sm:$0xff] }
  0x28   : > { %1406 = vrot.lane.b32.xlu2 %v1382_v3, %s4452_s21  ;;  %v1372_v59 = vunpack.c.l.b16 %v326_v51  ;;  %v1373_v60 = vunpack.c.l.b16 %v327_v52  ;;  %v368_v1 = vpack.c.bf16 %v336_v55, %v336_v55  ;;  %v369_v3 = vpack.c.bf16 %v337_v56, %v337_v56 }
  0x29   : > { %1404 = vrot.lane.b32.xlu1 %v1381_v4, %s4452_s21  ;;  %1402 = vrot.lane.b32.xlu0 %v1380_v7, %s4452_s21  ;;  %v1487_v2 = vpack.c.b16 %v1457_v54, %v1456_v53  ;;  %v366_v4 = vpack.c.bf16 %v334_v61, %v334_v61  ;;  %v367_v5 = vpack.c.bf16 %v335_v62, %v335_v62  ;;  %v353_v61 = vld [vmem:[%s4506_s20 + $0x129] sm:$0xff] }
  0x2a   : > { %v1486_v6 = vpack.c.b16 %v1455_v58, %v1454_v57  ;;  %v1389_v7 = vpack.c.b16 %v1373_v60, %v1372_v59  ;;  %v364_v8 = vpack.c.bf16 %v332_v63, %v332_v63  ;;  %v365_v9 = vpack.c.bf16 %v333_v0, %v333_v0  ;;  %v354_v58 = vld [vmem:[%s4506_s20 + $0x139] sm:$0xff]  ;;  %v355_v59 = vld [vmem:[%s4506_s20 + $0x141] sm:$0xff]  ;;  %v350_v62 = vld [vmem:[%s4506_s20 + $0x109] sm:$0xff] }
  0x2b   : > { %v1462_v10 = vunpack.c.l.b16 %v368_v1  ;;  %v1463_v11 = vunpack.c.l.b16 %v369_v3  ;;  %v1460_v12 = vunpack.c.l.b16 %v366_v4  ;;  %v1461_v13 = vunpack.c.l.b16 %v367_v5  ;;  %v352_v60 = vld [vmem:[%s4506_s20 + $0x121] sm:$0xff]  ;;  %v351_v63 = vld [vmem:[%s4506_s20 + $0x111] sm:$0xff] }
  0x2c   : > { %v1458_v16 = vunpack.c.l.b16 %v364_v8  ;;  %v1459_v17 = vunpack.c.l.b16 %v365_v9  ;;  %v374_v22 = vpack.c.bf16 %v342_v14, %v342_v14  ;;  %v375_v23 = vpack.c.bf16 %v343_v15, %v343_v15  ;;  %v359_v14 = vld [vmem:[%s4506_s20 + $0x171] sm:$0xff] }
  0x2d   : > { %v1490_v24 = vpack.c.b16 %v1463_v11, %v1462_v10  ;;  %v372_v26 = vpack.c.bf16 %v340_v18, %v340_v18  ;;  %v371_v30 = vpack.c.bf16 %v339_v21, %v339_v21  ;;  %v378_v46 = vpack.c.bf16 %v346_v35, %v346_v35  ;;  %v3935_v11 = vld [vmem:[%s4506_s20 + $0x199] sm:$0xff] }
  0x2e   : > { %v1488_v27 = vpack.c.b16 %v1459_v17, %v1458_v16  ;;  %v1468_v31 = vunpack.c.l.b16 %v374_v22  ;;  %v1469_v32 = vunpack.c.l.b16 %v375_v23  ;;  %v379_v47 = vpack.c.bf16 %v347_v36, %v347_v36  ;;  %v3941_v36 = vld [vmem:[%s4506_s20 + $0x1e1] sm:$0xff] }
  0x2f   : > { %v1466_v37 = vunpack.c.l.b16 %v372_v26  ;;  %v1465_v40 = vunpack.c.l.b16 %v371_v30  ;;  %v376_v48 = vpack.c.bf16 %v344_v41, %v344_v41  ;;  %v1472_v54 = vunpack.c.l.b16 %v378_v46  ;;  %v3938_v41 = vld [vmem:[%s4506_s20 + $0x1b9] sm:$0xff] }
  0x30   : > { %1412 = vrot.lane.b32.xlu2 %v1385_v25, %s4452_s21  ;;  %v1489_v25 = vpack.c.b16 %v1461_v13, %v1460_v12  ;;  %v1493_v43 = vpack.c.b16 %v1469_v32, %v1468_v31  ;;  %v1473_v55 = vunpack.c.l.b16 %v379_v47  ;;  %v386_v0 = vpack.c.bf16 %v354_v58, %v354_v58  ;;  %v3936_v12 = vld [vmem:[%s4506_s20 + $0x1a1] sm:$0xff]  ;;  %v358_v13 = vld [vmem:[%s4506_s20 + $0x169] sm:$0xff] }
  0x31   : > { %1410 = vrot.lane.b32.xlu1 %v1384_v28, %s4452_s21  ;;  %1408 = vrot.lane.b32.xlu0 %v1383_v29, %s4452_s21  ;;  %v373_v28 = vpack.c.bf16 %v341_v19, %v341_v19  ;;  %v370_v29 = vpack.c.bf16 %v338_v20, %v338_v20  ;;  %v1470_v56 = vunpack.c.l.b16 %v376_v48  ;;  %v387_v1 = vpack.c.bf16 %v355_v59, %v355_v59  ;;  %v356_v19 = vld [vmem:[%s4506_s20 + $0x151] sm:$0xff]  ;;  %v357_v20 = vld [vmem:[%s4506_s20 + $0x159] sm:$0xff] }
  0x32   : > { %v1495_v3 = vpack.c.b16 %v1473_v55, %v1472_v54  ;;  %v384_v5 = vpack.c.bf16 %v352_v60, %v352_v60  ;;  %v383_v8 = vpack.c.bf16 %v351_v63, %v351_v63  ;;  %v1480_v9 = vunpack.c.l.b16 %v386_v0  ;;  %v3948_v54 = vld [vmem:[%s4506_s20 + $0x231] sm:$0xff] }
  0x33   : > { %v1467_v38 = vunpack.c.l.b16 %v373_v28  ;;  %v1464_v39 = vunpack.c.l.b16 %v370_v29  ;;  %v1481_v10 = vunpack.c.l.b16 %v387_v1  ;;  %v424_v22 = vpack.c.bf16 %v3935_v11, %v3935_v11  ;;  %v3945_v55 = vld [vmem:[%s4506_s20 + $0x211] sm:$0xff] }
  0x34   : > { %v1478_v15 = vunpack.c.l.b16 %v384_v5  ;;  %v1477_v18 = vunpack.c.l.b16 %v383_v8  ;;  %v425_v23 = vpack.c.bf16 %v3936_v12, %v3936_v12  ;;  %v388_v26 = vpack.c.bf16 %v356_v19, %v356_v19  ;;  %v3949_v19 = vld [vmem:[%s4506_s20 + $0x241] sm:$0xff] }
  0x35   : > { %v1492_v50 = vpack.c.b16 %v1467_v38, %v1466_v37  ;;  %v1491_v51 = vpack.c.b16 %v1465_v40, %v1464_v39  ;;  %v1499_v21 = vpack.c.b16 %v1481_v10, %v1480_v9  ;;  %v1566_v30 = vunpack.c.l.b16 %v424_v22  ;;  %v3942_v37 = vld [vmem:[%s4506_s20 + $0x1e9] sm:$0xff]  ;;  %v3940_v39 = vld [vmem:[%s4506_s20 + $0x1d1] sm:$0xff] }
  0x36   : > { %v1567_v31 = vunpack.c.l.b16 %v425_v23  ;;  %v3939_v38 = vld [vmem:[%s4506_s20 + $0x1c9] sm:$0xff]  ;;  %v3937_v40 = vld [vmem:[%s4506_s20 + $0x1b1] sm:$0xff]  ;;  %v429_v48 = vpack.c.bf16 %v3940_v39, %v3940_v39  ;;  %v437_v1 = vpack.c.bf16 %v3948_v54, %v3948_v54 }
  0x37   : > { %v428_v47 = vpack.c.bf16 %v3939_v38, %v3939_v38 }
  0x38   : > { %1418 = vrot.lane.b32.xlu2 %v1388_v44, %s4452_s21  ;;  %v380_v44 = vpack.c.bf16 %v348_v33, %v348_v33  ;;  %v1571_v58 = vunpack.c.l.b16 %v429_v48  ;;  %v1579_v9 = vunpack.c.l.b16 %v437_v1 }
  0x39   : > { %1416 = vrot.lane.b32.xlu1 %v1387_v45, %s4452_s21  ;;  %1414 = vrot.lane.b32.xlu0 %v1386_v49, %s4452_s21  ;;  %v381_v45 = vpack.c.bf16 %v349_v34, %v349_v34  ;;  %v377_v49 = vpack.c.bf16 %v345_v42, %v345_v42  ;;  %v1482_v34 = vunpack.c.l.b16 %v388_v26  ;;  %v430_v42 = vpack.c.bf16 %v3941_v36, %v3941_v36 }
  0x3a   : > { %v1474_v52 = vunpack.c.l.b16 %v380_v44  ;;  %v1598_v44 = vpack.c.b16 %v1567_v31, %v1566_v30 }
  0x3b   : > { %v1475_v53 = vunpack.c.l.b16 %v381_v45  ;;  %v1471_v57 = vunpack.c.l.b16 %v377_v49  ;;  %v426_v49 = vpack.c.bf16 %v3937_v40, %v3937_v40  ;;  %v3955_v40 = vld [vmem:[%s4506_s20 + $0x289] sm:$0xff] }
  0x3c   : > { %v444_v48 = vpack.c.bf16 %v3955_v40, %v3955_v40 }
  0x3d   : > { %v1494_v4 = vpack.c.b16 %v1471_v57, %v1470_v56  ;;  %v3946_v56 = vld [vmem:[%s4506_s20 + $0x219] sm:$0xff]  ;;  %v1570_v57 = vunpack.c.l.b16 %v428_v47  ;;  %v1568_v59 = vunpack.c.l.b16 %v426_v49 }
  0x40   : > { %1504 = vrot.lane.b32.xlu2 %v1487_v2, %s4453_s22  ;;  %v1496_v2 = vpack.c.b16 %v1475_v53, %v1474_v52  ;;  %v3947_v53 = vld [vmem:[%s4506_s20 + $0x229] sm:$0xff] }
  0x41   : > { %1502 = vrot.lane.b32.xlu1 %v1486_v6, %s4453_s22  ;;  %1420 = vrot.lane.b32.xlu0 %v1389_v7, %s4452_s21  ;;  %v385_v6 = vpack.c.bf16 %v353_v61, %v353_v61  ;;  %v382_v7 = vpack.c.bf16 %v350_v62, %v350_v62  ;;  %v3943_v61 = vld [vmem:[%s4506_s20 + $0x1f9] sm:$0xff]  ;;  %v3944_v62 = vld [vmem:[%s4506_s20 + $0x201] sm:$0xff]  ;;  %v436_v0 = vpack.c.bf16 %v3947_v53, %v3947_v53 }
  0x42   : > { %v433_v5 = vpack.c.bf16 %v3944_v62, %v3944_v62  ;;  %v3964_v62 = vld [vmem:[%s4506_s20 + $0x2f1] sm:$0xff] }
  0x43   : > { %v1479_v16 = vunpack.c.l.b16 %v385_v6  ;;  %v1476_v17 = vunpack.c.l.b16 %v382_v7  ;;  %v1600_v6 = vpack.c.b16 %v1571_v58, %v1570_v57  ;;  %v1578_v8 = vunpack.c.l.b16 %v436_v0  ;;  %v3965_v58 = vld [vmem:[%s4506_s20 + $0x301] sm:$0xff]  ;;  %v3962_v0 = vld [vmem:[%s4506_s20 + $0x2d9] sm:$0xff] }
  0x44   : > { %v454_v1 = vpack.c.bf16 %v3965_v58, %v3965_v58 }
  0x45   : > { %v1498_v28 = vpack.c.b16 %v1479_v16, %v1478_v15  ;;  %v1497_v29 = vpack.c.b16 %v1477_v18, %v1476_v17  ;;  %v3954_v15 = vld [vmem:[%s4506_s20 + $0x279] sm:$0xff]  ;;  %v3952_v18 = vld [vmem:[%s4506_s20 + $0x261] sm:$0xff]  ;;  %v1604_v23 = vpack.c.b16 %v1579_v9, %v1578_v8  ;;  %v451_v9 = vpack.c.bf16 %v3962_v0, %v3962_v0 }
  0x46   : > { %v3951_v16 = vld [vmem:[%s4506_s20 + $0x259] sm:$0xff]  ;;  %v443_v22 = vpack.c.bf16 %v3954_v15, %v3954_v15  ;;  %v3970_v15 = vld [vmem:[%s4506_s20 + $0x350] sm:$0xff] }
  0x47   : > { %v440_v26 = vpack.c.bf16 %v3951_v16, %v3951_v16  ;;  %v3984_v0 = vld [vmem:[%s4506_s20 + $0x3f8] sm:$0xff] }
  0x48   : > { %1510 = vrot.lane.b32.xlu2 %v1490_v24, %s4453_s22  ;;  %v390_v24 = vpack.c.bf16 %v358_v13, %v358_v13  ;;  %v1575_v13 = vunpack.c.l.b16 %v433_v5  ;;  %v1585_v31 = vunpack.c.l.b16 %v443_v22  ;;  %v3968_v22 = vld [vmem:[%s4506_s20 + $0x338] sm:$0xff] }
  0x49   : > { %1508 = vrot.lane.b32.xlu1 %v1489_v25, %s4453_s22  ;;  %1506 = vrot.lane.b32.xlu0 %v1488_v27, %s4453_s22  ;;  %v391_v25 = vpack.c.bf16 %v359_v14, %v359_v14  ;;  %v389_v27 = vpack.c.bf16 %v357_v20, %v357_v20  ;;  %v3953_v14 = vld [vmem:[%s4506_s20 + $0x271] sm:$0xff]  ;;  %v3950_v20 = vld [vmem:[%s4506_s20 + $0x249] sm:$0xff]  ;;  %v1582_v36 = vunpack.c.l.b16 %v440_v26 }
  0x4a   : > { %v1484_v32 = vunpack.c.l.b16 %v390_v24 }
  0x4b   : > { %v1485_v33 = vunpack.c.l.b16 %v391_v25  ;;  %v1483_v35 = vunpack.c.l.b16 %v389_v27  ;;  %v441_v27 = vpack.c.bf16 %v3952_v18, %v3952_v18 }
  0x4d   : > { %v1501_v45 = vpack.c.b16 %v1485_v33, %v1484_v32  ;;  %v1500_v46 = vpack.c.b16 %v1483_v35, %v1482_v34  ;;  %v3959_v32 = vld [vmem:[%s4506_s20 + $0x2b9] sm:$0xff]  ;;  %v3960_v33 = vld [vmem:[%s4506_s20 + $0x2c1] sm:$0xff]  ;;  %v3958_v35 = vld [vmem:[%s4506_s20 + $0x2a9] sm:$0xff] }
  0x4e   : > { %v3957_v34 = vld [vmem:[%s4506_s20 + $0x2a1] sm:$0xff]  ;;  %v447_v47 = vpack.c.bf16 %v3958_v35, %v3958_v35 }
  0x50   : > { %1516 = vrot.lane.b32.xlu2 %v1493_v43, %s4453_s22  ;;  %v431_v43 = vpack.c.bf16 %v3942_v37, %v3942_v37  ;;  %v1583_v37 = vunpack.c.l.b16 %v441_v27 }
  0x51   : > { %1514 = vrot.lane.b32.xlu1 %v1492_v50, %s4453_s22  ;;  %1512 = vrot.lane.b32.xlu0 %v1491_v51, %s4453_s22  ;;  %v427_v50 = vpack.c.bf16 %v3938_v41, %v3938_v41  ;;  %v1572_v51 = vunpack.c.l.b16 %v430_v42  ;;  %v3956_v41 = vld [vmem:[%s4506_s20 + $0x291] sm:$0xff] }
  0x52   : > { %v1573_v52 = vunpack.c.l.b16 %v431_v43  ;;  %v445_v49 = vpack.c.bf16 %v3956_v41, %v3956_v41  ;;  %v3977_v41 = vld [vmem:[%s4506_s20 + $0x3a8] sm:$0xff] }
  0x53   : > { %v1569_v60 = vunpack.c.l.b16 %v427_v50  ;;  %v1606_v50 = vpack.c.b16 %v1583_v37, %v1582_v36 }
  0x54   : > { %v1601_v63 = vpack.c.b16 %v1573_v52, %v1572_v51  ;;  %v1587_v57 = vunpack.c.l.b16 %v445_v49 }
  0x55   : > { %v1599_v7 = vpack.c.b16 %v1569_v60, %v1568_v59  ;;  %v3966_v59 = vld [vmem:[%s4506_s20 + $0x309] sm:$0xff] }
  0x56   : > { %v3963_v60 = vld [vmem:[%s4506_s20 + $0x2e9] sm:$0xff] }
  0x58   : > { %1522 = vrot.lane.b32.xlu2 %v1496_v2, %s4453_s22  ;;  %v434_v2 = vpack.c.bf16 %v3945_v55, %v3945_v55  ;;  %v1589_v55 = vunpack.c.l.b16 %v447_v47  ;;  %v3973_v47 = vld [vmem:[%s4506_s20 + $0x378] sm:$0xff] }
  0x59   : > { %1520 = vrot.lane.b32.xlu1 %v1495_v3, %s4453_s22  ;;  %1518 = vrot.lane.b32.xlu0 %v1494_v4, %s4453_s22  ;;  %v435_v3 = vpack.c.bf16 %v3946_v56, %v3946_v56  ;;  %v432_v4 = vpack.c.bf16 %v3943_v61, %v3943_v61  ;;  %v1586_v56 = vunpack.c.l.b16 %v444_v48  ;;  %v3974_v48 = vld [vmem:[%s4506_s20 + $0x380] sm:$0xff]  ;;  %v495_v58 = vpack.c.bf16 %v3973_v47, %v3973_v47 }
  0x5a   : > { %v1576_v10 = vunpack.c.l.b16 %v434_v2  ;;  %v455_v2 = vpack.c.bf16 %v3966_v59, %v3966_v59  ;;  %v496_v59 = vpack.c.bf16 %v3974_v48, %v3974_v48 }
  0x5b   : > { %v1577_v11 = vunpack.c.l.b16 %v435_v3  ;;  %v1574_v12 = vunpack.c.l.b16 %v432_v4  ;;  %v1608_v5 = vpack.c.b16 %v1587_v57, %v1586_v56 }
  0x5d   : > { %v1603_v24 = vpack.c.b16 %v1577_v11, %v1576_v10  ;;  %v1602_v25 = vpack.c.b16 %v1575_v13, %v1574_v12  ;;  %v1596_v10 = vunpack.c.l.b16 %v454_v1  ;;  %v1597_v11 = vunpack.c.l.b16 %v455_v2  ;;  %v3971_v12 = vld [vmem:[%s4506_s20 + $0x360] sm:$0xff]  ;;  %v3972_v13 = vld [vmem:[%s4506_s20 + $0x368] sm:$0xff]  ;;  %v3981_v1 = vld [vmem:[%s4506_s20 + $0x3d8] sm:$0xff] }
  0x5e   : > { %v493_v27 = vpack.c.bf16 %v3971_v12, %v3971_v12  ;;  %v3982_v2 = vld [vmem:[%s4506_s20 + $0x3e0] sm:$0xff] }
  0x5f   : > { %v1613_v26 = vpack.c.b16 %v1597_v11, %v1596_v10 }
  0x60   : > { %1528 = vrot.lane.b32.xlu2 %v1499_v21, %s4453_s22  ;;  %v442_v21 = vpack.c.bf16 %v3953_v14, %v3953_v14  ;;  %v3969_v14 = vld [vmem:[%s4506_s20 + $0x348] sm:$0xff]  ;;  %v1682_v35 = vunpack.c.l.b16 %v493_v27 }
  0x61   : > { %1526 = vrot.lane.b32.xlu1 %v1498_v28, %s4453_s22  ;;  %1524 = vrot.lane.b32.xlu0 %v1497_v29, %s4453_s22  ;;  %v438_v28 = vpack.c.bf16 %v3949_v19, %v3949_v19  ;;  %v439_v29 = vpack.c.bf16 %v3950_v20, %v3950_v20  ;;  %v1593_v20 = vunpack.c.l.b16 %v451_v9 }
  0x62   : > { %v1584_v30 = vunpack.c.l.b16 %v442_v21  ;;  %v3967_v21 = vld [vmem:[%s4506_s20 + $0x330] sm:$0xff] }
  0x63   : > { %v1580_v38 = vunpack.c.l.b16 %v438_v28  ;;  %v1581_v39 = vunpack.c.l.b16 %v439_v29  ;;  %v494_v28 = vpack.c.bf16 %v3972_v13, %v3972_v13  ;;  %v491_v29 = vpack.c.bf16 %v3969_v14, %v3969_v14 }
  0x64   : > { %v1607_v43 = vpack.c.b16 %v1585_v31, %v1584_v30  ;;  %v492_v30 = vpack.c.bf16 %v3970_v15, %v3970_v15  ;;  %v489_v31 = vpack.c.bf16 %v3967_v21, %v3967_v21  ;;  %v506_v14 = vpack.c.bf16 %v3984_v0, %v3984_v0  ;;  %v3991_v0 = vld [vmem:[%s4506_s20 + $0x450] sm:$0xff] }
  0x65   : > { %v1605_v51 = vpack.c.b16 %v1581_v39, %v1580_v38  ;;  %v1683_v36 = vunpack.c.l.b16 %v494_v28  ;;  %v1680_v37 = vunpack.c.l.b16 %v491_v29  ;;  %v503_v15 = vpack.c.bf16 %v3981_v1, %v3981_v1  ;;  %v3992_v1 = vld [vmem:[%s4506_s20 + $0x458] sm:$0xff] }
  0x66   : > { %v1681_v38 = vunpack.c.l.b16 %v492_v30  ;;  %v1678_v39 = vunpack.c.l.b16 %v489_v31  ;;  %v3989_v31 = vld [vmem:[%s4506_s20 + $0x438] sm:$0xff] }
  0x67   : > { %v1692_v27 = vunpack.c.l.b16 %v503_v15 }
  0x68   : > { %1614 = vrot.lane.b32.xlu2 %v1598_v44, %s4454_s23  ;;  %v448_v44 = vpack.c.bf16 %v3959_v32, %v3959_v32  ;;  %v490_v32 = vpack.c.bf16 %v3968_v22, %v3968_v22 }
  0x69   : > { %1532 = vrot.lane.b32.xlu1 %v1501_v45, %s4453_s22  ;;  %1530 = vrot.lane.b32.xlu0 %v1500_v46, %s4453_s22  ;;  %v449_v45 = vpack.c.bf16 %v3960_v33, %v3960_v33  ;;  %v446_v46 = vpack.c.bf16 %v3957_v34, %v3957_v34 }
  0x6a   : > { %v1590_v52 = vunpack.c.l.b16 %v448_v44  ;;  %v1679_v40 = vunpack.c.l.b16 %v490_v32  ;;  %v3975_v44 = vld [vmem:[%s4506_s20 + $0x390] sm:$0xff]  ;;  %v3990_v32 = vld [vmem:[%s4506_s20 + $0x440] sm:$0xff] }
  0x6b   : > { %v1591_v53 = vunpack.c.l.b16 %v449_v45  ;;  %v1588_v54 = vunpack.c.l.b16 %v446_v46  ;;  %v3976_v46 = vld [vmem:[%s4506_s20 + $0x398] sm:$0xff]  ;;  %v497_v56 = vpack.c.bf16 %v3975_v44, %v3975_v44 }
  0x6c   : > { %v498_v57 = vpack.c.bf16 %v3976_v46, %v3976_v46 }
  0x6d   : > { %v1610_v3 = vpack.c.b16 %v1591_v53, %v1590_v52  ;;  %v1609_v4 = vpack.c.b16 %v1589_v55, %v1588_v54  ;;  %v1712_v53 = vpack.c.b16 %v1683_v36, %v1682_v35  ;;  %v1711_v54 = vpack.c.b16 %v1681_v38, %v1680_v37  ;;  %v3988_v35 = vld [vmem:[%s4506_s20 + $0x428] sm:$0xff]  ;;  %v3986_v37 = vld [vmem:[%s4506_s20 + $0x410] sm:$0xff] }
  0x6e   : > { %v1710_v55 = vpack.c.b16 %v1679_v40, %v1678_v39  ;;  %v3985_v36 = vld [vmem:[%s4506_s20 + $0x408] sm:$0xff]  ;;  %v511_v40 = vpack.c.bf16 %v3989_v31, %v3989_v31  ;;  %v510_v48 = vpack.c.bf16 %v3988_v35, %v3988_v35  ;;  %v4000_v31 = vld [vmem:[%s4506_s20 + $0x4d0] sm:$0xff] }
  0x70   : > { %1620 = vrot.lane.b32.xlu2 %v1601_v63, %s4454_s23  ;;  %v3961_v63 = vld [vmem:[%s4506_s20 + $0x2d1] sm:$0xff] }
  0x71   : > { %1618 = vrot.lane.b32.xlu1 %v1600_v6, %s4454_s23  ;;  %1616 = vrot.lane.b32.xlu0 %v1599_v7, %s4454_s23  ;;  %v452_v6 = vpack.c.bf16 %v3963_v60, %v3963_v60  ;;  %v453_v7 = vpack.c.bf16 %v3964_v62, %v3964_v62  ;;  %v450_v8 = vpack.c.bf16 %v3961_v63, %v3961_v63  ;;  %v3983_v63 = vld [vmem:[%s4506_s20 + $0x3f0] sm:$0xff] }
  0x72   : > { %v4625_v17 = vpop.permute.xlu2 %1398  ;;  %v505_v13 = vpack.c.bf16 %v3983_v63, %v3983_v63 }
  0x73   : > { %v1594_v16 = vunpack.c.l.b16 %v452_v6  ;;  %v1595_v18 = vunpack.c.l.b16 %v453_v7  ;;  %v1592_v19 = vunpack.c.l.b16 %v450_v8  ;;  %v1685_v6 = vunpack.c.l.b16 %v496_v59  ;;  %v3979_v7 = vld [vmem:[%s4506_s20 + $0x3c0] sm:$0xff]  ;;  %v3980_v8 = vld [vmem:[%s4506_s20 + $0x3c8] sm:$0xff] }
  0x74   : > { %v1694_v22 = vunpack.c.l.b16 %v505_v13  ;;  %v513_v13 = vpack.c.bf16 %v3991_v0, %v3991_v0  ;;  %v4004_v0 = vld [vmem:[%s4506_s20 + $0x500] sm:$0xff] }
  0x75   : > { %v1612_v33 = vpack.c.b16 %v1595_v18, %v1594_v16  ;;  %v1611_v34 = vpack.c.b16 %v1593_v20, %v1592_v19  ;;  %v504_v16 = vpack.c.bf16 %v3982_v2, %v3982_v2  ;;  %v501_v18 = vpack.c.bf16 %v3979_v7, %v3979_v7 }
  0x76   : > { %v502_v19 = vpack.c.bf16 %v3980_v8, %v3980_v8 }
  0x77   : > { %v1693_v28 = vunpack.c.l.b16 %v504_v16  ;;  %v1690_v29 = vunpack.c.l.b16 %v501_v18 }
  0x78   : > { %1626 = vrot.lane.b32.xlu2 %v1604_v23, %s4454_s23  ;;  %v1691_v30 = vunpack.c.l.b16 %v502_v19 }
  0x79   : > { %1624 = vrot.lane.b32.xlu1 %v1603_v24, %s4454_s23  ;;  %1622 = vrot.lane.b32.xlu0 %v1602_v25, %s4454_s23  ;;  %v1717_v44 = vpack.c.b16 %v1693_v28, %v1692_v27  ;;  %v4001_v27 = vld [vmem:[%s4506_s20 + $0x4e0] sm:$0xff]  ;;  %v4002_v28 = vld [vmem:[%s4506_s20 + $0x4e8] sm:$0xff] }
  0x7a   : > { %v4639_v42 = vpop.permute.xlu2 %1400  ;;  %v1716_v46 = vpack.c.b16 %v1691_v30, %v1690_v29  ;;  %v3999_v29 = vld [vmem:[%s4506_s20 + $0x4c8] sm:$0xff] }
  0x80   : > { %1632 = vrot.lane.b32.xlu2 %v1607_v43, %s4454_s23  ;;  %v3978_v43 = vld [vmem:[%s4506_s20 + $0x3b0] sm:$0xff] }
  0x81   : > { %1630 = vrot.lane.b32.xlu1 %v1606_v50, %s4454_s23  ;;  %1628 = vrot.lane.b32.xlu0 %v1605_v51, %s4454_s23  ;;  %v499_v51 = vpack.c.bf16 %v3977_v41, %v3977_v41  ;;  %v500_v52 = vpack.c.bf16 %v3978_v43, %v3978_v43  ;;  %v512_v41 = vpack.c.bf16 %v3990_v32, %v3990_v32  ;;  %v3997_v32 = vld [vmem:[%s4506_s20 + $0x498] sm:$0xff] }
  0x82   : > { %v4647_v61 = vpop.permute.xlu2 %1406 }
  0x83   : > { %v1688_v60 = vunpack.c.l.b16 %v499_v51  ;;  %v1689_v62 = vunpack.c.l.b16 %v500_v52  ;;  %v507_v51 = vpack.c.bf16 %v3985_v36, %v3985_v36  ;;  %v508_v52 = vpack.c.bf16 %v3986_v37, %v3986_v37 }
  0x84   : > { %v556_v37 = vpack.c.bf16 %v4001_v27, %v4001_v27 }
  0x85   : > { %v1715_v12 = vpack.c.b16 %v1689_v62, %v1688_v60  ;;  %v1699_v60 = vunpack.c.l.b16 %v510_v48  ;;  %v1696_v62 = vunpack.c.l.b16 %v507_v51  ;;  %v1697_v63 = vunpack.c.l.b16 %v508_v52 }
  0x86   : > { %v519_v48 = vpack.c.bf16 %v3997_v32, %v3997_v32  ;;  %v1792_v52 = vunpack.c.l.b16 %v556_v37  ;;  %v4011_v32 = vld [vmem:[%s4506_s20 + $0x558] sm:$0xff]  ;;  %v4012_v37 = vld [vmem:[%s4506_s20 + $0x560] sm:$0xff] }
  0x87   : > { %v1719_v16 = vpack.c.b16 %v1697_v63, %v1696_v62  ;;  %v4003_v63 = vld [vmem:[%s4506_s20 + $0x4f8] sm:$0xff] }
  0x88   : > { %1638 = vrot.lane.b32.xlu2 %v1610_v3, %s4454_s23  ;;  %v1686_v3 = vunpack.c.l.b16 %v497_v56  ;;  %v3996_v56 = vld [vmem:[%s4506_s20 + $0x488] sm:$0xff] }
  0x89   : > { %1636 = vrot.lane.b32.xlu1 %v1609_v4, %s4454_s23  ;;  %1634 = vrot.lane.b32.xlu0 %v1608_v5, %s4454_s23  ;;  %v1687_v4 = vunpack.c.l.b16 %v498_v57  ;;  %v1684_v5 = vunpack.c.l.b16 %v495_v58  ;;  %v3993_v57 = vld [vmem:[%s4506_s20 + $0x468] sm:$0xff]  ;;  %v3994_v58 = vld [vmem:[%s4506_s20 + $0x470] sm:$0xff]  ;;  %v518_v7 = vpack.c.bf16 %v3996_v56, %v3996_v56 }
  0x8a   : > { %v4661_v23 = vpop.permute.xlu2 %1412  ;;  %v515_v8 = vpack.c.bf16 %v3993_v57, %v3993_v57  ;;  %v4005_v56 = vld [vmem:[%s4506_s20 + $0x510] sm:$0xff]  ;;  %v4006_v57 = vld [vmem:[%s4506_s20 + $0x518] sm:$0xff] }
  0x8b   : > { %6346 = vst [vmem:[#allocation2_spill] sm:$0xff] %v4661_v23  ;;  %v4663_v24 = vpop.permute.xlu1 %1394  ;;  %v4665_v25 = vpop.permute.xlu0 %1390  ;;  %v1714_v20 = vpack.c.b16 %v1687_v4, %v1686_v3  ;;  %v1713_v21 = vpack.c.b16 %v1685_v6, %v1684_v5  ;;  %v1707_v19 = vunpack.c.l.b16 %v518_v7  ;;  %v4055_v23 = vld [vmem:[%s4506_s20 + $0x451] sm:$0xff] }
  0x90   : > { %1644 = vrot.lane.b32.xlu2 %v1613_v26, %s4454_s23  ;;  %v1695_v26 = vunpack.c.l.b16 %v506_v14  ;;  %v514_v14 = vpack.c.bf16 %v3992_v1, %v3992_v1 }
  0x91   : > { %1642 = vrot.lane.b32.xlu1 %v1612_v33, %s4454_s23  ;;  %1640 = vrot.lane.b32.xlu0 %v1611_v34, %s4454_s23  ;;  %v3987_v33 = vld [vmem:[%s4506_s20 + $0x420] sm:$0xff] }
  0x92   : > { %v4673_v45 = vpop.permute.xlu2 %1418  ;;  %v1718_v43 = vpack.c.b16 %v1695_v26, %v1694_v22  ;;  %v509_v47 = vpack.c.bf16 %v3987_v33, %v3987_v33  ;;  %v1702_v22 = vunpack.c.l.b16 %v513_v13  ;;  %v1703_v26 = vunpack.c.l.b16 %v514_v14  ;;  %v3998_v33 = vld [vmem:[%s4506_s20 + $0x4a0] sm:$0xff] }
  0x93   : > { %v4678_v49 = vpop.permute.xlu1 %1396  ;;  %v4680_v50 = vpop.permute.xlu0 %1392  ;;  %v520_v51 = vpack.c.bf16 %v3998_v33, %v3998_v33  ;;  %v560_v13 = vpack.c.bf16 %v4005_v56, %v4005_v56  ;;  %v561_v14 = vpack.c.bf16 %v4006_v57, %v4006_v57 }
  0x94   : > { %6347 = vst [vmem:[#allocation3_spill] sm:$0xff] %v4678_v49  ;;  %v1698_v59 = vunpack.c.l.b16 %v509_v47  ;;  %v555_v47 = vpack.c.bf16 %v4000_v31, %v4000_v31  ;;  %v4014_v31 = vld [vmem:[%s4506_s20 + $0x578] sm:$0xff] }
  0x95   : > { %v1709_v62 = vunpack.c.l.b16 %v520_v51 }
  0x96   : > { %v1720_v15 = vpack.c.b16 %v1699_v60, %v1698_v59  ;;  %v1791_v59 = vunpack.c.l.b16 %v555_v47  ;;  %v1708_v60 = vunpack.c.l.b16 %v519_v48  ;;  %v569_v47 = vpack.c.bf16 %v4014_v31, %v4014_v31 }
  0x98   : > { %1730 = vrot.lane.b32.xlu2 %v1712_v53, %s4455_s24  ;;  %v1700_v53 = vunpack.c.l.b16 %v511_v40  ;;  %v557_v40 = vpack.c.bf16 %v4002_v28, %v4002_v28 }
  0x99   : > { %1728 = vrot.lane.b32.xlu1 %v1711_v54, %s4455_s24  ;;  %1726 = vrot.lane.b32.xlu0 %v1710_v55, %s4455_s24  ;;  %v1701_v54 = vunpack.c.l.b16 %v512_v41  ;;  %v3995_v55 = vld [vmem:[%s4506_s20 + $0x480] sm:$0xff] }
  0x9a   : > { %v4691_v9 = vpop.permute.xlu2 %1504  ;;  %v517_v6 = vpack.c.bf16 %v3995_v55, %v3995_v55  ;;  %v4008_v55 = vld [vmem:[%s4506_s20 + $0x530] sm:$0xff] }
  0x9b   : > { %v4693_v10 = vpop.permute.xlu1 %1404  ;;  %v4695_v11 = vpop.permute.xlu0 %1402  ;;  %v1721_v5 = vpack.c.b16 %v1701_v54, %v1700_v53  ;;  %v1793_v53 = vunpack.c.l.b16 %v557_v40  ;;  %v4007_v54 = vld [vmem:[%s4506_s20 + $0x528] sm:$0xff]  ;;  %v4009_v40 = vld [vmem:[%s4506_s20 + $0x540] sm:$0xff] }
  0x9c   : > { %6348 = vst [vmem:[#allocation4_spill] sm:$0xff] %v4693_v10  ;;  %v1706_v18 = vunpack.c.l.b16 %v517_v6 }
  0x9d   : > { %6349 = vst [vmem:[#allocation5_spill] sm:$0xff] %v4695_v11  ;;  %v1823_v7 = vpack.c.b16 %v1793_v53, %v1792_v52  ;;  %v566_v53 = vpack.c.bf16 %v4011_v32, %v4011_v32  ;;  %v4077_v11 = vld [vmem:[%s4506_s20 + $0x571] sm:$0xff] }
  0x9e   : > { %v1724_v41 = vpack.c.b16 %v1707_v19, %v1706_v18  ;;  %v1725_v19 = vpack.c.b16 %v1709_v62, %v1708_v60  ;;  %v4020_v60 = vld [vmem:[%s4506_s20 + $0x5c0] sm:$0xff] }
  0x9f   : > { %v4017_v62 = vld [vmem:[%s4506_s20 + $0x5a0] sm:$0xff] }
  0xa0   : > { %1736 = vrot.lane.b32.xlu2 %v1715_v12, %s4455_s24  ;;  %v516_v12 = vpack.c.bf16 %v3994_v58, %v3994_v58 }
  0xa1   : > { %1734 = vrot.lane.b32.xlu1 %v1714_v20, %s4455_s24  ;;  %1732 = vrot.lane.b32.xlu0 %v1713_v21, %s4455_s24  ;;  %v1704_v20 = vunpack.c.l.b16 %v515_v8  ;;  %v562_v8 = vpack.c.bf16 %v4007_v54, %v4007_v54  ;;  %v567_v54 = vpack.c.bf16 %v4012_v37, %v4012_v37 }
  0xa2   : > { %v4703_v34 = vpop.permute.xlu2 %1510  ;;  %v1705_v21 = vunpack.c.l.b16 %v516_v12  ;;  %v563_v12 = vpack.c.bf16 %v4008_v55, %v4008_v55  ;;  %v564_v55 = vpack.c.bf16 %v4009_v40, %v4009_v40 }
  0xa3   : > { %v4708_v38 = vpop.permute.xlu1 %1410  ;;  %v4710_v39 = vpop.permute.xlu0 %1408 }
  0xa4   : > { %6350 = vst [vmem:[#allocation6_spill] sm:$0xff] %v4708_v38 }
  0xa5   : > { %6351 = vst [vmem:[#allocation7_spill] sm:$0xff] %v4710_v39  ;;  %v4080_v39 = vld [vmem:[%s4506_s20 + $0x591] sm:$0xff] }
  0xa8   : > { %1742 = vrot.lane.b32.xlu2 %v1718_v43, %s4455_s24  ;;  %v1723_v43 = vpack.c.b16 %v1705_v21, %v1704_v20  ;;  %v1798_v20 = vunpack.c.l.b16 %v562_v8  ;;  %v1799_v21 = vunpack.c.l.b16 %v563_v12  ;;  %v1800_v8 = vunpack.c.l.b16 %v564_v55  ;;  %v4021_v55 = vld [vmem:[%s4506_s20 + $0x5d0] sm:$0xff] }
  0xa9   : > { %1740 = vrot.lane.b32.xlu1 %v1717_v44, %s4455_s24  ;;  %1738 = vrot.lane.b32.xlu0 %v1716_v46, %s4455_s24  ;;  %v1722_v44 = vpack.c.b16 %v1703_v26, %v1702_v22  ;;  %v554_v46 = vpack.c.bf16 %v3999_v29, %v3999_v29  ;;  %v1796_v22 = vunpack.c.l.b16 %v560_v13  ;;  %v1797_v26 = vunpack.c.l.b16 %v561_v14  ;;  %v4013_v29 = vld [vmem:[%s4506_s20 + $0x570] sm:$0xff]  ;;  %v4015_v13 = vld [vmem:[%s4506_s20 + $0x588] sm:$0xff] }
  0xaa   : > { %v4721_v2 = vpop.permute.xlu2 %1516  ;;  %v1826_v48 = vpack.c.b16 %v1799_v21, %v1798_v20  ;;  %v4016_v14 = vld [vmem:[%s4506_s20 + $0x590] sm:$0xff]  ;;  %v575_v21 = vpack.c.bf16 %v4020_v60, %v4020_v60 }
  0xab   : > { %6352 = vst [vmem:[#allocation8_spill] sm:$0xff] %v4721_v2  ;;  %v4723_v3 = vpop.permute.xlu1 %1416  ;;  %v4725_v4 = vpop.permute.xlu0 %1414  ;;  %v1790_v58 = vunpack.c.l.b16 %v554_v46  ;;  %v568_v46 = vpack.c.bf16 %v4013_v29, %v4013_v29  ;;  %v1825_v51 = vpack.c.b16 %v1797_v26, %v1796_v22  ;;  %v572_v22 = vpack.c.bf16 %v4017_v62, %v4017_v62 }
  0xac   : > { %6353 = vst [vmem:[#allocation9_spill] sm:$0xff] %v4723_v3  ;;  %v1811_v37 = vunpack.c.l.b16 %v575_v21  ;;  %v4032_v21 = vld [vmem:[%s4506_s20 + $0x339] sm:$0xff] }
  0xad   : > { %6354 = vst [vmem:[#allocation10_spill] sm:$0xff] %v4725_v4  ;;  %v1822_v18 = vpack.c.b16 %v1791_v59, %v1790_v58  ;;  %v1804_v57 = vunpack.c.l.b16 %v568_v46  ;;  %v1805_v58 = vunpack.c.l.b16 %v569_v47  ;;  %v4019_v59 = vld [vmem:[%s4506_s20 + $0x5b8] sm:$0xff]  ;;  %v1808_v40 = vunpack.c.l.b16 %v572_v22  ;;  %v4029_v22 = vld [vmem:[%s4506_s20 + $0x630] sm:$0xff] }
  0xae   : > { %v574_v20 = vpack.c.bf16 %v4019_v59, %v4019_v59 }
  0xb0   : > { %1748 = vrot.lane.b32.xlu2 %v1721_v5, %s4455_s24  ;;  %v1810_v32 = vunpack.c.l.b16 %v574_v20  ;;  %v4031_v20 = vld [vmem:[%s4506_s20 + $0x331] sm:$0xff] }
  0xb1   : > { %1746 = vrot.lane.b32.xlu1 %v1720_v15, %s4455_s24  ;;  %1744 = vrot.lane.b32.xlu0 %v1719_v16, %s4455_s24  ;;  %v558_v15 = vpack.c.bf16 %v4003_v63, %v4003_v63  ;;  %v559_v16 = vpack.c.bf16 %v4004_v0, %v4004_v0  ;;  %v4018_v63 = vld [vmem:[%s4506_s20 + $0x5a8] sm:$0xff]  ;;  %v1802_v0 = vunpack.c.l.b16 %v566_v53 }
  0xb2   : > { %v4733_v30 = vpop.permute.xlu2 %1522  ;;  %v573_v26 = vpack.c.bf16 %v4018_v63, %v4018_v63  ;;  %v1832_v62 = vpack.c.b16 %v1811_v37, %v1810_v32  ;;  %v4027_v32 = vld [vmem:[%s4506_s20 + $0x618] sm:$0xff]  ;;  %v4028_v37 = vld [vmem:[%s4506_s20 + $0x620] sm:$0xff] }
  0xb3   : > { %6355 = vst [vmem:[#allocation11_spill] sm:$0xff] %v4733_v30  ;;  %v4738_v35 = vpop.permute.xlu1 %1502  ;;  %v4740_v36 = vpop.permute.xlu0 %1420  ;;  %v1794_v27 = vunpack.c.l.b16 %v558_v15  ;;  %v1795_v28 = vunpack.c.l.b16 %v559_v16 }
  0xb4   : > { %6356 = vst [vmem:[#allocation12_spill] sm:$0xff] %v4738_v35 }
  0xb5   : > { %6357 = vst [vmem:[#allocation13_spill] sm:$0xff] %v4740_v36  ;;  %v1824_v52 = vpack.c.b16 %v1795_v28, %v1794_v27  ;;  %v570_v27 = vpack.c.bf16 %v4015_v13, %v4015_v13  ;;  %v571_v28 = vpack.c.bf16 %v4016_v14, %v4016_v14 }
  0xb7   : > { %v1806_v46 = vunpack.c.l.b16 %v570_v27  ;;  %v1807_v47 = vunpack.c.l.b16 %v571_v28 }
  0xb8   : > { %1754 = vrot.lane.b32.xlu2 %v1724_v41, %s4455_s24  ;;  %v4010_v41 = vld [vmem:[%s4506_s20 + $0x548] sm:$0xff] }
  0xb9   : > { %1752 = vrot.lane.b32.xlu1 %v1723_v43, %s4455_s24  ;;  %1750 = vrot.lane.b32.xlu0 %v1722_v44, %s4455_s24  ;;  %v565_v56 = vpack.c.bf16 %v4010_v41, %v4010_v41  ;;  %v1809_v41 = vunpack.c.l.b16 %v573_v26  ;;  %v4030_v26 = vld [vmem:[%s4506_s20 + $0x638] sm:$0xff] }
  0xba   : > { %v4751_v1 = vpop.permute.xlu2 %1528 }
  0xbb   : > { %6358 = vst [vmem:[#allocation14_spill] sm:$0xff] %v4751_v1  ;;  %v4753_v5 = vpop.permute.xlu1 %1508  ;;  %v4755_v6 = vpop.permute.xlu0 %1506  ;;  %v1801_v12 = vunpack.c.l.b16 %v565_v56  ;;  %v4022_v56 = vld [vmem:[%s4506_s20 + $0x5d8] sm:$0xff]  ;;  %v1831_v63 = vpack.c.b16 %v1809_v41, %v1808_v40 }
  0xbc   : > { %6359 = vst [vmem:[#allocation15_spill] sm:$0xff] %v4753_v5  ;;  %v577_v13 = vpack.c.bf16 %v4022_v56, %v4022_v56  ;;  %v583_v56 = vpack.c.bf16 %v4028_v37, %v4028_v37  ;;  %v222_v5 = vld [vmem:[%s4506_s20 + $0x110] sm:$0xff] }
  0xbd   : > { %6360 = vst [vmem:[#allocation16_spill] sm:$0xff] %v4755_v6  ;;  %v1827_v31 = vpack.c.b16 %v1801_v12, %v1800_v8  ;;  %v576_v12 = vpack.c.bf16 %v4021_v55, %v4021_v55  ;;  %v582_v55 = vpack.c.bf16 %v4027_v32, %v4027_v32  ;;  %v203_v6 = vld [vmem:[%s4506_s20 + $0x30] sm:$0xff] }
  0xbe   : > { %v235_v35 = vpack.c.bf16 %v203_v6, %v203_v6 }
  0xc0   : > { %1840 = vrot.lane.b32.xlu2 %v1823_v7, %s4456_s25  ;;  %v1803_v7 = vunpack.c.l.b16 %v567_v54  ;;  %v4024_v54 = vld [vmem:[%s4506_s20 + $0x5f0] sm:$0xff] }
  0xc1   : > { %1838 = vrot.lane.b32.xlu1 %v1822_v18, %s4456_s25  ;;  %1756 = vrot.lane.b32.xlu0 %v1725_v19, %s4455_s24  ;;  %v1829_v19 = vpack.c.b16 %v1805_v58, %v1804_v57  ;;  %v579_v8 = vpack.c.bf16 %v4024_v54, %v4024_v54  ;;  %v585_v54 = vpack.c.bf16 %v4030_v26, %v4030_v26  ;;  %v4034_v26 = vld [vmem:[%s4506_s20 + $0x351] sm:$0xff] }
  0xc2   : > { %v4763_v33 = vpop.permute.xlu2 %1614  ;;  %v1828_v29 = vpack.c.b16 %v1803_v7, %v1802_v0  ;;  %v1830_v0 = vpack.c.b16 %v1807_v47, %v1806_v46 }
  0xc3   : > { %6361 = vst [vmem:[#allocation17_spill] sm:$0xff] %v4763_v33  ;;  %v4768_v43 = vpop.permute.xlu1 %1514  ;;  %v4770_v44 = vpop.permute.xlu0 %1512  ;;  %v1815_v28 = vunpack.c.l.b16 %v579_v8  ;;  %v1818_v8 = vunpack.c.l.b16 %v582_v55 }
  0xc4   : > { %6362 = vst [vmem:[#allocation18_spill] sm:$0xff] %v4768_v43  ;;  %v4079_v43 = vld [vmem:[%s4506_s20 + $0x589] sm:$0xff] }
  0xc5   : > { %6363 = vst [vmem:[#allocation19_spill] sm:$0xff] %v4770_v44 }
  0xc8   : > { %1846 = vrot.lane.b32.xlu2 %v1826_v48, %s4456_s25  ;;  %v4025_v48 = vld [vmem:[%s4506_s20 + $0x600] sm:$0xff] }
  0xc9   : > { %1844 = vrot.lane.b32.xlu1 %v1825_v51, %s4456_s25  ;;  %1842 = vrot.lane.b32.xlu0 %v1824_v52, %s4456_s25  ;;  %v4026_v51 = vld [vmem:[%s4506_s20 + $0x608] sm:$0xff]  ;;  %v580_v59 = vpack.c.bf16 %v4025_v48, %v4025_v48  ;;  %v618_v48 = vpack.c.bf16 %v4031_v20, %v4031_v20 }
  0xca   : > { %v4781_v15 = vpop.permute.xlu2 %1620  ;;  %v4023_v52 = vld [vmem:[%s4506_s20 + $0x5e8] sm:$0xff]  ;;  %v581_v60 = vpack.c.bf16 %v4026_v51, %v4026_v51  ;;  %v619_v51 = vpack.c.bf16 %v4032_v21, %v4032_v21 }
  0xcb   : > { %6364 = vst [vmem:[#allocation20_spill] sm:$0xff] %v4781_v15  ;;  %v4783_v16 = vpop.permute.xlu1 %1520  ;;  %v4785_v18 = vpop.permute.xlu0 %1518  ;;  %v578_v7 = vpack.c.bf16 %v4023_v52, %v4023_v52  ;;  %v1816_v14 = vunpack.c.l.b16 %v580_v59  ;;  %v584_v52 = vpack.c.bf16 %v4029_v22, %v4029_v22  ;;  %v4036_v21 = vld [vmem:[%s4506_s20 + $0x369] sm:$0xff]  ;;  %v209_v15 = vld [vmem:[%s4506_s20 + $0x78] sm:$0xff] }
  0xcc   : > { %6365 = vst [vmem:[#allocation21_spill] sm:$0xff] %v4783_v16  ;;  %v4033_v22 = vld [vmem:[%s4506_s20 + $0x349] sm:$0xff] }
  0xcd   : > { %6366 = vst [vmem:[#allocation22_spill] sm:$0xff] %v4785_v18  ;;  %v1814_v27 = vunpack.c.l.b16 %v578_v7  ;;  %v1821_v7 = vunpack.c.l.b16 %v585_v54  ;;  %v621_v54 = vpack.c.bf16 %v4034_v26, %v4034_v26  ;;  %v4068_v18 = vld [vmem:[%s4506_s20 + $0x501] sm:$0xff]  ;;  %v4066_v16 = vld [vmem:[%s4506_s20 + $0x4e9] sm:$0xff] }
  0xcf   : > { %v1834_v59 = vpack.c.b16 %v1815_v28, %v1814_v27 }
  0xd0   : > { %1852 = vrot.lane.b32.xlu2 %v1829_v19, %s4456_s25  ;;  %v1817_v19 = vunpack.c.l.b16 %v581_v60 }
  0xd1   : > { %1850 = vrot.lane.b32.xlu1 %v1828_v29, %s4456_s25  ;;  %1848 = vrot.lane.b32.xlu0 %v1827_v31, %s4456_s25  ;;  %v1812_v29 = vunpack.c.l.b16 %v576_v12  ;;  %v1813_v31 = vunpack.c.l.b16 %v577_v13  ;;  %v1819_v12 = vunpack.c.l.b16 %v583_v56  ;;  %v4037_v13 = vld [vmem:[%s4506_s20 + $0x379] sm:$0xff] }
  0xd2   : > { %v4793_v53 = vpop.permute.xlu2 %1626  ;;  %v1835_v47 = vpack.c.b16 %v1817_v19, %v1816_v14  ;;  %v4038_v14 = vld [vmem:[%s4506_s20 + $0x381] sm:$0xff] }
  0xd3   : > { %6367 = vst [vmem:[#allocation23_spill] sm:$0xff] %v4793_v53  ;;  %v4798_v57 = vpop.permute.xlu1 %1526  ;;  %v4800_v58 = vpop.permute.xlu0 %1524  ;;  %v1833_v60 = vpack.c.b16 %v1813_v31, %v1812_v29  ;;  %v4035_v19 = vld [vmem:[%s4506_s20 + $0x361] sm:$0xff]  ;;  %v624_v29 = vpack.c.bf16 %v4037_v13, %v4037_v13  ;;  %v625_v31 = vpack.c.bf16 %v4038_v14, %v4038_v14  ;;  %v4042_v13 = vld [vmem:[%s4506_s20 + $0x3b1] sm:$0xff] }
  0xd4   : > { %6368 = vst [vmem:[#allocation24_spill] sm:$0xff] %v4798_v57  ;;  %v4049_v57 = vld [vmem:[%s4506_s20 + $0x409] sm:$0xff]  ;;  %v4054_v53 = vld [vmem:[%s4506_s20 + $0x441] sm:$0xff] }
  0xd5   : > { %6369 = vst [vmem:[#allocation25_spill] sm:$0xff] %v4800_v58  ;;  %v1908_v55 = vunpack.c.l.b16 %v624_v29  ;;  %v1909_v56 = vunpack.c.l.b16 %v625_v31 }
  0xd8   : > { %1858 = vrot.lane.b32.xlu2 %v1832_v62, %s4456_s25  ;;  %v1902_v62 = vunpack.c.l.b16 %v618_v48  ;;  %v622_v48 = vpack.c.bf16 %v4035_v19, %v4035_v19 }
  0xd9   : > { %1856 = vrot.lane.b32.xlu1 %v1831_v63, %s4456_s25  ;;  %1854 = vrot.lane.b32.xlu0 %v1830_v0, %s4456_s25  ;;  %v1903_v63 = vunpack.c.l.b16 %v619_v51  ;;  %v1820_v0 = vunpack.c.l.b16 %v584_v52  ;;  %v623_v51 = vpack.c.bf16 %v4036_v21, %v4036_v21  ;;  %v620_v52 = vpack.c.bf16 %v4033_v22, %v4033_v22 }
  0xda   : > { %v4811_v40 = vpop.permute.xlu2 %1632  ;;  %v1937_v22 = vpack.c.b16 %v1909_v56, %v1908_v55 }
  0xdb   : > { %6370 = vst [vmem:[#allocation26_spill] sm:$0xff] %v4811_v40  ;;  %v4813_v41 = vpop.permute.xlu1 %1532  ;;  %v4815_v46 = vpop.permute.xlu0 %1530  ;;  %v1934_v32 = vpack.c.b16 %v1903_v63, %v1902_v62  ;;  %v1837_v37 = vpack.c.b16 %v1821_v7, %v1820_v0  ;;  %v1906_v62 = vunpack.c.l.b16 %v622_v48  ;;  %v1907_v63 = vunpack.c.l.b16 %v623_v51  ;;  %v4053_v40 = vld [vmem:[%s4506_s20 + $0x439] sm:$0xff] }
  0xdc   : > { %6371 = vst [vmem:[#allocation27_spill] sm:$0xff] %v4813_v41  ;;  %v1904_v0 = vunpack.c.l.b16 %v620_v52  ;;  %v1905_v7 = vunpack.c.l.b16 %v621_v54  ;;  %v4113_v41 = vld [vmem:[%s4506_s20 + $0xf0] sm:$0xff] }
  0xdd   : > { %v1936_v48 = vpack.c.b16 %v1907_v63, %v1906_v62  ;;  %v4048_v62 = vld [vmem:[%s4506_s20 + $0x3f9] sm:$0xff] }
  0xde   : > { %v1935_v51 = vpack.c.b16 %v1905_v7, %v1904_v0  ;;  %v4045_v63 = vld [vmem:[%s4506_s20 + $0x3d9] sm:$0xff]  ;;  %v4046_v0 = vld [vmem:[%s4506_s20 + $0x3e1] sm:$0xff] }
  0xe0   : > { %1864 = vrot.lane.b32.xlu2 %v1835_v47, %s4456_s25  ;;  %v1836_v47 = vpack.c.b16 %v1819_v12, %v1818_v8  ;;  %v4039_v8 = vld [vmem:[%s4506_s20 + $0x391] sm:$0xff]  ;;  %v4040_v12 = vld [vmem:[%s4506_s20 + $0x399] sm:$0xff] }
  0xe1   : > { %1862 = vrot.lane.b32.xlu1 %v1834_v59, %s4456_s25  ;;  %1860 = vrot.lane.b32.xlu0 %v1833_v60, %s4456_s25  ;;  %v4043_v59 = vld [vmem:[%s4506_s20 + $0x3c1] sm:$0xff]  ;;  %v4044_v60 = vld [vmem:[%s4506_s20 + $0x3c9] sm:$0xff] }
  0xe2   : > { %v4823_v20 = vpop.permute.xlu2 %1638  ;;  %v630_v26 = vpack.c.bf16 %v4043_v59, %v4043_v59  ;;  %v631_v29 = vpack.c.bf16 %v4044_v60, %v4044_v60  ;;  %v4050_v60 = vld [vmem:[%s4506_s20 + $0x411] sm:$0xff] }
  0xe3   : > { %6372 = vst [vmem:[#allocation28_spill] sm:$0xff] %v4823_v20  ;;  %v4828_v27 = vpop.permute.xlu1 %1618  ;;  %v4830_v28 = vpop.permute.xlu0 %1616  ;;  %v4041_v20 = vld [vmem:[%s4506_s20 + $0x3a9] sm:$0xff] }
  0xe4   : > { %6373 = vst [vmem:[#allocation29_spill] sm:$0xff] %v4828_v27  ;;  %v628_v31 = vpack.c.bf16 %v4041_v20, %v4041_v20  ;;  %v1914_v52 = vunpack.c.l.b16 %v630_v26  ;;  %v1915_v54 = vunpack.c.l.b16 %v631_v29  ;;  %v4047_v20 = vld [vmem:[%s4506_s20 + $0x3f1] sm:$0xff] }
  0xe5   : > { %v4103_v27 = vld [vmem:[%s4506_s20 + $0x78] sm:$0xff] }
  0xe6   : > { %v1912_v58 = vunpack.c.l.b16 %v628_v31  ;;  %v1940_v26 = vpack.c.b16 %v1915_v54, %v1914_v52 }
  0xe8   : > { %1950 = vrot.lane.b32.xlu2 %v1934_v32, %s4457_s26  ;;  %v629_v32 = vpack.c.bf16 %v4042_v13, %v4042_v13 }
  0xe9   : > { %1868 = vrot.lane.b32.xlu1 %v1837_v37, %s4456_s25  ;;  %1866 = vrot.lane.b32.xlu0 %v1836_v47, %s4456_s25  ;;  %v626_v37 = vpack.c.bf16 %v4039_v8, %v4039_v8  ;;  %v627_v47 = vpack.c.bf16 %v4040_v12, %v4040_v12  ;;  %v636_v12 = vpack.c.bf16 %v4049_v57, %v4049_v57 }
  0xea   : > { %v4841_v14 = vpop.permute.xlu2 %1644  ;;  %v1913_v55 = vunpack.c.l.b16 %v629_v32  ;;  %v634_v32 = vpack.c.bf16 %v4047_v20, %v4047_v20 }
  0xeb   : > { %6374 = vst [vmem:[#allocation30_spill] sm:$0xff] %v4841_v14  ;;  %v4843_v19 = vpop.permute.xlu1 %1624  ;;  %v4845_v21 = vpop.permute.xlu0 %1622  ;;  %v1910_v56 = vunpack.c.l.b16 %v626_v37  ;;  %v1911_v59 = vunpack.c.l.b16 %v627_v47  ;;  %v635_v37 = vpack.c.bf16 %v4048_v62, %v4048_v62  ;;  %v632_v47 = vpack.c.bf16 %v4045_v63, %v4045_v63  ;;  %v4089_v14 = vld [vmem:[%s4506_s20 + $0x601] sm:$0xff] }
  0xec   : > { %6375 = vst [vmem:[#allocation31_spill] sm:$0xff] %v4843_v19  ;;  %v1939_v29 = vpack.c.b16 %v1913_v55, %v1912_v58  ;;  %v1918_v57 = vunpack.c.l.b16 %v634_v32  ;;  %v4051_v55 = vld [vmem:[%s4506_s20 + $0x421] sm:$0xff]  ;;  %v642_v63 = vpack.c.bf16 %v4055_v23, %v4055_v23 }
  0xed   : > { %v1938_v31 = vpack.c.b16 %v1911_v59, %v1910_v56  ;;  %v1919_v58 = vunpack.c.l.b16 %v635_v37  ;;  %v1916_v52 = vunpack.c.l.b16 %v632_v47  ;;  %v4052_v56 = vld [vmem:[%s4506_s20 + $0x429] sm:$0xff]  ;;  %v4065_v19 = vld [vmem:[%s4506_s20 + $0x4e1] sm:$0xff] }
  0xee   : > { %v1926_v37 = vunpack.c.l.b16 %v642_v63 }
  0xf0   : > { %1956 = vrot.lane.b32.xlu2 %v1937_v22, %s4457_s26  ;;  %v637_v22 = vpack.c.bf16 %v4050_v60, %v4050_v60 }
  0xf1   : > { %1954 = vrot.lane.b32.xlu1 %v1936_v48, %s4457_s26  ;;  %1952 = vrot.lane.b32.xlu0 %v1935_v51, %s4457_s26  ;;  %v633_v48 = vpack.c.bf16 %v4046_v0, %v4046_v0  ;;  %v1920_v51 = vunpack.c.l.b16 %v636_v12  ;;  %v640_v12 = vpack.c.bf16 %v4053_v40, %v4053_v40 }
  0xf2   : > { %v4853_v13 = vpop.permute.xlu2 %1730  ;;  %v1921_v4 = vunpack.c.l.b16 %v637_v22  ;;  %v641_v22 = vpack.c.bf16 %v4054_v53, %v4054_v53  ;;  %v4059_v53 = vld [vmem:[%s4506_s20 + $0x481] sm:$0xff] }
  0xf3   : > { %6376 = vst [vmem:[#allocation32_spill] sm:$0xff] %v4853_v13  ;;  %v4858_v7 = vpop.permute.xlu1 %1630  ;;  %v4860_v8 = vpop.permute.xlu0 %1628  ;;  %v1917_v54 = vunpack.c.l.b16 %v633_v48  ;;  %v1924_v48 = vunpack.c.l.b16 %v640_v12 }
  0xf4   : > { %6377 = vst [vmem:[#allocation33_spill] sm:$0xff] %v4858_v7  ;;  %v4056_v7 = vld [vmem:[%s4506_s20 + $0x459] sm:$0xff]  ;;  %v1943_v62 = vpack.c.b16 %v1921_v4, %v1920_v51  ;;  %v1925_v4 = vunpack.c.l.b16 %v641_v22  ;;  %v646_v22 = vpack.c.bf16 %v4059_v53, %v4059_v53 }
  0xf5   : > { %6378 = vst [vmem:[#allocation34_spill] sm:$0xff] %v4860_v8  ;;  %v643_v0 = vpack.c.bf16 %v4056_v7, %v4056_v7  ;;  %v1941_v32 = vpack.c.b16 %v1917_v54, %v1916_v52  ;;  %v4062_v7 = vld [vmem:[%s4506_s20 + $0x4a1] sm:$0xff]  ;;  %v4058_v52 = vld [vmem:[%s4506_s20 + $0x471] sm:$0xff] }
  0xf7   : > { %v1927_v47 = vunpack.c.l.b16 %v643_v0  ;;  %v1945_v0 = vpack.c.b16 %v1925_v4, %v1924_v48  ;;  %v4063_v4 = vld [vmem:[%s4506_s20 + $0x4c9] sm:$0xff] }
  0xf8   : > { %1962 = vrot.lane.b32.xlu2 %v1940_v26, %s4457_s26  ;;  %v638_v26 = vpack.c.bf16 %v4051_v55, %v4051_v55 }
  0xf9   : > { %1960 = vrot.lane.b32.xlu1 %v1939_v29, %s4457_s26  ;;  %1958 = vrot.lane.b32.xlu0 %v1938_v31, %s4457_s26  ;;  %v639_v29 = vpack.c.bf16 %v4052_v56, %v4052_v56  ;;  %v1942_v31 = vpack.c.b16 %v1919_v58, %v1918_v57  ;;  %v4060_v57 = vld [vmem:[%s4506_s20 + $0x489] sm:$0xff]  ;;  %v1946_v63 = vpack.c.b16 %v1927_v47, %v1926_v37 }
  0xfa   : > { %v4871_v59 = vpop.permute.xlu2 %1736  ;;  %v1922_v51 = vunpack.c.l.b16 %v638_v26  ;;  %v4057_v58 = vld [vmem:[%s4506_s20 + $0x469] sm:$0xff]  ;;  %v647_v26 = vpack.c.bf16 %v4060_v57, %v4060_v57 }
  0xfb   : > { %6379 = vst [vmem:[#allocation35_spill] sm:$0xff] %v4871_v59  ;;  %v4873_v60 = vpop.permute.xlu1 %1636  ;;  %v4875_v20 = vpop.permute.xlu0 %1634  ;;  %v1923_v23 = vunpack.c.l.b16 %v639_v29  ;;  %v644_v29 = vpack.c.bf16 %v4057_v58, %v4057_v58  ;;  %v4067_v59 = vld [vmem:[%s4506_s20 + $0x4f9] sm:$0xff] }
  0xfc   : > { %6380 = vst [vmem:[#allocation36_spill] sm:$0xff] %v4873_v60  ;;  %v4061_v60 = vld [vmem:[%s4506_s20 + $0x499] sm:$0xff]  ;;  %v1931_v37 = vunpack.c.l.b16 %v647_v26  ;;  %v686_v58 = vpack.c.bf16 %v4067_v59, %v4067_v59 }
  0xfd   : > { %6381 = vst [vmem:[#allocation37_spill] sm:$0xff] %v4875_v20  ;;  %v648_v56 = vpack.c.bf16 %v4061_v60, %v4061_v60  ;;  %v1944_v12 = vpack.c.b16 %v1923_v23, %v1922_v51  ;;  %v1930_v60 = vunpack.c.l.b16 %v646_v22  ;;  %v1928_v47 = vunpack.c.l.b16 %v644_v29  ;;  %v4064_v51 = vld [vmem:[%s4506_s20 + $0x4d1] sm:$0xff]  ;;  %v4101_v20 = vld [vmem:[%s4506_s20 + $0x60] sm:$0xff] }
  0xfe   : > { %v2018_v26 = vunpack.c.l.b16 %v686_v58 }
 0x100   : > { %1968 = vrot.lane.b32.xlu2 %v1943_v62, %s4457_s26  ;;  %v649_v62 = vpack.c.bf16 %v4062_v7, %v4062_v7 }
 0x101   : > { %1966 = vrot.lane.b32.xlu1 %v1942_v31, %s4457_s26  ;;  %1964 = vrot.lane.b32.xlu0 %v1941_v32, %s4457_s26  ;;  %v645_v31 = vpack.c.bf16 %v4058_v52, %v4058_v52  ;;  %v1932_v32 = vunpack.c.l.b16 %v648_v56  ;;  %v687_v52 = vpack.c.bf16 %v4068_v18, %v4068_v18  ;;  %v684_v56 = vpack.c.bf16 %v4065_v19, %v4065_v19  ;;  %v4074_v18 = vld [vmem:[%s4506_s20 + $0x549] sm:$0xff] }
 0x102   : > { %v4883_v40 = vpop.permute.xlu2 %1742 }
 0x103   : > { %6382 = vst [vmem:[#allocation38_spill] sm:$0xff] %v4883_v40  ;;  %v4888_v54 = vpop.permute.xlu1 %1642  ;;  %v4890_v55 = vpop.permute.xlu0 %1640  ;;  %v1933_v40 = vunpack.c.l.b16 %v649_v62  ;;  %v1929_v48 = vunpack.c.l.b16 %v645_v31  ;;  %v685_v62 = vpack.c.bf16 %v4066_v16, %v4066_v16  ;;  %v2019_v29 = vunpack.c.l.b16 %v687_v52  ;;  %v4071_v16 = vld [vmem:[%s4506_s20 + $0x529] sm:$0xff] }
 0x104   : > { %6383 = vst [vmem:[#allocation39_spill] sm:$0xff] %v4890_v55  ;;  %v2016_v31 = vunpack.c.l.b16 %v684_v56 }
 0x105   : > { %v1949_v57 = vpack.c.b16 %v1933_v40, %v1932_v32  ;;  %v1947_v22 = vpack.c.b16 %v1929_v48, %v1928_v47  ;;  %v2017_v40 = vunpack.c.l.b16 %v685_v62  ;;  %v4070_v47 = vld [vmem:[%s4506_s20 + $0x519] sm:$0xff]  ;;  %v2048_v58 = vpack.c.b16 %v2019_v29, %v2018_v26 }
 0x106   : > { %v690_v62 = vpack.c.bf16 %v4071_v16, %v4071_v16 }
 0x107   : > { %v2047_v52 = vpack.c.b16 %v2017_v40, %v2016_v31 }
 0x108   : > { %1974 = vrot.lane.b32.xlu2 %v1946_v63, %s4457_s26  ;;  %v682_v63 = vpack.c.bf16 %v4063_v4, %v4063_v4  ;;  %v2022_v26 = vunpack.c.l.b16 %v690_v62 }
 0x109   : > { %1972 = vrot.lane.b32.xlu1 %v1945_v0, %s4457_s26  ;;  %1970 = vrot.lane.b32.xlu0 %v1944_v12, %s4457_s26  ;;  %v683_v0 = vpack.c.bf16 %v4064_v51, %v4064_v51  ;;  %v1948_v12 = vpack.c.b16 %v1931_v37, %v1930_v60  ;;  %v4072_v60 = vld [vmem:[%s4506_s20 + $0x531] sm:$0xff] }
 0x10a   : > { %v4901_v23 = vpop.permute.xlu2 %1748  ;;  %v2014_v32 = vunpack.c.l.b16 %v682_v63  ;;  %v4069_v37 = vld [vmem:[%s4506_s20 + $0x511] sm:$0xff]  ;;  %v691_v63 = vpack.c.bf16 %v4072_v60, %v4072_v60 }
 0x10b   : > { %6384 = vst [vmem:[#allocation40_spill] sm:$0xff] %v4901_v23  ;;  %v4903_v7 = vpop.permute.xlu1 %1728  ;;  %v4905_v53 = vpop.permute.xlu0 %1726  ;;  %v2015_v59 = vunpack.c.l.b16 %v683_v0  ;;  %v4073_v23 = vld [vmem:[%s4506_s20 + $0x541] sm:$0xff]  ;;  %v688_v0 = vpack.c.bf16 %v4069_v37, %v4069_v37 }
 0x10c   : > { %6385 = vst [vmem:[#allocation41_spill] sm:$0xff] %v4905_v53  ;;  %v692_v51 = vpack.c.bf16 %v4073_v23, %v4073_v23  ;;  %v4078_v23 = vld [vmem:[%s4506_s20 + $0x579] sm:$0xff]  ;;  %v2023_v29 = vunpack.c.l.b16 %v691_v63 }
 0x10d   : > { %v2046_v56 = vpack.c.b16 %v2015_v59, %v2014_v32  ;;  %v2020_v31 = vunpack.c.l.b16 %v688_v0  ;;  %v4075_v32 = vld [vmem:[%s4506_s20 + $0x559] sm:$0xff]  ;;  %v4076_v59 = vld [vmem:[%s4506_s20 + $0x561] sm:$0xff] }
 0x10e   : > { %v2050_v62 = vpack.c.b16 %v2023_v29, %v2022_v26  ;;  %v4084_v26 = vld [vmem:[%s4506_s20 + $0x5c1] sm:$0xff]  ;;  %v4091_v53 = vld [vmem:[%s4506_s20 + $0x619] sm:$0xff] }
 0x10f   : > { %v4081_v29 = vld [vmem:[%s4506_s20 + $0x5a1] sm:$0xff] }
 0x110   : > { %1980 = vrot.lane.b32.xlu2 %v1949_v57, %s4457_s26  ;;  %v693_v57 = vpack.c.bf16 %v4074_v18, %v4074_v18 }
 0x111   : > { %1978 = vrot.lane.b32.xlu1 %v1948_v12, %s4457_s26  ;;  %1976 = vrot.lane.b32.xlu0 %v1947_v22, %s4457_s26  ;;  %v689_v12 = vpack.c.bf16 %v4070_v47, %v4070_v47  ;;  %v2024_v22 = vunpack.c.l.b16 %v692_v51  ;;  %v698_v47 = vpack.c.bf16 %v4079_v43, %v4079_v43  ;;  %v699_v51 = vpack.c.bf16 %v4080_v39, %v4080_v39  ;;  %v4086_v39 = vld [vmem:[%s4506_s20 + $0x5d9] sm:$0xff] }
 0x112   : > { %v4913_v19 = vpop.permute.xlu2 %1754  ;;  %v2025_v44 = vunpack.c.l.b16 %v693_v57  ;;  %v696_v57 = vpack.c.bf16 %v4077_v11, %v4077_v11  ;;  %v4083_v11 = vld [vmem:[%s4506_s20 + $0x5b9] sm:$0xff] }
 0x113   : > { %v4918_v48 = vpop.permute.xlu1 %1734  ;;  %v4920_v4 = vpop.permute.xlu0 %1732  ;;  %v2021_v40 = vunpack.c.l.b16 %v689_v12  ;;  %v2030_v0 = vunpack.c.l.b16 %v698_v47  ;;  %v2031_v12 = vunpack.c.l.b16 %v699_v51 }
 0x114   : > { %6386 = vst [vmem:[#allocation42_spill] sm:$0xff] %v4918_v48  ;;  %v2051_v37 = vpack.c.b16 %v2025_v44, %v2024_v22 }
 0x115   : > { %6387 = vst [vmem:[#allocation43_spill] sm:$0xff] %v4920_v4  ;;  %v2049_v63 = vpack.c.b16 %v2021_v40, %v2020_v31  ;;  %v4085_v4 = vld [vmem:[%s4506_s20 + $0x5d1] sm:$0xff]  ;;  %v4082_v31 = vld [vmem:[%s4506_s20 + $0x5a9] sm:$0xff]  ;;  %v2054_v47 = vpack.c.b16 %v2031_v12, %v2030_v0 }
 0x118   : > { %2066 = vrot.lane.b32.xlu2 %v2048_v58, %s4458_s27  ;;  %v697_v58 = vpack.c.bf16 %v4078_v23, %v4078_v23 }
 0x119   : > { %2064 = vrot.lane.b32.xlu1 %v2047_v52, %s4458_s27  ;;  %2062 = vrot.lane.b32.xlu0 %v2046_v56, %s4458_s27  ;;  %v694_v52 = vpack.c.bf16 %v4075_v32, %v4075_v32  ;;  %v695_v56 = vpack.c.bf16 %v4076_v59, %v4076_v59  ;;  %v704_v59 = vpack.c.bf16 %v4085_v4, %v4085_v4 }
 0x11a   : > { %v4931_v18 = vpop.permute.xlu2 %1840  ;;  %v2029_v44 = vunpack.c.l.b16 %v697_v58  ;;  %v702_v58 = vpack.c.bf16 %v4083_v11, %v4083_v11 }
 0x11b   : > { %v4933_v16 = vpop.permute.xlu1 %1740  ;;  %v4935_v60 = vpop.permute.xlu0 %1738  ;;  %v2026_v22 = vunpack.c.l.b16 %v694_v52  ;;  %v2027_v43 = vunpack.c.l.b16 %v695_v56  ;;  %v703_v52 = vpack.c.bf16 %v4084_v26, %v4084_v26  ;;  %v700_v56 = vpack.c.bf16 %v4081_v29, %v4081_v29 }
 0x11c   : > { %6388 = vst [vmem:[#allocation44_spill] sm:$0xff] %v4933_v16  ;;  %v2034_v4 = vunpack.c.l.b16 %v702_v58  ;;  %v710_v29 = vpack.c.bf16 %v4091_v53, %v4091_v53 }
 0x11d   : > { %6389 = vst [vmem:[#allocation45_spill] sm:$0xff] %v4935_v60  ;;  %v2028_v60 = vunpack.c.l.b16 %v696_v57  ;;  %v2052_v57 = vpack.c.b16 %v2027_v43, %v2026_v22  ;;  %v2032_v0 = vunpack.c.l.b16 %v700_v56  ;;  %v4088_v22 = vld [vmem:[%s4506_s20 + $0x5f1] sm:$0xff] }
 0x11f   : > { %v2053_v51 = vpack.c.b16 %v2029_v44, %v2028_v60  ;;  %v2035_v60 = vunpack.c.l.b16 %v703_v52  ;;  %v4087_v44 = vld [vmem:[%s4506_s20 + $0x5e9] sm:$0xff]  ;;  %v2042_v52 = vunpack.c.l.b16 %v710_v29 }
 0x120   : > { %2072 = vrot.lane.b32.xlu2 %v2051_v37, %s4458_s27  ;;  %v705_v37 = vpack.c.bf16 %v4086_v39, %v4086_v39 }
 0x121   : > { %2070 = vrot.lane.b32.xlu1 %v2050_v62, %s4458_s27  ;;  %2068 = vrot.lane.b32.xlu0 %v2049_v63, %s4458_s27  ;;  %v701_v62 = vpack.c.bf16 %v4082_v31, %v4082_v31  ;;  %v2036_v63 = vunpack.c.l.b16 %v704_v59  ;;  %v708_v59 = vpack.c.bf16 %v4089_v14, %v4089_v14  ;;  %v4095_v14 = vld [vmem:[%s4506_s20 + $0x18] sm:$0xff] }
 0x122   : > { %v4943_v23 = vpop.permute.xlu2 %1846  ;;  %v2037_v13 = vunpack.c.l.b16 %v705_v37 }
 0x123   : > { %6390 = vst [vmem:[#allocation46_spill] sm:$0xff] %v4943_v23  ;;  %v4948_v40 = vpop.permute.xlu1 %1746  ;;  %v4950_v32 = vpop.permute.xlu0 %1744  ;;  %v2033_v12 = vunpack.c.l.b16 %v701_v62  ;;  %v2040_v62 = vunpack.c.l.b16 %v708_v59 }
 0x124   : > { %6391 = vst [vmem:[#allocation47_spill] sm:$0xff] %v4948_v40  ;;  %v4092_v40 = vld [vmem:[%s4506_s20 + $0x621] sm:$0xff]  ;;  %v2057_v26 = vpack.c.b16 %v2037_v13, %v2036_v63 }
 0x125   : > { %6392 = vst [vmem:[#allocation48_spill] sm:$0xff] %v4950_v32  ;;  %v4090_v32 = vld [vmem:[%s4506_s20 + $0x609] sm:$0xff]  ;;  %v711_v31 = vpack.c.bf16 %v4092_v40, %v4092_v40  ;;  %v2055_v58 = vpack.c.b16 %v2033_v12, %v2032_v0  ;;  %v4098_v40 = vld [vmem:[%s4506_s20 + $0x38] sm:$0xff] }
 0x126   : > { %v709_v37 = vpack.c.bf16 %v4090_v32, %v4090_v32  ;;  %v4094_v0 = vld [vmem:[%s4506_s20 + $0x639] sm:$0xff] }
 0x127   : > { %v2043_v56 = vunpack.c.l.b16 %v711_v31 }
 0x128   : > { %2078 = vrot.lane.b32.xlu2 %v2054_v47, %s4458_s27  ;;  %v706_v47 = vpack.c.bf16 %v4087_v44, %v4087_v44  ;;  %v2041_v13 = vunpack.c.l.b16 %v709_v37  ;;  %v747_v37 = vpack.c.bf16 %v4095_v14, %v4095_v14 }
 0x129   : > { %2076 = vrot.lane.b32.xlu1 %v2053_v51, %s4458_s27  ;;  %2074 = vrot.lane.b32.xlu0 %v2052_v57, %s4458_s27  ;;  %v707_v51 = vpack.c.bf16 %v4088_v22, %v4088_v22  ;;  %v2056_v57 = vpack.c.b16 %v2035_v60, %v2034_v4  ;;  %v4096_v4 = vld [vmem:[%s4506_s20 + $0x20] sm:$0xff]  ;;  %v4093_v60 = vld [vmem:[%s4506_s20 + $0x631] sm:$0xff]  ;;  %v2060_v29 = vpack.c.b16 %v2043_v56, %v2042_v52 }
 0x12a   : > { %v4961_v43 = vpop.permute.xlu2 %1852  ;;  %v2038_v63 = vunpack.c.l.b16 %v706_v47  ;;  %v2059_v31 = vpack.c.b16 %v2041_v13, %v2040_v62  ;;  %v748_v47 = vpack.c.bf16 %v4096_v4, %v4096_v4  ;;  %v4099_v13 = vld [vmem:[%s4506_s20 + $0x48] sm:$0xff] }
 0x12b   : > { %6393 = vst [vmem:[#allocation49_spill] sm:$0xff] %v4961_v43  ;;  %v4963_v39 = vpop.permute.xlu1 %1752  ;;  %v4965_v11 = vpop.permute.xlu0 %1750  ;;  %v2039_v53 = vunpack.c.l.b16 %v707_v51  ;;  %v712_v51 = vpack.c.bf16 %v4093_v60, %v4093_v60  ;;  %v755_v60 = vpack.c.bf16 %v4103_v27, %v4103_v27 }
 0x12c   : > { %6394 = vst [vmem:[#allocation50_spill] sm:$0xff] %v4963_v39  ;;  %v2127_v52 = vunpack.c.l.b16 %v748_v47  ;;  %v200_v39 = vld [vmem:[%s4506_s20 + $0x8] sm:$0xff] }
 0x12d   : > { %6395 = vst [vmem:[#allocation51_spill] sm:$0xff] %v4965_v11  ;;  %v4097_v11 = vld [vmem:[%s4506_s20 + $0x30] sm:$0xff]  ;;  %v2058_v59 = vpack.c.b16 %v2039_v53, %v2038_v63  ;;  %v2044_v56 = vunpack.c.l.b16 %v712_v51  ;;  %v2134_v47 = vunpack.c.l.b16 %v755_v60  ;;  %v232_v3 = vpack.c.bf16 %v200_v39, %v200_v39 }
 0x12e   : > { %v749_v22 = vpack.c.bf16 %v4097_v11, %v4097_v11  ;;  %v2126_v11 = vunpack.c.l.b16 %v747_v37  ;;  %v4100_v63 = vld [vmem:[%s4506_s20 + $0x50] sm:$0xff] }
 0x130   : > { %2084 = vrot.lane.b32.xlu2 %v2057_v26, %s4458_s27  ;;  %v750_v26 = vpack.c.bf16 %v4098_v40, %v4098_v40 }
 0x131   : > { %2082 = vrot.lane.b32.xlu1 %v2056_v57, %s4458_s27  ;;  %2080 = vrot.lane.b32.xlu0 %v2055_v58, %s4458_s27  ;;  %v713_v57 = vpack.c.bf16 %v4094_v0, %v4094_v0  ;;  %v2128_v58 = vunpack.c.l.b16 %v749_v22  ;;  %v753_v22 = vpack.c.bf16 %v4101_v20, %v4101_v20  ;;  %v4110_v20 = vld [vmem:[%s4506_s20 + $0xc8] sm:$0xff] }
 0x132   : > { %v4973_v32 = vpop.permute.xlu2 %1858  ;;  %v762_v60 = vpack.c.bf16 %v4110_v20, %v4110_v20 }
 0x133   : > { %6396 = vst [vmem:[#allocation52_spill] sm:$0xff] %v4973_v32  ;;  %v4978_v12 = vpop.permute.xlu1 %1838  ;;  %v4980_v44 = vpop.permute.xlu0 %1756  ;;  %v2129_v32 = vunpack.c.l.b16 %v750_v26  ;;  %v2045_v62 = vunpack.c.l.b16 %v713_v57 }
 0x134   : > { %6397 = vst [vmem:[#allocation53_spill] sm:$0xff] %v4978_v12  ;;  %v4104_v12 = vld [vmem:[%s4506_s20 + $0x80] sm:$0xff] }
 0x135   : > { %6398 = vst [vmem:[#allocation54_spill] sm:$0xff] %v4980_v44  ;;  %v4102_v44 = vld [vmem:[%s4506_s20 + $0x68] sm:$0xff]  ;;  %v2159_v4 = vpack.c.b16 %v2129_v32, %v2128_v58  ;;  %v756_v0 = vpack.c.bf16 %v4104_v12, %v4104_v12  ;;  %v2061_v37 = vpack.c.b16 %v2045_v62, %v2044_v56  ;;  %v2132_v32 = vunpack.c.l.b16 %v753_v22  ;;  %v4109_v58 = vld [vmem:[%s4506_s20 + $0xc0] sm:$0xff]  ;;  %v4105_v56 = vld [vmem:[%s4506_s20 + $0x90] sm:$0xff] }
 0x136   : > { %v754_v26 = vpack.c.bf16 %v4102_v44, %v4102_v44  ;;  %v4107_v44 = vld [vmem:[%s4506_s20 + $0xa8] sm:$0xff]  ;;  %v4106_v62 = vld [vmem:[%s4506_s20 + $0x98] sm:$0xff] }
 0x137   : > { %v2135_v51 = vunpack.c.l.b16 %v756_v0 }
 0x138   : > { %2090 = vrot.lane.b32.xlu2 %v2060_v29, %s4458_s27  ;;  %v751_v29 = vpack.c.bf16 %v4099_v13, %v4099_v13  ;;  %v2133_v27 = vunpack.c.l.b16 %v754_v26 }
 0x139   : > { %2088 = vrot.lane.b32.xlu1 %v2059_v31, %s4458_s27  ;;  %2086 = vrot.lane.b32.xlu0 %v2058_v59, %s4458_s27  ;;  %v752_v31 = vpack.c.bf16 %v4100_v63, %v4100_v63  ;;  %v2158_v59 = vpack.c.b16 %v2127_v52, %v2126_v11  ;;  %v4108_v52 = vld [vmem:[%s4506_s20 + $0xb0] sm:$0xff]  ;;  %v2162_v0 = vpack.c.b16 %v2135_v51, %v2134_v47 }
 0x13a   : > { %v4991_v53 = vpop.permute.xlu2 %1864  ;;  %v2130_v57 = vunpack.c.l.b16 %v751_v29  ;;  %v2161_v22 = vpack.c.b16 %v2133_v27, %v2132_v32  ;;  %v759_v29 = vpack.c.bf16 %v4107_v44, %v4107_v44 }
 0x13b   : > { %6399 = vst [vmem:[#allocation55_spill] sm:$0xff] %v4991_v53  ;;  %v4993_v40 = vpop.permute.xlu1 %1844  ;;  %v4995_v14 = vpop.permute.xlu0 %1842  ;;  %v2131_v12 = vunpack.c.l.b16 %v752_v31  ;;  %v760_v31 = vpack.c.bf16 %v4108_v52, %v4108_v52 }
 0x13c   : > { %6400 = vst [vmem:[#allocation56_spill] sm:$0xff] %v4993_v40  ;;  %v2141_v40 = vunpack.c.l.b16 %v762_v60  ;;  %v2138_v47 = vunpack.c.l.b16 %v759_v29 }
 0x13d   : > { %6401 = vst [vmem:[#allocation57_spill] sm:$0xff] %v4995_v14  ;;  %v2160_v26 = vpack.c.b16 %v2131_v12, %v2130_v57  ;;  %v2139_v51 = vunpack.c.l.b16 %v760_v31  ;;  %v4111_v57 = vld [vmem:[%s4506_s20 + $0xd8] sm:$0xff]  ;;  %v4112_v12 = vld [vmem:[%s4506_s20 + $0xe0] sm:$0xff] }
 0x140   : > { %2176 = vrot.lane.b32.xlu2 %v2159_v4, %s4459_s28  ;;  %v761_v4 = vpack.c.bf16 %v4109_v58, %v4109_v58 }
 0x141   : > { %2174 = vrot.lane.b32.xlu1 %v2158_v59, %s4459_s28  ;;  %2092 = vrot.lane.b32.xlu0 %v2061_v37, %s4458_s27  ;;  %v757_v59 = vpack.c.bf16 %v4105_v56, %v4105_v56  ;;  %v758_v37 = vpack.c.bf16 %v4106_v62, %v4106_v62 }
 0x142   : > { %v5003_v11 = vpop.permute.xlu2 %1950  ;;  %v2140_v14 = vunpack.c.l.b16 %v761_v4  ;;  %v765_v4 = vpack.c.bf16 %v4113_v41, %v4113_v41  ;;  %v4119_v41 = vld [vmem:[%s4506_s20 + $0x138] sm:$0xff] }
 0x143   : > { %6402 = vst [vmem:[#allocation58_spill] sm:$0xff] %v5003_v11  ;;  %v5008_v13 = vpop.permute.xlu1 %1850  ;;  %v5010_v63 = vpop.permute.xlu0 %1848  ;;  %v4115_v11 = vld [vmem:[%s4506_s20 + $0x108] sm:$0xff]  ;;  %v2136_v32 = vunpack.c.l.b16 %v757_v59  ;;  %v2137_v27 = vunpack.c.l.b16 %v758_v37 }
 0x144   : > { %6403 = vst [vmem:[#allocation59_spill] sm:$0xff] %v5008_v13  ;;  %v4116_v13 = vld [vmem:[%s4506_s20 + $0x110] sm:$0xff]  ;;  %v2165_v52 = vpack.c.b16 %v2141_v40, %v2140_v14  ;;  %v767_v56 = vpack.c.bf16 %v4115_v11, %v4115_v11  ;;  %v2144_v37 = vunpack.c.l.b16 %v765_v4 }
 0x145   : > { %6404 = vst [vmem:[#allocation60_spill] sm:$0xff] %v5010_v63  ;;  %v4114_v63 = vld [vmem:[%s4506_s20 + $0xf8] sm:$0xff]  ;;  %v768_v62 = vpack.c.bf16 %v4116_v13, %v4116_v13  ;;  %v2163_v29 = vpack.c.b16 %v2137_v27, %v2136_v32  ;;  %v4118_v32 = vld [vmem:[%s4506_s20 + $0x128] sm:$0xff] }
 0x146   : > { %v766_v60 = vpack.c.bf16 %v4114_v63, %v4114_v63  ;;  %v2146_v31 = vunpack.c.l.b16 %v767_v56  ;;  %v4122_v13 = vld [vmem:[%s4506_s20 + $0x158] sm:$0xff] }
 0x147   : > { %v2147_v59 = vunpack.c.l.b16 %v768_v62 }
 0x148   : > { %2182 = vrot.lane.b32.xlu2 %v2162_v0, %s4459_s28  ;;  %v763_v0 = vpack.c.bf16 %v4111_v57, %v4111_v57  ;;  %v2145_v40 = vunpack.c.l.b16 %v766_v60  ;;  %v771_v60 = vpack.c.bf16 %v4119_v41, %v4119_v41 }
 0x149   : > { %2180 = vrot.lane.b32.xlu1 %v2161_v22, %s4459_s28  ;;  %2178 = vrot.lane.b32.xlu0 %v2160_v26, %s4459_s28  ;;  %v764_v22 = vpack.c.bf16 %v4112_v12, %v4112_v12  ;;  %v2164_v26 = vpack.c.b16 %v2139_v51, %v2138_v47  ;;  %v4120_v47 = vld [vmem:[%s4506_s20 + $0x140] sm:$0xff]  ;;  %v2168_v56 = vpack.c.b16 %v2147_v59, %v2146_v31 }
 0x14a   : > { %v5021_v58 = vpop.permute.xlu2 %1956  ;;  %v2142_v14 = vunpack.c.l.b16 %v763_v0  ;;  %v4117_v51 = vld [vmem:[%s4506_s20 + $0x120] sm:$0xff]  ;;  %v2167_v62 = vpack.c.b16 %v2145_v40, %v2144_v37  ;;  %v772_v0 = vpack.c.bf16 %v4120_v47, %v4120_v47  ;;  %v4123_v40 = vld [vmem:[%s4506_s20 + $0x168] sm:$0xff] }
 0x14b   : > { %6405 = vst [vmem:[#allocation61_spill] sm:$0xff] %v5021_v58  ;;  %v5023_v20 = vpop.permute.xlu1 %1856  ;;  %v5025_v44 = vpop.permute.xlu0 %1854  ;;  %v2143_v11 = vunpack.c.l.b16 %v764_v22  ;;  %v769_v22 = vpack.c.bf16 %v4117_v51, %v4117_v51  ;;  %v4125_v58 = vld [vmem:[%s4506_s20 + $0x180] sm:$0xff] }
 0x14c   : > { %6406 = vst [vmem:[#allocation62_spill] sm:$0xff] %v5023_v20  ;;  %v2151_v31 = vunpack.c.l.b16 %v772_v0 }
 0x14d   : > { %6407 = vst [vmem:[#allocation63_spill] sm:$0xff] %v5025_v44  ;;  %v4121_v44 = vld [vmem:[%s4506_s20 + $0x150] sm:$0xff]  ;;  %v2166_v4 = vpack.c.b16 %v2143_v11, %v2142_v14  ;;  %v2148_v59 = vunpack.c.l.b16 %v769_v22 }
 0x14e   : > { %v773_v12 = vpack.c.bf16 %v4121_v44, %v4121_v44  ;;  %v2150_v44 = vunpack.c.l.b16 %v771_v60  ;;  %v4124_v14 = vld [vmem:[%s4506_s20 + $0x170] sm:$0xff] }
 0x150   : > { %2188 = vrot.lane.b32.xlu2 %v2165_v52, %s4459_s28  ;;  %v774_v52 = vpack.c.bf16 %v4122_v13, %v4122_v13 }
 0x151   : > { %2186 = vrot.lane.b32.xlu1 %v2164_v26, %s4459_s28  ;;  %2184 = vrot.lane.b32.xlu0 %v2163_v29, %s4459_s28  ;;  %v770_v26 = vpack.c.bf16 %v4118_v32, %v4118_v32  ;;  %v2152_v29 = vunpack.c.l.b16 %v773_v12  ;;  %v777_v12 = vpack.c.bf16 %v4125_v58, %v4125_v58  ;;  %v4134_v58 = vld [vmem:[%s4506_s20 + $0x200] sm:$0xff] }
 0x152   : > { %v5033_v63 = vpop.permute.xlu2 %1962  ;;  %v2153_v20 = vunpack.c.l.b16 %v774_v52 }
 0x153   : > { %6408 = vst [vmem:[#allocation64_spill] sm:$0xff] %v5033_v63  ;;  %v5038_v27 = vpop.permute.xlu1 %1862  ;;  %v5040_v57 = vpop.permute.xlu0 %1860  ;;  %v4127_v63 = vld [vmem:[%s4506_s20 + $0x1b0] sm:$0xff]  ;;  %v2149_v37 = vunpack.c.l.b16 %v770_v26 }
 0x154   : > { %6409 = vst [vmem:[#allocation65_spill] sm:$0xff] %v5038_v27  ;;  %v4128_v27 = vld [vmem:[%s4506_s20 + $0x1b8] sm:$0xff]  ;;  %v2171_v47 = vpack.c.b16 %v2153_v20, %v2152_v29  ;;  %v812_v51 = vpack.c.bf16 %v4127_v63, %v4127_v63  ;;  %v2156_v20 = vunpack.c.l.b16 %v777_v12 }
 0x155   : > { %6410 = vst [vmem:[#allocation66_spill] sm:$0xff] %v5040_v57  ;;  %v4126_v57 = vld [vmem:[%s4506_s20 + $0x188] sm:$0xff]  ;;  %v813_v32 = vpack.c.bf16 %v4128_v27, %v4128_v27  ;;  %v2169_v60 = vpack.c.b16 %v2149_v37, %v2148_v59  ;;  %v4133_v27 = vld [vmem:[%s4506_s20 + $0x1f8] sm:$0xff]  ;;  %v4130_v37 = vld [vmem:[%s4506_s20 + $0x1d0] sm:$0xff] }
 0x156   : > { %v778_v52 = vpack.c.bf16 %v4126_v57, %v4126_v57  ;;  %v2238_v0 = vunpack.c.l.b16 %v812_v51  ;;  %v4131_v57 = vld [vmem:[%s4506_s20 + $0x1e0] sm:$0xff]  ;;  %v4129_v59 = vld [vmem:[%s4506_s20 + $0x1c8] sm:$0xff]  ;;  %v818_v51 = vpack.c.bf16 %v4133_v27, %v4133_v27 }
 0x157   : > { %v2239_v22 = vunpack.c.l.b16 %v813_v32  ;;  %v819_v32 = vpack.c.bf16 %v4134_v58, %v4134_v58  ;;  %v4139_v27 = vld [vmem:[%s4506_s20 + $0x240] sm:$0xff] }
 0x158   : > { %2194 = vrot.lane.b32.xlu2 %v2168_v56, %s4459_s28  ;;  %v775_v56 = vpack.c.bf16 %v4123_v40, %v4123_v40  ;;  %v2157_v26 = vunpack.c.l.b16 %v778_v52  ;;  %v207_v40 = vld [vmem:[%s4506_s20 + $0x60] sm:$0xff]  ;;  %v2244_v53 = vunpack.c.l.b16 %v818_v51 }
 0x159   : > { %2192 = vrot.lane.b32.xlu1 %v2167_v62, %s4459_s28  ;;  %2190 = vrot.lane.b32.xlu0 %v2166_v4, %s4459_s28  ;;  %v776_v62 = vpack.c.bf16 %v4124_v14, %v4124_v14  ;;  %v2170_v4 = vpack.c.b16 %v2151_v31, %v2150_v44  ;;  %v4132_v31 = vld [vmem:[%s4506_s20 + $0x1e8] sm:$0xff]  ;;  %v2270_v12 = vpack.c.b16 %v2239_v22, %v2238_v0  ;;  %v2245_v33 = vunpack.c.l.b16 %v819_v32  ;;  %v215_v51 = vld [vmem:[%s4506_s20 + $0xc0] sm:$0xff] }
 0x15a   : > { %v5051_v11 = vpop.permute.xlu2 %1968  ;;  %v2154_v63 = vunpack.c.l.b16 %v775_v56  ;;  %v2173_v52 = vpack.c.b16 %v2157_v26, %v2156_v20  ;;  %v4140_v0 = vld [vmem:[%s4506_s20 + $0x248] sm:$0xff]  ;;  %v4138_v20 = vld [vmem:[%s4506_s20 + $0x230] sm:$0xff]  ;;  %v247_v8 = vpack.c.bf16 %v215_v51, %v215_v51  ;;  %v4142_v51 = vld [vmem:[%s4506_s20 + $0x260] sm:$0xff] }
 0x15b   : > { %6411 = vst [vmem:[#allocation67_spill] sm:$0xff] %v5051_v11  ;;  %v5053_v13 = vpop.permute.xlu1 %1868  ;;  %v5055_v41 = vpop.permute.xlu0 %1866  ;;  %v2155_v29 = vunpack.c.l.b16 %v776_v62  ;;  %v816_v62 = vpack.c.bf16 %v4131_v57, %v4131_v57  ;;  %v208_v11 = vld [vmem:[%s4506_s20 + $0x68] sm:$0xff]  ;;  %v4135_v57 = vld [vmem:[%s4506_s20 + $0x210] sm:$0xff]  ;;  %v825_v43 = vpack.c.bf16 %v4140_v0, %v4140_v0 }
 0x15c   : > { %6412 = vst [vmem:[#allocation68_spill] sm:$0xff] %v5053_v13  ;;  %v239_v13 = vpack.c.bf16 %v207_v40, %v207_v40  ;;  %v4137_v22 = vld [vmem:[%s4506_s20 + $0x228] sm:$0xff]  ;;  %v241_v40 = vpack.c.bf16 %v209_v15, %v209_v15  ;;  %v823_v15 = vpack.c.bf16 %v4138_v20, %v4138_v20  ;;  %v820_v16 = vpack.c.bf16 %v4135_v57, %v4135_v57 }
 0x15d   : > { %v2172_v56 = vpack.c.b16 %v2155_v29, %v2154_v63  ;;  %v2242_v26 = vunpack.c.l.b16 %v816_v62  ;;  %v216_v32 = vld [vmem:[%s4506_s20 + $0xc8] sm:$0xff]  ;;  %v204_v62 = vld [vmem:[%s4506_s20 + $0x38] sm:$0xff]  ;;  %v822_v36 = vpack.c.bf16 %v4137_v22, %v4137_v22 }
 0x15e   : > { %v248_v1 = vpack.c.bf16 %v216_v32, %v216_v32  ;;  %v236_v30 = vpack.c.bf16 %v204_v62, %v204_v62  ;;  %v2249_v22 = vunpack.c.l.b16 %v823_v15  ;;  %v2246_v20 = vunpack.c.l.b16 %v820_v16 }
 0x15f   : > { %v2248_v0 = vunpack.c.l.b16 %v822_v36  ;;  %v4143_v36 = vld [vmem:[%s4506_s20 + $0x270] sm:$0xff]  ;;  %v5117_v16 = vunpack.c.l.b16 %v235_v35  ;;  %v5130_v32 = vunpack.c.l.b16 %v232_v3  ;;  %v827_v15 = vpack.c.bf16 %v4142_v51, %v4142_v51  ;;  %v4150_v51 = vld [vmem:[%s4506_s20 + $0x2c0] sm:$0xff] }
 0x160   : > { %2200 = vrot.lane.b32.xlu2 %v2171_v47, %s4459_s28  ;;  %v5119_v39 = vunpack.c.l.b16 %v236_v30 }
 0x161   : > { %2198 = vrot.lane.b32.xlu1 %v2170_v4, %s4459_s28  ;;  %2196 = vrot.lane.b32.xlu0 %v2169_v60, %s4459_s28  ;;  %v817_v4 = vpack.c.bf16 %v4132_v31, %v4132_v31  ;;  %v814_v60 = vpack.c.bf16 %v4129_v59, %v4129_v59  ;;  %v4136_v31 = vld [vmem:[%s4506_s20 + $0x218] sm:$0xff]  ;;  %v240_v59 = vpack.c.bf16 %v208_v11, %v208_v11 }
 0x162   : > { %v5063_v44 = vpop.permute.xlu2 %1974  ;;  %v824_v11 = vpack.c.bf16 %v4139_v27, %v4139_v27  ;;  %v821_v55 = vpack.c.bf16 %v4136_v31, %v4136_v31  ;;  %v2251_v27 = vunpack.c.l.b16 %v825_v43  ;;  %v5110_v43 = vunpack.c.l.b16 %v247_v8 }
 0x163   : > { %6413 = vst [vmem:[#allocation69_spill] sm:$0xff] %v5063_v44  ;;  %v5069_v14 = vpop.permute.xlu1 %1954  ;;  %v5071_v47 = vpop.permute.xlu0 %1952  ;;  %v815_v44 = vpack.c.bf16 %v4130_v37, %v4130_v37  ;;  %v2243_v63 = vunpack.c.l.b16 %v817_v4  ;;  %v2240_v29 = vunpack.c.l.b16 %v814_v60  ;;  %v5085_v37 = vunpack.c.l.b16 %v239_v13  ;;  %v221_v13 = vld [vmem:[%s4506_s20 + $0x108] sm:$0xff] }
 0x164   : > { %6414 = vst [vmem:[#allocation70_spill] sm:$0xff] %v5069_v14  ;;  %v210_v14 = vld [vmem:[%s4506_s20 + $0x80] sm:$0xff]  ;;  %v2273_v60 = vpack.c.b16 %v2245_v33, %v2244_v53  ;;  %v254_v33 = vpack.c.bf16 %v222_v5, %v222_v5  ;;  %v2250_v53 = vunpack.c.l.b16 %v824_v11  ;;  %v2247_v57 = vunpack.c.l.b16 %v821_v55 }
 0x165   : > { %v2241_v58 = vunpack.c.l.b16 %v815_v44  ;;  %v5104_v6 = vunpack.c.l.b16 %v240_v59  ;;  %v5115_v55 = vunpack.c.l.b16 %v248_v1  ;;  %v4144_v59 = vld [vmem:[%s4506_s20 + $0x278] sm:$0xff]  ;;  %v828_v11 = vpack.c.bf16 %v4143_v36, %v4143_v36  ;;  %v4147_v36 = vld [vmem:[%s4506_s20 + $0x2a0] sm:$0xff] }
 0x166   : > { %v5138_v62 = vunpack.c.l.b16 %v254_v33  ;;  %v829_v3 = vpack.c.bf16 %v4144_v59, %v4144_v59  ;;  %v4152_v59 = vld [vmem:[%s4506_s20 + $0x2d8] sm:$0xff]  ;;  %v832_v2 = vpack.c.bf16 %v4147_v36, %v4147_v36  ;;  %v219_v36 = vld [vmem:[%s4506_s20 + $0xf0] sm:$0xff] }
 0x168   : > { %2286 = vrot.lane.b32.xlu2 %v2270_v12, %s4460_s29  ;;  %v199_v12 = vld [vmem:[%s4506_s20] sm:$0xff]  ;;  %6422 = vst [vmem:[#allocation78_spill] sm:$0xff] %v5138_v62 }
 0x169   : > { %2204 = vrot.lane.b32.xlu1 %v2173_v52, %s4459_s28  ;;  %2202 = vrot.lane.b32.xlu0 %v2172_v56, %s4459_s28  ;;  %v242_v56 = vpack.c.bf16 %v210_v14, %v210_v14  ;;  %v2272_v14 = vpack.c.b16 %v2243_v63, %v2242_v26  ;;  %v4145_v26 = vld [vmem:[%s4506_s20 + $0x288] sm:$0xff]  ;;  %v4146_v63 = vld [vmem:[%s4506_s20 + $0x290] sm:$0xff]  ;;  %s4393_s28 = sshll.u32 %s6524_s16, 8 }
 0x16a   : > { %v5090_v52 = vpop.permute.xlu2 %1980  ;;  %v830_v30 = vpack.c.bf16 %v4145_v26, %v4145_v26  ;;  %v201_v26 = vld [vmem:[%s4506_s20 + $0x18] sm:$0xff] }
 0x16b   : > { %6415 = vst [vmem:[#allocation71_spill] sm:$0xff] %v5090_v52  ;;  %v5095_v4 = vpop.permute.xlu1 %1960  ;;  %v5097_v44 = vpop.permute.xlu0 %1958  ;;  %v2271_v52 = vpack.c.b16 %v2241_v58, %v2240_v29  ;;  %v5106_v29 = vunpack.c.l.b16 %v241_v40  ;;  %v5108_v5 = vunpack.c.l.b16 %v242_v56  ;;  %v4141_v40 = vld [vmem:[%s4506_s20 + $0x258] sm:$0xff]  ;;  %v831_v56 = vpack.c.bf16 %v4146_v63, %v4146_v63 }
 0x16c   : > { %6416 = vst [vmem:[#allocation72_spill] sm:$0xff] %v5095_v4  ;;  %v231_v4 = vpack.c.bf16 %v199_v12, %v199_v12  ;;  %v205_v12 = vld [vmem:[%s4506_s20 + $0x48] sm:$0xff]  ;;  %v1298_v63 = vpack.c.b16 %v5104_v6, %v5085_v37  ;;  %v228_v6 = vld [vmem:[%s4506_s20 + $0x158] sm:$0xff]  ;;  %v233_v33 = vpack.c.bf16 %v201_v26, %v201_v26  ;;  %v837_v26 = vpack.c.bf16 %v4152_v59, %v4152_v59 }
 0x16d   : > { %6417 = vst [vmem:[#allocation73_spill] sm:$0xff] %v5097_v44  ;;  %v253_v44 = vpack.c.bf16 %v221_v13, %v221_v13  ;;  %v826_v13 = vpack.c.bf16 %v4141_v40, %v4141_v40  ;;  %v4149_v40 = vld [vmem:[%s4506_s20 + $0x2b8] sm:$0xff]  ;;  %v4148_v37 = vld [vmem:[%s4506_s20 + $0x2a8] sm:$0xff]  ;;  %v260_v38 = vpack.c.bf16 %v228_v6, %v228_v6 }
 0x16e   : > { %v5121_v58 = vunpack.c.l.b16 %v231_v4  ;;  %v2276_v4 = vpack.c.b16 %v2251_v27, %v2250_v53  ;;  %v5146_v53 = vld [vmem:[%s4506_s20 + $0x150] sm:$0xff]  ;;  %v5149_v27 = vld [vmem:[%s4506_s20 + $0x20] sm:$0xff]  ;;  %v5187_v48 = vunpack.c.l.b16 %v233_v33  ;;  %v2263_v6 = vunpack.c.l.b16 %v837_v26  ;;  %v220_v33 = vld [vmem:[%s4506_s20 + $0xf8] sm:$0xff] }
 0x16f   : > { %v5128_v8 = vunpack.c.l.b16 %v253_v44  ;;  %v2274_v44 = vpack.c.b16 %v2247_v57, %v2246_v20  ;;  %v4151_v20 = vld [vmem:[%s4506_s20 + $0x2d0] sm:$0xff]  ;;  %v252_v26 = vpack.c.bf16 %v220_v33, %v220_v33 }
 0x170   : > { %2292 = vrot.lane.b32.xlu2 %v2273_v60, %s4460_s29  ;;  %v2275_v60 = vpack.c.b16 %v2249_v22, %v2248_v0  ;;  %v2256_v0 = vunpack.c.l.b16 %v830_v30  ;;  %v2257_v22 = vunpack.c.l.b16 %v831_v56  ;;  %v2252_v30 = vunpack.c.l.b16 %v826_v13  ;;  %v212_v13 = vld [vmem:[%s4506_s20 + $0x98] sm:$0xff] }
 0x171   : > { %2290 = vrot.lane.b32.xlu1 %v2272_v14, %s4460_s29  ;;  %2288 = vrot.lane.b32.xlu0 %v2271_v52, %s4460_s29  ;;  %6419 = vst [vmem:[#allocation75_spill] sm:$0xff] %v5128_v8  ;;  %v206_v52 = vld [vmem:[%s4506_s20 + $0x50] sm:$0xff]  ;;  %v237_v14 = vpack.c.bf16 %v205_v12, %v205_v12  ;;  %v2254_v12 = vunpack.c.l.b16 %v828_v11  ;;  %v2253_v56 = vunpack.c.l.b16 %v827_v15  ;;  %v213_v8 = vld [vmem:[%s4506_s20 + $0xa8] sm:$0xff] }
 0x172   : > { %v5123_v31 = vpop.permute.xlu2 %2066  ;;  %v214_v11 = vld [vmem:[%s4506_s20 + $0xb0] sm:$0xff]  ;;  %v245_v23 = vpack.c.bf16 %v213_v8, %v213_v8 }
 0x173   : > { %6418 = vst [vmem:[#allocation74_spill] sm:$0xff] %v5123_v31  ;;  %v5134_v1 = vpop.permute.xlu1 %1966  ;;  %v5136_v35 = vpop.permute.xlu0 %1964  ;;  %v5169_v57 = vunpack.c.l.b16 %v237_v14  ;;  %v2279_v14 = vpack.c.b16 %v2257_v22, %v2256_v0  ;;  %v2277_v10 = vpack.c.b16 %v2253_v56, %v2252_v30  ;;  %v244_v0 = vpack.c.bf16 %v212_v13, %v212_v13 }
 0x174   : > { %6420 = vst [vmem:[#allocation76_spill] sm:$0xff] %v5134_v1  ;;  %v238_v1 = vpack.c.bf16 %v206_v52, %v206_v52  ;;  %v2255_v52 = vunpack.c.l.b16 %v829_v3  ;;  %v211_v3 = vld [vmem:[%s4506_s20 + $0x90] sm:$0xff]  ;;  %v5191_v22 = vsel %vm2990_vm0, %v1298_v63, %v4625_v17  ;;  %v4158_v17 = vld [vmem:[%s4506_s20 + $0x320] sm:$0xff]  ;;  %v5203_v30 = vunpack.c.l.b16 %v260_v38  ;;  %v4156_v38 = vld [vmem:[%s4506_s20 + $0x308] sm:$0xff] }
 0x175   : > { %6421 = vst [vmem:[#allocation77_spill] sm:$0xff] %v5136_v35  ;;  %v834_v35 = vpack.c.bf16 %v4149_v40, %v4149_v40  ;;  %v5217_v13 = vunpack.c.l.b16 %v244_v0 }
 0x176   : > { %6423 = vst [vmem:[#allocation79_spill] sm:$0xff] %v5169_v57  ;;  %v841_v57 = vpack.c.bf16 %v4156_v38, %v4156_v38  ;;  %v4161_v38 = vld [vmem:[%s4506_s20 + $0x31] sm:$0xff] }
 0x177   : > { %v2260_v59 = vunpack.c.l.b16 %v834_v35 }
 0x178   : > { %2298 = vrot.lane.b32.xlu2 %v2276_v4, %s4460_s29  ;;  %v5171_v4 = vunpack.c.l.b16 %v238_v1  ;;  %v836_v1 = vpack.c.bf16 %v4151_v20, %v4151_v20 }
 0x179   : > { %2296 = vrot.lane.b32.xlu1 %v2275_v60, %s4460_s29  ;;  %2294 = vrot.lane.b32.xlu0 %v2274_v44, %s4460_s29  ;;  %v234_v60 = vpack.c.bf16 %v5149_v27, %v5149_v27  ;;  %v259_v44 = vpack.c.bf16 %v5146_v53, %v5146_v53  ;;  %v835_v27 = vpack.c.bf16 %v4150_v51, %v4150_v51  ;;  %v2258_v51 = vunpack.c.l.b16 %v832_v2  ;;  %v4155_v2 = vld [vmem:[%s4506_s20 + $0x300] sm:$0xff] }
 0x17a   : > { %6424 = vst [vmem:[#allocation80_spill] sm:$0xff] %v5171_v4  ;;  %v5176_v62 = vpop.permute.xlu2 %2072  ;;  %v2278_v53 = vpack.c.b16 %v2255_v52, %v2254_v12  ;;  %v2262_v8 = vunpack.c.l.b16 %v836_v1  ;;  %v4157_v52 = vld [vmem:[%s4506_s20 + $0x318] sm:$0xff]  ;;  %v4154_v1 = vld [vmem:[%s4506_s20 + $0x2f0] sm:$0xff] }
 0x17b   : > { %6425 = vst [vmem:[#allocation81_spill] sm:$0xff] %v5176_v62  ;;  %v5183_v15 = vpop.permute.xlu1 %1972  ;;  %v5185_v31 = vpop.permute.xlu0 %1970  ;;  %v833_v62 = vpack.c.bf16 %v4148_v37, %v4148_v37  ;;  %v217_v37 = vld [vmem:[%s4506_s20 + $0xd8] sm:$0xff]  ;;  %v2261_v40 = vunpack.c.l.b16 %v835_v27  ;;  %v5201_v63 = vunpack.c.l.b16 %v259_v44  ;;  %v5205_v56 = vunpack.c.l.b16 %v234_v60  ;;  %v4153_v60 = vld [vmem:[%s4506_s20 + $0x2e8] sm:$0xff] }
 0x17c   : > { %6426 = vst [vmem:[#allocation82_spill] sm:$0xff] %v5183_v15  ;;  %v246_v15 = vpack.c.bf16 %v214_v11, %v214_v11  ;;  %v5207_v11 = vunpack.c.l.b16 %v245_v23  ;;  %v249_v44 = vpack.c.bf16 %v217_v37, %v217_v37  ;;  %v251_v23 = vpack.c.bf16 %v219_v36, %v219_v36 }
 0x17d   : > { %6427 = vst [vmem:[#allocation83_spill] sm:$0xff] %v5185_v31  ;;  %v243_v31 = vpack.c.bf16 %v211_v3, %v211_v3  ;;  %v2259_v12 = vunpack.c.l.b16 %v833_v62  ;;  %v218_v3 = vld [vmem:[%s4506_s20 + $0xe0] sm:$0xff]  ;;  %v2282_v0 = vpack.c.b16 %v2263_v6, %v2262_v8  ;;  %v2281_v20 = vpack.c.b16 %v2261_v40, %v2260_v59 }
 0x17e   : > { %v5213_v35 = vunpack.c.l.b16 %v246_v15  ;;  %v843_v15 = vpack.c.bf16 %v4158_v17, %v4158_v17  ;;  %v838_v4 = vpack.c.bf16 %v4153_v60, %v4153_v60  ;;  %v839_v49 = vpack.c.bf16 %v4154_v1, %v4154_v1  ;;  %v223_v6 = vld [vmem:[%s4506_s20 + $0x120] sm:$0xff] }
 0x17f   : > { %v5215_v62 = vunpack.c.l.b16 %v243_v31  ;;  %v250_v31 = vpack.c.bf16 %v218_v3, %v218_v3  ;;  %v2280_v37 = vpack.c.b16 %v2259_v12, %v2258_v51  ;;  %v6429_v36 = vpack.c.b16 %v5108_v5, %v5106_v29  ;;  %v225_v5 = vld [vmem:[%s4506_s20 + $0x138] sm:$0xff]  ;;  %v4163_v12 = vld [vmem:[%s4506_s20 + $0x49] sm:$0xff] }
 0x180   : > { %2304 = vrot.lane.b32.xlu2 %v2279_v14, %s4460_s29  ;;  %v2269_v51 = vunpack.c.l.b16 %v843_v15  ;;  %v5247_v17 = vunpack.c.l.b16 %v251_v23  ;;  %v4162_v60 = vld [vmem:[%s4506_s20 + $0x39] sm:$0xff]  ;;  %v2264_v23 = vunpack.c.l.b16 %v838_v4  ;;  %v2265_v15 = vunpack.c.l.b16 %v839_v49 }
 0x181   : > { %2302 = vrot.lane.b32.xlu1 %v2278_v53, %s4460_s29  ;;  %2300 = vrot.lane.b32.xlu0 %v2277_v10, %s4460_s29  ;;  %v842_v10 = vpack.c.bf16 %v4157_v52, %v4157_v52  ;;  %v5233_v33 = vsel %vm2990_vm0, %v6429_v36, %v4639_v42  ;;  %v1308_v52 = vpack.c.b16 %v5203_v30, %v5201_v63  ;;  %v224_v42 = vld [vmem:[%s4506_s20 + $0x128] sm:$0xff]  ;;  %v5249_v63 = vunpack.c.l.b16 %v252_v26  ;;  %v4159_v26 = vld [vmem:[%s4506_s20 + $0x19] sm:$0xff] }
 0x182   : > { %v5219_v14 = vpop.permute.xlu2 %2078  ;;  %6430 = vst [vmem:[#allocation85_spill] sm:$0xff] %v5233_v33  ;;  %v5251_v30 = vunpack.c.l.b16 %v249_v44  ;;  %v5253_v3 = vunpack.c.l.b16 %v250_v31  ;;  %v4160_v36 = vld [vmem:[%s4506_s20 + $0x21] sm:$0xff]  ;;  %v6431_v44 = vpack.c.b16 %v5115_v55, %v5110_v43  ;;  %v255_v29 = vpack.c.bf16 %v223_v6, %v223_v6 }
 0x183   : > { %6428 = vst [vmem:[#allocation84_spill] sm:$0xff] %v5219_v14  ;;  %v5224_v27 = vpop.permute.xlu1 %1978  ;;  %v5226_v53 = vpop.permute.xlu0 %1976  ;;  %v840_v14 = vpack.c.bf16 %v4155_v2, %v4155_v2  ;;  %v2268_v40 = vunpack.c.l.b16 %v842_v10  ;;  %v4164_v2 = vld [vmem:[%s4506_s20 + $0x51] sm:$0xff]  ;;  %v2267_v10 = vunpack.c.l.b16 %v841_v57  ;;  %v256_v59 = vpack.c.bf16 %v224_v42, %v224_v42  ;;  %v226_v57 = vld [vmem:[%s4506_s20 + $0x140] sm:$0xff] }
 0x184   : > { %v5268_v31 = vsel %vm2990_vm0, %v6431_v44, %v4647_v61  ;;  %v881_v33 = vpack.c.bf16 %v4164_v2, %v4164_v2  ;;  %v878_v43 = vpack.c.bf16 %v4161_v38, %v4161_v38  ;;  %v879_v55 = vpack.c.bf16 %v4162_v60, %v4162_v60 }
 0x185   : > { %v2266_v1 = vunpack.c.l.b16 %v840_v14  ;;  %v2285_v14 = vpack.c.b16 %v2269_v51, %v2268_v40  ;;  %v876_v61 = vpack.c.bf16 %v4159_v26, %v4159_v26  ;;  %v877_v44 = vpack.c.bf16 %v4160_v36, %v4160_v36 }
 0x186   : > { %v5281_v42 = vunpack.c.l.b16 %v255_v29  ;;  %v2355_v2 = vunpack.c.l.b16 %v881_v33  ;;  %v2353_v38 = vunpack.c.l.b16 %v879_v55  ;;  %v4169_v29 = vld [vmem:[%s4506_s20 + $0x91] sm:$0xff]  ;;  %v4167_v33 = vld [vmem:[%s4506_s20 + $0x79] sm:$0xff] }
 0x187   : > { %v2350_v60 = vunpack.c.l.b16 %v876_v61 }
 0x188   : > { %2310 = vrot.lane.b32.xlu2 %v2282_v0, %s4460_s29  ;;  %v257_v0 = vpack.c.bf16 %v225_v5, %v225_v5  ;;  %v2284_v5 = vpack.c.b16 %v2267_v10, %v2266_v1  ;;  %v2351_v1 = vunpack.c.l.b16 %v877_v44  ;;  %v4170_v10 = vld [vmem:[%s4506_s20 + $0x99] sm:$0xff] }
 0x189   : > { %2308 = vrot.lane.b32.xlu1 %v2281_v20, %s4460_s29  ;;  %2306 = vrot.lane.b32.xlu0 %v2280_v37, %s4460_s29  ;;  %v3035_v20 = vsel %vm2990_vm0, %v1308_v52, %v4673_v45  ;;  %v880_v37 = vpack.c.bf16 %v4163_v12, %v4163_v12  ;;  %v2283_v45 = vpack.c.b16 %v2265_v15, %v2264_v23 }
 0x18a   : > { %v5270_v8 = vpop.permute.xlu2 %2084  ;;  %v3069_v6 = vsel %vm3039_vm1, %v3035_v20, %v4815_v46  ;;  %v258_v52 = vpack.c.bf16 %v226_v57, %v226_v57  ;;  %v2352_v46 = vunpack.c.l.b16 %v878_v43  ;;  %v5290_v23 = vunpack.c.l.b16 %v257_v0  ;;  %v4168_v20 = vld [vmem:[%s4506_s20 + $0x81] sm:$0xff]  ;;  %v4166_v57 = vld [vmem:[%s4506_s20 + $0x69] sm:$0xff] }
 0x18b   : > { %v5275_v4 = vpop.permute.xlu1 %2064  ;;  %v5277_v49 = vpop.permute.xlu0 %2062  ;;  %v3102_v40 = vsel %vm3072_vm2, %v3069_v6, %v4888_v54  ;;  %v2354_v12 = vunpack.c.l.b16 %v880_v37  ;;  %v5292_v54 = vunpack.c.l.b16 %v256_v59  ;;  %v6432_v15 = vpack.c.b16 %v5205_v56, %v5187_v48  ;;  %v229_v37 = vld [vmem:[%s4506_s20 + $0x168] sm:$0xff]  ;;  %v230_v43 = vld [vmem:[%s4506_s20 + $0x170] sm:$0xff] }
 0x18c   : > { %v3135_v51 = vsel %vm3105_vm3, %v3102_v40, %v4913_v19  ;;  %v5304_v36 = vunpack.c.l.b16 %v258_v52  ;;  %v886_v56 = vpack.c.bf16 %v4169_v29, %v4169_v29  ;;  %v887_v61 = vpack.c.bf16 %v4170_v10, %v4170_v10 }
 0x18d   : > { %v3168_v19 = vsel %vm3138_vm4, %v3135_v51, %v5055_v41  ;;  %v2996_v26 = vsel %vm2990_vm0, %v6432_v15, %v4680_v50  ;;  %v4165_v41 = vld [vmem:[%s4506_s20 + $0x61] sm:$0xff]  ;;  %v2384_v44 = vpack.c.b16 %v2355_v2, %v2354_v12  ;;  %v2383_v6 = vpack.c.b16 %v2353_v38, %v2352_v46  ;;  %v4175_v38 = vld [vmem:[%s4506_s20 + $0xd9] sm:$0xff] }
 0x18e   : > { %v3201_v59 = vsel %vm3171_vm5, %v3168_v19, %v5224_v27  ;;  %v882_v52 = vpack.c.bf16 %v4165_v41, %v4165_v41  ;;  %v883_v40 = vpack.c.bf16 %v4166_v57, %v4166_v57  ;;  %v1304_v51 = vpack.c.b16 %v5249_v63, %v5247_v17 }
 0x18f   : > { %v261_v19 = vpack.c.bf16 %v229_v37, %v229_v37  ;;  %v262_v29 = vpack.c.bf16 %v230_v43, %v230_v43  ;;  %v2360_v2 = vunpack.c.l.b16 %v886_v56  ;;  %v2361_v46 = vunpack.c.l.b16 %v887_v61 }
 0x190   : > { %2316 = vrot.lane.b32.xlu2 %v2285_v14, %s4460_s29  ;;  %v3043_v14 = vsel %vm3039_vm1, %v2996_v26, %v4691_v9  ;;  %v885_v9 = vpack.c.bf16 %v4168_v20, %v4168_v20  ;;  %v1307_v17 = vpack.c.b16 %v5304_v36, %v5290_v23  ;;  %v1306_v63 = vpack.c.b16 %v5292_v54, %v5281_v42  ;;  %v4171_v36 = vld [vmem:[%s4506_s20 + $0xa9] sm:$0xff] }
 0x191   : > { %2314 = vrot.lane.b32.xlu1 %v2284_v5, %s4460_s29  ;;  %2312 = vrot.lane.b32.xlu0 %v2283_v45, %s4460_s29  ;;  %v3076_v27 = vsel %vm3072_vm2, %v3043_v14, %v4830_v28  ;;  %v2382_v5 = vpack.c.b16 %v2351_v1, %v2350_v60  ;;  %v884_v45 = vpack.c.bf16 %v4167_v33, %v4167_v33  ;;  %v4176_v60 = vld [vmem:[%s4506_s20 + $0xe1] sm:$0xff]  ;;  %v4174_v1 = vld [vmem:[%s4506_s20 + $0xc9] sm:$0xff]  ;;  %v2356_v15 = vunpack.c.l.b16 %v882_v52 }
 0x192   : > { %v2091_v0 = vpop.permute.xlu2 %2090  ;;  %v3109_v10 = vsel %vm3105_vm3, %v3076_v27, %v4903_v7  ;;  %v1303_v28 = vpack.c.b16 %v5253_v3, %v5251_v30  ;;  %v2359_v23 = vunpack.c.l.b16 %v885_v9  ;;  %v2357_v26 = vunpack.c.l.b16 %v883_v40  ;;  %v6486_v3 = vld [vmem:[#allocation70_spill] sm:$0xff] }
 0x193   : > { %v5316_v55 = vsel %vm3204_vm6, %v3201_v59, %v2091_v0  ;;  %v5318_v48 = vpop.permute.xlu1 %2070  ;;  %v5320_v50 = vpop.permute.xlu0 %2068  ;;  %v3142_v12 = vsel %vm3138_vm4, %v3109_v10, %v4931_v18  ;;  %v4173_v18 = vld [vmem:[%s4506_s20 + $0xc1] sm:$0xff]  ;;  %v2358_v33 = vunpack.c.l.b16 %v884_v45  ;;  %v4172_v59 = vld [vmem:[%s4506_s20 + $0xb1] sm:$0xff]  ;;  %v5350_v0 = vunpack.c.l.b16 %v261_v19 }
 0x194   : > { %v3175_v7 = vsel %vm3171_vm5, %v3142_v12, %v5071_v47  ;;  %v3049_v47 = vsel %vm3039_vm1, %v5191_v22, %v4703_v34  ;;  %v5352_v20 = vunpack.c.l.b16 %v262_v29  ;;  %v2387_v56 = vpack.c.b16 %v2361_v46, %v2360_v2  ;;  %v6435_v29 = vld [vmem:[#allocation3_spill] sm:$0xff]  ;;  %v6436_v10 = vld [vmem:[#allocation80_spill] sm:$0xff] }
 0x195   : > { %v3208_v41 = vsel %vm3204_vm6, %v3175_v7, %v5275_v4  ;;  %v892_v61 = vpack.c.bf16 %v4175_v38, %v4175_v38  ;;  %v893_v27 = vpack.c.bf16 %v4176_v60, %v4176_v60  ;;  %v891_v34 = vpack.c.bf16 %v4174_v1, %v4174_v1  ;;  %v6437_v12 = vld [vmem:[#allocation79_spill] sm:$0xff] }
 0x196   : > { %v888_v22 = vpack.c.bf16 %v4171_v36, %v4171_v36  ;;  %v6433_v4 = vpack.c.b16 %v5119_v39, %v5117_v16  ;;  %v3082_v45 = vsel %vm3072_vm2, %v3049_v47, %v4845_v21  ;;  %v2386_v9 = vpack.c.b16 %v2359_v23, %v2358_v33  ;;  %v6439_v16 = vld [vmem:[#allocation42_spill] sm:$0xff]  ;;  %v6440_v39 = vld [vmem:[#allocation4_spill] sm:$0xff]  ;;  %v6445_v47 = vld [vmem:[#allocation73_spill] sm:$0xff] }
 0x197   : > { %v2385_v52 = vpack.c.b16 %v2357_v26, %v2356_v15  ;;  %v6434_v40 = vpack.c.b16 %v5130_v32, %v5121_v58  ;;  %v6438_v2 = vpack.c.b16 %v6436_v10, %v6437_v12  ;;  %v3115_v21 = vsel %vm3105_vm3, %v3082_v45, %v6439_v16  ;;  %v6442_v32 = vld [vmem:[#allocation46_spill] sm:$0xff]  ;;  %v4182_v1 = vld [vmem:[%s4506_s20 + $0x129] sm:$0xff] }
 0x198   : > { %2402 = vrot.lane.b32.xlu2 %v2384_v44, %s4461_s30  ;;  %v890_v44 = vpack.c.bf16 %v4173_v18, %v4173_v18  ;;  %v6441_v38 = vpack.c.b16 %v5213_v35, %v5207_v11  ;;  %v2366_v7 = vunpack.c.l.b16 %v892_v61  ;;  %v2367_v60 = vunpack.c.l.b16 %v893_v27  ;;  %v4181_v18 = vld [vmem:[%s4506_s20 + $0x121] sm:$0xff]  ;;  %v6444_v36 = vld [vmem:[#allocation8_spill] sm:$0xff] }
 0x199   : > { %2400 = vrot.lane.b32.xlu1 %v2383_v6, %s4461_s30  ;;  %2398 = vrot.lane.b32.xlu0 %v2382_v5, %s4461_s30  ;;  %v889_v6 = vpack.c.bf16 %v4172_v59, %v4172_v59  ;;  %v2999_v5 = vsel %vm2990_vm0, %v6433_v4, %v4663_v24  ;;  %v2993_v19 = vsel %vm2990_vm0, %v6434_v40, %v4665_v25  ;;  %v2365_v23 = vunpack.c.l.b16 %v891_v34  ;;  %v6443_v11 = vld [vmem:[#allocation6_spill] sm:$0xff]  ;;  %v4177_v34 = vld [vmem:[%s4506_s20 + $0xf1] sm:$0xff] }
 0x19a   : > { %v2177_v57 = vpop.permute.xlu2 %2176  ;;  %v3002_v46 = vsel %vm2990_vm0, %v6438_v2, %v6435_v29  ;;  %v1309_v24 = vpack.c.b16 %v5352_v20, %v5350_v0  ;;  %v3014_v58 = vsel %vm2990_vm0, %v6441_v38, %v6440_v39  ;;  %v3148_v25 = vsel %vm3138_vm4, %v3115_v21, %v6442_v32  ;;  %v4179_v20 = vld [vmem:[%s4506_s20 + $0x109] sm:$0xff]  ;;  %v6450_v10 = vld [vmem:[#allocation34_spill] sm:$0xff] }
 0x19b   : > { %v5357_v14 = vsel %vm3237_vm7, %v3208_v41, %v2177_v57  ;;  %v5359_v37 = vpop.permute.xlu1 %2076  ;;  %v5361_v43 = vpop.permute.xlu0 %2074  ;;  %v2364_v33 = vunpack.c.l.b16 %v890_v44  ;;  %v2362_v15 = vunpack.c.l.b16 %v888_v22  ;;  %v2363_v26 = vunpack.c.l.b16 %v889_v6  ;;  %v6446_v41 = vld [vmem:[#allocation9_spill] sm:$0xff]  ;;  %v6447_v6 = vld [vmem:[#allocation11_spill] sm:$0xff]  ;;  %v6448_v45 = vld [vmem:[#allocation12_spill] sm:$0xff] }
 0x19c   : > { %v3023_v35 = vsel %vm2990_vm0, %v1304_v51, %v6443_v11  ;;  %v3055_v59 = vsel %vm3039_vm1, %v3014_v58, %v6444_v36  ;;  %v3181_v0 = vsel %vm3171_vm5, %v3148_v25, %v6445_v47  ;;  %v3032_v57 = vsel %vm2990_vm0, %v1307_v17, %v6446_v41  ;;  %v4180_v44 = vld [vmem:[%s4506_s20 + $0x111] sm:$0xff]  ;;  %v4178_v22 = vld [vmem:[%s4506_s20 + $0xf9] sm:$0xff]  ;;  %v6451_v32 = vld [vmem:[#allocation39_spill] sm:$0xff] }
 0x19d   : > { %v898_v27 = vpack.c.bf16 %v4181_v18, %v4181_v18  ;;  %v899_v51 = vpack.c.bf16 %v4182_v1, %v4182_v1  ;;  %v3061_v4 = vsel %vm3039_vm1, %v3023_v35, %v6447_v6  ;;  %v3088_v12 = vsel %vm3072_vm2, %v3055_v59, %v6450_v10  ;;  %v6452_v18 = vld [vmem:[#allocation44_spill] sm:$0xff]  ;;  %v6453_v36 = vld [vmem:[#allocation13_spill] sm:$0xff] }
 0x19e   : > { %v2390_v2 = vpack.c.b16 %v2367_v60, %v2366_v7  ;;  %v2389_v16 = vpack.c.b16 %v2365_v23, %v2364_v33  ;;  %v2388_v21 = vpack.c.b16 %v2363_v26, %v2362_v15  ;;  %v896_v39 = vpack.c.bf16 %v4179_v20, %v4179_v20  ;;  %v6454_v60 = vld [vmem:[#allocation15_spill] sm:$0xff]  ;;  %v6455_v23 = vld [vmem:[#allocation49_spill] sm:$0xff]  ;;  %v6456_v26 = vld [vmem:[#allocation50_spill] sm:$0xff] }
 0x19f   : > { %v897_v38 = vpack.c.bf16 %v4180_v44, %v4180_v44  ;;  %v895_v58 = vpack.c.bf16 %v4178_v22, %v4178_v22  ;;  %v3121_v1 = vsel %vm3105_vm3, %v3088_v12, %v6452_v18  ;;  %v2372_v11 = vunpack.c.l.b16 %v898_v27  ;;  %v4187_v47 = vld [vmem:[%s4506_s20 + $0x169] sm:$0xff]  ;;  %v6458_v41 = vld [vmem:[#allocation17_spill] sm:$0xff] }
 0x1a0   : > { %2408 = vrot.lane.b32.xlu2 %v2387_v56, %s4461_s30  ;;  %v3214_v56 = vsel %vm3204_vm6, %v3181_v0, %v5318_v48  ;;  %v2373_v35 = vunpack.c.l.b16 %v899_v51  ;;  %v3038_v7 = vsel %vm2990_vm0, %v1309_v24, %v6453_v36  ;;  %v3047_v33 = vsel %vm3039_vm1, %v3002_v46, %v6454_v60  ;;  %v6457_v0 = vld [vmem:[#allocation16_spill] sm:$0xff]  ;;  %v4186_v44 = vld [vmem:[%s4506_s20 + $0x159] sm:$0xff] }
 0x1a1   : > { %2406 = vrot.lane.b32.xlu1 %v2386_v9, %s4461_s30  ;;  %2404 = vrot.lane.b32.xlu0 %v2385_v52, %s4461_s30  ;;  %v3041_v9 = vsel %vm3039_vm1, %v2993_v19, %v6448_v45  ;;  %v6449_v52 = vld [vmem:[#allocation14_spill] sm:$0xff]  ;;  %v894_v19 = vpack.c.bf16 %v4177_v34, %v4177_v34  ;;  %v3154_v15 = vsel %vm3138_vm4, %v3121_v1, %v6455_v23  ;;  %v4188_v27 = vld [vmem:[%s4506_s20 + $0x171] sm:$0xff]  ;;  %v2370_v34 = vunpack.c.l.b16 %v896_v39 }
 0x1a2   : > { %v2183_v61 = vpop.permute.xlu2 %2182  ;;  %v3067_v40 = vsel %vm3039_vm1, %v3032_v57, %v6449_v52  ;;  %v3045_v20 = vsel %vm3039_vm1, %v2999_v5, %v6457_v0  ;;  %v3074_v57 = vsel %vm3072_vm2, %v3041_v9, %v6458_v41  ;;  %v4185_v51 = vld [vmem:[%s4506_s20 + $0x151] sm:$0xff]  ;;  %v2371_v5 = vunpack.c.l.b16 %v897_v38  ;;  %v4183_v45 = vld [vmem:[%s4506_s20 + $0x139] sm:$0xff]  ;;  %v4184_v9 = vld [vmem:[%s4506_s20 + $0x141] sm:$0xff] }
 0x1a3   : > { %v5417_v17 = vsel %vm3237_vm7, %v3214_v56, %v2183_v61  ;;  %v5419_v29 = vpop.permute.xlu1 %2082  ;;  %v5421_v48 = vpop.permute.xlu0 %2080  ;;  %v3100_v25 = vsel %vm3072_vm2, %v3067_v40, %v6451_v32  ;;  %v6459_v56 = vld [vmem:[#allocation55_spill] sm:$0xff]  ;;  %v6460_v61 = vld [vmem:[#allocation77_spill] sm:$0xff]  ;;  %v2368_v22 = vunpack.c.l.b16 %v894_v19  ;;  %v2369_v6 = vunpack.c.l.b16 %v895_v58  ;;  %v6461_v52 = vld [vmem:[#allocation20_spill] sm:$0xff] }
 0x1a4   : > { %v3133_v59 = vsel %vm3105_vm3, %v3100_v25, %v6456_v26  ;;  %v3187_v46 = vsel %vm3171_vm5, %v3154_v15, %v6460_v61  ;;  %v5456_v40 = vsel %vm3072_vm2, %v3047_v33, %v6461_v52  ;;  %v904_v19 = vpack.c.bf16 %v4187_v47, %v4187_v47  ;;  %v6464_v23 = vld [vmem:[#allocation29_spill] sm:$0xff]  ;;  %v6465_v26 = vld [vmem:[#allocation30_spill] sm:$0xff]  ;;  %v6467_v41 = vld [vmem:[#allocation47_spill] sm:$0xff] }
 0x1a5   : > { %v3166_v24 = vsel %vm3138_vm4, %v3133_v59, %v6459_v56  ;;  %v3220_v12 = vsel %vm3204_vm6, %v3187_v46, %v5359_v37  ;;  %v905_v58 = vpack.c.bf16 %v4188_v27, %v4188_v27  ;;  %v902_v32 = vpack.c.bf16 %v4185_v51, %v4185_v51  ;;  %v6462_v37 = vld [vmem:[#allocation27_spill] sm:$0xff]  ;;  %v6466_v47 = vld [vmem:[#allocation41_spill] sm:$0xff] }
 0x1a6   : > { %v3199_v10 = vsel %vm3171_vm5, %v3166_v24, %v5226_v53  ;;  %v903_v18 = vpack.c.bf16 %v4186_v44, %v4186_v44  ;;  %v900_v53 = vpack.c.bf16 %v4183_v45, %v4183_v45  ;;  %v901_v1 = vpack.c.bf16 %v4184_v9, %v4184_v9  ;;  %v6468_v24 = vld [vmem:[#allocation52_spill] sm:$0xff]  ;;  %v6469_v61 = vld [vmem:[#allocation53_spill] sm:$0xff]  ;;  %v6471_v45 = vld [vmem:[#allocation58_spill] sm:$0xff] }
 0x1a7   : > { %v2392_v60 = vpack.c.b16 %v2371_v5, %v2370_v34  ;;  %v2391_v33 = vpack.c.b16 %v2369_v6, %v2368_v22  ;;  %v3078_v15 = vsel %vm3072_vm2, %v3045_v20, %v6464_v23  ;;  %v3107_v0 = vsel %vm3105_vm3, %v3074_v57, %v6466_v47  ;;  %v4215_v51 = vld [vmem:[%s4506_s20 + $0x2d1] sm:$0xff]  ;;  %v4216_v20 = vld [vmem:[%s4506_s20 + $0x2d9] sm:$0xff]  ;;  %v6472_v52 = vld [vmem:[#allocation83_spill] sm:$0xff] }
 0x1a8   : > { %2414 = vrot.lane.b32.xlu2 %v2390_v2, %s4461_s30  ;;  %v2378_v46 = vunpack.c.l.b16 %v904_v19  ;;  %v2379_v27 = vunpack.c.l.b16 %v905_v58  ;;  %v2376_v44 = vunpack.c.l.b16 %v902_v32  ;;  %v2377_v57 = vunpack.c.l.b16 %v903_v18  ;;  %v6470_v22 = vld [vmem:[#allocation54_spill] sm:$0xff] }
 0x1a9   : > { %2412 = vrot.lane.b32.xlu1 %v2389_v16, %s4461_s30  ;;  %2410 = vrot.lane.b32.xlu0 %v2388_v21, %s4461_s30  ;;  %v2393_v16 = vpack.c.b16 %v2373_v35, %v2372_v11  ;;  %v3071_v11 = vsel %vm3039_vm1, %v3038_v7, %v6462_v37  ;;  %v6463_v35 = vld [vmem:[#allocation37_spill] sm:$0xff]  ;;  %v2374_v34 = vunpack.c.l.b16 %v900_v53  ;;  %v2375_v5 = vunpack.c.l.b16 %v901_v1  ;;  %v4189_v53 = vld [vmem:[%s4506_s20 + $0x181] sm:$0xff]  ;;  %v4190_v1 = vld [vmem:[%s4506_s20 + $0x189] sm:$0xff] }
 0x1aa   : > { %v2189_v2 = vpop.permute.xlu2 %2188  ;;  %v3094_v36 = vsel %vm3072_vm2, %v3061_v4, %v6463_v35  ;;  %v3104_v59 = vsel %vm3072_vm2, %v3071_v11, %v6465_v26  ;;  %v3140_v4 = vsel %vm3138_vm4, %v3107_v0, %v6469_v61  ;;  %v964_v58 = vpack.c.bf16 %v4215_v51, %v4215_v51  ;;  %v4208_v18 = vld [vmem:[%s4506_s20 + $0x279] sm:$0xff]  ;;  %v6474_v37 = vld [vmem:[#allocation71_spill] sm:$0xff] }
 0x1ab   : > { %v5463_v21 = vsel %vm3237_vm7, %v3220_v12, %v2189_v2  ;;  %v2089_v39 = vpop.permute.xlu1 %2088  ;;  %v5465_v38 = vpop.permute.xlu0 %2086  ;;  %v3127_v56 = vsel %vm3105_vm3, %v3094_v36, %v6467_v41  ;;  %v3137_v6 = vsel %vm3105_vm3, %v3104_v59, %v6470_v22  ;;  %v3173_v9 = vsel %vm3171_vm5, %v3140_v4, %v6471_v45  ;;  %v4207_v12 = vld [vmem:[%s4506_s20 + $0x271] sm:$0xff]  ;;  %v6476_v61 = vld [vmem:[#allocation43_spill] sm:$0xff]  ;;  %v6482_v45 = vld [vmem:[#allocation18_spill] sm:$0xff] }
 0x1ac   : > { %v5468_v25 = vsel %vm3204_vm6, %v3199_v10, %v2089_v39  ;;  %v3160_v7 = vsel %vm3138_vm4, %v3127_v56, %v6468_v24  ;;  %v6473_v2 = vld [vmem:[#allocation68_spill] sm:$0xff]  ;;  %v965_v32 = vpack.c.bf16 %v4216_v20, %v4216_v20  ;;  %v3206_v35 = vsel %vm3204_vm6, %v3173_v9, %v5277_v49  ;;  %v6477_v51 = vld [vmem:[#allocation5_spill] sm:$0xff] }
 0x1ad   : > { %v3193_v10 = vsel %vm3171_vm5, %v3160_v7, %v6472_v52  ;;  %v2396_v23 = vpack.c.b16 %v2379_v27, %v2378_v46  ;;  %v2395_v59 = vpack.c.b16 %v2377_v57, %v2376_v44  ;;  %v2394_v47 = vpack.c.b16 %v2375_v5, %v2374_v34  ;;  %v6475_v24 = vld [vmem:[#allocation32_spill] sm:$0xff]  ;;  %v6479_v57 = vld [vmem:[#allocation7_spill] sm:$0xff]  ;;  %v6481_v22 = vld [vmem:[#allocation57_spill] sm:$0xff] }
 0x1ae   : > { %v3226_v39 = vsel %vm3204_vm6, %v3193_v10, %v5419_v29  ;;  %v956_v0 = vpack.c.bf16 %v4207_v12, %v4207_v12  ;;  %v957_v41 = vpack.c.bf16 %v4208_v18, %v4208_v18  ;;  %v906_v56 = vpack.c.bf16 %v4189_v53, %v4189_v53  ;;  %v6484_v9 = vld [vmem:[#allocation85_spill] sm:$0xff]  ;;  %v4272_v12 = vld [vmem:[%s4506_s20 + $0x5a8] sm:$0xff]  ;;  %v4240_v53 = vld [vmem:[%s4506_s20 + $0x410] sm:$0xff] }
 0x1af   : > { %v907_v49 = vpack.c.bf16 %v4190_v1, %v4190_v1  ;;  %v3111_v7 = vsel %vm3105_vm3, %v3078_v15, %v6475_v24  ;;  %v3113_v4 = vsel %vm3105_vm3, %v5456_v40, %v6476_v61  ;;  %v2486_v46 = vunpack.c.l.b16 %v964_v58  ;;  %v6480_v15 = vld [vmem:[#allocation56_spill] sm:$0xff]  ;;  %v6485_v10 = vld [vmem:[#allocation61_spill] sm:$0xff]  ;;  %v4239_v18 = vld [vmem:[%s4506_s20 + $0x408] sm:$0xff] }
 0x1b0   : > { %2420 = vrot.lane.b32.xlu2 %v2393_v16, %s4461_s30  ;;  %v3170_v16 = vsel %vm3138_vm4, %v3137_v6, %v6473_v2  ;;  %v2487_v27 = vunpack.c.l.b16 %v965_v32  ;;  %v6478_v20 = vpack.c.b16 %v5217_v13, %v5215_v62  ;;  %v3020_v34 = vsel %vm2990_vm0, %v1303_v28, %v6479_v57  ;;  %v4271_v6 = vld [vmem:[%s4506_s20 + $0x5a0] sm:$0xff]  ;;  %v6483_v13 = vld [vmem:[#allocation19_spill] sm:$0xff]  ;;  %v6488_v61 = vld [vmem:[#allocation21_spill] sm:$0xff] }
 0x1b1   : > { %2418 = vrot.lane.b32.xlu1 %v2392_v60, %s4461_s30  ;;  %2416 = vrot.lane.b32.xlu0 %v2391_v33, %s4461_s30  ;;  %v3203_v11 = vsel %vm3171_vm5, %v3170_v16, %v6474_v37  ;;  %v3146_v5 = vsel %vm3138_vm4, %v3113_v4, %v6480_v15  ;;  %v3144_v40 = vsel %vm3138_vm4, %v3111_v7, %v6481_v22  ;;  %v4247_v2 = vld [vmem:[%s4506_s20 + $0x468] sm:$0xff]  ;;  %v4248_v16 = vld [vmem:[%s4506_s20 + $0x470] sm:$0xff]  ;;  %v2380_v58 = vunpack.c.l.b16 %v906_v56  ;;  %v6487_v1 = vld [vmem:[#allocation74_spill] sm:$0xff] }
 0x1b2   : > { %v2195_v19 = vpop.permute.xlu2 %2194  ;;  %v3011_v44 = vsel %vm2990_vm0, %v6478_v20, %v6477_v51  ;;  %v3051_v52 = vsel %vm3039_vm1, %v6484_v9, %v6483_v13  ;;  %v3179_v30 = vsel %vm3171_vm5, %v3146_v5, %v6485_v10  ;;  %v3177_v28 = vsel %vm3171_vm5, %v3144_v40, %v6486_v3  ;;  %v6490_v20 = vld [vmem:[#allocation22_spill] sm:$0xff]  ;;  %v6491_v57 = vld [vmem:[#allocation23_spill] sm:$0xff]  ;;  %v4312_v10 = vld [vmem:[%s4506_s20 + $0x471] sm:$0xff] }
 0x1b3   : > { %v5510_v36 = vsel %vm3237_vm7, %v3226_v39, %v2195_v19  ;;  %v2175_v60 = vpop.permute.xlu1 %2174  ;;  %v2093_v33 = vpop.permute.xlu0 %2092  ;;  %v3053_v62 = vsel %vm3039_vm1, %v3011_v44, %v6482_v45  ;;  %v2478_v39 = vunpack.c.l.b16 %v956_v0  ;;  %v2479_v19 = vunpack.c.l.b16 %v957_v41  ;;  %v6492_v5 = vld [vmem:[#allocation26_spill] sm:$0xff]  ;;  %v6493_v40 = vld [vmem:[#allocation35_spill] sm:$0xff]  ;;  %v6494_v45 = vld [vmem:[#allocation45_spill] sm:$0xff] }
 0x1b4   : > { %v5513_v29 = vsel %vm3237_vm7, %v3206_v35, %v2175_v60  ;;  %v5516_v26 = vsel %vm3204_vm6, %v3203_v11, %v2093_v33  ;;  %v2381_v32 = vunpack.c.l.b16 %v907_v49  ;;  %v3210_v37 = vsel %vm3204_vm6, %v3177_v28, %v6487_v1  ;;  %v6495_v28 = vld [vmem:[#allocation33_spill] sm:$0xff] }
 0x1b5   : > { %v3212_v11 = vsel %vm3204_vm6, %v3179_v30, %v5320_v50  ;;  %v2506_v60 = vpack.c.b16 %v2487_v27, %v2486_v46  ;;  %v1086_v33 = vpack.c.bf16 %v4271_v6, %v4271_v6  ;;  %v1087_v0 = vpack.c.bf16 %v4272_v12, %v4272_v12 }
 0x1b6   : > { %v1029_v41 = vpack.c.bf16 %v4247_v2, %v4247_v2  ;;  %v1030_v56 = vpack.c.bf16 %v4248_v16, %v4248_v16  ;;  %v1021_v50 = vpack.c.bf16 %v4239_v18, %v4239_v18  ;;  %v1022_v7 = vpack.c.bf16 %v4240_v53, %v4240_v53  ;;  %v6496_v2 = vld [vmem:[#allocation59_spill] sm:$0xff]  ;;  %v6499_v53 = vld [vmem:[#allocation72_spill] sm:$0xff] }
 0x1b7   : > { %v3059_v4 = vsel %vm3039_vm1, %v3020_v34, %v6488_v61  ;;  %v2502_v27 = vpack.c.b16 %v2479_v19, %v2478_v39  ;;  %v2397_v51 = vpack.c.b16 %v2381_v32, %v2380_v58  ;;  %v3057_v44 = vsel %vm3039_vm1, %v5268_v31, %v6490_v20  ;;  %v6497_v39 = vld [vmem:[#allocation60_spill] sm:$0xff] }
 0x1b8   : > { %2426 = vrot.lane.b32.xlu2 %v2396_v23, %s4461_s30  ;;  %v3086_v15 = vsel %vm3072_vm2, %v3053_v62, %v6491_v57  ;;  %v3092_v22 = vsel %vm3072_vm2, %v3059_v4, %v6492_v5  ;;  %v2702_v13 = vunpack.c.l.b16 %v1086_v33  ;;  %v2703_v9 = vunpack.c.l.b16 %v1087_v0  ;;  %v4303_v58 = vld [vmem:[%s4506_s20 + $0x409] sm:$0xff]  ;;  %v4279_v33 = vld [vmem:[%s4506_s20 + $0x600] sm:$0xff] }
 0x1b9   : > { %2424 = vrot.lane.b32.xlu1 %v2395_v59, %s4461_s30  ;;  %2422 = vrot.lane.b32.xlu0 %v2394_v47, %s4461_s30  ;;  %v3119_v34 = vsel %vm3105_vm3, %v3086_v15, %v6494_v45  ;;  %v2598_v31 = vunpack.c.l.b16 %v1029_v41  ;;  %v2599_v62 = vunpack.c.l.b16 %v1030_v56  ;;  %v2590_v30 = vunpack.c.l.b16 %v1021_v50  ;;  %v6498_v32 = vld [vmem:[#allocation64_spill] sm:$0xff]  ;;  %v6503_v45 = vld [vmem:[#allocation62_spill] sm:$0xff] }
 0x1ba   : > { %v2201_v35 = vpop.permute.xlu2 %2200  ;;  %v2591_v3 = vunpack.c.l.b16 %v1022_v7  ;;  %v3090_v12 = vsel %vm3072_vm2, %v3057_v44, %v6495_v28  ;;  %v3152_v16 = vsel %vm3138_vm4, %v3119_v34, %v6496_v2  ;;  %v2726_v61 = vpack.c.b16 %v2703_v9, %v2702_v13  ;;  %v6502_v15 = vld [vmem:[#allocation48_spill] sm:$0xff]  ;;  %v6504_v13 = vld [vmem:[#allocation63_spill] sm:$0xff]  ;;  %v6509_v28 = vld [vmem:[#allocation10_spill] sm:$0xff] }
 0x1bb   : > { %v5561_v23 = vsel %vm3237_vm7, %v5468_v25, %v2201_v35  ;;  %v2181_v59 = vpop.permute.xlu1 %2180  ;;  %v2179_v47 = vpop.permute.xlu0 %2178  ;;  %v6489_v25 = vld [vmem:[#allocation31_spill] sm:$0xff]  ;;  %v3185_v18 = vsel %vm3171_vm5, %v3152_v16, %v6498_v32  ;;  %v1159_v35 = vpack.c.bf16 %v4312_v10, %v4312_v10  ;;  %v3125_v5 = vsel %vm3105_vm3, %v3092_v22, %v6502_v15  ;;  %v6505_v10 = vld [vmem:[#allocation2_spill] sm:$0xff]  ;;  %v6511_v16 = vld [vmem:[#allocation76_spill] sm:$0xff] }
 0x1bc   : > { %v5564_v49 = vsel %vm3237_vm7, %v3212_v11, %v2181_v59  ;;  %v5567_v24 = vsel %vm3237_vm7, %v3210_v37, %v2179_v47  ;;  %v3084_v46 = vsel %vm3072_vm2, %v3051_v52, %v6489_v25  ;;  %v4311_v52 = vld [vmem:[%s4506_s20 + $0x469] sm:$0xff]  ;;  %v6500_v47 = vld [vmem:[#allocation81_spill] sm:$0xff]  ;;  %v3218_v41 = vsel %vm3204_vm6, %v3185_v18, %v5361_v43 }
 0x1bd   : > { %v3117_v6 = vsel %vm3105_vm3, %v3084_v46, %v6493_v40  ;;  %v1158_v11 = vpack.c.bf16 %v4311_v52, %v4311_v52  ;;  %v4280_v59 = vld [vmem:[%s4506_s20 + $0x608] sm:$0xff]  ;;  %v2618_v46 = vpack.c.b16 %v2599_v62, %v2598_v31  ;;  %v1094_v43 = vpack.c.bf16 %v4279_v33, %v4279_v33  ;;  %v4191_v52 = vld [vmem:[%s4506_s20 + $0x1b1] sm:$0xff]  ;;  %v6506_v31 = vld [vmem:[#allocation78_spill] sm:$0xff] }
 0x1be   : > { %v3150_v19 = vsel %vm3138_vm4, %v3117_v6, %v6497_v39  ;;  %v1095_v44 = vpack.c.bf16 %v4280_v59, %v4280_v59  ;;  %v2823_v6 = vunpack.c.l.b16 %v1159_v35  ;;  %v3158_v34 = vsel %vm3138_vm4, %v3125_v5, %v6503_v45  ;;  %v6507_v62 = vld [vmem:[#allocation75_spill] sm:$0xff]  ;;  %v6515_v15 = vld [vmem:[#allocation28_spill] sm:$0xff] }
 0x1bf   : > { %v3183_v1 = vsel %vm3171_vm5, %v3150_v19, %v6499_v53  ;;  %v2822_v40 = vunpack.c.l.b16 %v1158_v11  ;;  %v3029_v22 = vsel %vm2990_vm0, %v1306_v63, %v6509_v28  ;;  %v4192_v19 = vld [vmem:[%s4506_s20 + $0x1b9] sm:$0xff]  ;;  %v4344_v32 = vld [vmem:[%s4506_s20 + $0x609] sm:$0xff]  ;;  %v2710_v63 = vunpack.c.l.b16 %v1094_v43  ;;  %v4335_v53 = vld [vmem:[%s4506_s20 + $0x5a1] sm:$0xff] }
 0x1c0   : > { %2534 = vrot.lane.b32.xlu2 %v2506_v60, %s4462_s5  ;;  %v4304_v60 = vld [vmem:[%s4506_s20 + $0x411] sm:$0xff]  ;;  %v3216_v0 = vsel %vm3204_vm6, %v3183_v1, %v6500_v47  ;;  %v2711_v18 = vunpack.c.l.b16 %v1095_v44  ;;  %v4336_v1 = vld [vmem:[%s4506_s20 + $0x5a9] sm:$0xff]  ;;  %v940_v59 = vpack.c.bf16 %v4191_v52, %v4191_v52 }
 0x1c1   : > { %2526 = vrot.lane.b32.xlu1 %v2502_v27, %s4462_s5  ;;  %2428 = vrot.lane.b32.xlu0 %v2397_v51, %s4461_s30  ;;  %v2614_v27 = vpack.c.b16 %v2591_v3, %v2590_v30  ;;  %v1150_v51 = vpack.c.bf16 %v4303_v58, %v4303_v58  ;;  %v1151_v20 = vpack.c.bf16 %v4304_v60, %v4304_v60  ;;  %v4343_v58 = vld [vmem:[%s4506_s20 + $0x601] sm:$0xff]  ;;  %v6517_v45 = vld [vmem:[#allocation40_spill] sm:$0xff] }
 0x1c2   : > { %v2287_v37 = vpop.permute.xlu2 %2286  ;;  %v6508_v30 = vpack.c.b16 %v6506_v31, %v6507_v62  ;;  %v2842_v33 = vpack.c.b16 %v2823_v6, %v2822_v40  ;;  %v6516_v40 = vld [vmem:[#allocation36_spill] sm:$0xff]  ;;  %v2462_v52 = vunpack.c.l.b16 %v940_v59  ;;  %v4231_v31 = vld [vmem:[%s4506_s20 + $0x3a8] sm:$0xff] }
 0x1c3   : > { %v5609_v56 = vsel %vm3270_vm8, %v5513_v29, %v2287_v37  ;;  %v2187_v50 = vpop.permute.xlu1 %2186  ;;  %v2185_v7 = vpop.permute.xlu0 %2184  ;;  %v6501_v29 = vld [vmem:[#allocation38_spill] sm:$0xff]  ;;  %v2814_v42 = vunpack.c.l.b16 %v1150_v51  ;;  %v2815_v54 = vunpack.c.l.b16 %v1151_v20  ;;  %v6512_v37 = vld [vmem:[#allocation84_spill] sm:$0xff]  ;;  %v1215_v51 = vpack.c.bf16 %v4336_v1, %v4336_v1 }
 0x1c4   : > { %v5612_v4 = vsel %vm3237_vm7, %v3218_v41, %v2187_v50  ;;  %v5615_v25 = vsel %vm3237_vm7, %v3216_v0, %v2185_v7  ;;  %v3123_v57 = vsel %vm3105_vm3, %v3090_v12, %v6501_v29  ;;  %v3026_v3 = vsel %vm2990_vm0, %v6508_v30, %v6505_v10  ;;  %v6510_v12 = vld [vmem:[#allocation67_spill] sm:$0xff]  ;;  %v6513_v20 = vld [vmem:[#allocation24_spill] sm:$0xff] }
 0x1c5   : > { %v3156_v9 = vsel %vm3138_vm4, %v3123_v57, %v6504_v13  ;;  %v3191_v2 = vsel %vm3171_vm5, %v3158_v34, %v6510_v12  ;;  %v941_v50 = vpack.c.bf16 %v4192_v19, %v4192_v19  ;;  %v1222_v7 = vpack.c.bf16 %v4343_v58, %v4343_v58  ;;  %v6518_v13 = vld [vmem:[#allocation51_spill] sm:$0xff]  ;;  %v4232_v62 = vld [vmem:[%s4506_s20 + $0x3b0] sm:$0xff]  ;;  %v6519_v12 = vld [vmem:[#allocation65_spill] sm:$0xff] }
 0x1c6   : > { %v3189_v39 = vsel %vm3171_vm5, %v3156_v9, %v6511_v16  ;;  %v3224_v35 = vsel %vm3204_vm6, %v3191_v2, %v5421_v48  ;;  %v1214_v48 = vpack.c.bf16 %v4335_v53, %v4335_v53  ;;  %v3065_v43 = vsel %vm3039_vm1, %v3029_v22, %v6513_v20  ;;  %v6520_v16 = vld [vmem:[#allocation66_spill] sm:$0xff]  ;;  %v4223_v19 = vld [vmem:[%s4506_s20 + $0x348] sm:$0xff]  ;;  %v6521_v58 = vld [vmem:[#allocation69_spill] sm:$0xff] }
 0x1c7   : > { %v3222_v11 = vsel %vm3204_vm6, %v3189_v39, %v6512_v37  ;;  %v2838_v29 = vpack.c.b16 %v2815_v54, %v2814_v42  ;;  %v2730_v57 = vpack.c.b16 %v2711_v18, %v2710_v63  ;;  %v3098_v5 = vsel %vm3072_vm2, %v3065_v43, %v6515_v15  ;;  %v6522_v42 = vld [vmem:[#allocation82_spill] sm:$0xff]  ;;  %v4224_v1 = vld [vmem:[%s4506_s20 + $0x350] sm:$0xff] }
 0x1c8   : > { %2750 = vrot.lane.b32.xlu2 %v2726_v61, %s4463_s6  ;;  %v1223_v61 = vpack.c.bf16 %v4344_v32, %v4344_v32  ;;  %v3131_v9 = vsel %vm3105_vm3, %v3098_v5, %v6518_v13  ;;  %v2463_v10 = vunpack.c.l.b16 %v941_v50  ;;  %v2934_v30 = vunpack.c.l.b16 %v1222_v7  ;;  %v4199_v37 = vld [vmem:[%s4506_s20 + $0x211] sm:$0xff] }
 0x1c9   : > { %2646 = vrot.lane.b32.xlu1 %v2618_v46, %s4464_s7  ;;  %2638 = vrot.lane.b32.xlu0 %v2614_v27, %s4464_s7  ;;  %v2926_v28 = vunpack.c.l.b16 %v1214_v48  ;;  %v2927_v22 = vunpack.c.l.b16 %v1215_v51  ;;  %v3164_v2 = vsel %vm3138_vm4, %v3131_v9, %v6519_v12  ;;  %v1013_v18 = vpack.c.bf16 %v4231_v31, %v4231_v31 }
 0x1ca   : > { %v2293_v60 = vpop.permute.xlu2 %2292  ;;  %v3197_v32 = vsel %vm3171_vm5, %v3164_v2, %v6521_v58  ;;  %v1014_v53 = vpack.c.bf16 %v4232_v62, %v4232_v62  ;;  %v1005_v48 = vpack.c.bf16 %v4223_v19, %v4223_v19  ;;  %v1006_v51 = vpack.c.bf16 %v4224_v1, %v4224_v1 }
 0x1cb   : > { %v5654_v47 = vsel %vm3270_vm8, %v5564_v49, %v2293_v60  ;;  %v2193_v0 = vpop.permute.xlu1 %2192  ;;  %v2191_v41 = vpop.permute.xlu0 %2190  ;;  %v6514_v49 = vld [vmem:[#allocation25_spill] sm:$0xff]  ;;  %v3230_v60 = vsel %vm3204_vm6, %v3197_v32, %v5465_v38  ;;  %v948_v38 = vpack.c.bf16 %v4199_v37, %v4199_v37  ;;  %v4327_v32 = vld [vmem:[%s4506_s20 + $0x541] sm:$0xff]  ;;  %vm3807_vm0 = vcmask 261120  }
 0x1cc   : > { %v5657_v46 = vsel %vm3237_vm7, %v3224_v35, %v2193_v0  ;;  %v5660_v27 = vsel %vm3237_vm7, %v3222_v11, %v2191_v41  ;;  %v3063_v44 = vsel %vm3039_vm1, %v3026_v3, %v6514_v49  ;;  %v2935_v3 = vunpack.c.l.b16 %v1223_v61  ;;  %v4200_v11 = vld [vmem:[%s4506_s20 + $0x219] sm:$0xff]  ;;  %v4287_v49 = vld [vmem:[%s4506_s20 + $0x349] sm:$0xff] }
 0x1cd   : > { %v3096_v6 = vsel %vm3072_vm2, %v3063_v44, %v6516_v40  ;;  %v2494_v41 = vpack.c.b16 %v2463_v10, %v2462_v52  ;;  %v2950_v61 = vpack.c.b16 %v2927_v22, %v2926_v28  ;;  %v949_v20 = vpack.c.bf16 %v4200_v11, %v4200_v11  ;;  %v4288_v44 = vld [vmem:[%s4506_s20 + $0x351] sm:$0xff]  ;;  %v4320_v11 = vld [vmem:[%s4506_s20 + $0x4e9] sm:$0xff] }
 0x1ce   : > { %v3129_v34 = vsel %vm3105_vm3, %v3096_v6, %v6517_v45  ;;  %v2583_v43 = vunpack.c.l.b16 %v1014_v53  ;;  %v2574_v15 = vunpack.c.l.b16 %v1005_v48  ;;  %v2575_v5 = vunpack.c.l.b16 %v1006_v51  ;;  %v4255_v45 = vld [vmem:[%s4506_s20 + $0x4e0] sm:$0xff] }
 0x1cf   : > { %v3162_v39 = vsel %vm3138_vm4, %v3129_v34, %v6520_v16  ;;  %v2470_v40 = vunpack.c.l.b16 %v948_v38  ;;  %v2471_v6 = vunpack.c.l.b16 %v949_v20  ;;  %v4256_v34 = vld [vmem:[%s4506_s20 + $0x4e8] sm:$0xff]  ;;  %v1134_v52 = vpack.c.bf16 %v4287_v49, %v4287_v49 }
 0x1d0   : > { %2870 = vrot.lane.b32.xlu2 %v2842_v33, %s4465_s8  ;;  %v3195_v54 = vsel %vm3171_vm5, %v3162_v39, %v6522_v42  ;;  %v1070_v2 = vpack.c.bf16 %v4255_v45, %v4255_v45  ;;  %v1071_v16 = vpack.c.bf16 %v4256_v34, %v4256_v34  ;;  %v2606_v39 = vpack.c.b16 %v2575_v5, %v2574_v15  ;;  %v4328_v42 = vld [vmem:[%s4506_s20 + $0x549] sm:$0xff]  ;;  %v4210_v34 = vld [vmem:[%s4506_s20 + $0x291] sm:$0xff] }
 0x1d1   : > { %2862 = vrot.lane.b32.xlu1 %v2838_v29, %s4465_s8  ;;  %2758 = vrot.lane.b32.xlu0 %v2730_v57, %s4463_s6  ;;  %v3228_v35 = vsel %vm3204_vm6, %v3195_v54, %v5270_v8  ;;  %v2954_v8 = vpack.c.b16 %v2935_v3, %v2934_v30  ;;  %v4263_v29 = vld [vmem:[%s4506_s20 + $0x540] sm:$0xff]  ;;  %v4264_v57 = vld [vmem:[%s4506_s20 + $0x548] sm:$0xff]  ;;  %v1135_v30 = vpack.c.bf16 %v4288_v44, %v4288_v44 }
 0x1d2   : > { %v2299_v63 = vpop.permute.xlu2 %2298  ;;  %v1078_v3 = vpack.c.bf16 %v4263_v29, %v4263_v29  ;;  %v1079_v28 = vpack.c.bf16 %v4264_v57, %v4264_v57  ;;  %v2498_v19 = vpack.c.b16 %v2471_v6, %v2470_v40  ;;  %v1206_v1 = vpack.c.bf16 %v4327_v32, %v4327_v32  ;;  %v4241_v29 = vld [vmem:[%s4506_s20 + $0x420] sm:$0xff]  ;;  %v4242_v57 = vld [vmem:[%s4506_s20 + $0x428] sm:$0xff] }
 0x1d3   : > { %v5697_v33 = vsel %vm3270_vm8, %v5612_v4, %v2299_v63  ;;  %v2199_v59 = vpop.permute.xlu1 %2198  ;;  %v2197_v0 = vpop.permute.xlu0 %2196  ;;  %v2582_v4 = vunpack.c.l.b16 %v1013_v18  ;;  %v2799_v58 = vunpack.c.l.b16 %v1135_v30  ;;  %v2686_v63 = vunpack.c.l.b16 %v1070_v2  ;;  %v4217_v15 = vld [vmem:[%s4506_s20 + $0x2e9] sm:$0xff] }
 0x1d4   : > { %v3263_v50 = vsel %vm3237_vm7, %v3230_v60, %v2199_v59  ;;  %v5701_v7 = vsel %vm3237_vm7, %v3228_v35, %v2197_v0  ;;  %v2694_v54 = vunpack.c.l.b16 %v1078_v3  ;;  %v2687_v18 = vunpack.c.l.b16 %v1071_v16  ;;  %v4295_v35 = vld [vmem:[%s4506_s20 + $0x3a9] sm:$0xff]  ;;  %v4296_v60 = vld [vmem:[%s4506_s20 + $0x3b1] sm:$0xff] }
 0x1d5   : > { %v2610_v9 = vpack.c.b16 %v2583_v43, %v2582_v4  ;;  %v1207_v37 = vpack.c.bf16 %v4328_v42, %v4328_v42  ;;  %v1199_v4 = vpack.c.bf16 %v4320_v11, %v4320_v11  ;;  %v1143_v43 = vpack.c.bf16 %v4296_v60, %v4296_v60  ;;  %v4209_v45 = vld [vmem:[%s4506_s20 + $0x289] sm:$0xff]  ;;  %v4274_v11 = vld [vmem:[%s4506_s20 + $0x5c0] sm:$0xff] }
 0x1d6   : > { %v2718_v38 = vpack.c.b16 %v2687_v18, %v2686_v63  ;;  %v2918_v49 = vunpack.c.l.b16 %v1206_v1  ;;  %v1024_v3 = vpack.c.bf16 %v4242_v57, %v4242_v57  ;;  %v4250_v60 = vld [vmem:[%s4506_s20 + $0x488] sm:$0xff] }
 0x1d7   : > { %v2919_v44 = vunpack.c.l.b16 %v1207_v37  ;;  %v2911_v5 = vunpack.c.l.b16 %v1199_v4  ;;  %v2807_v6 = vunpack.c.l.b16 %v1143_v43 }
 0x1d8   : > { %2510 = vrot.lane.b32.xlu2 %v2494_v41, %s4462_s5  ;;  %v2593_v42 = vunpack.c.l.b16 %v1024_v3 }
 0x1d9   : > { %2982 = vrot.lane.b32.xlu1 %v2954_v8, %s4466_s9  ;;  %2974 = vrot.lane.b32.xlu0 %v2950_v61, %s4466_s9 }
 0x1da   : > { %v2305_v13 = vpop.permute.xlu2 %2304 }
 0x1db   : > { %v5714_v10 = vsel %vm3270_vm8, %v5657_v46, %v2305_v13  ;;  %v2205_v31 = vpop.permute.xlu1 %2204  ;;  %v2203_v62 = vpop.permute.xlu0 %2202  ;;  %v2798_v46 = vunpack.c.l.b16 %v1134_v52  ;;  %v1023_v52 = vpack.c.bf16 %v4241_v29, %v4241_v29 }
 0x1dc   : > { %v3269_v22 = vsel %vm3237_vm7, %v5516_v26, %v2205_v31  ;;  %v5720_v12 = vsel %vm3237_vm7, %v5316_v55, %v2203_v62  ;;  %v2695_v26 = vunpack.c.l.b16 %v1079_v28  ;;  %v4319_v55 = vld [vmem:[%s4506_s20 + $0x4e1] sm:$0xff]  ;;  %v966_v28 = vpack.c.bf16 %v4217_v15, %v4217_v15  ;;  %v4337_v15 = vld [vmem:[%s4506_s20 + $0x5b9] sm:$0xff] }
 0x1dd   : > { %v2830_v8 = vpack.c.b16 %v2799_v58, %v2798_v46  ;;  %v1198_v20 = vpack.c.bf16 %v4319_v55, %v4319_v55  ;;  %v959_v46 = vpack.c.bf16 %v4210_v34, %v4210_v34  ;;  %v4273_v55 = vld [vmem:[%s4506_s20 + $0x5b8] sm:$0xff]  ;;  %v4306_v34 = vld [vmem:[%s4506_s20 + $0x429] sm:$0xff] }
 0x1de   : > { %v2722_v51 = vpack.c.b16 %v2695_v26, %v2694_v54  ;;  %v4281_v54 = vld [vmem:[%s4506_s20 + $0x618] sm:$0xff]  ;;  %v4282_v26 = vld [vmem:[%s4506_s20 + $0x620] sm:$0xff]  ;;  %v1088_v43 = vpack.c.bf16 %v4273_v55, %v4273_v55 }
 0x1df   : > { %v1096_v1 = vpack.c.bf16 %v4281_v54, %v4281_v54  ;;  %v1097_v37 = vpack.c.bf16 %v4282_v26, %v4282_v26 }
 0x1e0   : > { %2630 = vrot.lane.b32.xlu2 %v2610_v9, %s4464_s7  ;;  %v2946_v9 = vpack.c.b16 %v2919_v44, %v2918_v49  ;;  %v1089_v49 = vpack.c.bf16 %v4274_v11, %v4274_v11  ;;  %v1032_v44 = vpack.c.bf16 %v4250_v60, %v4250_v60  ;;  %v4194_v11 = vld [vmem:[%s4506_s20 + $0x1d1] sm:$0xff]  ;;  %v4346_v60 = vld [vmem:[%s4506_s20 + $0x621] sm:$0xff] }
 0x1e1   : > { %2622 = vrot.lane.b32.xlu1 %v2606_v39, %s4464_s7  ;;  %2518 = vrot.lane.b32.xlu0 %v2498_v19, %s4462_s5  ;;  %v958_v19 = vpack.c.bf16 %v4209_v45, %v4209_v45  ;;  %v2712_v29 = vunpack.c.l.b16 %v1096_v1  ;;  %v2713_v57 = vunpack.c.l.b16 %v1097_v37  ;;  %v4305_v45 = vld [vmem:[%s4506_s20 + $0x421] sm:$0xff] }
 0x1e2   : > { %v2311_v53 = vpop.permute.xlu2 %2310 }
 0x1e3   : > { %v5732_v59 = vsel %vm3270_vm8, %v3263_v50, %v2311_v53  ;;  %v2291_v0 = vpop.permute.xlu1 %2290  ;;  %v2289_v41 = vpop.permute.xlu0 %2288  ;;  %v1142_v50 = vpack.c.bf16 %v4295_v35, %v4295_v35  ;;  %v2480_v18 = vunpack.c.l.b16 %v958_v19  ;;  %v4249_v35 = vld [vmem:[%s4506_s20 + $0x480] sm:$0xff] }
 0x1e4   : > { %v3276_v61 = vsel %vm3270_vm8, %v5567_v24, %v2291_v0  ;;  %v5738_v48 = vsel %vm3270_vm8, %v5357_v14, %v2289_v41  ;;  %v4218_v24 = vld [vmem:[%s4506_s20 + $0x2f1] sm:$0xff]  ;;  %v2910_v14 = vunpack.c.l.b16 %v1198_v20 }
 0x1e5   : > { %v2806_v40 = vunpack.c.l.b16 %v1142_v50  ;;  %v967_v2 = vpack.c.bf16 %v4218_v24, %v4218_v24  ;;  %v4338_v24 = vld [vmem:[%s4506_s20 + $0x5c1] sm:$0xff] }
 0x1e6   : > { %v2942_v58 = vpack.c.b16 %v2911_v5, %v2910_v14  ;;  %v4314_v14 = vld [vmem:[%s4506_s20 + $0x489] sm:$0xff]  ;;  %v2705_v5 = vunpack.c.l.b16 %v1089_v49 }
 0x1e7   : > { %v2834_v32 = vpack.c.b16 %v2807_v6, %v2806_v40  ;;  %v2489_v63 = vunpack.c.l.b16 %v967_v2  ;;  %v2601_v6 = vunpack.c.l.b16 %v1032_v44  ;;  %v1161_v19 = vpack.c.bf16 %v4314_v14, %v4314_v14  ;;  %v4258_v14 = vld [vmem:[%s4506_s20 + $0x500] sm:$0xff] }
 0x1e8   : > { %2846 = vrot.lane.b32.xlu2 %v2830_v8, %s4465_s8  ;;  %v943_v44 = vpack.c.bf16 %v4194_v11, %v4194_v11 }
 0x1e9   : > { %2742 = vrot.lane.b32.xlu1 %v2722_v51, %s4463_s6  ;;  %2734 = vrot.lane.b32.xlu0 %v2718_v38, %s4463_s6 }
 0x1ea   : > { %v2317_v13 = vpop.permute.xlu2 %2316 }
 0x1eb   : > { %v5750_v31 = vsel %vm3270_vm8, %v3269_v22, %v2317_v13  ;;  %v2297_v62 = vpop.permute.xlu1 %2296  ;;  %v2295_v30 = vpop.permute.xlu0 %2294  ;;  %v2592_v22 = vunpack.c.l.b16 %v1023_v52  ;;  %v1216_v52 = vpack.c.bf16 %v4337_v15, %v4337_v15 }
 0x1ec   : > { %v3282_v16 = vsel %vm3270_vm8, %v5615_v25, %v2297_v62  ;;  %v5756_v39 = vsel %vm3270_vm8, %v5417_v17, %v2295_v30  ;;  %v2488_v25 = vunpack.c.l.b16 %v966_v28  ;;  %v2481_v17 = vunpack.c.l.b16 %v959_v46 }
 0x1ed   : > { %v2615_v51 = vpack.c.b16 %v2593_v42, %v2592_v22  ;;  %v1217_v28 = vpack.c.bf16 %v4338_v24, %v4338_v24  ;;  %v1153_v22 = vpack.c.bf16 %v4306_v34, %v4306_v34  ;;  %v4226_v34 = vld [vmem:[%s4506_s20 + $0x368] sm:$0xff] }
 0x1ee   : > { %v2507_v4 = vpack.c.b16 %v2489_v63, %v2488_v25  ;;  %v2503_v50 = vpack.c.b16 %v2481_v17, %v2480_v18  ;;  %v4201_v25 = vld [vmem:[%s4506_s20 + $0x229] sm:$0xff]  ;;  %v4202_v63 = vld [vmem:[%s4506_s20 + $0x231] sm:$0xff] }
 0x1ef   : > { %v2929_v26 = vunpack.c.l.b16 %v1217_v28  ;;  %v2817_v55 = vunpack.c.l.b16 %v1153_v22  ;;  %v950_v1 = vpack.c.bf16 %v4201_v25, %v4201_v25  ;;  %v951_v37 = vpack.c.bf16 %v4202_v63, %v4202_v63 }
 0x1f0   : > { %2966 = vrot.lane.b32.xlu2 %v2946_v9, %s4466_s9  ;;  %v2731_v9 = vpack.c.b16 %v2713_v57, %v2712_v29  ;;  %v1225_v57 = vpack.c.bf16 %v4346_v60, %v4346_v60  ;;  %v4265_v60 = vld [vmem:[%s4506_s20 + $0x558] sm:$0xff] }
 0x1f1   : > { %2958 = vrot.lane.b32.xlu1 %v2942_v58, %s4466_s9  ;;  %2854 = vrot.lane.b32.xlu0 %v2834_v32, %s4465_s8  ;;  %v1152_v32 = vpack.c.bf16 %v4305_v45, %v4305_v45  ;;  %v2472_v15 = vunpack.c.l.b16 %v950_v1  ;;  %v2473_v24 = vunpack.c.l.b16 %v951_v37  ;;  %v4225_v45 = vld [vmem:[%s4506_s20 + $0x360] sm:$0xff] }
 0x1f2   : > { %v2403_v53 = vpop.permute.xlu2 %2402 }
 0x1f3   : > { %v5768_v0 = vsel %vm3303_vm9, %v3276_v61, %v2403_v53  ;;  %v2303_v41 = vpop.permute.xlu1 %2302  ;;  %v2301_v8 = vpop.permute.xlu0 %2300  ;;  %v1031_v61 = vpack.c.bf16 %v4249_v35, %v4249_v35  ;;  %v2816_v17 = vunpack.c.l.b16 %v1152_v32  ;;  %v4345_v35 = vld [vmem:[%s4506_s20 + $0x619] sm:$0xff] }
 0x1f4   : > { %v5772_v38 = vsel %vm3270_vm8, %v5660_v27, %v2303_v41  ;;  %v5776_v20 = vsel %vm3270_vm8, %v5463_v21, %v2301_v8  ;;  %v4313_v27 = vld [vmem:[%s4506_s20 + $0x481] sm:$0xff]  ;;  %v2704_v21 = vunpack.c.l.b16 %v1088_v43  ;;  %v1224_v29 = vpack.c.bf16 %v4345_v35, %v4345_v35  ;;  %v4290_v35 = vld [vmem:[%s4506_s20 + $0x369] sm:$0xff] }
 0x1f5   : > { %v2600_v40 = vunpack.c.l.b16 %v1031_v61  ;;  %v1160_v2 = vpack.c.bf16 %v4313_v27, %v4313_v27  ;;  %v2839_v49 = vpack.c.b16 %v2817_v55, %v2816_v17  ;;  %v4257_v27 = vld [vmem:[%s4506_s20 + $0x4f8] sm:$0xff] }
 0x1f6   : > { %v2727_v42 = vpack.c.b16 %v2705_v5, %v2704_v21  ;;  %v4233_v21 = vld [vmem:[%s4506_s20 + $0x3c0] sm:$0xff]  ;;  %v2465_v5 = vunpack.c.l.b16 %v943_v44 }
 0x1f7   : > { %v2619_v54 = vpack.c.b16 %v2601_v6, %v2600_v40  ;;  %v2824_v18 = vunpack.c.l.b16 %v1160_v2  ;;  %v2936_v40 = vunpack.c.l.b16 %v1224_v29  ;;  %v2937_v6 = vunpack.c.l.b16 %v1225_v57 }
 0x1f8   : > { %2640 = vrot.lane.b32.xlu2 %v2615_v51, %s4464_s7  ;;  %v1073_v2 = vpack.c.bf16 %v4258_v14, %v4258_v14 }
 0x1f9   : > { %2536 = vrot.lane.b32.xlu1 %v2507_v4, %s4462_s5  ;;  %2528 = vrot.lane.b32.xlu0 %v2503_v50, %s4462_s5  ;;  %v2955_v25 = vpack.c.b16 %v2937_v6, %v2936_v40  ;;  %v4398_v40 = vld [vmem:[%s6338_s1 + $0x20] sm:$0xff] }
 0x1fa   : > { %v2409_v13 = vpop.permute.xlu2 %2408  ;;  %v2689_v63 = vunpack.c.l.b16 %v1073_v2 }
 0x1fb   : > { %v5788_v62 = vsel %vm3303_vm9, %v3282_v16, %v2409_v13  ;;  %v2309_v30 = vpop.permute.xlu1 %2308  ;;  %v2307_v3 = vpop.permute.xlu0 %2306  ;;  %v2928_v16 = vunpack.c.l.b16 %v1216_v52  ;;  %v1072_v52 = vpack.c.bf16 %v4257_v27, %v4257_v27  ;;  %v1080_v27 = vpack.c.bf16 %v4265_v60, %v4265_v60  ;;  %v4243_v60 = vld [vmem:[%s4506_s20 + $0x438] sm:$0xff] }
 0x1fc   : > { %v3294_v46 = vsel %vm3270_vm8, %v5701_v7, %v2309_v30  ;;  %v5794_v58 = vsel %vm3270_vm8, %v5510_v36, %v2307_v3  ;;  %v2825_v7 = vunpack.c.l.b16 %v1161_v19  ;;  %v4193_v36 = vld [vmem:[%s4506_s20 + $0x1c9] sm:$0xff]  ;;  %v1015_v19 = vpack.c.bf16 %v4233_v21, %v4233_v21 }
 0x1fd   : > { %v2951_v51 = vpack.c.b16 %v2929_v26, %v2928_v16  ;;  %v942_v61 = vpack.c.bf16 %v4193_v36, %v4193_v36  ;;  %v1008_v16 = vpack.c.bf16 %v4226_v34, %v4226_v34  ;;  %v2696_v34 = vunpack.c.l.b16 %v1080_v27 }
 0x1fe   : > { %v2843_v43 = vpack.c.b16 %v2825_v7, %v2824_v18  ;;  %v4297_v18 = vld [vmem:[%s4506_s20 + $0x3c1] sm:$0xff]  ;;  %v4298_v7 = vld [vmem:[%s4506_s20 + $0x3c9] sm:$0xff] }
 0x1ff   : > { %v2577_v36 = vunpack.c.l.b16 %v1008_v16  ;;  %v1144_v37 = vpack.c.bf16 %v4297_v18, %v4297_v18  ;;  %v1145_v11 = vpack.c.bf16 %v4298_v7, %v4298_v7  ;;  %v4397_v7 = vld [vmem:[%s6338_s1 + $0x18] sm:$0xff] }
 0x200   : > { %2760 = vrot.lane.b32.xlu2 %v2731_v9, %s4463_s6  ;;  %v2499_v9 = vpack.c.b16 %v2473_v24, %v2472_v15  ;;  %v1137_v24 = vpack.c.bf16 %v4290_v35, %v4290_v35  ;;  %v4396_v35 = vld [vmem:[%s6338_s1 + $0x10] sm:$0xff] }
 0x201   : > { %2752 = vrot.lane.b32.xlu1 %v2727_v42, %s4463_s6  ;;  %2648 = vrot.lane.b32.xlu0 %v2619_v54, %s4464_s7  ;;  %v1007_v54 = vpack.c.bf16 %v4225_v45, %v4225_v45  ;;  %v2808_v21 = vunpack.c.l.b16 %v1144_v37 }
 0x202   : > { %v5802_v53 = vpop.permute.xlu2 %2414  ;;  %v2801_v45 = vunpack.c.l.b16 %v1137_v24 }
 0x203   : > { %v2315_v41 = vpop.permute.xlu1 %2314  ;;  %v2313_v8 = vpop.permute.xlu0 %2312  ;;  %v2576_v55 = vunpack.c.l.b16 %v1007_v54 }
 0x204   : > { %v3300_v4 = vsel %vm3270_vm8, %v5720_v12, %v2315_v41  ;;  %v5811_v50 = vsel %vm3270_vm8, %v5561_v23, %v2313_v8  ;;  %v4234_v12 = vld [vmem:[%s4506_s20 + $0x3c8] sm:$0xff]  ;;  %v2464_v23 = vunpack.c.l.b16 %v942_v61  ;;  %v4266_v41 = vld [vmem:[%s4506_s20 + $0x560] sm:$0xff] }
 0x205   : > { %v1016_v32 = vpack.c.bf16 %v4234_v12, %v4234_v12  ;;  %v2607_v57 = vpack.c.b16 %v2577_v36, %v2576_v55  ;;  %v1081_v14 = vpack.c.bf16 %v4266_v41, %v4266_v41  ;;  %v2809_v12 = vunpack.c.l.b16 %v1145_v11 }
 0x206   : > { %v2495_v26 = vpack.c.b16 %v2465_v5, %v2464_v23  ;;  %v4329_v23 = vld [vmem:[%s4506_s20 + $0x559] sm:$0xff]  ;;  %v4330_v5 = vld [vmem:[%s4506_s20 + $0x561] sm:$0xff] }
 0x207   : > { %v2585_v17 = vunpack.c.l.b16 %v1016_v32  ;;  %v1208_v16 = vpack.c.bf16 %v4329_v23, %v4329_v23 }
 0x208   : > { %2976 = vrot.lane.b32.xlu2 %v2951_v51, %s4466_s9 }
 0x209   : > { %2872 = vrot.lane.b32.xlu1 %v2843_v43, %s4465_s8  ;;  %2864 = vrot.lane.b32.xlu0 %v2839_v49, %s4465_s8 }
 0x20a   : > { %v2421_v13 = vpop.permute.xlu2 %2420 }
 0x20b   : > { %v5823_v30 = vsel %vm3303_vm9, %v3294_v46, %v2421_v13  ;;  %v2401_v3 = vpop.permute.xlu1 %2400  ;;  %v2399_v28 = vpop.permute.xlu0 %2398  ;;  %v2688_v46 = vunpack.c.l.b16 %v1072_v52  ;;  %v2697_v13 = vunpack.c.l.b16 %v1081_v14  ;;  %v4322_v52 = vld [vmem:[%s4506_s20 + $0x501] sm:$0xff] }
 0x20c   : > { %v5827_v22 = vsel %vm3303_vm9, %v5738_v48, %v2401_v3  ;;  %v5831_v42 = vsel %vm3303_vm9, %v5609_v56, %v2399_v28  ;;  %v2584_v48 = vunpack.c.l.b16 %v1015_v19  ;;  %v4289_v56 = vld [vmem:[%s4506_s20 + $0x361] sm:$0xff]  ;;  %v2835_v28 = vpack.c.b16 %v2809_v12, %v2808_v21 }
 0x20d   : > { %v2719_v49 = vpack.c.b16 %v2689_v63, %v2688_v46  ;;  %v1136_v15 = vpack.c.bf16 %v4289_v56, %v4289_v56  ;;  %v1201_v18 = vpack.c.bf16 %v4322_v52, %v4322_v52  ;;  %v4251_v56 = vld [vmem:[%s4506_s20 + $0x498] sm:$0xff] }
 0x20e   : > { %v2611_v29 = vpack.c.b16 %v2585_v17, %v2584_v48  ;;  %v2723_v17 = vpack.c.b16 %v2697_v13, %v2696_v34  ;;  %v4283_v34 = vld [vmem:[%s4506_s20 + $0x630] sm:$0xff]  ;;  %v4284_v13 = vld [vmem:[%s4506_s20 + $0x638] sm:$0xff] }
 0x20f   : > { %v2800_v6 = vunpack.c.l.b16 %v1136_v15  ;;  %v2913_v11 = vunpack.c.l.b16 %v1201_v18 }
 0x210   : > { %2520 = vrot.lane.b32.xlu2 %v2499_v9, %s4462_s5  ;;  %v4321_v9 = vld [vmem:[%s4506_s20 + $0x4f9] sm:$0xff] }
 0x211   : > { %2512 = vrot.lane.b32.xlu1 %v2495_v26, %s4462_s5  ;;  %2984 = vrot.lane.b32.xlu0 %v2955_v25, %s4466_s9  ;;  %v1209_v26 = vpack.c.bf16 %v4330_v5, %v4330_v5  ;;  %v1200_v63 = vpack.c.bf16 %v4321_v9, %v4321_v9  ;;  %v2831_v48 = vpack.c.b16 %v2801_v45, %v2800_v6  ;;  %v4394_v9 = vld [vmem:[%s6338_s1] sm:$0xff] }
 0x212   : > { %v2427_v1 = vpop.permute.xlu2 %2426 }
 0x213   : > { %v5843_v8 = vsel %vm3303_vm9, %v3300_v4, %v2427_v1  ;;  %v2407_v51 = vpop.permute.xlu1 %2406  ;;  %v2405_v43 = vpop.permute.xlu0 %2404  ;;  %v4399_v4 = vld [vmem:[%s6338_s1 + $0x28] sm:$0xff]  ;;  %v2921_v1 = vunpack.c.l.b16 %v1209_v26  ;;  %v2912_v37 = vunpack.c.l.b16 %v1200_v63 }
 0x214   : > { %v5847_v61 = vsel %vm3303_vm9, %v5756_v39, %v2407_v51  ;;  %v5851_v44 = vsel %vm3303_vm9, %v5654_v47, %v2405_v43  ;;  %4401 = vmatpush.bf16.msra.mxu2 %v4399_v4  ;;  %4402 = vmatpush.bf16.msra.mxu3 %v4399_v4  ;;  %v4211_v47 = vld [vmem:[%s4506_s20 + $0x2a1] sm:$0xff]  ;;  %v4212_v39 = vld [vmem:[%s4506_s20 + $0x2a9] sm:$0xff]  ;;  %v1033_v51 = vpack.c.bf16 %v4251_v56, %v4251_v56 }
 0x215   : > { %3584 = vmatpush.bf16.msra.mxu0 %v4399_v4  ;;  %4400 = vmatpush.bf16.msra.mxu1 %v4399_v4  ;;  %v960_v2 = vpack.c.bf16 %v4211_v47, %v4211_v47  ;;  %v961_v54 = vpack.c.bf16 %v4212_v39, %v4212_v39  ;;  %v2943_v12 = vpack.c.b16 %v2913_v11, %v2912_v37  ;;  %v4395_v47 = vld [vmem:[%s6338_s1 + $0x8] sm:$0xff] }
 0x216   : > { %v1025_v39 = vpack.c.bf16 %v4243_v60, %v4243_v60  ;;  %v2602_v6 = vunpack.c.l.b16 %v1033_v51 }
 0x217   : > { %v2482_v55 = vunpack.c.l.b16 %v960_v2  ;;  %v2483_v36 = vunpack.c.l.b16 %v961_v54  ;;  %v4276_v54 = vld [vmem:[%s4506_s20 + $0x5d8] sm:$0xff] }
 0x218   : > { %2736 = vrot.lane.b32.xlu2 %v2719_v49, %s4463_s6  ;;  %4404 = vmatpush.bf16.msra.mxu2 %v4398_v40  ;;  %v4244_v49 = vld [vmem:[%s4506_s20 + $0x440] sm:$0xff]  ;;  %v2594_v52 = vunpack.c.l.b16 %v1025_v39 }
 0x219   : > { %2632 = vrot.lane.b32.xlu1 %v2611_v29, %s4464_s7  ;;  %2624 = vrot.lane.b32.xlu0 %v2607_v57, %s4464_s7  ;;  %v4219_v29 = vld [vmem:[%s4506_s20 + $0x301] sm:$0xff]  ;;  %v4220_v57 = vld [vmem:[%s4506_s20 + $0x309] sm:$0xff]  ;;  %v2504_v24 = vpack.c.b16 %v2483_v36, %v2482_v55  ;;  %v1026_v23 = vpack.c.bf16 %v4244_v49, %v4244_v49  ;;  %v1099_v36 = vpack.c.bf16 %v4284_v13, %v4284_v13 }
 0x21a   : > { %v5868_v3 = vpop.permute.xlu2 %2534  ;;  %4405 = vmatpush.bf16.msra.mxu3 %v4398_v40  ;;  %3585 = vmatpush.bf16.msra.mxu0 %v4398_v40  ;;  %v968_v5 = vpack.c.bf16 %v4219_v29, %v4219_v29  ;;  %v4347_v49 = vld [vmem:[%s4506_s20 + $0x631] sm:$0xff] }
 0x21b   : > { %v2413_v19 = vpop.permute.xlu1 %2412  ;;  %v2411_v32 = vpop.permute.xlu0 %2410  ;;  %4403 = vmatpush.bf16.msra.mxu1 %v4398_v40  ;;  %v969_v40 = vpack.c.bf16 %v4220_v57, %v4220_v57  ;;  %v2715_v60 = vunpack.c.l.b16 %v1099_v36  ;;  %v4339_v29 = vld [vmem:[%s4506_s20 + $0x5d1] sm:$0xff] }
 0x21c   : > { %v5872_v25 = vsel %vm3303_vm9, %v5776_v20, %v2413_v19  ;;  %v5876_v46 = vsel %vm3303_vm9, %v5697_v33, %v2411_v32  ;;  %4407 = vmatpush.bf16.msra.mxu2 %v4397_v7  ;;  %v4252_v20 = vld [vmem:[%s4506_s20 + $0x4a0] sm:$0xff]  ;;  %v2920_v33 = vunpack.c.l.b16 %v1208_v16  ;;  %v2490_v2 = vunpack.c.l.b16 %v968_v5  ;;  %v4275_v32 = vld [vmem:[%s4506_s20 + $0x5d0] sm:$0xff] }
 0x21d   : > { %v1034_v43 = vpack.c.bf16 %v4252_v20, %v4252_v20  ;;  %v2491_v19 = vunpack.c.l.b16 %v969_v40  ;;  %v1090_v56 = vpack.c.bf16 %v4275_v32, %v4275_v32  ;;  %v1091_v20 = vpack.c.bf16 %v4276_v54, %v4276_v54 }
 0x21e   : > { %4408 = vmatpush.bf16.msra.mxu3 %v4397_v7  ;;  %3586 = vmatpush.bf16.msra.mxu0 %v4397_v7  ;;  %v2947_v21 = vpack.c.b16 %v2921_v1, %v2920_v33 }
 0x21f   : > { %4406 = vmatpush.bf16.msra.mxu1 %v4397_v7  ;;  %v2603_v45 = vunpack.c.l.b16 %v1034_v43  ;;  %v2508_v1 = vpack.c.b16 %v2491_v19, %v2490_v2  ;;  %v2706_v51 = vunpack.c.l.b16 %v1090_v56  ;;  %v2707_v43 = vunpack.c.l.b16 %v1091_v20  ;;  %v4203_v2 = vld [vmem:[%s4506_s20 + $0x241] sm:$0xff]  ;;  %v4204_v19 = vld [vmem:[%s4506_s20 + $0x249] sm:$0xff] }
 0x220   : > { %2856 = vrot.lane.b32.xlu2 %v2835_v28, %s4465_s8  ;;  %4410 = vmatpush.bf16.msra.mxu2 %v4396_v35  ;;  %v2595_v28 = vunpack.c.l.b16 %v1026_v23 }
 0x221   : > { %2848 = vrot.lane.b32.xlu1 %v2831_v48, %s4465_s8  ;;  %2744 = vrot.lane.b32.xlu0 %v2723_v17, %s4463_s6  ;;  %v2620_v26 = vpack.c.b16 %v2603_v45, %v2602_v6  ;;  %v1098_v17 = vpack.c.bf16 %v4283_v34, %v4283_v34  ;;  %v2728_v6 = vpack.c.b16 %v2707_v43, %v2706_v51 }
 0x222   : > { %v5890_v41 = vpop.permute.xlu2 %2750  ;;  %4411 = vmatpush.bf16.msra.mxu3 %v4396_v35  ;;  %3587 = vmatpush.bf16.msra.mxu0 %v4396_v35  ;;  %v2616_v33 = vpack.c.b16 %v2595_v28, %v2594_v52  ;;  %v1218_v45 = vpack.c.bf16 %v4339_v29, %v4339_v29  ;;  %v4227_v52 = vld [vmem:[%s4506_s20 + $0x378] sm:$0xff]  ;;  %v4228_v28 = vld [vmem:[%s4506_s20 + $0x380] sm:$0xff] }
 0x223   : > { %v2419_v4 = vpop.permute.xlu1 %2418  ;;  %v2417_v15 = vpop.permute.xlu0 %2416  ;;  %4409 = vmatpush.bf16.msra.mxu1 %v4396_v35  ;;  %v2714_v35 = vunpack.c.l.b16 %v1098_v17  ;;  %v1009_v20 = vpack.c.bf16 %v4227_v52, %v4227_v52  ;;  %v4268_v29 = vld [vmem:[%s4506_s20 + $0x578] sm:$0xff] }
 0x224   : > { %v5897_v27 = vsel %vm3303_vm9, %v5794_v58, %v2419_v4  ;;  %v5901_v14 = vsel %vm3303_vm9, %v5714_v10, %v2417_v15  ;;  %4413 = vmatpush.bf16.msra.mxu2 %v4395_v47  ;;  %v4307_v10 = vld [vmem:[%s4506_s20 + $0x439] sm:$0xff]  ;;  %v4308_v58 = vld [vmem:[%s4506_s20 + $0x441] sm:$0xff] }
 0x225   : > { %v1154_v7 = vpack.c.bf16 %v4307_v10, %v4307_v10  ;;  %v1155_v48 = vpack.c.bf16 %v4308_v58, %v4308_v58  ;;  %v4340_v4 = vld [vmem:[%s4506_s20 + $0x5d9] sm:$0xff]  ;;  %v2732_v40 = vpack.c.b16 %v2715_v60, %v2714_v35  ;;  %v2578_v43 = vunpack.c.l.b16 %v1009_v20 }
 0x226   : > { %4414 = vmatpush.bf16.msra.mxu3 %v4395_v47  ;;  %3588 = vmatpush.bf16.msra.mxu0 %v4395_v47  ;;  %v4315_v15 = vld [vmem:[%s4506_s20 + $0x499] sm:$0xff]  ;;  %v1219_v10 = vpack.c.bf16 %v4340_v4, %v4340_v4 }
 0x227   : > { %4412 = vmatpush.bf16.msra.mxu1 %v4395_v47  ;;  %v2818_v37 = vunpack.c.l.b16 %v1154_v7  ;;  %v2819_v11 = vunpack.c.l.b16 %v1155_v48  ;;  %v1226_v47 = vpack.c.bf16 %v4347_v49, %v4347_v49  ;;  %v1162_v58 = vpack.c.bf16 %v4315_v15, %v4315_v15  ;;  %v4196_v7 = vld [vmem:[%s4506_s20 + $0x1e9] sm:$0xff] }
 0x228   : > { %2530 = vrot.lane.b32.xlu2 %v2504_v24, %s4462_s5  ;;  %4416 = vmatpush.bf16.msra.mxu2 %v4394_v9  ;;  %v4316_v24 = vld [vmem:[%s4506_s20 + $0x4a1] sm:$0xff]  ;;  %v2931_v32 = vunpack.c.l.b16 %v1219_v10  ;;  %v945_v35 = vpack.c.bf16 %v4196_v7, %v4196_v7  ;;  %v4323_v7 = vld [vmem:[%s4506_s20 + $0x511] sm:$0xff] }
 0x229   : > { %2968 = vrot.lane.b32.xlu1 %v2947_v21, %s4466_s9  ;;  %2960 = vrot.lane.b32.xlu0 %v2943_v12, %s4466_s9  ;;  %v2840_v5 = vpack.c.b16 %v2819_v11, %v2818_v37  ;;  %v1163_v34 = vpack.c.bf16 %v4316_v24, %v4316_v24  ;;  %v2938_v13 = vunpack.c.l.b16 %v1226_v47  ;;  %v2826_v54 = vunpack.c.l.b16 %v1162_v58  ;;  %v4259_v47 = vld [vmem:[%s4506_s20 + $0x510] sm:$0xff]  ;;  %v4236_v10 = vld [vmem:[%s4506_s20 + $0x3e0] sm:$0xff] }
 0x22a   : > { %v5918_v16 = vpop.permute.xlu2 %2870  ;;  %4417 = vmatpush.bf16.msra.mxu3 %v4394_v9  ;;  %3589 = vmatpush.bf16.msra.mxu0 %v4394_v9  ;;  %v953_v37 = vpack.c.bf16 %v4204_v19, %v4204_v19  ;;  %v3321_v58 = vsel %vm3303_vm9, %v5772_v38, %v5802_v53  ;;  %v1074_v19 = vpack.c.bf16 %v4259_v47, %v4259_v47 }
 0x22b   : > { %v2425_v63 = vpop.permute.xlu1 %2424  ;;  %v5920_v18 = vpop.permute.xlu0 %2422  ;;  %4415 = vmatpush.bf16.msra.mxu1 %v4394_v9 }
 0x22c   : > { %v5924_v55 = vsel %vm3303_vm9, %v5811_v50, %v2425_v63  ;;  %v4348_v50 = vld [vmem:[%s4506_s20 + $0x639] sm:$0xff]  ;;  %v4195_v63 = vld [vmem:[%s4506_s20 + $0x1e1] sm:$0xff]  ;;  %v2475_v15 = vunpack.c.l.b16 %v953_v37 }
 0x22d   : > { %v1227_v39 = vpack.c.bf16 %v4348_v50, %v4348_v50  ;;  %v944_v11 = vpack.c.bf16 %v4195_v63, %v4195_v63  ;;  %v4267_v50 = vld [vmem:[%s4506_s20 + $0x570] sm:$0xff]  ;;  %v4291_v37 = vld [vmem:[%s4506_s20 + $0x379] sm:$0xff] }
 0x22f   : > { %v2939_v9 = vunpack.c.l.b16 %v1227_v39  ;;  %v2466_v24 = vunpack.c.l.b16 %v944_v11  ;;  %v4292_v11 = vld [vmem:[%s4506_s20 + $0x381] sm:$0xff] }
 0x230   : > { %2650 = vrot.lane.b32.xlu2 %v2620_v26, %s4464_s7  ;;  %v2827_v26 = vunpack.c.l.b16 %v1163_v34  ;;  %v3329_v34 = vsel %vm3303_vm9, %v5732_v59, %v5920_v18 }
 0x231   : > { %2642 = vrot.lane.b32.xlu1 %v2616_v33, %s4464_s7  ;;  %2538 = vrot.lane.b32.xlu0 %v2508_v1, %s4462_s5  ;;  %v2956_v56 = vpack.c.b16 %v2939_v9, %v2938_v13  ;;  %v1010_v33 = vpack.c.bf16 %v4228_v28, %v4228_v28  ;;  %v952_v1 = vpack.c.bf16 %v4203_v2, %v4203_v2 }
 0x232   : > { %v5932_v57 = vpop.permute.xlu2 %2510  ;;  %v2844_v51 = vpack.c.b16 %v2827_v26, %v2826_v54  ;;  %v1018_v54 = vpack.c.bf16 %v4236_v10, %v4236_v10  ;;  %v3362_v59 = vsel %vm3336_vm10, %v3329_v34, %v5868_v3  ;;  %v4300_v3 = vld [vmem:[%s4506_s20 + $0x3e1] sm:$0xff] }
 0x233   : > { %v5937_v21 = vpop.permute.xlu1 %2526  ;;  %v2429_v12 = vpop.permute.xlu0 %2428  ;;  %v2579_v49 = vunpack.c.l.b16 %v1010_v33  ;;  %v2474_v4 = vunpack.c.l.b16 %v952_v1 }
 0x234   : > { %v5941_v23 = vsel %vm3303_vm9, %v5750_v31, %v2429_v12  ;;  %v2930_v31 = vunpack.c.l.b16 %v1218_v45  ;;  %v2467_v12 = vunpack.c.l.b16 %v945_v35  ;;  %v4235_v45 = vld [vmem:[%s4506_s20 + $0x3d8] sm:$0xff]  ;;  %v3354_v38 = vsel %vm3336_vm10, %v3321_v58, %v5937_v21 }
 0x235   : > { %v2608_v52 = vpack.c.b16 %v2579_v49, %v2578_v43  ;;  %v2500_v28 = vpack.c.b16 %v2475_v15, %v2474_v4  ;;  %v4299_v21 = vld [vmem:[%s4506_s20 + $0x3d9] sm:$0xff]  ;;  %v2587_v1 = vunpack.c.l.b16 %v1018_v54  ;;  %v1202_v43 = vpack.c.bf16 %v4323_v7, %v4323_v7 }
 0x236   : > { %v2952_v60 = vpack.c.b16 %v2931_v32, %v2930_v31  ;;  %v2496_v2 = vpack.c.b16 %v2467_v12, %v2466_v24  ;;  %v1017_v32 = vpack.c.bf16 %v4235_v45, %v4235_v45  ;;  %v1146_v24 = vpack.c.bf16 %v4299_v21, %v4299_v21  ;;  %v4332_v54 = vld [vmem:[%s4506_s20 + $0x579] sm:$0xff] }
 0x237   : > { %v1147_v12 = vpack.c.bf16 %v4300_v3, %v4300_v3  ;;  %v1211_v3 = vpack.c.bf16 %v4332_v54, %v4332_v54  ;;  %v4318_v54 = vld [vmem:[%s4506_s20 + $0x4b9] sm:$0xff] }
 0x238   : > { %2866 = vrot.lane.b32.xlu2 %v2840_v5, %s4465_s8  ;;  %v1082_v5 = vpack.c.bf16 %v4267_v50, %v4267_v50  ;;  %v2586_v33 = vunpack.c.l.b16 %v1017_v32  ;;  %v2810_v58 = vunpack.c.l.b16 %v1146_v24  ;;  %v4331_v32 = vld [vmem:[%s4506_s20 + $0x571] sm:$0xff] }
 0x239   : > { %2762 = vrot.lane.b32.xlu1 %v2732_v40, %s4463_s6  ;;  %2754 = vrot.lane.b32.xlu0 %v2728_v6, %s4463_s6  ;;  %v1083_v40 = vpack.c.bf16 %v4268_v29, %v4268_v29  ;;  %v4260_v6 = vld [vmem:[%s4506_s20 + $0x518] sm:$0xff]  ;;  %v2811_v34 = vunpack.c.l.b16 %v1147_v12  ;;  %v1210_v21 = vpack.c.bf16 %v4331_v32, %v4331_v32 }
 0x23a   : > { %v5952_v48 = vpop.permute.xlu2 %2630  ;;  %v1075_v31 = vpack.c.bf16 %v4260_v6, %v4260_v6  ;;  %v2698_v53 = vunpack.c.l.b16 %v1082_v5  ;;  %v2612_v45 = vpack.c.b16 %v2587_v1, %v2586_v33  ;;  %v4253_v33 = vld [vmem:[%s4506_s20 + $0x4b0] sm:$0xff]  ;;  %v4254_v1 = vld [vmem:[%s4506_s20 + $0x4b8] sm:$0xff] }
 0x23b   : > { %v2647_v17 = vpop.permute.xlu1 %2646  ;;  %v2639_v36 = vpop.permute.xlu0 %2638  ;;  %v2699_v18 = vunpack.c.l.b16 %v1083_v40  ;;  %v1139_v40 = vpack.c.bf16 %v4292_v11, %v4292_v11  ;;  %v1035_v12 = vpack.c.bf16 %v4253_v33, %v4253_v33  ;;  %v4317_v32 = vld [vmem:[%s4506_s20 + $0x4b1] sm:$0xff] }
 0x23c   : > { %v3395_v26 = vsel %vm3369_vm11, %v3362_v59, %v2647_v17  ;;  %v3387_v63 = vsel %vm3369_vm11, %v3354_v38, %v2639_v36  ;;  %v2690_v17 = vunpack.c.l.b16 %v1074_v19  ;;  %v2691_v36 = vunpack.c.l.b16 %v1075_v31  ;;  %v4214_v31 = vld [vmem:[%s4506_s20 + $0x2c1] sm:$0xff] }
 0x23d   : > { %v3420_v35 = vsel %vm3402_vm12, %v3387_v63, %v5890_v41  ;;  %v1138_v41 = vpack.c.bf16 %v4291_v37, %v4291_v37 }
 0x23e   : > { %v2720_v6 = vpack.c.b16 %v2691_v36, %v2690_v17  ;;  %v4277_v17 = vld [vmem:[%s4506_s20 + $0x5e8] sm:$0xff]  ;;  %v4278_v36 = vld [vmem:[%s4506_s20 + $0x5f0] sm:$0xff] }
 0x23f   : > { %v1093_v24 = vpack.c.bf16 %v4278_v36, %v4278_v36  ;;  %v1165_v36 = vpack.c.bf16 %v4318_v54, %v4318_v54 }
 0x240   : > { %2986 = vrot.lane.b32.xlu2 %v2956_v56, %s4466_s9  ;;  %v4324_v56 = vld [vmem:[%s4506_s20 + $0x519] sm:$0xff] }
 0x241   : > { %2978 = vrot.lane.b32.xlu1 %v2952_v60, %s4466_s9  ;;  %2874 = vrot.lane.b32.xlu0 %v2844_v51, %s4465_s8  ;;  %v2724_v51 = vpack.c.b16 %v2699_v18, %v2698_v53  ;;  %v1203_v49 = vpack.c.bf16 %v4324_v56, %v4324_v56  ;;  %v2836_v18 = vpack.c.b16 %v2811_v34, %v2810_v58 }
 0x242   : > { %v5960_v39 = vpop.permute.xlu2 %2846 }
 0x243   : > { %v2863_v13 = vpop.permute.xlu1 %2862  ;;  %v2759_v9 = vpop.permute.xlu0 %2758  ;;  %v2915_v10 = vunpack.c.l.b16 %v1203_v49  ;;  %v2923_v49 = vunpack.c.l.b16 %v1211_v3 }
 0x244   : > { %v3428_v20 = vsel %vm3402_vm12, %v3395_v26, %v2759_v9  ;;  %v3453_v50 = vsel %vm3435_vm13, %v3420_v35, %v2863_v13  ;;  %v2802_v13 = vunpack.c.l.b16 %v1138_v41  ;;  %v2803_v9 = vunpack.c.l.b16 %v1139_v40 }
 0x245   : > { %v3461_v15 = vsel %vm3435_vm13, %v3428_v20, %v5918_v16  ;;  %v2914_v16 = vunpack.c.l.b16 %v1202_v43  ;;  %v963_v20 = vpack.c.bf16 %v4214_v31, %v4214_v31  ;;  %v2922_v43 = vunpack.c.l.b16 %v1210_v21 }
 0x246   : > { %v2832_v26 = vpack.c.b16 %v2803_v9, %v2802_v13  ;;  %v2709_v13 = vunpack.c.l.b16 %v1093_v24  ;;  %v2604_v9 = vunpack.c.l.b16 %v1035_v12  ;;  %v4350_v24 = vld [vmem:[%s4506_s20 + $0x651] sm:$0xff] }
 0x247   : > { %v2944_v53 = vpack.c.b16 %v2915_v10, %v2914_v16  ;;  %v3338_v16 = vsel %vm3336_vm10, %v5831_v42, %v5932_v57  ;;  %v2948_v58 = vpack.c.b16 %v2923_v49, %v2922_v43  ;;  %v2829_v49 = vunpack.c.l.b16 %v1165_v36 }
 0x248   : > { %2626 = vrot.lane.b32.xlu2 %v2608_v52, %s4464_s7  ;;  %v4221_v52 = vld [vmem:[%s4506_s20 + $0x319] sm:$0xff] }
 0x249   : > { %2522 = vrot.lane.b32.xlu1 %v2500_v28, %s4462_s5  ;;  %2514 = vrot.lane.b32.xlu0 %v2496_v2, %s4462_s5  ;;  %v4222_v28 = vld [vmem:[%s4506_s20 + $0x321] sm:$0xff]  ;;  %v4213_v2 = vld [vmem:[%s4506_s20 + $0x2b9] sm:$0xff]  ;;  %v970_v63 = vpack.c.bf16 %v4221_v52, %v4221_v52 }
 0x24a   : > { %v5989_v60 = vpop.permute.xlu2 %2966  ;;  %v971_v7 = vpack.c.bf16 %v4222_v28, %v4222_v28  ;;  %v962_v56 = vpack.c.bf16 %v4213_v2, %v4213_v2 }
 0x24b   : > { %v2983_v29 = vpop.permute.xlu1 %2982  ;;  %v2975_v4 = vpop.permute.xlu0 %2974  ;;  %v2492_v37 = vunpack.c.l.b16 %v970_v63  ;;  %v4285_v63 = vld [vmem:[%s4506_s20 + $0x648] sm:$0xff] }
 0x24c   : > { %v3486_v47 = vsel %vm3468_vm14, %v3453_v50, %v2975_v4  ;;  %v3494_v5 = vsel %vm3468_vm14, %v3461_v15, %v2983_v29  ;;  %v2493_v11 = vunpack.c.l.b16 %v971_v7  ;;  %v2484_v35 = vunpack.c.l.b16 %v962_v56  ;;  %v4245_v50 = vld [vmem:[%s4506_s20 + $0x450] sm:$0xff]  ;;  %v4246_v29 = vld [vmem:[%s4506_s20 + $0x458] sm:$0xff] }
 0x24d   : > { %4383 = vmatmul.msk.bf16.vlgmr.msra.gmra.mxu2 %vm3549_vm15, %v3486_v47  ;;  %4387 = vmatmul.msk.bf16.vlgmr.msra.gmra.mxu3 %vm3549_vm15, %v3494_v5  ;;  %v1092_v15 = vpack.c.bf16 %v4277_v17, %v4277_v17  ;;  %v1036_v47 = vpack.c.bf16 %v4254_v1, %v4254_v1  ;;  %v4286_v7 = vld [vmem:[%s4506_s20 + $0x650] sm:$0xff]  ;;  %v1164_v17 = vpack.c.bf16 %v4317_v32, %v4317_v32 }
 0x24e   : > { %v2509_v40 = vpack.c.b16 %v2493_v11, %v2492_v37 }
 0x24f   : > { %v2708_v34 = vunpack.c.l.b16 %v1092_v15  ;;  %v2605_v52 = vunpack.c.l.b16 %v1036_v47  ;;  %v2828_v43 = vunpack.c.l.b16 %v1164_v17  ;;  %v4349_v15 = vld [vmem:[%s4506_s20 + $0x649] sm:$0xff]  ;;  %v4238_v17 = vld [vmem:[%s4506_s20 + $0x3f8] sm:$0xff] }
 0x250   : > { %2746 = vrot.lane.b32.xlu2 %v2724_v51, %s4463_s6  ;;  %v2485_v51 = vunpack.c.l.b16 %v963_v20 }
 0x251   : > { %2738 = vrot.lane.b32.xlu1 %v2720_v6, %s4463_s6  ;;  %2634 = vrot.lane.b32.xlu0 %v2612_v45, %s4464_s7  ;;  %v1027_v6 = vpack.c.bf16 %v4245_v50, %v4245_v50  ;;  %v1028_v45 = vpack.c.bf16 %v4246_v29, %v4246_v29  ;;  %v4197_v50 = vld [vmem:[%s4506_s20 + $0x1f9] sm:$0xff]  ;;  %v4198_v29 = vld [vmem:[%s4506_s20 + $0x201] sm:$0xff] }
 0x252   : > { %v6004_v19 = vpop.permute.xlu2 %2640  ;;  %v2505_v10 = vpack.c.b16 %v2485_v51, %v2484_v35  ;;  %v1100_v51 = vpack.c.bf16 %v4285_v63, %v4285_v63  ;;  %v4205_v63 = vld [vmem:[%s4506_s20 + $0x259] sm:$0xff] }
 0x253   : > { %v2623_v38 = vpop.permute.xlu1 %2622  ;;  %v2519_v59 = vpop.permute.xlu0 %2518  ;;  %v2596_v42 = vunpack.c.l.b16 %v1027_v6  ;;  %v2597_v57 = vunpack.c.l.b16 %v1028_v45 }
 0x254   : > { %v3371_v28 = vsel %vm3369_vm11, %v3338_v16, %v2623_v38  ;;  %v3346_v2 = vsel %vm3336_vm10, %v5847_v61, %v2519_v59  ;;  %v2729_v61 = vpack.c.b16 %v2709_v13, %v2708_v34  ;;  %v2621_v59 = vpack.c.b16 %v2605_v52, %v2604_v9 }
 0x255   : > { %v3379_v38 = vsel %vm3369_vm11, %v3346_v2, %v5952_v48  ;;  %v2617_v1 = vpack.c.b16 %v2597_v57, %v2596_v42  ;;  %v2716_v47 = vunpack.c.l.b16 %v1100_v51  ;;  %v947_v34 = vpack.c.bf16 %v4198_v29, %v4198_v29  ;;  %v4262_v29 = vld [vmem:[%s4506_s20 + $0x530] sm:$0xff] }
 0x256   : > { %v1228_v13 = vpack.c.bf16 %v4349_v15, %v4349_v15  ;;  %v1229_v9 = vpack.c.bf16 %v4350_v24, %v4350_v24 }
 0x257   : > { %v2469_v57 = vunpack.c.l.b16 %v947_v34 }
 0x258   : > { %2962 = vrot.lane.b32.xlu2 %v2944_v53, %s4466_s9  ;;  %v4309_v53 = vld [vmem:[%s4506_s20 + $0x451] sm:$0xff]  ;;  %v2940_v32 = vunpack.c.l.b16 %v1228_v13  ;;  %v2941_v54 = vunpack.c.l.b16 %v1229_v9  ;;  %v1077_v9 = vpack.c.bf16 %v4262_v29, %v4262_v29 }
 0x259   : > { %2858 = vrot.lane.b32.xlu1 %v2836_v18, %s4465_s8  ;;  %2850 = vrot.lane.b32.xlu0 %v2832_v26, %s4465_s8  ;;  %v4310_v26 = vld [vmem:[%s4506_s20 + $0x459] sm:$0xff]  ;;  %v1156_v37 = vpack.c.bf16 %v4309_v53, %v4309_v53 }
 0x25a   : > { %v6018_v4 = vpop.permute.xlu2 %2760  ;;  %v1157_v35 = vpack.c.bf16 %v4310_v26, %v4310_v26  ;;  %v4230_v26 = vld [vmem:[%s4506_s20 + $0x398] sm:$0xff]  ;;  %v2957_v36 = vpack.c.b16 %v2941_v54, %v2940_v32 }
 0x25b   : > { %v2743_v5 = vpop.permute.xlu1 %2742  ;;  %v2735_v41 = vpop.permute.xlu0 %2734 }
 0x25c   : > { %v3404_v31 = vsel %vm3402_vm12, %v3371_v28, %v2735_v41  ;;  %v3412_v56 = vsel %vm3402_vm12, %v3379_v38, %v2743_v5  ;;  %v2821_v12 = vunpack.c.l.b16 %v1157_v35  ;;  %v4341_v41 = vld [vmem:[%s4506_s20 + $0x5e9] sm:$0xff]  ;;  %v954_v35 = vpack.c.bf16 %v4205_v63, %v4205_v63 }
 0x25d   : > { %v3437_v3 = vsel %vm3435_vm13, %v3404_v31, %v5960_v39  ;;  %v1101_v39 = vpack.c.bf16 %v4286_v7, %v4286_v7  ;;  %v1220_v52 = vpack.c.bf16 %v4341_v41, %v4341_v41  ;;  %v4206_v7 = vld [vmem:[%s4506_s20 + $0x261] sm:$0xff] }
 0x25e   : > { %v955_v51 = vpack.c.bf16 %v4206_v7, %v4206_v7  ;;  %v2693_v7 = vunpack.c.l.b16 %v1077_v9 }
 0x25f   : > { %v2717_v5 = vunpack.c.l.b16 %v1101_v39  ;;  %v2932_v53 = vunpack.c.l.b16 %v1220_v52  ;;  %v4293_v52 = vld [vmem:[%s4506_s20 + $0x391] sm:$0xff] }
 0x260   : > { %2540 = vrot.lane.b32.xlu2 %v2509_v40, %s4462_s5  ;;  %v4342_v40 = vld [vmem:[%s4506_s20 + $0x5f1] sm:$0xff] }
 0x261   : > { %2532 = vrot.lane.b32.xlu1 %v2505_v10, %s4462_s5  ;;  %2970 = vrot.lane.b32.xlu0 %v2948_v58, %s4466_s9  ;;  %v2845_v10 = vpack.c.b16 %v2829_v49, %v2828_v43  ;;  %v946_v58 = vpack.c.bf16 %v4197_v50, %v4197_v50  ;;  %v1221_v28 = vpack.c.bf16 %v4342_v40, %v4342_v40  ;;  %v4269_v43 = vld [vmem:[%s4506_s20 + $0x588] sm:$0xff]  ;;  %v4270_v49 = vld [vmem:[%s4506_s20 + $0x590] sm:$0xff] }
 0x262   : > { %v6035_v18 = vpop.permute.xlu2 %2976  ;;  %v2733_v31 = vpack.c.b16 %v2717_v5, %v2716_v47  ;;  %v4261_v50 = vld [vmem:[%s4506_s20 + $0x528] sm:$0xff]  ;;  %v2476_v47 = vunpack.c.l.b16 %v954_v35  ;;  %v2477_v5 = vunpack.c.l.b16 %v955_v51  ;;  %v1084_v40 = vpack.c.bf16 %v4269_v43, %v4269_v43  ;;  %v4334_v35 = vld [vmem:[%s4506_s20 + $0x591] sm:$0xff] }
 0x263   : > { %v2959_v20 = vpop.permute.xlu1 %2958  ;;  %v2855_v21 = vpop.permute.xlu0 %2854  ;;  %v2468_v42 = vunpack.c.l.b16 %v946_v58  ;;  %v2933_v38 = vunpack.c.l.b16 %v1221_v28  ;;  %v1085_v34 = vpack.c.bf16 %v4270_v49, %v4270_v49  ;;  %v1076_v13 = vpack.c.bf16 %v4261_v50, %v4261_v50  ;;  %v4294_v28 = vld [vmem:[%s4506_s20 + $0x399] sm:$0xff] }
 0x264   : > { %v3445_v48 = vsel %vm3435_vm13, %v3412_v56, %v2855_v21  ;;  %v3470_v33 = vsel %vm3468_vm14, %v3437_v3, %v2959_v20  ;;  %v4237_v3 = vld [vmem:[%s4506_s20 + $0x3f0] sm:$0xff]  ;;  %v2501_v54 = vpack.c.b16 %v2477_v5, %v2476_v47  ;;  %v1213_v49 = vpack.c.bf16 %v4334_v35, %v4334_v35 }
 0x265   : > { %4375 = vmatmul.msk.bf16.vlgmr.msra.gmra.mxu0 %vm3549_vm15, %v3470_v33  ;;  %v3478_v11 = vsel %vm3468_vm14, %v3445_v48, %v5989_v60  ;;  %v2820_v60 = vunpack.c.l.b16 %v1156_v37  ;;  %v2497_v21 = vpack.c.b16 %v2469_v57, %v2468_v42  ;;  %v2953_v48 = vpack.c.b16 %v2933_v38, %v2932_v53 }
 0x266   : > { %4379 = vmatmul.msk.bf16.vlgmr.msra.gmra.mxu1 %vm3549_vm15, %v3478_v11  ;;  %v1019_v33 = vpack.c.bf16 %v4237_v3, %v4237_v3  ;;  %v1012_v11 = vpack.c.bf16 %v4230_v26, %v4230_v26  ;;  %v1140_v42 = vpack.c.bf16 %v4293_v52, %v4293_v52  ;;  %v1141_v57 = vpack.c.bf16 %v4294_v28, %v4294_v28  ;;  %v4326_v3 = vld [vmem:[%s4506_s20 + $0x531] sm:$0xff] }
 0x267   : > { %v2841_v2 = vpack.c.b16 %v2821_v12, %v2820_v60  ;;  %v2700_v38 = vunpack.c.l.b16 %v1084_v40  ;;  %v2701_v26 = vunpack.c.l.b16 %v1085_v34  ;;  %v2692_v63 = vunpack.c.l.b16 %v1076_v13 }
 0x268   : > { %2756 = vrot.lane.b32.xlu2 %v2729_v61, %s4463_s6  ;;  %v4229_v61 = vld [vmem:[%s4506_s20 + $0x390] sm:$0xff]  ;;  %v2588_v15 = vunpack.c.l.b16 %v1019_v33  ;;  %v2581_v12 = vunpack.c.l.b16 %v1012_v11  ;;  %v1205_v50 = vpack.c.bf16 %v4326_v3, %v4326_v3 }
 0x269   : > { %2652 = vrot.lane.b32.xlu1 %v2621_v59, %s4464_s7  ;;  %2644 = vrot.lane.b32.xlu0 %v2617_v1, %s4464_s7  ;;  %v1020_v1 = vpack.c.bf16 %v4238_v17, %v4238_v17  ;;  %v1011_v37 = vpack.c.bf16 %v4229_v61, %v4229_v61  ;;  %v4302_v17 = vld [vmem:[%s4506_s20 + $0x3f9] sm:$0xff]  ;;  %v4333_v11 = vld [vmem:[%s4506_s20 + $0x589] sm:$0xff] }
 0x26a   : > { %v6058_v6 = vpop.permute.xlu2 %2520  ;;  %v1212_v43 = vpack.c.bf16 %v4333_v11, %v4333_v11  ;;  %v2917_v47 = vunpack.c.l.b16 %v1205_v50 }
 0x26b   : > { %v6060_v45 = vpop.permute.xlu1 %2536  ;;  %v2529_v16 = vpop.permute.xlu0 %2528  ;;  %v2589_v24 = vunpack.c.l.b16 %v1020_v1  ;;  %v2580_v60 = vunpack.c.l.b16 %v1011_v37  ;;  %v2725_v1 = vpack.c.b16 %v2701_v26, %v2700_v38  ;;  %v2721_v37 = vpack.c.b16 %v2693_v7, %v2692_v63 }
 0x26c   : > { %v3356_v39 = vsel %vm3336_vm10, %v5901_v14, %v2529_v16  ;;  %v3364_v53 = vsel %vm3336_vm10, %v5924_v55, %v6060_v45  ;;  %v4325_v55 = vld [vmem:[%s4506_s20 + $0x529] sm:$0xff]  ;;  %v3348_v28 = vsel %vm3336_vm10, %v5788_v62, %v6058_v6 }
 0x26d   : > { %v3389_v14 = vsel %vm3369_vm11, %v3356_v39, %v6004_v19  ;;  %v2609_v32 = vpack.c.b16 %v2581_v12, %v2580_v60  ;;  %v2925_v60 = vunpack.c.l.b16 %v1213_v49 }
 0x270   : > { %2876 = vrot.lane.b32.xlu2 %v2845_v10, %s4465_s8 }
 0x271   : > { %2868 = vrot.lane.b32.xlu1 %v2841_v2, %s4465_s8  ;;  %2764 = vrot.lane.b32.xlu0 %v2733_v31, %s4463_s6  ;;  %v2613_v31 = vpack.c.b16 %v2589_v24, %v2588_v15  ;;  %v1149_v15 = vpack.c.bf16 %v4302_v17, %v4302_v17  ;;  %v2924_v24 = vunpack.c.l.b16 %v1212_v43 }
 0x272   : > { %v6066_v59 = vpop.permute.xlu2 %2736 }
 0x273   : > { %v2753_v56 = vpop.permute.xlu1 %2752  ;;  %v2649_v20 = vpop.permute.xlu0 %2648 }
 0x274   : > { %v3422_v16 = vsel %vm3402_vm12, %v3389_v14, %v2753_v56  ;;  %v3397_v61 = vsel %vm3369_vm11, %v3364_v53, %v2649_v20  ;;  %v2805_v56 = vunpack.c.l.b16 %v1141_v57  ;;  %v4301_v20 = vld [vmem:[%s4506_s20 + $0x3f1] sm:$0xff]  ;;  %v2813_v14 = vunpack.c.l.b16 %v1149_v15 }
 0x275   : > { %v3430_v45 = vsel %vm3402_vm12, %v3397_v61, %v6018_v4  ;;  %v1204_v4 = vpack.c.bf16 %v4325_v55, %v4325_v55  ;;  %v1148_v29 = vpack.c.bf16 %v4301_v20, %v4301_v20 }
 0x277   : > { %v2916_v12 = vunpack.c.l.b16 %v1204_v4  ;;  %v2812_v5 = vunpack.c.l.b16 %v1148_v29 }
 0x278   : > { %2516 = vrot.lane.b32.xlu2 %v2497_v21, %s4462_s5 }
 0x279   : > { %2988 = vrot.lane.b32.xlu1 %v2957_v36, %s4466_s9  ;;  %2980 = vrot.lane.b32.xlu0 %v2953_v48, %s4466_s9  ;;  %v2945_v34 = vpack.c.b16 %v2917_v47, %v2916_v12  ;;  %v2837_v13 = vpack.c.b16 %v2813_v14, %v2812_v5  ;;  %v6166_v47 = vld [vmem:[%s6340_s3] ss:$0 sm:$0xff] }
 0x27a   : > { %v6084_v41 = vpop.permute.xlu2 %2856 }
 0x27b   : > { %v2873_v10 = vpop.permute.xlu1 %2872  ;;  %v2865_v58 = vpop.permute.xlu0 %2864 }
 0x27c   : > { %v3455_v2 = vsel %vm3435_vm13, %v3422_v16, %v2865_v58  ;;  %v3463_v36 = vsel %vm3435_vm13, %v3430_v45, %v2873_v10  ;;  %v2949_v58 = vpack.c.b16 %v2925_v60, %v2924_v24  ;;  %v6157_v60 = vld [vmem:[%s6339_s2] ss:$0 sm:$0xff] }
 0x27d   : > { %v3488_v19 = vsel %vm3468_vm14, %v3455_v2, %v6035_v18  ;;  %v2804_v18 = vunpack.c.l.b16 %v1140_v42 }
 0x27e   : > { %4384 = vmatmul.msk.bf16.gmra.mxu2 %vm3549_vm15, %v3488_v19 }
 0x27f   : > { %v2833_v39 = vpack.c.b16 %v2805_v56, %v2804_v18 }
 0x280   : > { %2636 = vrot.lane.b32.xlu2 %v2613_v31, %s4464_s7 }
 0x281   : > { %2628 = vrot.lane.b32.xlu1 %v2609_v32, %s4464_s7  ;;  %2524 = vrot.lane.b32.xlu0 %v2501_v54, %s4462_s5  ;;  %s6180_s5 = scalar_lea.vmem %s6341_s4, %s4393_s28 }
 0x282   : > { %v2531_v21 = vpop.permute.xlu2 %2530 }
 0x283   : > { %v2513_v48 = vpop.permute.xlu1 %2512  ;;  %v2985_v33 = vpop.permute.xlu0 %2984  ;;  %v3358_v56 = vsel %vm3336_vm10, %v5897_v27, %v2531_v21 }
 0x284   : > { %v3496_v51 = vsel %vm3468_vm14, %v3463_v36, %v2985_v33  ;;  %v3340_v2 = vsel %vm3336_vm10, %v5827_v22, %v2513_v48 }
 0x285   : > { %4388 = vmatmul.msk.bf16.gmra.mxu3 %vm3549_vm15, %v3496_v51 }
 0x288   : > { %2852 = vrot.lane.b32.xlu2 %v2833_v39, %s4465_s8 }
 0x289   : > { %2748 = vrot.lane.b32.xlu1 %v2725_v1, %s4463_s6  ;;  %2740 = vrot.lane.b32.xlu0 %v2721_v37, %s4463_s6 }
 0x28a   : > { %v2651_v10 = vpop.permute.xlu2 %2650 }
 0x28b   : > { %v2633_v40 = vpop.permute.xlu1 %2632  ;;  %v2625_v16 = vpop.permute.xlu0 %2624 }
 0x28c   : > { %v3381_v42 = vsel %vm3369_vm11, %v3348_v28, %v2633_v40  ;;  %v3373_v57 = vsel %vm3369_vm11, %v3340_v2, %v2625_v16 }
 0x28d   : > { %v3406_v32 = vsel %vm3402_vm12, %v3373_v57, %v6066_v59 }
 0x290   : > { %2972 = vrot.lane.b32.xlu2 %v2949_v58, %s4466_s9 }
 0x291   : > { %2964 = vrot.lane.b32.xlu1 %v2945_v34, %s4466_s9  ;;  %2860 = vrot.lane.b32.xlu0 %v2837_v13, %s4465_s8 }
 0x292   : > { %v2867_v31 = vpop.permute.xlu2 %2866 }
 0x293   : > { %v2849_v9 = vpop.permute.xlu1 %2848  ;;  %v2745_v52 = vpop.permute.xlu0 %2744 }
 0x294   : > { %v3414_v19 = vsel %vm3402_vm12, %v3381_v42, %v2745_v52  ;;  %v3439_v54 = vsel %vm3435_vm13, %v3406_v32, %v2849_v9 }
 0x295   : > { %v3447_v62 = vsel %vm3435_vm13, %v3414_v19, %v6084_v41 }
 0x29a   : > { %v2987_v61 = vpop.permute.xlu2 %2986 }
 0x29b   : > { %v2969_v53 = vpop.permute.xlu1 %2968  ;;  %v2961_v38 = vpop.permute.xlu0 %2960 }
 0x29c   : > { %v3472_v6 = vsel %vm3468_vm14, %v3439_v54, %v2961_v38  ;;  %v3480_v22 = vsel %vm3468_vm14, %v3447_v62, %v2969_v53 }
 0x29d   : > { %4376 = vmatmul.msk.bf16.gmra.mxu0 %vm3549_vm15, %v3472_v6  ;;  %4380 = vmatmul.msk.bf16.gmra.mxu1 %vm3549_vm15, %v3480_v22 }
 0x2a2   : > { %v2627_v7 = vpop.permute.xlu2 %2626 }
 0x2a3   : > { %v2643_v26 = vpop.permute.xlu1 %2642  ;;  %v2539_v63 = vpop.permute.xlu0 %2538 }
 0x2a4   : > { %v3391_v55 = vsel %vm3369_vm11, %v3358_v56, %v2643_v26  ;;  %v3366_v41 = vsel %vm3336_vm10, %v5843_v8, %v2539_v63 }
 0x2a5   : > { %v3399_v3 = vsel %vm3369_vm11, %v3366_v41, %v2651_v10 }
 0x2aa   : > { %v2747_v33 = vpop.permute.xlu2 %2746 }
 0x2ab   : > { %v2763_v59 = vpop.permute.xlu1 %2762  ;;  %v2755_v18 = vpop.permute.xlu0 %2754 }
 0x2ac   : > { %v3424_v45 = vsel %vm3402_vm12, %v3391_v55, %v2755_v18  ;;  %v3432_v20 = vsel %vm3402_vm12, %v3399_v3, %v2763_v59 }
 0x2ad   : > { %v3457_v48 = vsel %vm3435_vm13, %v3424_v45, %v2867_v31 }
 0x2b2   : > { %v2963_v11 = vpop.permute.xlu2 %2962 }
 0x2b3   : > { %v2979_v17 = vpop.permute.xlu1 %2978  ;;  %v2875_v36 = vpop.permute.xlu0 %2874 }
 0x2b4   : > { %v3465_v1 = vsel %vm3435_vm13, %v3432_v20, %v2875_v36  ;;  %v3490_v27 = vsel %vm3468_vm14, %v3457_v48, %v2979_v17 }
 0x2b5   : > { %4385 = vmatmul.msk.bf16.gmra.mxu2 %vm3549_vm15, %v3490_v27  ;;  %v3498_v21 = vsel %vm3468_vm14, %v3465_v1, %v2987_v61 }
 0x2b6   : > { %4389 = vmatmul.msk.bf16.gmra.mxu3 %vm3549_vm15, %v3498_v21 }
 0x2ba   : > { %v2541_v43 = vpop.permute.xlu2 %2540 }
 0x2bb   : > { %v2523_v8 = vpop.permute.xlu1 %2522  ;;  %v2515_v37 = vpop.permute.xlu0 %2514  ;;  %v3368_v17 = vsel %vm3336_vm10, %v5941_v23, %v2541_v43 }
 0x2bc   : > { %v3342_v39 = vsel %vm3336_vm10, %v5768_v0, %v2515_v37  ;;  %v3350_v0 = vsel %vm3336_vm10, %v5876_v46, %v2523_v8 }
 0x2bd   : > { %v3375_v49 = vsel %vm3369_vm11, %v3342_v39, %v2627_v7 }
 0x2c2   : > { %v2757_v10 = vpop.permute.xlu2 %2756 }
 0x2c3   : > { %v2739_v35 = vpop.permute.xlu1 %2738  ;;  %v2635_v51 = vpop.permute.xlu0 %2634 }
 0x2c4   : > { %v3408_v4 = vsel %vm3402_vm12, %v3375_v49, %v2739_v35  ;;  %v3383_v12 = vsel %vm3369_vm11, %v3350_v0, %v2635_v51 }
 0x2c5   : > { %v3416_v58 = vsel %vm3402_vm12, %v3383_v12, %v2747_v33 }
 0x2ca   : > { %v2877_v61 = vpop.permute.xlu2 %2876 }
 0x2cb   : > { %v2859_v50 = vpop.permute.xlu1 %2858  ;;  %v2851_v29 = vpop.permute.xlu0 %2850 }
 0x2cc   : > { %v3441_v15 = vsel %vm3435_vm13, %v3408_v4, %v2851_v29  ;;  %v3449_v46 = vsel %vm3435_vm13, %v3416_v58, %v2859_v50 }
 0x2cd   : > { %v3474_v24 = vsel %vm3468_vm14, %v3441_v15, %v2963_v11 }
 0x2ce   : > { %4377 = vmatmul.msk.bf16.gmra.mxu0 %vm3549_vm15, %v3474_v24 }
 0x2d0   : > { %v3631_v5 = vpop.f32.mrf.mxu2  ;;  %v3651_v14 = vpop.f32.mrf.mxu3 }
 0x2d1   : > { %v3691_v40 = vmul.f32 %v6157_v60, %v3631_v5  ;;  %v3699_v16 = vmul.f32 %v6157_v60, %v3651_v14 }
 0x2d2   : > { %v2517_v36 = vpop.permute.xlu2 %2516 }
 0x2d3   : > { %v3727_v34 = vadd.f32 %v6166_v47, %v3691_v40  ;;  %v3735_v13 = vadd.f32 %v6166_v47, %v3699_v16  ;;  %v2533_v9 = vpop.permute.xlu1 %2532  ;;  %v2971_v52 = vpop.permute.xlu0 %2970 }
 0x2d4   : > { %v3482_v28 = vsel %vm3468_vm14, %v3449_v46, %v2971_v52  ;;  %v3360_v48 = vsel %vm3336_vm10, %v5823_v30, %v2533_v9  ;;  %v3344_v52 = vsel %vm3336_vm10, %v5851_v44, %v2517_v36 }
 0x2d5   : > { %v3759_v2 = vmul.f32 0.2, %v3727_v34  ;;  %v3767_v31 = vmul.f32 0.2, %v3735_v13  ;;  %4381 = vmatmul.msk.bf16.gmra.mxu1 %vm3549_vm15, %v3482_v28 }
 0x2d7   : > { %v3791_v42 = vmax.f32 %v3727_v34, %v3759_v2  ;;  %v3799_v57 = vmax.f32 %v3735_v13, %v3767_v31 }
 0x2d8   : > { %v3633_v19 = vpop.f32.mrf.mxu2  ;;  %v3653_v32 = vpop.f32.mrf.mxu3 }
 0x2d9   : > { %3824 = vst.msk [vmem:[%s6180_s5 + $0x80] sm:$0xff] %vm3807_vm0, %v3791_v42  ;;  %v3692_v54 = vmul.f32 %v6157_v60, %v3633_v19  ;;  %v3700_v53 = vmul.f32 %v6157_v60, %v3653_v32 }
 0x2da   : > { %3832 = vst.msk [vmem:[%s6180_s5 + $0xc0] sm:$0xff] %vm3807_vm0, %v3799_v57  ;;  %v2637_v12 = vpop.permute.xlu2 %2636 }
 0x2db   : > { %v3728_v38 = vadd.f32 %v6166_v47, %v3692_v54  ;;  %v3736_v62 = vadd.f32 %v6166_v47, %v3700_v53  ;;  %v2653_v6 = vpop.permute.xlu1 %2652  ;;  %v2645_v22 = vpop.permute.xlu0 %2644 }
 0x2dc   : > { %v3401_v33 = vsel %vm3369_vm11, %v3368_v17, %v2653_v6  ;;  %v3393_v1 = vsel %vm3369_vm11, %v3360_v48, %v2645_v22 }
 0x2dd   : > { %v3760_v26 = vmul.f32 0.2, %v3728_v38  ;;  %v3768_v63 = vmul.f32 0.2, %v3736_v62  ;;  %v3426_v35 = vsel %vm3402_vm12, %v3393_v1, %v2757_v10 }
 0x2df   : > { %v3792_v7 = vmax.f32 %v3728_v38, %v3760_v26  ;;  %v3800_v59 = vmax.f32 %v3736_v62, %v3768_v63 }
 0x2e1   : > { %3825 = vst.msk [vmem:[%s6180_s5 + $0x88] sm:$0xff] %vm3807_vm0, %v3792_v7 }
 0x2e2   : > { %3833 = vst.msk [vmem:[%s6180_s5 + $0xc8] sm:$0xff] %vm3807_vm0, %v3800_v59  ;;  %v3591_v18 = vpop.f32.mrf.mxu0  ;;  %v2853_v34 = vpop.permute.xlu2 %2852 }
 0x2e3   : > { %v3675_v56 = vmul.f32 %v6157_v60, %v3591_v18  ;;  %v2869_v55 = vpop.permute.xlu1 %2868  ;;  %v2765_v41 = vpop.permute.xlu0 %2764 }
 0x2e4   : > { %v3611_v45 = vpop.f32.mrf.mxu1  ;;  %v3434_v8 = vsel %vm3402_vm12, %v3401_v33, %v2765_v41  ;;  %v3459_v23 = vsel %vm3435_vm13, %v3426_v35, %v2869_v55 }
 0x2e5   : > { %v3711_v3 = vadd.f32 %v6166_v47, %v3675_v56  ;;  %v3683_v20 = vmul.f32 %v6157_v60, %v3611_v45  ;;  %v3467_v4 = vsel %vm3435_vm13, %v3434_v8, %v2877_v61 }
 0x2e7   : > { %v3743_v27 = vmul.f32 0.2, %v3711_v3  ;;  %v3719_v21 = vadd.f32 %v6166_v47, %v3683_v20 }
 0x2e9   : > { %v3775_v37 = vmax.f32 %v3711_v3, %v3743_v27  ;;  %v3751_v11 = vmul.f32 0.2, %v3719_v21 }
 0x2ea   : > { %v3593_v51 = vpop.f32.mrf.mxu0  ;;  %v2973_v32 = vpop.permute.xlu2 %2972 }
 0x2eb   : > { %3808 = vst.msk [vmem:[%s6180_s5] sm:$0xff] %vm3807_vm0, %v3775_v37  ;;  %v3783_v30 = vmax.f32 %v3719_v21, %v3751_v11  ;;  %v3676_v39 = vmul.f32 %v6157_v60, %v3593_v51  ;;  %v2989_v43 = vpop.permute.xlu1 %2988  ;;  %v2981_v49 = vpop.permute.xlu0 %2980 }
 0x2ec   : > { %v3613_v50 = vpop.f32.mrf.mxu1  ;;  %v3492_v29 = vsel %vm3468_vm14, %v3459_v23, %v2981_v49  ;;  %v3500_v15 = vsel %vm3468_vm14, %v3467_v4, %v2989_v43 }
 0x2ed   : > { %3816 = vst.msk [vmem:[%s6180_s5 + $0x40] sm:$0xff] %vm3807_vm0, %v3783_v30  ;;  %v3712_v24 = vadd.f32 %v6166_v47, %v3676_v39  ;;  %v3684_v0 = vmul.f32 %v6157_v60, %v3613_v50  ;;  %4386 = vmatmul.msk.bf16.gmra.mxu2 %vm3549_vm15, %v3492_v29  ;;  %4390 = vmatmul.msk.bf16.gmra.mxu3 %vm3549_vm15, %v3500_v15 }
 0x2ef   : > { %v3744_v5 = vmul.f32 0.2, %v3712_v24  ;;  %v3720_v14 = vadd.f32 %v6166_v47, %v3684_v0 }
 0x2f1   : > { %v3776_v40 = vmax.f32 %v3712_v24, %v3744_v5  ;;  %v3752_v16 = vmul.f32 0.2, %v3720_v14 }
 0x2f3   : > { %3809 = vst.msk [vmem:[%s6180_s5 + $0x8] sm:$0xff] %vm3807_vm0, %v3776_v40  ;;  %v3784_v10 = vmax.f32 %v3720_v14, %v3752_v16  ;;  %v2629_v58 = vpop.permute.xlu1 %2628  ;;  %v2525_v46 = vpop.permute.xlu0 %2524 }
 0x2f4   : > { %v3377_v28 = vsel %vm3369_vm11, %v3344_v52, %v2629_v58  ;;  %v3352_v2 = vsel %vm3336_vm10, %v5872_v25, %v2525_v46 }
 0x2f5   : > { %3817 = vst.msk [vmem:[%s6180_s5 + $0x48] sm:$0xff] %vm3807_vm0, %v3784_v10  ;;  %v3385_v57 = vsel %vm3369_vm11, %v3352_v2, %v2637_v12 }
 0x2fb   : > { %v2749_v13 = vpop.permute.xlu1 %2748  ;;  %v2741_v9 = vpop.permute.xlu0 %2740 }
 0x2fc   : > { %v3410_v31 = vsel %vm3402_vm12, %v3377_v28, %v2741_v9  ;;  %v3418_v54 = vsel %vm3402_vm12, %v3385_v57, %v2749_v13 }
 0x2fd   : > { %v3443_v53 = vsel %vm3435_vm13, %v3410_v31, %v2853_v34 }
 0x301   : > { %v3636_v42 = vpop.f32.mrf.mxu2 }
 0x302   : > { %v3693_v19 = vmul.f32 %v6157_v60, %v3636_v42 }
 0x303   : > { %v2965_v38 = vpop.permute.xlu1 %2964  ;;  %v2861_v44 = vpop.permute.xlu0 %2860 }
 0x304   : > { %v3729_v62 = vadd.f32 %v6166_v47, %v3693_v19  ;;  %v3451_v6 = vsel %vm3435_vm13, %v3418_v54, %v2861_v44  ;;  %v3476_v25 = vsel %vm3468_vm14, %v3443_v53, %v2965_v38 }
 0x305   : > { %4378 = vmatmul.msk.bf16.gmra.mxu0 %vm3549_vm15, %v3476_v25  ;;  %v3484_v22 = vsel %vm3468_vm14, %v3451_v6, %v2973_v32 }
 0x306   : > { %v3761_v61 = vmul.f32 0.2, %v3729_v62  ;;  %4382 = vmatmul.msk.bf16.gmra.mxu1 %vm3549_vm15, %v3484_v22 }
 0x308   : > { %v3793_v26 = vmax.f32 %v3729_v62, %v3761_v61  ;;  %v3656_v63 = vpop.f32.mrf.mxu3 }
 0x309   : > { %v3701_v7 = vmul.f32 %v6157_v60, %v3656_v63  ;;  %v3638_v59 = vpop.f32.mrf.mxu2 }
 0x30a   : > { %3826 = vst.msk [vmem:[%s6180_s5 + $0x90] sm:$0xff] %vm3807_vm0, %v3793_v26  ;;  %v3694_v18 = vmul.f32 %v6157_v60, %v3638_v59 }
 0x30b   : > { %v3737_v56 = vadd.f32 %v6166_v47, %v3701_v7 }
 0x30c   : > { %v3730_v55 = vadd.f32 %v6166_v47, %v3694_v18 }
 0x30d   : > { %v3769_v41 = vmul.f32 0.2, %v3737_v56 }
 0x30e   : > { %v3762_v45 = vmul.f32 0.2, %v3730_v55 }
 0x30f   : > { %v3801_v3 = vmax.f32 %v3737_v56, %v3769_v41 }
 0x310   : > { %v3794_v20 = vmax.f32 %v3730_v55, %v3762_v45  ;;  %v3658_v17 = vpop.f32.mrf.mxu3 }
 0x311   : > { %3834 = vst.msk [vmem:[%s6180_s5 + $0xd0] sm:$0xff] %vm3807_vm0, %v3801_v3  ;;  %v3702_v36 = vmul.f32 %v6157_v60, %v3658_v17 }
 0x312   : > { %3827 = vst.msk [vmem:[%s6180_s5 + $0x98] sm:$0xff] %vm3807_vm0, %v3794_v20 }
 0x313   : > { %v3738_v48 = vadd.f32 %v6166_v47, %v3702_v36 }
 0x315   : > { %v3770_v33 = vmul.f32 0.2, %v3738_v48 }
 0x317   : > { %v3802_v1 = vmax.f32 %v3738_v48, %v3770_v33 }
 0x319   : > { %3835 = vst.msk [vmem:[%s6180_s5 + $0xd8] sm:$0xff] %vm3807_vm0, %v3802_v1 }
 0x31a   : > { %v3596_v27 = vpop.f32.mrf.mxu0  ;;  %v3616_v21 = vpop.f32.mrf.mxu1 }
 0x31b   : > { %v3677_v8 = vmul.f32 %v6157_v60, %v3596_v27  ;;  %v3685_v37 = vmul.f32 %v6157_v60, %v3616_v21 }
 0x31d   : > { %v3713_v11 = vadd.f32 %v6166_v47, %v3677_v8  ;;  %v3721_v35 = vadd.f32 %v6166_v47, %v3685_v37 }
 0x31f   : > { %v3745_v51 = vmul.f32 0.2, %v3713_v11  ;;  %v3753_v23 = vmul.f32 0.2, %v3721_v35 }
 0x321   : > { %v3777_v30 = vmax.f32 %v3713_v11, %v3745_v51  ;;  %v3785_v39 = vmax.f32 %v3721_v35, %v3753_v23 }
 0x322   : > { %v3598_v43 = vpop.f32.mrf.mxu0  ;;  %v3618_v49 = vpop.f32.mrf.mxu1 }
 0x323   : > { %3810 = vst.msk [vmem:[%s6180_s5 + $0x10] sm:$0xff] %vm3807_vm0, %v3777_v30  ;;  %v3678_v4 = vmul.f32 %v6157_v60, %v3598_v43  ;;  %v3686_v50 = vmul.f32 %v6157_v60, %v3618_v49 }
 0x324   : > { %3818 = vst.msk [vmem:[%s6180_s5 + $0x50] sm:$0xff] %vm3807_vm0, %v3785_v39 }
 0x325   : > { %v3714_v29 = vadd.f32 %v6166_v47, %v3678_v4  ;;  %v3722_v15 = vadd.f32 %v6166_v47, %v3686_v50 }
 0x327   : > { %v3746_v24 = vmul.f32 0.2, %v3714_v29  ;;  %v3754_v0 = vmul.f32 0.2, %v3722_v15 }
 0x329   : > { %v3778_v12 = vmax.f32 %v3714_v29, %v3746_v24  ;;  %v3786_v5 = vmax.f32 %v3722_v15, %v3754_v0 }
 0x32b   : > { %3811 = vst.msk [vmem:[%s6180_s5 + $0x18] sm:$0xff] %vm3807_vm0, %v3778_v12 }
 0x32c   : > { %3819 = vst.msk [vmem:[%s6180_s5 + $0x58] sm:$0xff] %vm3807_vm0, %v3786_v5 }
 0x338   : > { %v3641_v14 = vpop.f32.mrf.mxu2 }
 0x339   : > { %v3695_v40 = vmul.f32 %v6157_v60, %v3641_v14  ;;  %v3661_v16 = vpop.f32.mrf.mxu3 }
 0x33a   : > { %v3703_v10 = vmul.f32 %v6157_v60, %v3661_v16 }
 0x33b   : > { %v3731_v58 = vadd.f32 %v6166_v47, %v3695_v40 }
 0x33c   : > { %v3739_v46 = vadd.f32 %v6166_v47, %v3703_v10 }
 0x33d   : > { %v3763_v34 = vmul.f32 0.2, %v3731_v58 }
 0x33e   : > { %v3771_v13 = vmul.f32 0.2, %v3739_v46 }
 0x33f   : > { %v3795_v9 = vmax.f32 %v3731_v58, %v3763_v34 }
 0x340   : > { %v3803_v52 = vmax.f32 %v3739_v46, %v3771_v13  ;;  %v3643_v28 = vpop.f32.mrf.mxu2 }
 0x341   : > { %3828 = vst.msk [vmem:[%s6180_s5 + $0xa0] sm:$0xff] %vm3807_vm0, %v3795_v9  ;;  %v3696_v2 = vmul.f32 %v6157_v60, %v3643_v28  ;;  %v3663_v31 = vpop.f32.mrf.mxu3 }
 0x342   : > { %3836 = vst.msk [vmem:[%s6180_s5 + $0xe0] sm:$0xff] %vm3807_vm0, %v3803_v52  ;;  %v3704_v42 = vmul.f32 %v6157_v60, %v3663_v31 }
 0x343   : > { %v3732_v57 = vadd.f32 %v6166_v47, %v3696_v2 }
 0x344   : > { %v3740_v19 = vadd.f32 %v6166_v47, %v3704_v42 }
 0x345   : > { %v3764_v32 = vmul.f32 0.2, %v3732_v57 }
 0x346   : > { %v3772_v54 = vmul.f32 0.2, %v3740_v19 }
 0x347   : > { %v3796_v53 = vmax.f32 %v3732_v57, %v3764_v32 }
 0x348   : > { %v3804_v38 = vmax.f32 %v3740_v19, %v3772_v54 }
 0x349   : > { %3829 = vst.msk [vmem:[%s6180_s5 + $0xa8] sm:$0xff] %vm3807_vm0, %v3796_v53 }
 0x34a   : > { %3837 = vst.msk [vmem:[%s6180_s5 + $0xe8] sm:$0xff] %vm3807_vm0, %v3804_v38 }
 0x34b   : > { %v3601_v44 = vpop.f32.mrf.mxu0 }
 0x34c   : > { %v3679_v62 = vmul.f32 %v6157_v60, %v3601_v44 }
 0x34e   : > { %v3715_v6 = vadd.f32 %v6166_v47, %v3679_v62 }
 0x350   : > { %v3747_v25 = vmul.f32 0.2, %v3715_v6 }
 0x352   : > { %v3779_v22 = vmax.f32 %v3715_v6, %v3747_v25  ;;  %v3621_v61 = vpop.f32.mrf.mxu1 }
 0x353   : > { %v3687_v26 = vmul.f32 %v6157_v60, %v3621_v61  ;;  %v3603_v63 = vpop.f32.mrf.mxu0 }
 0x354   : > { %3812 = vst.msk [vmem:[%s6180_s5 + $0x20] sm:$0xff] %vm3807_vm0, %v3779_v22  ;;  %v3680_v7 = vmul.f32 %v6157_v60, %v3603_v63 }
 0x355   : > { %v3723_v59 = vadd.f32 %v6166_v47, %v3687_v26 }
 0x356   : > { %v3716_v18 = vadd.f32 %v6166_v47, %v3680_v7 }
 0x357   : > { %v3755_v56 = vmul.f32 0.2, %v3723_v59 }
 0x358   : > { %v3748_v55 = vmul.f32 0.2, %v3716_v18 }
 0x359   : > { %v3787_v41 = vmax.f32 %v3723_v59, %v3755_v56 }
 0x35a   : > { %v3780_v45 = vmax.f32 %v3716_v18, %v3748_v55  ;;  %v3623_v3 = vpop.f32.mrf.mxu1 }
 0x35b   : > { %3820 = vst.msk [vmem:[%s6180_s5 + $0x60] sm:$0xff] %vm3807_vm0, %v3787_v41  ;;  %v3688_v20 = vmul.f32 %v6157_v60, %v3623_v3 }
 0x35c   : > { %3813 = vst.msk [vmem:[%s6180_s5 + $0x28] sm:$0xff] %vm3807_vm0, %v3780_v45 }
 0x35d   : > { %v3724_v17 = vadd.f32 %v6166_v47, %v3688_v20 }
 0x35f   : > { %v3756_v36 = vmul.f32 0.2, %v3724_v17 }
 0x361   : > { %v3788_v48 = vmax.f32 %v3724_v17, %v3756_v36 }
 0x363   : > { %3821 = vst.msk [vmem:[%s6180_s5 + $0x68] sm:$0xff] %vm3807_vm0, %v3788_v48 }
 0x370   : > { %v3646_v33 = vpop.f32.mrf.mxu2  ;;  %v3666_v1 = vpop.f32.mrf.mxu3 }
 0x371   : > { %v3697_v27 = vmul.f32 %v6157_v60, %v3646_v33  ;;  %v3705_v21 = vmul.f32 %v6157_v60, %v3666_v1 }
 0x373   : > { %v3733_v8 = vadd.f32 %v6166_v47, %v3697_v27  ;;  %v3741_v37 = vadd.f32 %v6166_v47, %v3705_v21 }
 0x375   : > { %v3765_v11 = vmul.f32 0.2, %v3733_v8  ;;  %v3773_v35 = vmul.f32 0.2, %v3741_v37 }
 0x377   : > { %v3797_v51 = vmax.f32 %v3733_v8, %v3765_v11  ;;  %v3805_v23 = vmax.f32 %v3741_v37, %v3773_v35 }
 0x378   : > { %v3648_v30 = vpop.f32.mrf.mxu2  ;;  %v3668_v39 = vpop.f32.mrf.mxu3 }
 0x379   : > { %3830 = vst.msk [vmem:[%s6180_s5 + $0xb0] sm:$0xff] %vm3807_vm0, %v3797_v51  ;;  %v3698_v43 = vmul.f32 %v6157_v60, %v3648_v30  ;;  %v3706_v49 = vmul.f32 %v6157_v60, %v3668_v39 }
 0x37a   : > { %3838 = vst.msk [vmem:[%s6180_s5 + $0xf0] sm:$0xff] %vm3807_vm0, %v3805_v23 }
 0x37b   : > { %v3734_v4 = vadd.f32 %v6166_v47, %v3698_v43  ;;  %v3742_v50 = vadd.f32 %v6166_v47, %v3706_v49 }
 0x37d   : > { %v3766_v29 = vmul.f32 0.2, %v3734_v4  ;;  %v3774_v15 = vmul.f32 0.2, %v3742_v50 }
 0x37f   : > { %v3798_v24 = vmax.f32 %v3734_v4, %v3766_v29  ;;  %v3806_v0 = vmax.f32 %v3742_v50, %v3774_v15 }
 0x381   : > { %3831 = vst.msk [vmem:[%s6180_s5 + $0xb8] sm:$0xff] %vm3807_vm0, %v3798_v24 }
 0x382   : > { %3839 = vst.msk [vmem:[%s6180_s5 + $0xf8] sm:$0xff] %vm3807_vm0, %v3806_v0  ;;  %v3606_v12 = vpop.f32.mrf.mxu0 }
 0x383   : > { %v3681_v5 = vmul.f32 %v6157_v60, %v3606_v12  ;;  %v3626_v14 = vpop.f32.mrf.mxu1 }
 0x384   : > { %v3689_v40 = vmul.f32 %v6157_v60, %v3626_v14 }
 0x385   : > { %v3717_v16 = vadd.f32 %v6166_v47, %v3681_v5 }
 0x386   : > { %v3725_v10 = vadd.f32 %v6166_v47, %v3689_v40 }
 0x387   : > { %v3749_v58 = vmul.f32 0.2, %v3717_v16 }
 0x388   : > { %v3757_v46 = vmul.f32 0.2, %v3725_v10 }
 0x389   : > { %v3781_v34 = vmax.f32 %v3717_v16, %v3749_v58 }
 0x38a   : > { %v3789_v13 = vmax.f32 %v3725_v10, %v3757_v46  ;;  %v3608_v9 = vpop.f32.mrf.mxu0 }
 0x38b   : > { %3814 = vst.msk [vmem:[%s6180_s5 + $0x30] sm:$0xff] %vm3807_vm0, %v3781_v34  ;;  %v3682_v52 = vmul.f32 %v6157_v60, %v3608_v9  ;;  %v3628_v28 = vpop.f32.mrf.mxu1 }
 0x38c   : > { %3822 = vst.msk [vmem:[%s6180_s5 + $0x70] sm:$0xff] %vm3807_vm0, %v3789_v13  ;;  %v3690_v2 = vmul.f32 %v6157_v60, %v3628_v28 }
 0x38d   : > { %v3718_v31 = vadd.f32 %v6166_v47, %v3682_v52 }
 0x38e   : > { %v3726_v42 = vadd.f32 %v6166_v47, %v3690_v2 }
 0x38f   : > { %v3750_v57 = vmul.f32 0.2, %v3718_v31 }
 0x390   : > { %v3758_v19 = vmul.f32 0.2, %v3726_v42 }
 0x391   : > { %v3782_v32 = vmax.f32 %v3718_v31, %v3750_v57 }
 0x392   : > { %v3790_v54 = vmax.f32 %v3726_v42, %v3758_v19 }
 0x393   : > { %3815 = vst.msk [vmem:[%s6180_s5 + $0x38] sm:$0xff] %vm3807_vm0, %v3782_v32 }
 0x394   : > { %3823 = vst.msk [vmem:[%s6180_s5 + $0x78] sm:$0xff] %vm3807_vm0, %v3790_v54 }
 0x395 PF: > { %s14_s15 = sadd.s32 1, %s4450_s15  }
 0x396   : > { %p11_p4 = scmp.ge.s32.totalorder %s14_s15, 4  }
 0x398   :  { %13 = sbr.rel (!%p11_p4) target bundleno = 1 (0x1), region = 73 }

// kernel: discriminator_forward.7
= control target key start
LH: loop header
LB: loop body
LE: loop exit
PB: predicated region body
PF: predicated region fallthrough
CT: control target
= control target key end

     0   :  { %s1808_s15 = smov 0   ;;  %s2189_s0 = inlined_call_operand.vmem [shape: f32[2,4,5,5,64], index: 0, kind: input, shape index: {}]   ;;  %s2190_s1 = inlined_call_operand.vmem [shape: bf16[1024,128], index: 1, kind: input, shape index: {}]   ;;  %s2191_s2 = inlined_call_operand.vmem [shape: f32[1,128], index: 2, kind: input, shape index: {}]   ;;  %s2192_s3 = inlined_call_operand.vmem [shape: f32[1,128], index: 3, kind: input, shape index: {}]   ;;  %s2193_s4 = inlined_call_operand.vmem [shape: f32[2,4,4,128], index: 4, kind: output, shape index: {}]  }
   0x1 LB: > { %s1375_s16 = sadd.s32 4294967295, %s1780_s15   ;;  %p1379_p0 = scmp.ge.s32.totalorder %s1780_s15, 1  ;;  %s1780_s15 = sphi %s1808_s15, %s14_s15  }
   0x2   : > { %p162_p1 = scmp.lt.s32.totalorder %s1780_s15, 3 }
   0x4   : > { %p163_p2 = pnand %p1379_p0, %p162_p1 }
   0x5   : > { %p188_p3 = scmp.lt.s32.totalorder (!%p163_p2), %s1375_s16, 1  ;;  %s1782_s21 = smov (!%p163_p2), 64  }
   0x6   : > { %166 = sbr.rel (%p163_p2) target bundleno = 437 (0x1b5), region = 36 }
   0xb   : > { %s2195_s16 = smov (!%p188_p3, %s1375_s16), 1  ;;  %vm637_vm0 = vcmask 523264  }
   0xc   : > { %s1762_s17 = smul.u32 160, %s2195_s16  ;;  %s1697_s11 = sshll.u32 %s2195_s16, 4 }
   0xd   : > { %s197_s13 = scalar_lea.vmem %s2193_s4, %s1697_s11 }
   0xe   : > { %s1822_s20 = scalar_lea.vmem %s2189_s0, %s1762_s17 }
   0xf   : > { %v198_v0 = vld [vmem:[%s1822_s20] sm:$0xf]  ;;  %v199_v1 = vld [vmem:[%s1822_s20 + $0x8] sm:$0xf]  ;;  %v200_v2 = vld [vmem:[%s1822_s20 + $0x10] sm:$0xf] }
  0x10   : > { %v201_v3 = vld [vmem:[%s1822_s20 + $0x18] sm:$0xf]  ;;  %206 = vst [vmem:[#allocation1] ss:$2 sm:$0xff] %v198_v0  ;;  %v1383_v4 = vld [vmem:[%s1822_s20 + $0x28] sm:$0xf] }
  0x11   : > { %208 = vst [vmem:[#allocation1 + $0x1] ss:$2 sm:$0xff] %v199_v1  ;;  %v1384_v5 = vld [vmem:[%s1822_s20 + $0x30] sm:$0xf]  ;;  %v1385_v7 = vld [vmem:[%s1822_s20 + $0x38] sm:$0xf] }
  0x12   : > { %210 = vst [vmem:[#allocation1 + $0x10] ss:$2 sm:$0xff] %v200_v2  ;;  %v1386_v8 = vld [vmem:[%s1822_s20 + $0x40] sm:$0xf]  ;;  %v242_v11 = vld [vmem:[%s1822_s20 + $0x9] sm:$0xf] }
  0x13   : > { %212 = vst [vmem:[#allocation1 + $0x11] ss:$2 sm:$0xff] %v201_v3  ;;  %v241_v10 = vld [vmem:[%s1822_s20 + $0x1] sm:$0xf]  ;;  %v243_v13 = vld [vmem:[%s1822_s20 + $0x11] sm:$0xf] }
  0x14   : > { %v244_v14 = vld [vmem:[%s1822_s20 + $0x19] sm:$0xf]  ;;  %v1387_v16 = vld [vmem:[%s1822_s20 + $0x29] sm:$0xf]  ;;  %v1388_v17 = vld [vmem:[%s1822_s20 + $0x31] sm:$0xf] }
  0x15   : > { %v1389_v19 = vld [vmem:[%s1822_s20 + $0x39] sm:$0xf]  ;;  %v1390_v20 = vld [vmem:[%s1822_s20 + $0x41] sm:$0xf]  ;;  %v1391_v22 = vld [vmem:[%s1822_s20 + $0x50] sm:$0xf] }
  0x16   : > { %v1392_v23 = vld [vmem:[%s1822_s20 + $0x58] sm:$0xf]  ;;  %v1393_v25 = vld [vmem:[%s1822_s20 + $0x60] sm:$0xf]  ;;  %v1394_v26 = vld [vmem:[%s1822_s20 + $0x68] sm:$0xf] }
  0x17   : > { %v1395_v28 = vld [vmem:[%s1822_s20 + $0x78] sm:$0xf]  ;;  %v1396_v29 = vld [vmem:[%s1822_s20 + $0x80] sm:$0xf]  ;;  %v1397_v31 = vld [vmem:[%s1822_s20 + $0x88] sm:$0xf] }
  0x18   : > { %v1830_v6 = vld.sshfl [vmem:[#allocation1] sm:$0xff pattern:$0x75316420]  ;;  %v1398_v32 = vld [vmem:[%s1822_s20 + $0x90] sm:$0xf] }
  0x19   : > { %228 = vst [vmem:[#allocation1] ss:$2 sm:$0xff] %v1383_v4  ;;  %v1399_v34 = vld [vmem:[%s1822_s20 + $0x51] sm:$0xf]  ;;  %v1400_v35 = vld [vmem:[%s1822_s20 + $0x59] sm:$0xf] }
  0x1a   : > { %v1834_v9 = vld.sshfl [vmem:[#allocation1 + $0x10] sm:$0xff pattern:$0x75316420]  ;;  %230 = vst [vmem:[#allocation1 + $0x1] ss:$2 sm:$0xff] %v1384_v5 }
  0x1b   : > { %232 = vst [vmem:[#allocation1 + $0x10] ss:$2 sm:$0xff] %v1385_v7  ;;  %v1401_v37 = vld [vmem:[%s1822_s20 + $0x61] sm:$0xf]  ;;  %v1402_v39 = vld [vmem:[%s1822_s20 + $0x69] sm:$0xf] }
  0x1c   : > { %234 = vst [vmem:[#allocation1 + $0x11] ss:$2 sm:$0xff] %v1386_v8  ;;  %v1403_v47 = vld [vmem:[%s1822_s20 + $0x79] sm:$0xf]  ;;  %v1404_v48 = vld [vmem:[%s1822_s20 + $0x81] sm:$0xf] }
  0x1d   : > { %v1405_v50 = vld [vmem:[%s1822_s20 + $0x89] sm:$0xf]  ;;  %v1406_v53 = vld [vmem:[%s1822_s20 + $0x91] sm:$0xf]  ;;  %v1409_v59 = vld [vmem:[%s1822_s20 + $0x18] sm:$0xf] }
  0x1e   : > { %v1407_v56 = vld [vmem:[%s1822_s20 + $0x8] sm:$0xf]  ;;  %v1408_v57 = vld [vmem:[%s1822_s20 + $0x10] sm:$0xf]  ;;  %v1410_v61 = vld [vmem:[%s1822_s20 + $0x20] sm:$0xf] }
  0x1f   : > { %v1411_v5 = vld [vmem:[%s1822_s20 + $0x30] sm:$0xf]  ;;  %v1412_v7 = vld [vmem:[%s1822_s20 + $0x38] sm:$0xf] }
  0x21   : > { %v235_v12 = vld.sshfl [vmem:[#allocation1] sm:$0xff pattern:$0x75316420] }
  0x22   : > { %249 = vst [vmem:[#allocation1] ss:$2 sm:$0xff] %v241_v10  ;;  %v239_v44 = vpack.c.bf16 %v235_v12, %v235_v12  ;;  %v1413_v12 = vld [vmem:[%s1822_s20 + $0x40] sm:$0xf] }
  0x23   : > { %v236_v15 = vld.sshfl [vmem:[#allocation1 + $0x10] sm:$0xff pattern:$0x75316420]  ;;  %251 = vst [vmem:[#allocation1 + $0x1] ss:$2 sm:$0xff] %v242_v11 }
  0x24   : > { %253 = vst [vmem:[#allocation1 + $0x10] ss:$2 sm:$0xff] %v243_v13  ;;  %v240_v45 = vpack.c.bf16 %v236_v15, %v236_v15  ;;  %v548_v51 = vunpack.c.l.b16 %v239_v44  ;;  %v1414_v13 = vld [vmem:[%s1822_s20 + $0x48] sm:$0xf] }
  0x25   : > { %255 = vst [vmem:[#allocation1 + $0x11] ss:$2 sm:$0xff] %v244_v14  ;;  %v1428_v44 = vld [vmem:[%s1822_s20 + $0x88] sm:$0xf] }
  0x26   : > { %v549_v52 = vunpack.c.l.b16 %v240_v45 }
  0x28   : > { %v550_v55 = vpack.c.b16 %v549_v52, %v548_v51  ;;  %v1705_v51 = vld [vmem:[%s2190_s1 + $0x38] sm:$0xff] }
  0x29   : > { %v1713_v52 = vld [vmem:[%s2190_s1 + $0x78] sm:$0xff]  ;;  %1182 = vmatpush.bf16.msra.mxu0 %v1705_v51 }
  0x2a   : > { %v1842_v18 = vld.sshfl [vmem:[#allocation1] sm:$0xff pattern:$0x75316420]  ;;  %1196 = vmatpush.bf16.msra.mxu1 %v1713_v52 }
  0x2b   : > { %270 = vst [vmem:[#allocation1] ss:$2 sm:$0xff] %v1387_v16  ;;  %v1415_v16 = vld [vmem:[%s1822_s20 + $0x9] sm:$0xf]  ;;  %v1714_v52 = vld [vmem:[%s2190_s1 + $0x80] sm:$0xff] }
  0x2c   : > { %v1846_v21 = vld.sshfl [vmem:[#allocation1 + $0x10] sm:$0xff pattern:$0x75316420]  ;;  %272 = vst [vmem:[#allocation1 + $0x1] ss:$2 sm:$0xff] %v1388_v17 }
  0x2d   : > { %274 = vst [vmem:[#allocation1 + $0x10] ss:$2 sm:$0xff] %v1389_v19  ;;  %v1416_v17 = vld [vmem:[%s1822_s20 + $0x11] sm:$0xf] }
  0x2e   : > { %276 = vst [vmem:[#allocation1 + $0x11] ss:$2 sm:$0xff] %v1390_v20  ;;  %v1417_v20 = vld [vmem:[%s1822_s20 + $0x19] sm:$0xf] }
  0x33   : > { %v1850_v24 = vld.sshfl [vmem:[#allocation1] sm:$0xff pattern:$0x75316420] }
  0x34   : > { %292 = vst [vmem:[#allocation1] ss:$2 sm:$0xff] %v1391_v22  ;;  %v281_v2 = vpack.c.bf16 %v1850_v24, %v1850_v24  ;;  %v1418_v22 = vld [vmem:[%s1822_s20 + $0x21] sm:$0xf]  ;;  %v1419_v24 = vld [vmem:[%s1822_s20 + $0x31] sm:$0xf] }
  0x35   : > { %v1854_v27 = vld.sshfl [vmem:[#allocation1 + $0x10] sm:$0xff pattern:$0x75316420]  ;;  %294 = vst [vmem:[#allocation1 + $0x1] ss:$2 sm:$0xff] %v1392_v23 }
  0x36   : > { %296 = vst [vmem:[#allocation1 + $0x10] ss:$2 sm:$0xff] %v1393_v25  ;;  %v282_v3 = vpack.c.bf16 %v1854_v27, %v1854_v27  ;;  %v560_v8 = vunpack.c.l.b16 %v281_v2  ;;  %v1420_v25 = vld [vmem:[%s1822_s20 + $0x39] sm:$0xf]  ;;  %v1421_v27 = vld [vmem:[%s1822_s20 + $0x41] sm:$0xf] }
  0x37   : > { %298 = vst [vmem:[#allocation1 + $0x11] ss:$2 sm:$0xff] %v1394_v26 }
  0x38   : > { %v561_v10 = vunpack.c.l.b16 %v282_v3  ;;  %v1711_v3 = vld [vmem:[%s2190_s1 + $0x68] sm:$0xff] }
  0x3a   : > { %v562_v15 = vpack.c.b16 %v561_v10, %v560_v8 }
  0x3c   : > { %v1858_v30 = vld.sshfl [vmem:[#allocation1] sm:$0xff pattern:$0x75316420] }
  0x3d   : > { %314 = vst [vmem:[#allocation1] ss:$2 sm:$0xff] %v1395_v28  ;;  %v1422_v28 = vld [vmem:[%s1822_s20 + $0x49] sm:$0xf] }
  0x3e   : > { %v1862_v33 = vld.sshfl [vmem:[#allocation1 + $0x10] sm:$0xff pattern:$0x75316420]  ;;  %316 = vst [vmem:[#allocation1 + $0x1] ss:$2 sm:$0xff] %v1396_v29 }
  0x3f   : > { %318 = vst [vmem:[#allocation1 + $0x10] ss:$2 sm:$0xff] %v1397_v31  ;;  %v1423_v31 = vld [vmem:[%s1822_s20 + $0x58] sm:$0xf] }
  0x40   : > { %320 = vst [vmem:[#allocation1 + $0x11] ss:$2 sm:$0xff] %v1398_v32  ;;  %v1424_v32 = vld [vmem:[%s1822_s20 + $0x60] sm:$0xf] }
  0x45   : > { %v321_v36 = vld.sshfl [vmem:[#allocation1] sm:$0xff pattern:$0x75316420] }
  0x46   : > { %v325_v38 = vpack.c.bf16 %v321_v36, %v321_v36  ;;  %335 = vst [vmem:[#allocation1] ss:$2 sm:$0xff] %v1399_v34 }
  0x47   : > { %v322_v40 = vld.sshfl [vmem:[#allocation1 + $0x10] sm:$0xff pattern:$0x75316420]  ;;  %337 = vst [vmem:[#allocation1 + $0x1] ss:$2 sm:$0xff] %v1400_v35 }
  0x48   : > { %v326_v41 = vpack.c.bf16 %v322_v40, %v322_v40  ;;  %v572_v42 = vunpack.c.l.b16 %v325_v38  ;;  %339 = vst [vmem:[#allocation1 + $0x10] ss:$2 sm:$0xff] %v1401_v37  ;;  %v1425_v35 = vld [vmem:[%s1822_s20 + $0x68] sm:$0xf]  ;;  %v1426_v37 = vld [vmem:[%s1822_s20 + $0x70] sm:$0xf] }
  0x49   : > { %341 = vst [vmem:[#allocation1 + $0x11] ss:$2 sm:$0xff] %v1402_v39 }
  0x4a   : > { %v573_v43 = vunpack.c.l.b16 %v326_v41 }
  0x4c   : > { %v574_v46 = vpack.c.b16 %v573_v43, %v572_v42  ;;  %v1427_v43 = vld [vmem:[%s1822_s20 + $0x80] sm:$0xf] }
  0x4e   : > { %575 = vrot.lane.b32.xlu0 %v574_v46, %s1782_s21  ;;  %v1871_v49 = vld.sshfl [vmem:[#allocation1] sm:$0xff pattern:$0x75316420]  ;;  %v1429_v46 = vld [vmem:[%s1822_s20 + $0x90] sm:$0xf] }
  0x4f   : > { %356 = vst [vmem:[#allocation1] ss:$2 sm:$0xff] %v1403_v47  ;;  %v1430_v47 = vld [vmem:[%s1822_s20 + $0x98] sm:$0xf] }
  0x50   : > { %v1875_v54 = vld.sshfl [vmem:[#allocation1 + $0x10] sm:$0xff pattern:$0x75316420]  ;;  %358 = vst [vmem:[#allocation1 + $0x1] ss:$2 sm:$0xff] %v1404_v48 }
  0x51   : > { %360 = vst [vmem:[#allocation1 + $0x10] ss:$2 sm:$0xff] %v1405_v50  ;;  %v1721_v50 = vld [vmem:[%s2190_s1 + $0xb8] sm:$0xff] }
  0x52   : > { %362 = vst [vmem:[#allocation1 + $0x11] ss:$2 sm:$0xff] %v1406_v53  ;;  %1210 = vmatpush.bf16.msra.mxu2 %v1721_v50  ;;  %v1720_v53 = vld [vmem:[%s2190_s1 + $0xb0] sm:$0xff] }
  0x56   : > { %551 = vrot.lane.b32.xlu0 %v550_v55, %s1782_s21  ;;  %v1704_v55 = vld [vmem:[%s2190_s1 + $0x30] sm:$0xff]  ;;  %1211 = vmatpush.bf16.msra.mxu2 %v1720_v53  ;;  %v1753_v53 = vld [vmem:[%s2190_s1 + $0x1b8] sm:$0xff] }
  0x57   : > { %v363_v58 = vld.sshfl [vmem:[#allocation1] sm:$0xff pattern:$0x75316420]  ;;  %1183 = vmatpush.bf16.msra.mxu0 %v1704_v55 }
  0x58   : > { %v367_v60 = vpack.c.bf16 %v363_v58, %v363_v58  ;;  %378 = vst [vmem:[#allocation1] ss:$2 sm:$0xff] %v1407_v56  ;;  %v1431_v56 = vld [vmem:[%s1822_s20 + $0x59] sm:$0xf]  ;;  %v1432_v58 = vld [vmem:[%s1822_s20 + $0x61] sm:$0xf] }
  0x59   : > { %v364_v62 = vld.sshfl [vmem:[#allocation1 + $0x10] sm:$0xff pattern:$0x75316420]  ;;  %380 = vst [vmem:[#allocation1 + $0x1] ss:$2 sm:$0xff] %v1408_v57  ;;  %v1698_v55 = vld [vmem:[%s2190_s1] sm:$0xff] }
  0x5a   : > { %v368_v63 = vpack.c.bf16 %v364_v62, %v364_v62  ;;  %382 = vst [vmem:[#allocation1 + $0x10] ss:$2 sm:$0xff] %v1409_v59  ;;  %v584_v0 = vunpack.c.l.b16 %v367_v60  ;;  %v1712_v57 = vld [vmem:[%s2190_s1 + $0x70] sm:$0xff]  ;;  %v1433_v59 = vld [vmem:[%s1822_s20 + $0x69] sm:$0xf] }
  0x5b   : > { %384 = vst [vmem:[#allocation1 + $0x11] ss:$2 sm:$0xff] %v1410_v61  ;;  %v1434_v61 = vld [vmem:[%s1822_s20 + $0x71] sm:$0xf]  ;;  %1197 = vmatpush.bf16.msra.mxu1 %v1712_v57  ;;  %v1737_v57 = vld [vmem:[%s2190_s1 + $0x138] sm:$0xff] }
  0x5c   : > { %v585_v1 = vunpack.c.l.b16 %v368_v63  ;;  %v1719_v63 = vld [vmem:[%s2190_s1 + $0xa8] sm:$0xff] }
  0x5d   : > { %1212 = vmatpush.bf16.msra.mxu2 %v1719_v63  ;;  %v1744_v63 = vld [vmem:[%s2190_s1 + $0x170] sm:$0xff] }
  0x5e   : > { %v586_v4 = vpack.c.b16 %v585_v1, %v584_v0  ;;  %v1703_v0 = vld [vmem:[%s2190_s1 + $0x28] sm:$0xff]  ;;  %v1729_v1 = vld [vmem:[%s2190_s1 + $0xf8] sm:$0xff] }
  0x5f   : > { %1224 = vmatpush.bf16.msra.mxu3 %v1729_v1  ;;  %1184 = vmatpush.bf16.msra.mxu0 %v1703_v0  ;;  %v1751_v0 = vld [vmem:[%s2190_s1 + $0x1a8] sm:$0xff]  ;;  %v1725_v1 = vld [vmem:[%s2190_s1 + $0xd8] sm:$0xff] }
  0x60   : > { %587 = vrot.lane.b32.xlu1 %v586_v4, %s1782_s21  ;;  %v1889_v11 = vld.sshfl [vmem:[#allocation1] sm:$0xff pattern:$0x75316420]  ;;  %1198 = vmatpush.bf16.msra.mxu1 %v1711_v3  ;;  %v1743_v3 = vld [vmem:[%s2190_s1 + $0x168] sm:$0xff] }
  0x61   : > { %400 = vst [vmem:[#allocation1] ss:$2 sm:$0xff] %v1411_v5 }
  0x62   : > { %v1893_v14 = vld.sshfl [vmem:[#allocation1 + $0x10] sm:$0xff pattern:$0x75316420]  ;;  %402 = vst [vmem:[#allocation1 + $0x1] ss:$2 sm:$0xff] %v1412_v7 }
  0x63   : > { %404 = vst [vmem:[#allocation1 + $0x10] ss:$2 sm:$0xff] %v1413_v12  ;;  %v1728_v7 = vld [vmem:[%s2190_s1 + $0xf0] sm:$0xff] }
  0x64   : > { %406 = vst [vmem:[#allocation1 + $0x11] ss:$2 sm:$0xff] %v1414_v13  ;;  %v1718_v13 = vld [vmem:[%s2190_s1 + $0xa0] sm:$0xff]  ;;  %1225 = vmatpush.bf16.msra.mxu3 %v1728_v7 }
  0x65   : > { %1213 = vmatpush.bf16.msra.mxu2 %v1718_v13  ;;  %v1734_v7 = vld [vmem:[%s2190_s1 + $0x120] sm:$0xff]  ;;  %v1749_v13 = vld [vmem:[%s2190_s1 + $0x198] sm:$0xff] }
  0x68   : > { %563 = vrot.lane.b32.xlu1 %v562_v15, %s1782_s21  ;;  %v1702_v15 = vld [vmem:[%s2190_s1 + $0x20] sm:$0xff] }
  0x69   : > { %v1898_v19 = vld.sshfl [vmem:[#allocation1] sm:$0xff pattern:$0x75316420]  ;;  %1185 = vmatpush.bf16.msra.mxu0 %v1702_v15 }
  0x6a   : > { %421 = vst [vmem:[#allocation1] ss:$2 sm:$0xff] %v1415_v16  ;;  %v411_v10 = vpack.c.bf16 %v1898_v19, %v1898_v19  ;;  %v1710_v16 = vld [vmem:[%s2190_s1 + $0x60] sm:$0xff] }
  0x6b   : > { %v1902_v23 = vld.sshfl [vmem:[#allocation1 + $0x10] sm:$0xff pattern:$0x75316420]  ;;  %423 = vst [vmem:[#allocation1 + $0x1] ss:$2 sm:$0xff] %v1416_v17  ;;  %1199 = vmatpush.bf16.msra.mxu1 %v1710_v16 }
  0x6c   : > { %425 = vst [vmem:[#allocation1 + $0x10] ss:$2 sm:$0xff] %v1417_v20  ;;  %v412_v12 = vpack.c.bf16 %v1902_v23, %v1902_v23  ;;  %v1435_v19 = vld [vmem:[%s1822_s20 + $0x81] sm:$0xf]  ;;  %v1727_v20 = vld [vmem:[%s2190_s1 + $0xe8] sm:$0xff] }
  0x6d   : > { %427 = vst [vmem:[#allocation1 + $0x11] ss:$2 sm:$0xff] %v1418_v22  ;;  %v1436_v22 = vld [vmem:[%s1822_s20 + $0x89] sm:$0xf]  ;;  %1226 = vmatpush.bf16.msra.mxu3 %v1727_v20  ;;  %v1722_v20 = vld [vmem:[%s2190_s1 + $0xc0] sm:$0xff] }
  0x72   : > { %v1906_v26 = vld.sshfl [vmem:[#allocation1] sm:$0xff pattern:$0x75316420] }
  0x73   : > { %442 = vst [vmem:[#allocation1] ss:$2 sm:$0xff] %v1419_v24  ;;  %v1437_v24 = vld [vmem:[%s1822_s20 + $0x91] sm:$0xf] }
  0x74   : > { %v1910_v29 = vld.sshfl [vmem:[#allocation1 + $0x10] sm:$0xff pattern:$0x75316420]  ;;  %444 = vst [vmem:[#allocation1 + $0x1] ss:$2 sm:$0xff] %v1420_v25  ;;  %v596_v25 = vunpack.c.l.b16 %v411_v10  ;;  %v304_v10 = vpack.c.bf16 %v1862_v33, %v1862_v33  ;;  %v1733_v33 = vld [vmem:[%s2190_s1 + $0x118] sm:$0xff] }
  0x75   : > { %446 = vst [vmem:[#allocation1 + $0x10] ss:$2 sm:$0xff] %v1421_v27  ;;  %v597_v27 = vunpack.c.l.b16 %v412_v12  ;;  %v1742_v12 = vld [vmem:[%s2190_s1 + $0x160] sm:$0xff] }
  0x76   : > { %448 = vst [vmem:[#allocation1 + $0x11] ss:$2 sm:$0xff] %v1422_v28  ;;  %v1717_v28 = vld [vmem:[%s2190_s1 + $0x98] sm:$0xff]  ;;  %v568_v16 = vunpack.c.l.b16 %v304_v10  ;;  %v390_v10 = vpack.c.bf16 %v1893_v14, %v1893_v14 }
  0x77   : > { %1214 = vmatpush.bf16.msra.mxu2 %v1717_v28 }
  0x7b   : > { %v449_v34 = vld.sshfl [vmem:[#allocation1] sm:$0xff pattern:$0x75316420] }
  0x7c   : > { %v453_v36 = vpack.c.bf16 %v449_v34, %v449_v34  ;;  %464 = vst [vmem:[#allocation1] ss:$2 sm:$0xff] %v1423_v31  ;;  %v1438_v31 = vld [vmem:[%s1822_s20 + $0x99] sm:$0xf] }
  0x7d   : > { %v450_v38 = vld.sshfl [vmem:[#allocation1 + $0x10] sm:$0xff pattern:$0x75316420]  ;;  %466 = vst [vmem:[#allocation1 + $0x1] ss:$2 sm:$0xff] %v1424_v32  ;;  %v1701_v32 = vld [vmem:[%s2190_s1 + $0x18] sm:$0xff] }
  0x7e   : > { %v454_v39 = vpack.c.bf16 %v450_v38, %v450_v38  ;;  %468 = vst [vmem:[#allocation1 + $0x10] ss:$2 sm:$0xff] %v1425_v35  ;;  %v608_v40 = vunpack.c.l.b16 %v453_v36  ;;  %v1709_v34 = vld [vmem:[%s2190_s1 + $0x58] sm:$0xff]  ;;  %v1726_v36 = vld [vmem:[%s2190_s1 + $0xe0] sm:$0xff]  ;;  %v1716_v38 = vld [vmem:[%s2190_s1 + $0x90] sm:$0xff]  ;;  %1186 = vmatpush.bf16.msra.mxu0 %v1701_v32 }
  0x7f   : > { %470 = vst [vmem:[#allocation1 + $0x11] ss:$2 sm:$0xff] %v1426_v37  ;;  %v598_v37 = vpack.c.b16 %v597_v27, %v596_v25  ;;  %1200 = vmatpush.bf16.msra.mxu1 %v1709_v34  ;;  %1227 = vmatpush.bf16.msra.mxu3 %v1726_v36  ;;  %v218_v25 = vpack.c.bf16 %v1834_v9, %v1834_v9  ;;  %v1732_v27 = vld [vmem:[%s2190_s1 + $0x110] sm:$0xff] }
  0x80   : > { %v609_v41 = vunpack.c.l.b16 %v454_v39  ;;  %v1700_v39 = vld [vmem:[%s2190_s1 + $0x10] sm:$0xff]  ;;  %1215 = vmatpush.bf16.msra.mxu2 %v1716_v38  ;;  %v260_v9 = vpack.c.bf16 %v1842_v18, %v1842_v18  ;;  %v261_v38 = vpack.c.bf16 %v1846_v21, %v1846_v21  ;;  %v347_v18 = vpack.c.bf16 %v1875_v54, %v1875_v54  ;;  %v1731_v21 = vld [vmem:[%s2190_s1 + $0x108] sm:$0xff]  ;;  %v1730_v54 = vld [vmem:[%s2190_s1 + $0x100] sm:$0xff] }
  0x81   : > { %v544_v34 = vunpack.c.l.b16 %v218_v25 }
  0x82   : > { %v610_v42 = vpack.c.b16 %v609_v41, %v608_v40  ;;  %v1708_v40 = vld [vmem:[%s2190_s1 + $0x50] sm:$0xff]  ;;  %v1715_v41 = vld [vmem:[%s2190_s1 + $0x88] sm:$0xff]  ;;  %1187 = vmatpush.bf16.msra.mxu0 %v1700_v39 }
  0x83   : > { %1201 = vmatpush.bf16.msra.mxu1 %v1708_v40  ;;  %1228 = vmatpush.bf16.msra.mxu3 %v1725_v1  ;;  %v1740_v39 = vld [vmem:[%s2190_s1 + $0x150] sm:$0xff]  ;;  %v1747_v40 = vld [vmem:[%s2190_s1 + $0x188] sm:$0xff] }
  0x84   : > { %611 = vrot.lane.b32.xlu1 %v610_v42, %s1782_s21  ;;  %v1919_v45 = vld.sshfl [vmem:[#allocation1] sm:$0xff pattern:$0x75316420]  ;;  %1216 = vmatpush.bf16.msra.mxu2 %v1715_v41  ;;  %v1761_v41 = vld [vmem:[%s2190_s1 + $0x1f8] sm:$0xff] }
  0x85   : > { %486 = vst [vmem:[#allocation1] ss:$2 sm:$0xff] %v1427_v43  ;;  %v1699_v43 = vld [vmem:[%s2190_s1 + $0x8] sm:$0xff] }
  0x86   : > { %v1923_v48 = vld.sshfl [vmem:[#allocation1 + $0x10] sm:$0xff pattern:$0x75316420]  ;;  %488 = vst [vmem:[#allocation1 + $0x1] ss:$2 sm:$0xff] %v1428_v44  ;;  %v1707_v44 = vld [vmem:[%s2190_s1 + $0x48] sm:$0xff]  ;;  %1188 = vmatpush.bf16.msra.mxu0 %v1699_v43 }
  0x87   : > { %490 = vst [vmem:[#allocation1 + $0x10] ss:$2 sm:$0xff] %v1429_v46  ;;  %1202 = vmatpush.bf16.msra.mxu1 %v1707_v44  ;;  %v476_v1 = vpack.c.bf16 %v1923_v48, %v1923_v48  ;;  %v389_v48 = vpack.c.bf16 %v1889_v11, %v1889_v11 }
  0x88   : > { %492 = vst [vmem:[#allocation1 + $0x11] ss:$2 sm:$0xff] %v1430_v47  ;;  %1217 = vmatpush.bf16.msra.mxu2 %v1714_v52 }
  0x8a   : > { %1189 = vmatpush.bf16.msra.mxu0 %v1698_v55 }
  0x8c   : > { %1266 = vmatpush.bf16.msrb.mxu2 %v1753_v53  ;;  %v1760_v53 = vld [vmem:[%s2190_s1 + $0x1f0] sm:$0xff] }
  0x8d   : > { %v493_v60 = vld.sshfl [vmem:[#allocation1] sm:$0xff pattern:$0x75316420] }
  0x8e   : > { %v497_v62 = vpack.c.bf16 %v493_v60, %v493_v60  ;;  %507 = vst [vmem:[#allocation1] ss:$2 sm:$0xff] %v1431_v56  ;;  %v1745_v60 = vld [vmem:[%s2190_s1 + $0x178] sm:$0xff]  ;;  %1238 = vmatpush.bf16.msrb.mxu0 %v1737_v57  ;;  %v1738_v57 = vld [vmem:[%s2190_s1 + $0x140] sm:$0xff] }
  0x8f   : > { %v494_v2 = vld.sshfl [vmem:[#allocation1 + $0x10] sm:$0xff pattern:$0x75316420]  ;;  %509 = vst [vmem:[#allocation1 + $0x1] ss:$2 sm:$0xff] %v1432_v58  ;;  %v1706_v58 = vld [vmem:[%s2190_s1 + $0x40] sm:$0xff] }
  0x90   : > { %v498_v4 = vpack.c.bf16 %v494_v2, %v494_v2  ;;  %511 = vst [vmem:[#allocation1 + $0x10] ss:$2 sm:$0xff] %v1433_v59  ;;  %v620_v5 = vunpack.c.l.b16 %v497_v62  ;;  %v1736_v62 = vld [vmem:[%s2190_s1 + $0x130] sm:$0xff]  ;;  %1203 = vmatpush.bf16.msra.mxu1 %v1706_v58  ;;  %v1735_v2 = vld [vmem:[%s2190_s1 + $0x128] sm:$0xff] }
  0x91   : > { %513 = vst [vmem:[#allocation1 + $0x11] ss:$2 sm:$0xff] %v1434_v61  ;;  %v1752_v61 = vld [vmem:[%s2190_s1 + $0x1b0] sm:$0xff]  ;;  %v1759_v58 = vld [vmem:[%s2190_s1 + $0x1e8] sm:$0xff] }
  0x92   : > { %v621_v8 = vunpack.c.l.b16 %v498_v4  ;;  %1267 = vmatpush.bf16.msrb.mxu2 %v1752_v61  ;;  %1239 = vmatpush.bf16.msrb.mxu0 %v1736_v62  ;;  %v1750_v4 = vld [vmem:[%s2190_s1 + $0x1a0] sm:$0xff]  ;;  %v1757_v62 = vld [vmem:[%s2190_s1 + $0x1d8] sm:$0xff] }
  0x93   : > { %v1758_v61 = vld [vmem:[%s2190_s1 + $0x1e0] sm:$0xff] }
  0x94   : > { %v622_v17 = vpack.c.b16 %v621_v8, %v620_v5  ;;  %1252 = vmatpush.bf16.msrb.mxu1 %v1745_v60  ;;  %v1724_v5 = vld [vmem:[%s2190_s1 + $0xd0] sm:$0xff]  ;;  %v303_v8 = vpack.c.bf16 %v1858_v30, %v1858_v30  ;;  %v1723_v30 = vld [vmem:[%s2190_s1 + $0xc8] sm:$0xff] }
  0x95   : > { %1229 = vmatpush.bf16.msra.mxu3 %v1724_v5  ;;  %v432_v5 = vpack.c.bf16 %v1906_v26, %v1906_v26 }
  0x96   : > { %v1980_v23 = vld.sshfl [vmem:[#allocation1] sm:$0xff pattern:$0x75316420]  ;;  %623 = vrot.lane.b32.xlu2 %v622_v17, %s1782_s21  ;;  %1268 = vmatpush.bf16.msrb.mxu2 %v1751_v0  ;;  %v567_v15 = vunpack.c.l.b16 %v303_v8  ;;  %v1741_v17 = vld [vmem:[%s2190_s1 + $0x158] sm:$0xff]  ;;  %v475_v0 = vpack.c.bf16 %v1919_v45, %v1919_v45 }
  0x97   : > { %528 = vst [vmem:[#allocation1] ss:$2 sm:$0xff] %v1435_v19  ;;  %1240 = vmatpush.bf16.msrb.mxu0 %v1735_v2  ;;  %v1748_v19 = vld [vmem:[%s2190_s1 + $0x190] sm:$0xff]  ;;  %v1755_v2 = vld [vmem:[%s2190_s1 + $0x1c8] sm:$0xff]  ;;  %v1754_v45 = vld [vmem:[%s2190_s1 + $0x1c0] sm:$0xff]  ;;  %v518_v14 = vpack.c.bf16 %v1980_v23, %v1980_v23 }
  0x98   : > { %v1994_v35 = vld.sshfl [vmem:[#allocation1 + $0x10] sm:$0xff pattern:$0x75316420]  ;;  %530 = vst [vmem:[#allocation1 + $0x1] ss:$2 sm:$0xff] %v1436_v22  ;;  %1253 = vmatpush.bf16.msrb.mxu1 %v1744_v63  ;;  %v569_v22 = vpack.c.b16 %v568_v16, %v567_v15  ;;  %v591_v16 = vunpack.c.l.b16 %v389_v48 }
  0x99   : > { %532 = vst [vmem:[#allocation1 + $0x10] ss:$2 sm:$0xff] %v1437_v24  ;;  %1230 = vmatpush.bf16.msra.mxu3 %v1723_v30  ;;  %v217_v24 = vpack.c.bf16 %v1830_v6, %v1830_v6  ;;  %v1756_v63 = vld [vmem:[%s2190_s1 + $0x1d0] sm:$0xff] }
  0x9a   : > { %534 = vst [vmem:[#allocation1 + $0x11] ss:$2 sm:$0xff] %v1438_v31  ;;  %1269 = vmatpush.bf16.msrb.mxu2 %v1750_v4  ;;  %v616_v4 = vunpack.c.l.b16 %v476_v1 }
  0x9b   : > { %1241 = vmatpush.bf16.msrb.mxu0 %v1734_v7  ;;  %v543_v32 = vunpack.c.l.b16 %v217_v24  ;;  %v433_v7 = vpack.c.bf16 %v1910_v29, %v1910_v29  ;;  %v592_v29 = vunpack.c.l.b16 %v390_v10  ;;  %v627_v24 = vunpack.c.l.b16 %v518_v14 }
  0x9c   : > { %1254 = vmatpush.bf16.msrb.mxu1 %v1743_v3  ;;  %v615_v3 = vunpack.c.l.b16 %v475_v0 }
  0x9d   : > { %1231 = vmatpush.bf16.msra.mxu3 %v1722_v20  ;;  %v545_v36 = vpack.c.b16 %v544_v34, %v543_v32 }
  0x9e   : > { %599 = vrot.lane.b32.xlu2 %v598_v37, %s1782_s21  ;;  %1270 = vmatpush.bf16.msrb.mxu2 %v1749_v13  ;;  %v617_v8 = vpack.c.b16 %v616_v4, %v615_v3  ;;  %v604_v13 = vunpack.c.l.b16 %v433_v7 }
  0x9f   : > { %v535_v42 = vld.sshfl [vmem:[#allocation1] sm:$0xff pattern:$0x75316420]  ;;  %1242 = vmatpush.bf16.msrb.mxu0 %v1733_v33  ;;  %v593_v33 = vpack.c.b16 %v592_v29, %v591_v16 }
  0xa0   : > { %v539_v46 = vpack.c.bf16 %v535_v42, %v535_v42  ;;  %1255 = vmatpush.bf16.msrb.mxu1 %v1742_v12  ;;  %v346_v42 = vpack.c.bf16 %v1871_v49, %v1871_v49  ;;  %v1746_v49 = vld [vmem:[%s2190_s1 + $0x180] sm:$0xff]  ;;  %v603_v12 = vunpack.c.l.b16 %v432_v5 }
  0xa1   : > { %v536_v47 = vld.sshfl [vmem:[#allocation1 + $0x10] sm:$0xff pattern:$0x75316420]  ;;  %1280 = vmatpush.bf16.msrb.mxu3 %v1761_v41 }
  0xa2   : > { %v540_v50 = vpack.c.bf16 %v536_v47, %v536_v47  ;;  %v632_v51 = vunpack.c.l.b16 %v539_v46  ;;  %1271 = vmatpush.bf16.msrb.mxu2 %v1748_v19  ;;  %v579_v44 = vunpack.c.l.b16 %v346_v42  ;;  %v580_v46 = vunpack.c.l.b16 %v347_v18  ;;  %v1739_v47 = vld [vmem:[%s2190_s1 + $0x148] sm:$0xff] }
  0xa3   : > { %1243 = vmatpush.bf16.msrb.mxu0 %v1732_v27  ;;  %v605_v30 = vpack.c.b16 %v604_v13, %v603_v12 }
  0xa4   : > { %v633_v56 = vunpack.c.l.b16 %v540_v50  ;;  %1256 = vmatpush.bf16.msrb.mxu1 %v1741_v17  ;;  %v555_v50 = vunpack.c.l.b16 %v260_v9  ;;  %v581_v52 = vpack.c.b16 %v580_v46, %v579_v44 }
  0xa5   : > { %1281 = vmatpush.bf16.msrb.mxu3 %v1760_v53 }
  0xa6   : > { %v634_v59 = vpack.c.b16 %v633_v56, %v632_v51  ;;  %1272 = vmatpush.bf16.msrb.mxu2 %v1747_v40  ;;  %v556_v51 = vunpack.c.l.b16 %v261_v38 }
  0xa7   : > { %1244 = vmatpush.bf16.msrb.mxu0 %v1731_v21 }
  0xa8   : > { %635 = vrot.lane.b32.xlu0 %v634_v59, %s1782_s21  ;;  %1257 = vmatpush.bf16.msrb.mxu1 %v1740_v39  ;;  %v557_v56 = vpack.c.b16 %v556_v51, %v555_v50 }
  0xa9   : > { %1282 = vmatpush.bf16.msrb.mxu3 %v1759_v58 }
  0xaa   : > { %1273 = vmatpush.bf16.msrb.mxu2 %v1746_v49 }
  0xab   : > { %1245 = vmatpush.bf16.msrb.mxu0 %v1730_v54  ;;  %v1772_v54 = vld [vmem:[%s2191_s2] ss:$0 sm:$0xff] }
  0xac   : > { %1258 = vmatpush.bf16.msrb.mxu1 %v1739_v47 }
  0xad   : > { %1283 = vmatpush.bf16.msrb.mxu3 %v1758_v61 }
  0xb0   : > { %1259 = vmatpush.bf16.msrb.mxu1 %v1738_v57 }
  0xb1   : > { %1284 = vmatpush.bf16.msrb.mxu3 %v1757_v62 }
  0xb5   : > { %1285 = vmatpush.bf16.msrb.mxu3 %v1756_v63 }
  0xb9   : > { %1286 = vmatpush.bf16.msrb.mxu3 %v1755_v2 }
  0xbd   : > { %1287 = vmatpush.bf16.msrb.mxu3 %v1754_v45 }
  0xc0   : > { %v576_v28 = vpop.permute.xlu0 %575 }
  0xc1   : > { %v648_v31 = vsel %vm637_vm0, %v569_v22, %v576_v28  ;;  %v519_v22 = vpack.c.bf16 %v1994_v35, %v1994_v35 }
  0xc2   : > { %1218 = vmatmul.bf16.vlgmr.msra.gmra.mxu2 %v648_v31 }
  0xc3   : > { %v628_v25 = vunpack.c.l.b16 %v519_v22 }
  0xc5   : > { %v629_v27 = vpack.c.b16 %v628_v25, %v627_v24 }
  0xc8   : > { %v552_v6 = vpop.permute.xlu0 %551 }
  0xc9   : > { %v640_v37 = vsel %vm637_vm0, %v545_v36, %v552_v6 }
  0xca   : > { %1190 = vmatmul.bf16.vlgmr.msra.gmra.mxu0 %v640_v37 }
  0xd2   : > { %v588_v43 = vpop.permute.xlu1 %587 }
  0xd3   : > { %v652_v55 = vsel %vm637_vm0, %v581_v52, %v588_v43 }
  0xd4   : > { %1232 = vmatmul.bf16.vlgmr.msra.gmra.mxu3 %v652_v55 }
  0xda   : > { %v564_v59 = vpop.permute.xlu1 %563 }
  0xdb   : > { %v644_v60 = vsel %vm637_vm0, %v557_v56, %v564_v59  ;;  %v1773_v56 = vld [vmem:[%s2192_s3] ss:$0 sm:$0xff] }
  0xdc   : > { %1204 = vmatmul.bf16.vlgmr.msra.gmra.mxu1 %v644_v60 }
  0xf0   : > { %v624_v15 = vpop.permute.xlu2 %623 }
  0xf1   : > { %v664_v26 = vsel %vm637_vm0, %v617_v8, %v624_v15 }
  0xf2   : > { %1274 = vmatmul.bf16.vlgmr.msrb.gmra.mxu2 %v664_v26 }
  0xf6   : > { %v612_v17 = vpop.permute.xlu1 %611 }
  0xf7   : > { %v660_v19 = vsel %vm637_vm0, %v605_v30, %v612_v17 }
  0xf8   : > { %v600_v20 = vpop.permute.xlu2 %599  ;;  %1260 = vmatmul.bf16.vlgmr.msrb.gmra.mxu1 %v660_v19 }
  0xf9   : > { %v656_v11 = vsel %vm637_vm0, %v593_v33, %v600_v20 }
  0xfa   : > { %1246 = vmatmul.bf16.vlgmr.msrb.gmra.mxu0 %v656_v11 }
 0x11a   : > { %v636_v28 = vpop.permute.xlu0 %635 }
 0x11b   : > { %v668_v31 = vsel %vm637_vm0, %v629_v27, %v636_v28 }
 0x11c   : > { %1288 = vmatmul.bf16.vlgmr.msrb.gmra.mxu3 %v668_v31 }
 0x145   : > { %v1219_v36 = vpop.f32.mrf.mxu2 }
 0x147   : > { %v1191_v32 = vpop.f32.mrf.mxu0 }
 0x14d   : > { %v1221_v40 = vpop.f32.mrf.mxu2 }
 0x14f   : > { %v1193_v6 = vpop.f32.mrf.mxu0 }
 0x157   : > { %v1233_v38 = vpop.f32.mrf.mxu3 }
 0x159   : > { %v1205_v34 = vpop.f32.mrf.mxu1 }
 0x15a   : > { %v1206_v37 = vadd.f32 %v1205_v34, %v1191_v32 }
 0x15c   : > { %v1220_v39 = vadd.f32 %v1219_v36, %v1206_v37 }
 0x15e   : > { %v1234_v42 = vadd.f32 %v1233_v38, %v1220_v39 }
 0x15f   : > { %v1235_v43 = vpop.f32.mrf.mxu3 }
 0x161   : > { %v1207_v9 = vpop.f32.mrf.mxu1 }
 0x162   : > { %v1208_v41 = vadd.f32 %v1207_v9, %v1193_v6 }
 0x164   : > { %v1222_v18 = vadd.f32 %v1221_v40, %v1208_v41 }
 0x166   : > { %v1236_v47 = vadd.f32 %v1235_v43, %v1222_v18 }
 0x175   : > { %v1261_v35 = vpop.f32.mrf.mxu1  ;;  %v1275_v44 = vpop.f32.mrf.mxu2 }
 0x177   : > { %v1247_v23 = vpop.f32.mrf.mxu0 }
 0x178   : > { %v1248_v21 = vadd.f32 %v1247_v23, %v1234_v42 }
 0x17a   : > { %v1262_v46 = vadd.f32 %v1261_v35, %v1248_v21 }
 0x17c   : > { %v1276_v50 = vadd.f32 %v1275_v44, %v1262_v46 }
 0x17d   : > { %v1263_v52 = vpop.f32.mrf.mxu1  ;;  %v1277_v59 = vpop.f32.mrf.mxu2 }
 0x17f   : > { %v1249_v49 = vpop.f32.mrf.mxu0 }
 0x180   : > { %v1250_v51 = vadd.f32 %v1249_v49, %v1236_v47 }
 0x182   : > { %v1264_v57 = vadd.f32 %v1263_v52, %v1250_v51 }
 0x184   : > { %v1278_v61 = vadd.f32 %v1277_v59, %v1264_v57 }
 0x19f   : > { %v1289_v53 = vpop.f32.mrf.mxu3 }
 0x1a0   : > { %v1290_v55 = vadd.f32 %v1289_v53, %v1276_v50 }
 0x1a2   : > { %v1298_v58 = vmul.f32 %v1772_v54, %v1290_v55 }
 0x1a4   : > { %v1304_v60 = vadd.f32 %v1773_v56, %v1298_v58 }
 0x1a6   : > { %v1306_v62 = vmul.f32 0.2, %v1304_v60 }
 0x1a7   : > { %v1291_v63 = vpop.f32.mrf.mxu3 }
 0x1a8   : > { %v1308_v0 = vmax.f32 %v1304_v60, %v1306_v62  ;;  %v1292_v1 = vadd.f32 %v1291_v63, %v1278_v61 }
 0x1aa   : > { %v1312_v2 = vrot.slane %v1308_v0, 4  ;;  %1316 = vst [vmem:[%s197_s13] sm:$0xf] %v1308_v0  ;;  %v1299_v3 = vmul.f32 %v1772_v54, %v1292_v1 }
 0x1ac   : > { %1317 = vst [vmem:[%s197_s13 + $0x4] sm:$0xf] %v1312_v2  ;;  %v1305_v4 = vadd.f32 %v1773_v56, %v1299_v3 }
 0x1ae   : > { %v1307_v5 = vmul.f32 0.2, %v1305_v4 }
 0x1b0   : > { %v1309_v7 = vmax.f32 %v1305_v4, %v1307_v5 }
 0x1b2   : > { %v1313_v45 = vrot.slane %v1309_v7, 4  ;;  %1318 = vst [vmem:[%s197_s13 + $0x8] sm:$0xf] %v1309_v7 }
 0x1b4   : > { %1319 = vst [vmem:[%s197_s13 + $0xc] sm:$0xf] %v1313_v45 }
 0x1b5 PF: > { %s14_s15 = sadd.s32 1, %s1780_s15  }
 0x1b6   : > { %p11_p4 = scmp.ge.s32.totalorder %s14_s15, 4  }
 0x1b8   :  { %13 = sbr.rel (!%p11_p4) target bundleno = 1 (0x1), region = 121 }

// kernel: discriminator_forward.8
= control target key start
LH: loop header
LB: loop body
LE: loop exit
PB: predicated region body
PF: predicated region fallthrough
CT: control target
= control target key end

     0   :  { %s3765_s15 = smov 0   ;;  %s5436_s0 = inlined_call_operand.vmem [shape: f32[2,4,3,3,128], index: 0, kind: input, shape index: {}]   ;;  %s5437_s1 = inlined_call_operand.vmem [shape: bf16[2048,256], index: 1, kind: input, shape index: {}]   ;;  %s5438_s2 = inlined_call_operand.vmem [shape: f32[1,256], index: 2, kind: input, shape index: {}]   ;;  %s5439_s3 = inlined_call_operand.vmem [shape: f32[1,256], index: 3, kind: input, shape index: {}]   ;;  %s5440_s4 = inlined_call_operand.vmem [shape: f32[2,2,2,256], index: 4, kind: output, shape index: {}]  }
   0x1 LB: > { %s2404_s16 = sadd.s32 4294967295, %s3738_s15   ;;  %p2408_p0 = scmp.ge.s32.totalorder %s3738_s15, 1  ;;  %s3738_s15 = sphi %s3765_s15, %s14_s15  }
   0x2   : > { %p162_p1 = scmp.lt.s32.totalorder %s3738_s15, 3 }
   0x4   : > { %p163_p2 = pnand %p2408_p0, %p162_p1 }
   0x5   : > { %p188_p3 = scmp.lt.s32.totalorder (!%p163_p2), %s2404_s16, 1 }
   0x6   : > { %166 = sbr.rel (%p163_p2) target bundleno = 435 (0x1b3), region = 36 }
   0xb   : > { %v2498_v0 = vld [vmem:[%s5437_s1 + $0x70] sm:$0xf]  ;;  %v3482_v1 = vld [vmem:[%s5437_s1 + $0x74] sm:$0xf0]  ;;  %v2490_v11 = vld [vmem:[%s5437_s1 + $0x60] sm:$0xf] }
   0xc   : > { %v2562_v2 = vld [vmem:[%s5437_s1 + $0xf0] sm:$0xf]  ;;  %v2499_v3 = vor.u32 %v3482_v1, %v2498_v0  ;;  %v3498_v4 = vld [vmem:[%s5437_s1 + $0xf4] sm:$0xf0]  ;;  %v3480_v13 = vld [vmem:[%s5437_s1 + $0x64] sm:$0xf0] }
   0xd   : > { %v2626_v5 = vld [vmem:[%s5437_s1 + $0x170] sm:$0xf]  ;;  %v3514_v6 = vld [vmem:[%s5437_s1 + $0x174] sm:$0xf0]  ;;  %v2563_v7 = vor.u32 %v3498_v4, %v2562_v2  ;;  %v2554_v14 = vld [vmem:[%s5437_s1 + $0xe0] sm:$0xf]  ;;  %v2491_v16 = vor.u32 %v3480_v13, %v2490_v11 }
   0xe   : > { %v2627_v8 = vor.u32 %v3514_v6, %v2626_v5  ;;  %v2690_v9 = vld [vmem:[%s5437_s1 + $0x1f0] sm:$0xf]  ;;  %v3530_v10 = vld [vmem:[%s5437_s1 + $0x1f4] sm:$0xf0]  ;;  %1901 = vmatpush.bf16.msra.mxu0 %v2499_v3  ;;  %v3496_v15 = vld [vmem:[%s5437_s1 + $0xe4] sm:$0xf0] }
   0xf   : > { %v2691_v12 = vor.u32 %v3530_v10, %v2690_v9  ;;  %1914 = vmatpush.bf16.msra.mxu1 %v2563_v7  ;;  %v2555_v17 = vor.u32 %v3496_v15, %v2554_v14  ;;  %v2618_v18 = vld [vmem:[%s5437_s1 + $0x160] sm:$0xf]  ;;  %v3512_v19 = vld [vmem:[%s5437_s1 + $0x164] sm:$0xf0]  ;;  %v2482_v23 = vld [vmem:[%s5437_s1 + $0x50] sm:$0xf] }
  0x10   : > { %1927 = vmatpush.bf16.msra.mxu2 %v2627_v8  ;;  %v2682_v20 = vld [vmem:[%s5437_s1 + $0x1e0] sm:$0xf]  ;;  %v2619_v21 = vor.u32 %v3512_v19, %v2618_v18  ;;  %v3528_v22 = vld [vmem:[%s5437_s1 + $0x1e4] sm:$0xf0]  ;;  %v3478_v24 = vld [vmem:[%s5437_s1 + $0x54] sm:$0xf0] }
  0x11   : > { %1940 = vmatpush.bf16.msra.mxu3 %v2691_v12  ;;  %v2683_v25 = vor.u32 %v3528_v22, %v2682_v20  ;;  %v2546_v26 = vld [vmem:[%s5437_s1 + $0xd0] sm:$0xf]  ;;  %v3494_v27 = vld [vmem:[%s5437_s1 + $0xd4] sm:$0xf0]  ;;  %v2483_v29 = vor.u32 %v3478_v24, %v2482_v23  ;;  %v2474_v35 = vld [vmem:[%s5437_s1 + $0x40] sm:$0xf] }
  0x12   : > { %v2610_v28 = vld [vmem:[%s5437_s1 + $0x150] sm:$0xf]  ;;  %1902 = vmatpush.bf16.msra.mxu0 %v2491_v16  ;;  %v3510_v30 = vld [vmem:[%s5437_s1 + $0x154] sm:$0xf0]  ;;  %v2547_v33 = vor.u32 %v3494_v27, %v2546_v26  ;;  %v3476_v36 = vld [vmem:[%s5437_s1 + $0x44] sm:$0xf0] }
  0x13   : > { %v2674_v31 = vld [vmem:[%s5437_s1 + $0x1d0] sm:$0xf]  ;;  %v3526_v32 = vld [vmem:[%s5437_s1 + $0x1d4] sm:$0xf0]  ;;  %1915 = vmatpush.bf16.msra.mxu1 %v2555_v17  ;;  %v2611_v34 = vor.u32 %v3510_v30, %v2610_v28  ;;  %v2538_v37 = vld [vmem:[%s5437_s1 + $0xc0] sm:$0xf]  ;;  %v2475_v44 = vor.u32 %v3476_v36, %v2474_v35 }
  0x14   : > { %1928 = vmatpush.bf16.msra.mxu2 %v2619_v21  ;;  %v2675_v38 = vor.u32 %v3526_v32, %v2674_v31  ;;  %v3492_v39 = vld [vmem:[%s5437_s1 + $0xc4] sm:$0xf0]  ;;  %v2602_v40 = vld [vmem:[%s5437_s1 + $0x140] sm:$0xf]  ;;  %v2466_v47 = vld [vmem:[%s5437_s1 + $0x30] sm:$0xf] }
  0x15   : > { %1941 = vmatpush.bf16.msra.mxu3 %v2683_v25  ;;  %v3508_v41 = vld [vmem:[%s5437_s1 + $0x144] sm:$0xf0]  ;;  %v2666_v42 = vld [vmem:[%s5437_s1 + $0x1c0] sm:$0xf]  ;;  %v2539_v45 = vor.u32 %v3492_v39, %v2538_v37  ;;  %v3474_v48 = vld [vmem:[%s5437_s1 + $0x34] sm:$0xf0] }
  0x16   : > { %v3524_v43 = vld [vmem:[%s5437_s1 + $0x1c4] sm:$0xf0]  ;;  %1903 = vmatpush.bf16.msra.mxu0 %v2483_v29  ;;  %v2603_v46 = vor.u32 %v3508_v41, %v2602_v40  ;;  %v2530_v49 = vld [vmem:[%s5437_s1 + $0xb0] sm:$0xf]  ;;  %v3490_v51 = vld [vmem:[%s5437_s1 + $0xb4] sm:$0xf0]  ;;  %v2467_v56 = vor.u32 %v3474_v48, %v2466_v47 }
  0x17   : > { %1916 = vmatpush.bf16.msra.mxu1 %v2547_v33  ;;  %v2667_v50 = vor.u32 %v3524_v43, %v2666_v42  ;;  %v2594_v52 = vld [vmem:[%s5437_s1 + $0x130] sm:$0xf]  ;;  %v3506_v53 = vld [vmem:[%s5437_s1 + $0x134] sm:$0xf0]  ;;  %v2531_v57 = vor.u32 %v3490_v51, %v2530_v49  ;;  %v2458_v59 = vld [vmem:[%s5437_s1 + $0x20] sm:$0xf] }
  0x18   : > { %1929 = vmatpush.bf16.msra.mxu2 %v2611_v34  ;;  %v2658_v54 = vld [vmem:[%s5437_s1 + $0x1b0] sm:$0xf]  ;;  %v3522_v55 = vld [vmem:[%s5437_s1 + $0x1b4] sm:$0xf0]  ;;  %v2595_v58 = vor.u32 %v3506_v53, %v2594_v52  ;;  %v3472_v60 = vld [vmem:[%s5437_s1 + $0x24] sm:$0xf0] }
  0x19   : > { %1942 = vmatpush.bf16.msra.mxu3 %v2675_v38  ;;  %v2522_v61 = vld [vmem:[%s5437_s1 + $0xa0] sm:$0xf]  ;;  %v2659_v62 = vor.u32 %v3522_v55, %v2658_v54  ;;  %v3488_v63 = vld [vmem:[%s5437_s1 + $0xa4] sm:$0xf0]  ;;  %v2459_v4 = vor.u32 %v3472_v60, %v2458_v59  ;;  %v2450_v7 = vld [vmem:[%s5437_s1 + $0x10] sm:$0xf] }
  0x1a   : > { %1904 = vmatpush.bf16.msra.mxu0 %v2475_v44  ;;  %v2586_v0 = vld [vmem:[%s5437_s1 + $0x120] sm:$0xf]  ;;  %v3504_v1 = vld [vmem:[%s5437_s1 + $0x124] sm:$0xf0]  ;;  %v2523_v5 = vor.u32 %v3488_v63, %v2522_v61  ;;  %v3470_v8 = vld [vmem:[%s5437_s1 + $0x14] sm:$0xf0] }
  0x1b   : > { %1917 = vmatpush.bf16.msra.mxu1 %v2539_v45  ;;  %v2650_v2 = vld [vmem:[%s5437_s1 + $0x1a0] sm:$0xf]  ;;  %v3520_v3 = vld [vmem:[%s5437_s1 + $0x1a4] sm:$0xf0]  ;;  %v2587_v6 = vor.u32 %v3504_v1, %v2586_v0  ;;  %v2514_v9 = vld [vmem:[%s5437_s1 + $0x90] sm:$0xf]  ;;  %v2451_v16 = vor.u32 %v3470_v8, %v2450_v7 }
  0x1c   : > { %1930 = vmatpush.bf16.msra.mxu2 %v2603_v46  ;;  %v2651_v10 = vor.u32 %v3520_v3, %v2650_v2  ;;  %v3486_v11 = vld [vmem:[%s5437_s1 + $0x94] sm:$0xf0]  ;;  %v2578_v12 = vld [vmem:[%s5437_s1 + $0x110] sm:$0xf]  ;;  %v2442_v17 = vld [vmem:[%s5437_s1] sm:$0xf] }
  0x1d   : > { %1943 = vmatpush.bf16.msra.mxu3 %v2667_v50  ;;  %v3502_v13 = vld [vmem:[%s5437_s1 + $0x114] sm:$0xf0]  ;;  %v2642_v14 = vld [vmem:[%s5437_s1 + $0x190] sm:$0xf]  ;;  %v3468_v18 = vld [vmem:[%s5437_s1 + $0x4] sm:$0xf0]  ;;  %v2515_v19 = vor.u32 %v3486_v11, %v2514_v9 }
  0x1e   : > { %1905 = vmatpush.bf16.msra.mxu0 %v2467_v56  ;;  %v3518_v15 = vld [vmem:[%s5437_s1 + $0x194] sm:$0xf0]  ;;  %v2579_v20 = vor.u32 %v3502_v13, %v2578_v12  ;;  %v2506_v21 = vld [vmem:[%s5437_s1 + $0x80] sm:$0xf]  ;;  %v3484_v22 = vld [vmem:[%s5437_s1 + $0x84] sm:$0xf0]  ;;  %v2443_v31 = vor.u32 %v3468_v18, %v2442_v17 }
  0x1f   : > { %1918 = vmatpush.bf16.msra.mxu1 %v2531_v57  ;;  %v2570_v23 = vld [vmem:[%s5437_s1 + $0x100] sm:$0xf]  ;;  %v2643_v24 = vor.u32 %v3518_v15, %v2642_v14  ;;  %v3500_v25 = vld [vmem:[%s5437_s1 + $0x104] sm:$0xf0]  ;;  %v2754_v28 = vld [vmem:[%s5437_s1 + $0x270] sm:$0xf]  ;;  %v2507_v35 = vor.u32 %v3484_v22, %v2506_v21 }
  0x20   : > { %1931 = vmatpush.bf16.msra.mxu2 %v2595_v58  ;;  %v2634_v26 = vld [vmem:[%s5437_s1 + $0x180] sm:$0xf]  ;;  %v3516_v27 = vld [vmem:[%s5437_s1 + $0x184] sm:$0xf0]  ;;  %v3546_v29 = vld [vmem:[%s5437_s1 + $0x274] sm:$0xf0]  ;;  %v2571_v36 = vor.u32 %v3500_v25, %v2570_v23 }
  0x21   : > { %1944 = vmatpush.bf16.msra.mxu3 %v2659_v62  ;;  %v2818_v30 = vld [vmem:[%s5437_s1 + $0x2f0] sm:$0xf]  ;;  %v3562_v32 = vld [vmem:[%s5437_s1 + $0x2f4] sm:$0xf0]  ;;  %v2635_v39 = vor.u32 %v3516_v27, %v2634_v26  ;;  %v2755_v40 = vor.u32 %v3546_v29, %v2754_v28  ;;  %v2746_v43 = vld [vmem:[%s5437_s1 + $0x260] sm:$0xf] }
  0x22   : > { %1906 = vmatpush.bf16.msra.mxu0 %v2459_v4  ;;  %v2882_v33 = vld [vmem:[%s5437_s1 + $0x370] sm:$0xf]  ;;  %v3578_v34 = vld [vmem:[%s5437_s1 + $0x374] sm:$0xf0]  ;;  %v2819_v41 = vor.u32 %v3562_v32, %v2818_v30  ;;  %v3544_v44 = vld [vmem:[%s5437_s1 + $0x264] sm:$0xf0] }
  0x23   : > { %1919 = vmatpush.bf16.msra.mxu1 %v2523_v5  ;;  %v2946_v37 = vld [vmem:[%s5437_s1 + $0x3f0] sm:$0xf]  ;;  %v3594_v38 = vld [vmem:[%s5437_s1 + $0x3f4] sm:$0xf0]  ;;  %v2883_v42 = vor.u32 %v3578_v34, %v2882_v33  ;;  %v2810_v45 = vld [vmem:[%s5437_s1 + $0x2e0] sm:$0xf]  ;;  %v2747_v52 = vor.u32 %v3544_v44, %v2746_v43 }
  0x24   : > { %1932 = vmatpush.bf16.msra.mxu2 %v2587_v6  ;;  %v2947_v46 = vor.u32 %v3594_v38, %v2946_v37  ;;  %v3560_v47 = vld [vmem:[%s5437_s1 + $0x2e4] sm:$0xf0]  ;;  %v2874_v48 = vld [vmem:[%s5437_s1 + $0x360] sm:$0xf]  ;;  %v2738_v53 = vld [vmem:[%s5437_s1 + $0x250] sm:$0xf] }
  0x25   : > { %1945 = vmatpush.bf16.msra.mxu3 %v2651_v10  ;;  %v3576_v49 = vld [vmem:[%s5437_s1 + $0x364] sm:$0xf0]  ;;  %v2938_v50 = vld [vmem:[%s5437_s1 + $0x3e0] sm:$0xf]  ;;  %v2811_v54 = vor.u32 %v3560_v47, %v2810_v45  ;;  %v3542_v56 = vld [vmem:[%s5437_s1 + $0x254] sm:$0xf0] }
  0x26   : > { %1907 = vmatpush.bf16.msra.mxu0 %v2451_v16  ;;  %v3592_v51 = vld [vmem:[%s5437_s1 + $0x3e4] sm:$0xf0]  ;;  %v2875_v55 = vor.u32 %v3576_v49, %v2874_v48  ;;  %v2802_v57 = vld [vmem:[%s5437_s1 + $0x2d0] sm:$0xf]  ;;  %v3558_v59 = vld [vmem:[%s5437_s1 + $0x2d4] sm:$0xf0]  ;;  %v2739_v0 = vor.u32 %v3542_v56, %v2738_v53 }
  0x27   : > { %1920 = vmatpush.bf16.msra.mxu1 %v2515_v19  ;;  %v2939_v58 = vor.u32 %v3592_v51, %v2938_v50  ;;  %v2866_v60 = vld [vmem:[%s5437_s1 + $0x350] sm:$0xf]  ;;  %v3574_v61 = vld [vmem:[%s5437_s1 + $0x354] sm:$0xf0]  ;;  %s5442_s16 = smov (!%p188_p3, %s2404_s16), 1  ;;  %v2803_v2 = vor.u32 %v3558_v59, %v2802_v57  ;;  %vm2340_vm0 = vcmask 1041408  }
  0x28   : > { %1933 = vmatpush.bf16.msra.mxu2 %v2579_v20  ;;  %v2930_v62 = vld [vmem:[%s5437_s1 + $0x3d0] sm:$0xf]  ;;  %v3590_v63 = vld [vmem:[%s5437_s1 + $0x3d4] sm:$0xf0]  ;;  %v2730_v1 = vld [vmem:[%s5437_s1 + $0x240] sm:$0xf]  ;;  %v2867_v3 = vor.u32 %v3574_v61, %v2866_v60 }
  0x29   : > { %1946 = vmatpush.bf16.msra.mxu3 %v2643_v24  ;;  %v3540_v4 = vld [vmem:[%s5437_s1 + $0x244] sm:$0xf0]  ;;  %v2794_v5 = vld [vmem:[%s5437_s1 + $0x2c0] sm:$0xf]  ;;  %s3723_s5 = smul.u32 48, %s5442_s16  ;;  %v2931_v6 = vor.u32 %v3590_v63, %v2930_v62  ;;  %s3466_s11 = sshll.u32 %s5442_s16, 3 }
  0x2a   : > { %1908 = vmatpush.bf16.msra.mxu0 %v2443_v31  ;;  %v3556_v7 = vld [vmem:[%s5437_s1 + $0x2c4] sm:$0xf0]  ;;  %v2858_v8 = vld [vmem:[%s5437_s1 + $0x340] sm:$0xf]  ;;  %v2722_v12 = vld [vmem:[%s5437_s1 + $0x230] sm:$0xf]  ;;  %v2731_v13 = vor.u32 %v3540_v4, %v2730_v1  ;;  %s197_s14 = scalar_lea.vmem %s5440_s4, %s3466_s11 }
  0x2b   : > { %1921 = vmatpush.bf16.msra.mxu1 %v2507_v35  ;;  %v3572_v9 = vld [vmem:[%s5437_s1 + $0x344] sm:$0xf0]  ;;  %v2922_v10 = vld [vmem:[%s5437_s1 + $0x3c0] sm:$0xf]  ;;  %s4074_s22 = scalar_lea.vmem %s5436_s0, %s3723_s5  ;;  %v3538_v14 = vld [vmem:[%s5437_s1 + $0x234] sm:$0xf0]  ;;  %v2795_v17 = vor.u32 %v3556_v7, %v2794_v5 }
  0x2c   : > { %1934 = vmatpush.bf16.msra.mxu2 %v2571_v36  ;;  %v3588_v11 = vld [vmem:[%s5437_s1 + $0x3c4] sm:$0xf0]  ;;  %v198_v15 = vld [vmem:[%s4074_s22] sm:$0x3]  ;;  %v199_v16 = vld [vmem:[%s4074_s22 + $0x4] sm:$0x3]  ;;  %v2859_v18 = vor.u32 %v3572_v9, %v2858_v8  ;;  %v2723_v26 = vor.u32 %v3538_v14, %v2722_v12 }
  0x2d   : > { %1947 = vmatpush.bf16.msra.mxu3 %v2635_v39  ;;  %v2786_v19 = vld [vmem:[%s5437_s1 + $0x2b0] sm:$0xf]  ;;  %v3554_v20 = vld [vmem:[%s5437_s1 + $0x2b4] sm:$0xf0]  ;;  %202 = vst [vmem:[#allocation1] ss:$4 sm:$0xff] %v198_v15  ;;  %v2923_v21 = vor.u32 %v3588_v11, %v2922_v10 }
  0x2e   : > { %1953 = vmatpush.bf16.msrb.mxu0 %v2755_v40  ;;  %v2850_v22 = vld [vmem:[%s5437_s1 + $0x330] sm:$0xf]  ;;  %v3570_v23 = vld [vmem:[%s5437_s1 + $0x334] sm:$0xf0]  ;;  %204 = vst [vmem:[#allocation1 + $0x1] ss:$4 sm:$0xff] %v199_v16  ;;  %v2787_v28 = vor.u32 %v3554_v20, %v2786_v19 }
  0x2f   : > { %1966 = vmatpush.bf16.msrb.mxu1 %v2819_v41  ;;  %v2914_v24 = vld [vmem:[%s5437_s1 + $0x3b0] sm:$0xf]  ;;  %v3586_v25 = vld [vmem:[%s5437_s1 + $0x3b4] sm:$0xf0]  ;;  %v2714_v27 = vld [vmem:[%s5437_s1 + $0x220] sm:$0xf]  ;;  %v2851_v29 = vor.u32 %v3570_v23, %v2850_v22 }
  0x30   : > { %1979 = vmatpush.bf16.msrb.mxu2 %v2883_v42  ;;  %v3536_v30 = vld [vmem:[%s5437_s1 + $0x224] sm:$0xf0]  ;;  %v2778_v31 = vld [vmem:[%s5437_s1 + $0x2a0] sm:$0xf]  ;;  %v2915_v33 = vor.u32 %v3586_v25, %v2914_v24  ;;  %v2412_v34 = vld [vmem:[%s4074_s22 + $0xc] sm:$0x3] }
  0x31   : > { %1992 = vmatpush.bf16.msrb.mxu3 %v2947_v46  ;;  %v3552_v32 = vld [vmem:[%s5437_s1 + $0x2a4] sm:$0xf0]  ;;  %v2842_v35 = vld [vmem:[%s5437_s1 + $0x320] sm:$0xf]  ;;  %v2413_v37 = vld [vmem:[%s4074_s22 + $0x10] sm:$0x3]  ;;  %v2715_v40 = vor.u32 %v3536_v30, %v2714_v27 }
  0x32   : > { %1954 = vmatpush.bf16.msrb.mxu0 %v2747_v52  ;;  %v3568_v36 = vld [vmem:[%s5437_s1 + $0x324] sm:$0xf0]  ;;  %v2906_v38 = vld [vmem:[%s5437_s1 + $0x3a0] sm:$0xf]  ;;  %v2706_v41 = vld [vmem:[%s5437_s1 + $0x210] sm:$0xf]  ;;  %v2779_v45 = vor.u32 %v3552_v32, %v2778_v31 }
  0x33   : > { %1967 = vmatpush.bf16.msrb.mxu1 %v2811_v54  ;;  %v3584_v39 = vld [vmem:[%s5437_s1 + $0x3a4] sm:$0xf0]  ;;  %v3534_v42 = vld [vmem:[%s5437_s1 + $0x214] sm:$0xf0]  ;;  %v2770_v43 = vld [vmem:[%s5437_s1 + $0x290] sm:$0xf]  ;;  %v2843_v46 = vor.u32 %v3568_v36, %v2842_v35 }
  0x34   : > { %1980 = vmatpush.bf16.msrb.mxu2 %v2875_v55  ;;  %v3550_v47 = vld [vmem:[%s5437_s1 + $0x294] sm:$0xf0]  ;;  %v2907_v48 = vor.u32 %v3584_v39, %v2906_v38  ;;  %v2834_v50 = vld [vmem:[%s5437_s1 + $0x310] sm:$0xf]  ;;  %v2707_v54 = vor.u32 %v3534_v42, %v2706_v41  ;;  %v2698_v57 = vld [vmem:[%s5437_s1 + $0x200] sm:$0xf] }
  0x35   : > { %1993 = vmatpush.bf16.msrb.mxu3 %v2939_v58  ;;  %v205_v44 = vld.sshfl [vmem:[#allocation1] sm:$0xff pattern:$0x73625140]  ;;  %v3566_v51 = vld [vmem:[%s5437_s1 + $0x314] sm:$0xf0]  ;;  %v2771_v55 = vor.u32 %v3550_v47, %v2770_v43  ;;  %vm2342_vm1 = vcmask 1043458  }
  0x36   : > { %1955 = vmatpush.bf16.msrb.mxu0 %v2739_v0  ;;  %213 = vst [vmem:[#allocation1] ss:$4 sm:$0xff] %v2412_v34  ;;  %v4137_v49 = vpack.c.bf16 %v205_v44, %v205_v44  ;;  %v2898_v52 = vld [vmem:[%s5437_s1 + $0x390] sm:$0xf]  ;;  %v3582_v53 = vld [vmem:[%s5437_s1 + $0x394] sm:$0xf0]  ;;  %v2835_v56 = vor.u32 %v3566_v51, %v2834_v50 }
  0x37   : > { %1968 = vmatpush.bf16.msrb.mxu1 %v2803_v2  ;;  %215 = vst [vmem:[#allocation1 + $0x1] ss:$4 sm:$0xff] %v2413_v37  ;;  %v3532_v58 = vld [vmem:[%s5437_s1 + $0x204] sm:$0xf0]  ;;  %v2762_v59 = vld [vmem:[%s5437_s1 + $0x280] sm:$0xf]  ;;  %v2899_v61 = vor.u32 %v3582_v53, %v2898_v52 }
  0x38   : > { %1981 = vmatpush.bf16.msrb.mxu2 %v2867_v3  ;;  %v219_v60 = vld [vmem:[%s4074_s22 + $0x1] sm:$0x3]  ;;  %1909 = vmatmul.bf16.vlgmr.msra.gmra.mxu0 %v4137_v49  ;;  %v3548_v62 = vld [vmem:[%s5437_s1 + $0x284] sm:$0xf0]  ;;  %v3010_v3 = vld [vmem:[%s5437_s1 + $0x470] sm:$0xf]  ;;  %v2699_v4 = vor.u32 %v3532_v58, %v2698_v57 }
  0x39   : > { %1994 = vmatpush.bf16.msrb.mxu3 %v2931_v6  ;;  %v2826_v63 = vld [vmem:[%s5437_s1 + $0x300] sm:$0xf]  ;;  %v3564_v0 = vld [vmem:[%s5437_s1 + $0x304] sm:$0xf0]  ;;  %v3610_v5 = vld [vmem:[%s5437_s1 + $0x474] sm:$0xf0]  ;;  %v2763_v11 = vor.u32 %v3548_v62, %v2762_v59 }
  0x3a   : > { %1956 = vmatpush.bf16.msrb.mxu0 %v2731_v13  ;;  %v2890_v1 = vld [vmem:[%s5437_s1 + $0x380] sm:$0xf]  ;;  %v3580_v2 = vld [vmem:[%s5437_s1 + $0x384] sm:$0xf0]  ;;  %v3074_v6 = vld [vmem:[%s5437_s1 + $0x4f0] sm:$0xf]  ;;  %v2827_v9 = vor.u32 %v3564_v0, %v2826_v63  ;;  %v3011_v14 = vor.u32 %v3610_v5, %v3010_v3 }
  0x3b   : > { %1969 = vmatpush.bf16.msrb.mxu1 %v2795_v17  ;;  %v3626_v7 = vld [vmem:[%s5437_s1 + $0x4f4] sm:$0xf0]  ;;  %v220_v8 = vld [vmem:[%s4074_s22 + $0x5] sm:$0x3]  ;;  %v2891_v12 = vor.u32 %v3580_v2, %v2890_v1  ;;  %v3002_v16 = vld [vmem:[%s5437_s1 + $0x460] sm:$0xf] }
  0x3c   : > { %1982 = vmatpush.bf16.msrb.mxu2 %v2859_v18  ;;  %v3075_v15 = vor.u32 %v3626_v7, %v3074_v6  ;;  %v3608_v17 = vld [vmem:[%s5437_s1 + $0x464] sm:$0xf0]  ;;  %v3066_v18 = vld [vmem:[%s5437_s1 + $0x4e0] sm:$0xf]  ;;  %v3138_v22 = vld [vmem:[%s5437_s1 + $0x570] sm:$0xf] }
  0x3d   : > { %1995 = vmatpush.bf16.msrb.mxu3 %v2923_v21  ;;  %v3624_v19 = vld [vmem:[%s5437_s1 + $0x4e4] sm:$0xf0]  ;;  %v3003_v20 = vor.u32 %v3608_v17, %v3002_v16  ;;  %v3642_v23 = vld [vmem:[%s5437_s1 + $0x574] sm:$0xf0]  ;;  %v2414_v24 = vld [vmem:[%s4074_s22 + $0xd] sm:$0x3] }
  0x3e   : > { %1957 = vmatpush.bf16.msrb.mxu0 %v2723_v26  ;;  %v216_v10 = vld.sshfl [vmem:[#allocation1] sm:$0xff pattern:$0x73625140]  ;;  %v3067_v21 = vor.u32 %v3624_v19, %v3066_v18  ;;  %v2415_v25 = vld [vmem:[%s4074_s22 + $0x11] sm:$0x3]  ;;  %v3139_v27 = vor.u32 %v3642_v23, %v3138_v22 }
  0x3f   : > { %1970 = vmatpush.bf16.msrb.mxu1 %v2787_v28  ;;  %223 = vst [vmem:[#allocation1] ss:$4 sm:$0xff] %v219_v60  ;;  %v4190_v13 = vpack.c.bf16 %v216_v10, %v216_v10  ;;  %v3640_v30 = vld [vmem:[%s5437_s1 + $0x564] sm:$0xf0]  ;;  %v2416_v32 = vld [vmem:[%s4074_s22 + $0x18] sm:$0x3] }
  0x40   : > { %1983 = vmatpush.bf16.msrb.mxu2 %v2851_v29  ;;  %225 = vst [vmem:[#allocation1 + $0x1] ss:$4 sm:$0xff] %v220_v8  ;;  %v3130_v29 = vld [vmem:[%s5437_s1 + $0x560] sm:$0xf]  ;;  %v3658_v34 = vld [vmem:[%s5437_s1 + $0x5f4] sm:$0xf0] }
  0x41   : > { %1996 = vmatpush.bf16.msrb.mxu3 %v2915_v33  ;;  %1922 = vmatmul.bf16.vlgmr.msra.gmra.mxu1 %v4190_v13  ;;  %v3131_v31 = vor.u32 %v3640_v30, %v3130_v29  ;;  %v3202_v33 = vld [vmem:[%s5437_s1 + $0x5f0] sm:$0xf]  ;;  %v2417_v35 = vld [vmem:[%s4074_s22 + $0x1c] sm:$0x3]  ;;  %v3606_v37 = vld [vmem:[%s5437_s1 + $0x454] sm:$0xf0] }
  0x42   : > { %1958 = vmatpush.bf16.msrb.mxu0 %v2715_v40  ;;  %v2994_v36 = vld [vmem:[%s5437_s1 + $0x450] sm:$0xf]  ;;  %v3622_v40 = vld [vmem:[%s5437_s1 + $0x4d4] sm:$0xf0]  ;;  %v3203_v44 = vor.u32 %v3658_v34, %v3202_v33  ;;  %v3656_v50 = vld [vmem:[%s5437_s1 + $0x5e4] sm:$0xf0] }
  0x43   : > { %1971 = vmatpush.bf16.msrb.mxu1 %v2779_v45  ;;  %v3058_v38 = vld [vmem:[%s5437_s1 + $0x4d0] sm:$0xf]  ;;  %v2995_v39 = vor.u32 %v3606_v37, %v2994_v36  ;;  %v3638_v42 = vld [vmem:[%s5437_s1 + $0x554] sm:$0xf0]  ;;  %v3194_v45 = vld [vmem:[%s5437_s1 + $0x5e0] sm:$0xf] }
  0x44   : > { %1984 = vmatpush.bf16.msrb.mxu2 %v2843_v46  ;;  %v3122_v41 = vld [vmem:[%s5437_s1 + $0x550] sm:$0xf]  ;;  %v3059_v46 = vor.u32 %v3622_v40, %v3058_v38  ;;  %v2986_v51 = vld [vmem:[%s5437_s1 + $0x440] sm:$0xf]  ;;  %v3604_v52 = vld [vmem:[%s5437_s1 + $0x444] sm:$0xf0]  ;;  %v3195_v58 = vor.u32 %v3656_v50, %v3194_v45 }
  0x45   : > { %1997 = vmatpush.bf16.msrb.mxu3 %v2907_v48  ;;  %v3123_v47 = vor.u32 %v3638_v42, %v3122_v41  ;;  %v3050_v53 = vld [vmem:[%s5437_s1 + $0x4c0] sm:$0xf]  ;;  %v3636_v57 = vld [vmem:[%s5437_s1 + $0x544] sm:$0xf0]  ;;  %v3654_v62 = vld [vmem:[%s5437_s1 + $0x5d4] sm:$0xf0] }
  0x46   : > { %1959 = vmatpush.bf16.msrb.mxu0 %v2707_v54  ;;  %v2987_v54 = vor.u32 %v3604_v52, %v2986_v51  ;;  %v2418_v63 = vld [vmem:[%s4074_s22 + $0x24] sm:$0x3]  ;;  %v2419_v0 = vld [vmem:[%s4074_s22 + $0x28] sm:$0x3]  ;;  %v3178_v1 = vld [vmem:[%s5437_s1 + $0x5c0] sm:$0xf] }
  0x47   : > { %1972 = vmatpush.bf16.msrb.mxu1 %v2771_v55  ;;  %v226_v26 = vld.sshfl [vmem:[#allocation1] sm:$0xff pattern:$0x73625140]  ;;  %v3620_v55 = vld [vmem:[%s5437_s1 + $0x4c4] sm:$0xf0] }
  0x48   : > { %1985 = vmatpush.bf16.msrb.mxu2 %v2835_v56  ;;  %v4213_v28 = vpack.c.bf16 %v226_v26, %v226_v26  ;;  %233 = vst [vmem:[#allocation1] ss:$4 sm:$0xff] %v2414_v24  ;;  %v3114_v56 = vld [vmem:[%s5437_s1 + $0x540] sm:$0xf]  ;;  %v3051_v59 = vor.u32 %v3620_v55, %v3050_v53  ;;  %v2978_v2 = vld [vmem:[%s5437_s1 + $0x430] sm:$0xf] }
  0x49   : > { %1998 = vmatpush.bf16.msrb.mxu3 %v2899_v61  ;;  %235 = vst [vmem:[#allocation1 + $0x1] ss:$4 sm:$0xff] %v2415_v25  ;;  %v3115_v60 = vor.u32 %v3636_v57, %v3114_v56  ;;  %v3186_v61 = vld [vmem:[%s5437_s1 + $0x5d0] sm:$0xf]  ;;  %v3602_v3 = vld [vmem:[%s5437_s1 + $0x434] sm:$0xf0] }
  0x4a   : > { %1960 = vmatpush.bf16.msrb.mxu0 %v2699_v4  ;;  %1935 = vmatmul.bf16.vlgmr.msra.gmra.mxu2 %v4213_v28  ;;  %v3042_v4 = vld [vmem:[%s5437_s1 + $0x4b0] sm:$0xf]  ;;  %v3187_v5 = vor.u32 %v3654_v62, %v3186_v61  ;;  %v2979_v6 = vor.u32 %v3602_v3, %v2978_v2  ;;  %v3618_v7 = vld [vmem:[%s5437_s1 + $0x4b4] sm:$0xf0]  ;;  %v2970_v16 = vld [vmem:[%s5437_s1 + $0x420] sm:$0xf] }
  0x4b   : > { %1973 = vmatpush.bf16.msrb.mxu1 %v2763_v11  ;;  %v3106_v8 = vld [vmem:[%s5437_s1 + $0x530] sm:$0xf]  ;;  %v3652_v11 = vld [vmem:[%s5437_s1 + $0x5c4] sm:$0xf0]  ;;  %v3034_v18 = vld [vmem:[%s5437_s1 + $0x4a0] sm:$0xf] }
  0x4c   : > { %1986 = vmatpush.bf16.msrb.mxu2 %v2827_v9  ;;  %v3634_v9 = vld [vmem:[%s5437_s1 + $0x534] sm:$0xf0]  ;;  %v3600_v17 = vld [vmem:[%s5437_s1 + $0x424] sm:$0xf0]  ;;  %v3179_v19 = vor.u32 %v3652_v11, %v3178_v1  ;;  %v3098_v22 = vld [vmem:[%s5437_s1 + $0x520] sm:$0xf] }
  0x4d   : > { %1999 = vmatpush.bf16.msrb.mxu3 %v2891_v12  ;;  %v3043_v12 = vor.u32 %v3618_v7, %v3042_v4  ;;  %v3632_v23 = vld [vmem:[%s5437_s1 + $0x524] sm:$0xf0]  ;;  %v3170_v24 = vld [vmem:[%s5437_s1 + $0x5b0] sm:$0xf]  ;;  %v3650_v25 = vld [vmem:[%s5437_s1 + $0x5b4] sm:$0xf0] }
  0x4e   : > { %2005 = vmatpush.bf16.msra.mxu0 %v3011_v14  ;;  %v3107_v14 = vor.u32 %v3634_v9, %v3106_v8  ;;  %v2962_v29 = vld [vmem:[%s5437_s1 + $0x410] sm:$0xf]  ;;  %v2420_v30 = vld [vmem:[%s4074_s22 + $0x19] sm:$0x3]  ;;  %v2421_v34 = vld [vmem:[%s4074_s22 + $0x1d] sm:$0x3]  ;;  %v3171_v40 = vor.u32 %v3650_v25, %v3170_v24 }
  0x4f   : > { %2018 = vmatpush.bf16.msra.mxu1 %v3075_v15  ;;  %v3614_v33 = vld [vmem:[%s5437_s1 + $0x494] sm:$0xf0]  ;;  %v3090_v38 = vld [vmem:[%s5437_s1 + $0x510] sm:$0xf]  ;;  %v3648_v41 = vld [vmem:[%s5437_s1 + $0x5a4] sm:$0xf0] }
  0x50   : > { %2031 = vmatpush.bf16.msra.mxu2 %v3139_v27  ;;  %v236_v43 = vld.sshfl [vmem:[#allocation1] sm:$0xff pattern:$0x73625140]  ;;  %v3099_v27 = vor.u32 %v3632_v23, %v3098_v22  ;;  %v3628_v52 = vld [vmem:[%s5437_s1 + $0x504] sm:$0xf0] }
  0x51   : > { %v4251_v48 = vpack.c.bf16 %v236_v43, %v236_v43  ;;  %244 = vst [vmem:[#allocation1] ss:$4 sm:$0xff] %v2416_v32  ;;  %v3026_v32 = vld [vmem:[%s5437_s1 + $0x490] sm:$0xf]  ;;  %v2954_v43 = vld [vmem:[%s5437_s1 + $0x400] sm:$0xf] }
  0x52   : > { %2006 = vmatpush.bf16.msra.mxu0 %v3003_v20  ;;  %246 = vst [vmem:[#allocation1 + $0x1] ss:$4 sm:$0xff] %v2417_v35  ;;  %v2971_v20 = vor.u32 %v3600_v17, %v2970_v16  ;;  %v3162_v35 = vld [vmem:[%s5437_s1 + $0x5a0] sm:$0xf]  ;;  %v3027_v37 = vor.u32 %v3614_v33, %v3026_v32  ;;  %v3330_v62 = vld [vmem:[%s5437_s1 + $0x6f0] sm:$0xf] }
  0x53   : > { %2019 = vmatpush.bf16.msra.mxu1 %v3067_v21  ;;  %1948 = vmatmul.bf16.vlgmr.msra.gmra.mxu3 %v4251_v48  ;;  %v3616_v21 = vld [vmem:[%s5437_s1 + $0x4a4] sm:$0xf0]  ;;  %v3018_v45 = vld [vmem:[%s5437_s1 + $0x480] sm:$0xf]  ;;  %v3163_v57 = vor.u32 %v3648_v41, %v3162_v35  ;;  %v2422_v1 = vld [vmem:[%s4074_s22 + $0x25] sm:$0x3] }
  0x54   : > { %2032 = vmatpush.bf16.msra.mxu2 %v3131_v31  ;;  %2044 = vmatpush.bf16.msra.mxu3 %v3203_v44  ;;  %v3035_v26 = vor.u32 %v3616_v21, %v3034_v18  ;;  %v3598_v31 = vld [vmem:[%s5437_s1 + $0x414] sm:$0xf0]  ;;  %v3596_v44 = vld [vmem:[%s5437_s1 + $0x404] sm:$0xf0]  ;;  %v3146_v2 = vld [vmem:[%s5437_s1 + $0x580] sm:$0xf] }
  0x55   : > { %v2963_v36 = vor.u32 %v3598_v31, %v2962_v29  ;;  %v2955_v51 = vor.u32 %v3596_v44, %v2954_v43  ;;  %v3644_v4 = vld [vmem:[%s5437_s1 + $0x584] sm:$0xf0]  ;;  %v3258_v7 = vld [vmem:[%s5437_s1 + $0x660] sm:$0xf]  ;;  %v3250_v23 = vld [vmem:[%s5437_s1 + $0x650] sm:$0xf] }
  0x56   : > { %2007 = vmatpush.bf16.msra.mxu0 %v2995_v39  ;;  %v3630_v39 = vld [vmem:[%s5437_s1 + $0x514] sm:$0xf0]  ;;  %v3672_v8 = vld [vmem:[%s5437_s1 + $0x664] sm:$0xf0]  ;;  %v3322_v9 = vld [vmem:[%s5437_s1 + $0x6e0] sm:$0xf] }
  0x57   : > { %2020 = vmatpush.bf16.msra.mxu1 %v3059_v46  ;;  %v3091_v42 = vor.u32 %v3630_v39, %v3090_v38  ;;  %v3612_v46 = vld [vmem:[%s5437_s1 + $0x484] sm:$0xf0]  ;;  %v3259_v11 = vor.u32 %v3672_v8, %v3258_v7  ;;  %v3670_v24 = vld [vmem:[%s5437_s1 + $0x654] sm:$0xf0]  ;;  %v3314_v25 = vld [vmem:[%s5437_s1 + $0x6d0] sm:$0xf] }
  0x58   : > { %2033 = vmatpush.bf16.msra.mxu2 %v3123_v47  ;;  %2045 = vmatpush.bf16.msra.mxu3 %v3195_v58  ;;  %v3082_v47 = vld [vmem:[%s5437_s1 + $0x500] sm:$0xf]  ;;  %v3019_v55 = vor.u32 %v3612_v46, %v3018_v45  ;;  %v3266_v58 = vld [vmem:[%s5437_s1 + $0x670] sm:$0xf]  ;;  %v3704_v21 = vld [vmem:[%s5437_s1 + $0x764] sm:$0xf0] }
  0x59   : > { %v247_v10 = vld.sshfl [vmem:[#allocation1] sm:$0xff pattern:$0x73625140]  ;;  %v3083_v56 = vor.u32 %v3628_v52, %v3082_v47  ;;  %v3378_v29 = vld [vmem:[%s5437_s1 + $0x750] sm:$0xf] }
  0x5a   : > { %2008 = vmatpush.bf16.msra.mxu0 %v2987_v54  ;;  %255 = vst [vmem:[#allocation1] ss:$4 sm:$0xff] %v2418_v63  ;;  %v4307_v15 = vpack.c.bf16 %v247_v10, %v247_v10  ;;  %v3154_v54 = vld [vmem:[%s5437_s1 + $0x590] sm:$0xf]  ;;  %v3690_v63 = vld [vmem:[%s5437_s1 + $0x6f4] sm:$0xf0] }
  0x5b   : > { %2021 = vmatpush.bf16.msra.mxu1 %v3051_v59  ;;  %257 = vst [vmem:[#allocation1 + $0x1] ss:$4 sm:$0xff] %v2419_v0  ;;  %v3674_v59 = vld [vmem:[%s5437_s1 + $0x674] sm:$0xf0]  ;;  %v3331_v0 = vor.u32 %v3690_v63, %v3330_v62  ;;  %v2423_v10 = vld [vmem:[%s4074_s22 + $0x29] sm:$0x3] }
  0x5c   : > { %2034 = vmatpush.bf16.msra.mxu2 %v3115_v60  ;;  %1961 = vmatmul.bf16.vlgmr.msrb.gmra.mxu0 %v4307_v15  ;;  %v3646_v60 = vld [vmem:[%s5437_s1 + $0x594] sm:$0xf0]  ;;  %v3267_v61 = vor.u32 %v3674_v59, %v3266_v58  ;;  %v3458_v31 = vld [vmem:[%s5437_s1 + $0x7f0] sm:$0xf]  ;;  %v2424_v33 = vld [vmem:[%s4074_s22 + $0x4] sm:$0x3] }
  0x5d   : > { %2046 = vmatpush.bf16.msra.mxu3 %v3187_v5  ;;  %v3155_v3 = vor.u32 %v3646_v60, %v3154_v54  ;;  %v3394_v5 = vld [vmem:[%s5437_s1 + $0x770] sm:$0xf]  ;;  %v3722_v32 = vld [vmem:[%s5437_s1 + $0x7f4] sm:$0xf0]  ;;  %v3242_v35 = vld [vmem:[%s5437_s1 + $0x640] sm:$0xf] }
  0x5e   : > { %2009 = vmatpush.bf16.msra.mxu0 %v2979_v6  ;;  %v3706_v6 = vld [vmem:[%s5437_s1 + $0x774] sm:$0xf0]  ;;  %v2425_v38 = vld [vmem:[%s4074_s22 + $0x8] sm:$0x3]  ;;  %v3459_v44 = vor.u32 %v3722_v32, %v3458_v31  ;;  %v3442_v52 = vld [vmem:[%s5437_s1 + $0x7d0] sm:$0xf] }
  0x5f   : > { %2022 = vmatpush.bf16.msra.mxu1 %v3043_v12  ;;  %v3688_v12 = vld [vmem:[%s5437_s1 + $0x6e4] sm:$0xf0]  ;;  %v3395_v16 = vor.u32 %v3706_v6, %v3394_v5  ;;  %v3718_v54 = vld [vmem:[%s5437_s1 + $0x7d4] sm:$0xf0]  ;;  %v3298_v59 = vld [vmem:[%s5437_s1 + $0x6b0] sm:$0xf] }
  0x60   : > { %2035 = vmatpush.bf16.msra.mxu2 %v3107_v14  ;;  %v3323_v17 = vor.u32 %v3688_v12, %v3322_v9  ;;  %v3684_v41 = vld [vmem:[%s5437_s1 + $0x6c4] sm:$0xf0]  ;;  %v3666_v58 = vld [vmem:[%s5437_s1 + $0x634] sm:$0xf0]  ;;  %v3362_v62 = vld [vmem:[%s5437_s1 + $0x730] sm:$0xf]  ;;  %v3443_v8 = vor.u32 %v3718_v54, %v3442_v52 }
  0x61   : > { %2047 = vmatpush.bf16.msra.mxu3 %v3179_v19  ;;  %v3147_v19 = vor.u32 %v3644_v4, %v3146_v2  ;;  %v3700_v46 = vld [vmem:[%s5437_s1 + $0x744] sm:$0xf0]  ;;  %v3698_v63 = vld [vmem:[%s5437_s1 + $0x734] sm:$0xf0]  ;;  %v3226_v5 = vld [vmem:[%s5437_s1 + $0x620] sm:$0xf] }
  0x62   : > { %2010 = vmatpush.bf16.msra.mxu0 %v2971_v20  ;;  %v258_v50 = vld.sshfl [vmem:[#allocation1] sm:$0xff pattern:$0x73625140]  ;;  %v3363_v4 = vor.u32 %v3698_v63, %v3362_v62  ;;  %v3664_v6 = vld [vmem:[%s5437_s1 + $0x624] sm:$0xf0] }
  0x63   : > { %2023 = vmatpush.bf16.msra.mxu1 %v3035_v26  ;;  %265 = vst [vmem:[#allocation1] ss:$4 sm:$0xff] %v2420_v30  ;;  %v4378_v53 = vpack.c.bf16 %v258_v50, %v258_v50  ;;  %v3386_v20 = vld [vmem:[%s5437_s1 + $0x760] sm:$0xf]  ;;  %v3251_v26 = vor.u32 %v3670_v24, %v3250_v23  ;;  %v3702_v30 = vld [vmem:[%s5437_s1 + $0x754] sm:$0xf0]  ;;  %v3227_v9 = vor.u32 %v3664_v6, %v3226_v5 }
  0x64   : > { %2036 = vmatpush.bf16.msra.mxu2 %v3099_v27  ;;  %267 = vst [vmem:[#allocation1 + $0x1] ss:$4 sm:$0xff] %v2421_v34  ;;  %v3387_v22 = vor.u32 %v3704_v21, %v3386_v20  ;;  %v3686_v27 = vld [vmem:[%s5437_s1 + $0x6d4] sm:$0xf0]  ;;  %v3379_v39 = vor.u32 %v3702_v30, %v3378_v29  ;;  %v3450_v50 = vld [vmem:[%s5437_s1 + $0x7e0] sm:$0xf] }
  0x65   : > { %2048 = vmatpush.bf16.msra.mxu3 %v3171_v40  ;;  %1974 = vmatmul.bf16.vlgmr.msrb.gmra.mxu1 %v4378_v53  ;;  %v3315_v34 = vor.u32 %v3686_v27, %v3314_v25  ;;  %v3290_v7 = vld [vmem:[%s5437_s1 + $0x6a0] sm:$0xf]  ;;  %v3696_v12 = vld [vmem:[%s5437_s1 + $0x724] sm:$0xf0]  ;;  %v3218_v20 = vld [vmem:[%s5437_s1 + $0x610] sm:$0xf] }
  0x66   : > { %2011 = vmatpush.bf16.msra.mxu0 %v2963_v36  ;;  %v3668_v36 = vld [vmem:[%s5437_s1 + $0x644] sm:$0xf0]  ;;  %v3282_v23 = vld [vmem:[%s5437_s1 + $0x690] sm:$0xf]  ;;  %v3694_v29 = vld [vmem:[%s5437_s1 + $0x714] sm:$0xf0] }
  0x67   : > { %2024 = vmatpush.bf16.msra.mxu1 %v3027_v37  ;;  %v3306_v37 = vld [vmem:[%s5437_s1 + $0x6c0] sm:$0xf]  ;;  %v3243_v40 = vor.u32 %v3668_v36, %v3242_v35  ;;  %v3346_v27 = vld [vmem:[%s5437_s1 + $0x710] sm:$0xf]  ;;  %v3714_v31 = vld [vmem:[%s5437_s1 + $0x7b4] sm:$0xf0] }
  0x68   : > { %2037 = vmatpush.bf16.msra.mxu2 %v3091_v42  ;;  %v3370_v42 = vld [vmem:[%s5437_s1 + $0x740] sm:$0xf]  ;;  %v3307_v45 = vor.u32 %v3684_v41, %v3306_v37  ;;  %v3426_v30 = vld [vmem:[%s5437_s1 + $0x7b0] sm:$0xf]  ;;  %v3660_v35 = vld [vmem:[%s5437_s1 + $0x604] sm:$0xf0] }
  0x69   : > { %2049 = vmatpush.bf16.msra.mxu3 %v3163_v57  ;;  %v3234_v57 = vld [vmem:[%s5437_s1 + $0x630] sm:$0xf]  ;;  %v2429_v36 = vld [vmem:[%s4074_s22 + $0x9] sm:$0x3]  ;;  %v3418_v37 = vld [vmem:[%s5437_s1 + $0x7a0] sm:$0xf] }
  0x6a   : > { %2012 = vmatpush.bf16.msra.mxu0 %v2955_v51  ;;  %v3720_v51 = vld [vmem:[%s5437_s1 + $0x7e4] sm:$0xf0]  ;;  %v3235_v60 = vor.u32 %v3666_v58, %v3234_v57  ;;  %v3497_v52 = vld [vmem:[%s5437_s1 + $0xf4] sm:$0xf]  ;;  %v2564_v54 = vld [vmem:[%s5437_s1 + $0xf8] sm:$0xf0] }
  0x6b   : > { %2025 = vmatpush.bf16.msra.mxu1 %v3019_v55  ;;  %v268_v14 = vld.sshfl [vmem:[#allocation1] sm:$0xff pattern:$0x73625140]  ;;  %v3371_v55 = vor.u32 %v3700_v46, %v3370_v42  ;;  %v3676_v41 = vld [vmem:[%s5437_s1 + $0x684] sm:$0xf0] }
  0x6c   : > { %2038 = vmatpush.bf16.msra.mxu2 %v3083_v56  ;;  %v4425_v18 = vpack.c.bf16 %v268_v14, %v268_v14  ;;  %275 = vst [vmem:[#allocation1] ss:$4 sm:$0xff] %v2422_v1  ;;  %v3451_v56 = vor.u32 %v3720_v51, %v3450_v50  ;;  %v2427_v1 = vld [vmem:[%s4074_s22 + $0x14] sm:$0x3]  ;;  %v3338_v42 = vld [vmem:[%s5437_s1 + $0x700] sm:$0xf] }
  0x6d   : > { %2050 = vmatpush.bf16.msra.mxu3 %v3155_v3  ;;  %277 = vst [vmem:[#allocation1 + $0x1] ss:$4 sm:$0xff] %v2423_v10  ;;  %v3434_v3 = vld [vmem:[%s5437_s1 + $0x7c0] sm:$0xf]  ;;  %v3680_v10 = vld [vmem:[%s5437_s1 + $0x6a4] sm:$0xf0] }
  0x6e   : > { %2057 = vmatpush.bf16.msrb.mxu0 %v3267_v61  ;;  %1987 = vmatmul.bf16.vlgmr.msrb.gmra.mxu2 %v4425_v18  ;;  %v3682_v61 = vld [vmem:[%s5437_s1 + $0x6b4] sm:$0xf0]  ;;  %v2500_v46 = vld [vmem:[%s5437_s1 + $0x78] sm:$0xf0]  ;;  %v3712_v50 = vld [vmem:[%s5437_s1 + $0x7a4] sm:$0xf0] }
  0x6f   : > { %2070 = vmatpush.bf16.msrb.mxu1 %v3331_v0  ;;  %v2426_v0 = vld [vmem:[%s4074_s22 + $0x10] sm:$0x3]  ;;  %v3299_v2 = vor.u32 %v3682_v61, %v3298_v59  ;;  %v2567_v59 = vor.u32 %v3497_v52, %v2564_v54  ;;  %v3710_v62 = vld [vmem:[%s5437_s1 + $0x794] sm:$0xf0]  ;;  %v3513_v5 = vld [vmem:[%s5437_s1 + $0x174] sm:$0xf] }
  0x70   : > { %2083 = vmatpush.bf16.msrb.mxu2 %v3395_v16  ;;  %v3716_v16 = vld [vmem:[%s5437_s1 + $0x7c4] sm:$0xf0]  ;;  %v3410_v61 = vld [vmem:[%s5437_s1 + $0x790] sm:$0xf]  ;;  %v2628_v6 = vld [vmem:[%s5437_s1 + $0x178] sm:$0xf0] }
  0x71   : > { %2051 = vmatpush.bf16.msra.mxu3 %v3147_v19  ;;  %v3435_v24 = vor.u32 %v3716_v16, %v3434_v3  ;;  %v2430_v63 = vld [vmem:[%s4074_s22 + $0x11] sm:$0x3]  ;;  %v2431_v3 = vld [vmem:[%s4074_s22 + $0x15] sm:$0x3]  ;;  %v2604_v54 = vld [vmem:[%s5437_s1 + $0x148] sm:$0xf0] }
  0x72   : > { %2058 = vmatpush.bf16.msrb.mxu0 %v3259_v11  ;;  %v3354_v11 = vld [vmem:[%s5437_s1 + $0x720] sm:$0xf]  ;;  %v3493_v16 = vld [vmem:[%s5437_s1 + $0xd4] sm:$0xf] }
  0x73   : > { %2071 = vmatpush.bf16.msrb.mxu1 %v3323_v17  ;;  %v3291_v17 = vor.u32 %v3680_v10, %v3290_v7  ;;  %v3355_v21 = vor.u32 %v3696_v12, %v3354_v11  ;;  %v3708_v10 = vld [vmem:[%s5437_s1 + $0x784] sm:$0xf0]  ;;  %v3477_v12 = vld [vmem:[%s5437_s1 + $0x54] sm:$0xf] }
  0x74   : > { %2084 = vmatpush.bf16.msrb.mxu2 %v3387_v22  ;;  %v278_v43 = vld.sshfl [vmem:[#allocation1] sm:$0xff pattern:$0x73625140]  ;;  %v3662_v22 = vld [vmem:[%s5437_s1 + $0x614] sm:$0xf0] }
  0x75   : > { %v4478_v47 = vpack.c.bf16 %v278_v43, %v278_v43  ;;  %286 = vst [vmem:[#allocation1] ss:$4 sm:$0xff] %v2424_v33  ;;  %v3219_v25 = vor.u32 %v3662_v22, %v3218_v20  ;;  %v3210_v33 = vld [vmem:[%s5437_s1 + $0x600] sm:$0xf]  ;;  %v3427_v43 = vor.u32 %v3714_v31, %v3426_v30  ;;  %v3509_v30 = vld [vmem:[%s5437_s1 + $0x154] sm:$0xf] }
  0x76   : > { %2059 = vmatpush.bf16.msrb.mxu0 %v3251_v26  ;;  %288 = vst [vmem:[#allocation1 + $0x1] ss:$4 sm:$0xff] %v2425_v38  ;;  %v3678_v26 = vld [vmem:[%s5437_s1 + $0x694] sm:$0xf0]  ;;  %v3347_v38 = vor.u32 %v3694_v29, %v3346_v27  ;;  %v2620_v27 = vld [vmem:[%s5437_s1 + $0x168] sm:$0xf0] }
  0x77   : > { %2072 = vmatpush.bf16.msrb.mxu1 %v3315_v34  ;;  %2000 = vmatmul.bf16.vlgmr.msrb.gmra.mxu3 %v4478_v47  ;;  %v3283_v32 = vor.u32 %v3678_v26, %v3282_v23  ;;  %v2428_v34 = vld [vmem:[%s4074_s22 + $0x5] sm:$0x3]  ;;  %v2612_v31 = vld [vmem:[%s5437_s1 + $0x158] sm:$0xf0] }
  0x78   : > { %2085 = vmatpush.bf16.msrb.mxu2 %v3379_v39  ;;  %2096 = vmatpush.bf16.msrb.mxu3 %v3459_v44  ;;  %v3211_v39 = vor.u32 %v3660_v35, %v3210_v33  ;;  %v3692_v44 = vld [vmem:[%s5437_s1 + $0x704] sm:$0xf0]  ;;  %v3511_v26 = vld [vmem:[%s5437_s1 + $0x164] sm:$0xf] }
  0x79   : > { %v3339_v58 = vor.u32 %v3692_v44, %v3338_v42  ;;  %v2623_v29 = vor.u32 %v3511_v26, %v2620_v27  ;;  %v3475_v33 = vld [vmem:[%s5437_s1 + $0x44] sm:$0xf]  ;;  %v2615_v44 = vor.u32 %v3509_v30, %v2612_v31  ;;  %v2668_v26 = vld [vmem:[%s5437_s1 + $0x1c8] sm:$0xf0]  ;;  %v3501_v31 = vld [vmem:[%s5437_s1 + $0x114] sm:$0xf] }
  0x7a   : > { %2060 = vmatpush.bf16.msrb.mxu0 %v3243_v40  ;;  %v3274_v40 = vld [vmem:[%s5437_s1 + $0x680] sm:$0xf]  ;;  %v3491_v35 = vld [vmem:[%s5437_s1 + $0xc4] sm:$0xf] }
  0x7b   : > { %2073 = vmatpush.bf16.msrb.mxu1 %v3307_v45  ;;  %v3481_v45 = vld [vmem:[%s5437_s1 + $0x74] sm:$0xf]  ;;  %v3507_v42 = vld [vmem:[%s5437_s1 + $0x144] sm:$0xf] }
  0x7c   : > { %2086 = vmatpush.bf16.msrb.mxu2 %v3371_v55  ;;  %2097 = vmatpush.bf16.msrb.mxu3 %v3451_v56  ;;  %v2503_v51 = vor.u32 %v3481_v45, %v2500_v46  ;;  %v3275_v56 = vor.u32 %v3676_v41, %v3274_v40  ;;  %v2433_v40 = vld [vmem:[%s4074_s22 + $0x20] sm:$0x3]  ;;  %v2468_v45 = vld [vmem:[%s5437_s1 + $0x38] sm:$0xf0]  ;;  %v3489_v46 = vld [vmem:[%s5437_s1 + $0xb4] sm:$0xf] }
  0x7d   : > { %v289_v14 = vld.sshfl [vmem:[#allocation1] sm:$0xff pattern:$0x73625140] }
  0x7e   : > { %2061 = vmatpush.bf16.msrb.mxu0 %v3235_v60  ;;  %v4537_v19 = vpack.c.bf16 %v289_v14, %v289_v14  ;;  %297 = vst [vmem:[#allocation1] ss:$4 sm:$0xff] %v2426_v0  ;;  %v3419_v60 = vor.u32 %v3712_v50, %v3418_v37  ;;  %v3479_v0 = vld [vmem:[%s5437_s1 + $0x64] sm:$0xf]  ;;  %v2484_v14 = vld [vmem:[%s5437_s1 + $0x58] sm:$0xf0] }
  0x7f   : > { %2074 = vmatpush.bf16.msrb.mxu1 %v3299_v2  ;;  %299 = vst [vmem:[#allocation1 + $0x1] ss:$4 sm:$0xff] %v2427_v1  ;;  %v2492_v1 = vld [vmem:[%s5437_s1 + $0x68] sm:$0xf0]  ;;  %v3495_v2 = vld [vmem:[%s5437_s1 + $0xe4] sm:$0xf]  ;;  %v2487_v22 = vor.u32 %v3477_v12, %v2484_v14 }
  0x80   : > { %2087 = vmatpush.bf16.msrb.mxu2 %v3363_v4  ;;  %2013 = vmatmul.bf16.vlgmr.msra.gmra.mxu0 %v4537_v19  ;;  %v3411_v4 = vor.u32 %v3710_v62, %v3410_v61  ;;  %v2495_v7 = vor.u32 %v3479_v0, %v2492_v1  ;;  %v2692_v37 = vld [vmem:[%s5437_s1 + $0x1f8] sm:$0xf0]  ;;  %v3525_v61 = vld [vmem:[%s5437_s1 + $0x1d4] sm:$0xf]  ;;  %v2607_v62 = vor.u32 %v3507_v42, %v2604_v54  ;;  %v3503_v14 = vld [vmem:[%s5437_s1 + $0x124] sm:$0xf] }
  0x81   : > { %2098 = vmatpush.bf16.msrb.mxu3 %v3443_v8  ;;  %v2556_v8 = vld [vmem:[%s5437_s1 + $0xe8] sm:$0xf0]  ;;  %v2532_v50 = vld [vmem:[%s5437_s1 + $0xb8] sm:$0xf0]  ;;  %v3505_v1 = vld [vmem:[%s5437_s1 + $0x134] sm:$0xf] }
  0x82   : > { %2062 = vmatpush.bf16.msrb.mxu0 %v3227_v9  ;;  %v3402_v9 = vld [vmem:[%s5437_s1 + $0x780] sm:$0xf]  ;;  %v2559_v11 = vor.u32 %v3495_v2, %v2556_v8  ;;  %v2676_v0 = vld [vmem:[%s5437_s1 + $0x1d8] sm:$0xf0] }
  0x83   : > { %2075 = vmatpush.bf16.msrb.mxu1 %v3291_v17  ;;  %v2548_v17 = vld [vmem:[%s5437_s1 + $0xd8] sm:$0xf0] }
  0x84   : > { %2088 = vmatpush.bf16.msrb.mxu2 %v3355_v21  ;;  %v2631_v21 = vor.u32 %v3513_v5, %v2628_v6  ;;  %v2551_v23 = vor.u32 %v3493_v16, %v2548_v17  ;;  %v2596_v2 = vld [vmem:[%s5437_s1 + $0x138] sm:$0xf0]  ;;  %v3487_v5 = vld [vmem:[%s5437_s1 + $0xa4] sm:$0xf]  ;;  %v2434_v6 = vld [vmem:[%s4074_s22 + $0x28] sm:$0x3] }
  0x85   : > { %2099 = vmatpush.bf16.msrb.mxu3 %v3435_v24  ;;  %v2588_v16 = vld [vmem:[%s5437_s1 + $0x128] sm:$0xf0]  ;;  %v3469_v17 = vld [vmem:[%s5437_s1 + $0x14] sm:$0xf]  ;;  %v2820_v54 = vld [vmem:[%s5437_s1 + $0x2f8] sm:$0xf0] }
  0x86   : > { %2063 = vmatpush.bf16.msrb.mxu0 %v3219_v25  ;;  %v300_v55 = vld.sshfl [vmem:[#allocation1] sm:$0xff pattern:$0x73625140]  ;;  %v3403_v25 = vor.u32 %v3708_v10, %v3402_v9  ;;  %v2524_v9 = vld [vmem:[%s5437_s1 + $0xa8] sm:$0xf0] }
  0x87   : > { %2076 = vmatpush.bf16.msrb.mxu1 %v3283_v32  ;;  %v4602_v57 = vpack.c.bf16 %v300_v55, %v300_v55  ;;  %307 = vst [vmem:[#allocation1] ss:$4 sm:$0xff] %v2428_v34  ;;  %v2432_v32 = vld [vmem:[%s4074_s22 + $0x1c] sm:$0x3]  ;;  %v2476_v34 = vld [vmem:[%s5437_s1 + $0x48] sm:$0xf0]  ;;  %v2527_v12 = vor.u32 %v3487_v5, %v2524_v9 }
  0x88   : > { %2089 = vmatpush.bf16.msrb.mxu2 %v3347_v38  ;;  %309 = vst [vmem:[#allocation1 + $0x1] ss:$4 sm:$0xff] %v2429_v36  ;;  %v3529_v36 = vld [vmem:[%s5437_s1 + $0x1f4] sm:$0xf]  ;;  %v2479_v38 = vor.u32 %v3475_v33, %v2476_v34  ;;  %v3523_v10 = vld [vmem:[%s5437_s1 + $0x1c4] sm:$0xf] }
  0x89   : > { %2100 = vmatpush.bf16.msrb.mxu3 %v3427_v43  ;;  %2026 = vmatmul.bf16.vlgmr.msra.gmra.mxu1 %v4602_v57  ;;  %v3473_v43 = vld [vmem:[%s5437_s1 + $0x34] sm:$0xf]  ;;  %v2695_v52 = vor.u32 %v3529_v36, %v2692_v37  ;;  %v2580_v33 = vld [vmem:[%s5437_s1 + $0x118] sm:$0xf0]  ;;  %v3467_v34 = vld [vmem:[%s5437_s1 + $0x4] sm:$0xf] }
  0x8a   : > { %2064 = vmatpush.bf16.msrb.mxu0 %v3211_v39  ;;  %v2540_v39 = vld [vmem:[%s5437_s1 + $0xc8] sm:$0xf0]  ;;  %v2471_v55 = vor.u32 %v3473_v43, %v2468_v45  ;;  %v3483_v37 = vld [vmem:[%s5437_s1 + $0x84] sm:$0xf]  ;;  %v2436_v43 = vld [vmem:[%s4074_s22 + $0x1d] sm:$0x3] }
  0x8b   : > { %2077 = vmatpush.bf16.msrb.mxu1 %v3275_v56  ;;  %v2543_v41 = vor.u32 %v3491_v35, %v2540_v39  ;;  %v2671_v35 = vor.u32 %v3523_v10, %v2668_v26  ;;  %v2444_v36 = vld [vmem:[%s5437_s1 + $0x8] sm:$0xf0]  ;;  %v3521_v39 = vld [vmem:[%s5437_s1 + $0x1b4] sm:$0xf]  ;;  %v2756_v45 = vld [vmem:[%s5437_s1 + $0x278] sm:$0xf0] }
  0x8c   : > { %2090 = vmatpush.bf16.msrb.mxu2 %v3339_v58  ;;  %v3527_v58 = vld [vmem:[%s5437_s1 + $0x1e4] sm:$0xf]  ;;  %v2644_v9 = vld [vmem:[%s5437_s1 + $0x198] sm:$0xf0]  ;;  %v3541_v10 = vld [vmem:[%s5437_s1 + $0x254] sm:$0xf] }
  0x8d   : > { %2101 = vmatpush.bf16.msrb.mxu3 %v3419_v60  ;;  %v2535_v60 = vor.u32 %v3489_v46, %v2532_v50  ;;  %v2437_v46 = vld [vmem:[%s4074_s22 + $0x21] sm:$0x3]  ;;  %v2583_v50 = vor.u32 %v3501_v31, %v2580_v33  ;;  %v3559_v5 = vld [vmem:[%s5437_s1 + $0x2e4] sm:$0xf]  ;;  %v2732_v26 = vld [vmem:[%s5437_s1 + $0x248] sm:$0xf0] }
  0x8e   : > { %2109 = vmatpush.bf16.msra.mxu0 %v2503_v51  ;;  %v2636_v31 = vld [vmem:[%s5437_s1 + $0x188] sm:$0xf0] }
  0x8f   : > { %2122 = vmatpush.bf16.msra.mxu1 %v2567_v59  ;;  %v310_v20 = vld.sshfl [vmem:[#allocation1] sm:$0xff pattern:$0x73625140]  ;;  %v2684_v59 = vld [vmem:[%s5437_s1 + $0x1e8] sm:$0xf0] }
  0x90   : > { %v4649_v24 = vpack.c.bf16 %v310_v20, %v310_v20  ;;  %317 = vst [vmem:[#allocation1] ss:$4 sm:$0xff] %v2430_v63  ;;  %v2687_v63 = vor.u32 %v3527_v58, %v2684_v59  ;;  %v2679_v20 = vor.u32 %v3525_v61, %v2676_v0  ;;  %v3519_v58 = vld [vmem:[%s5437_s1 + $0x1a4] sm:$0xf]  ;;  %v2652_v61 = vld [vmem:[%s5437_s1 + $0x1a8] sm:$0xf0] }
  0x91   : > { %2102 = vmatpush.bf16.msrb.mxu3 %v3411_v4  ;;  %319 = vst [vmem:[#allocation1 + $0x1] ss:$4 sm:$0xff] %v2431_v3  ;;  %v3471_v3 = vld [vmem:[%s5437_s1 + $0x24] sm:$0xf]  ;;  %v2460_v4 = vld [vmem:[%s5437_s1 + $0x28] sm:$0xf0] }
  0x92   : > { %2110 = vmatpush.bf16.msra.mxu0 %v2495_v7  ;;  %2039 = vmatmul.bf16.vlgmr.msra.gmra.mxu2 %v4649_v24  ;;  %v2435_v7 = vld [vmem:[%s4074_s22 + $0x2c] sm:$0x3]  ;;  %v2463_v8 = vor.u32 %v3471_v3, %v2460_v4  ;;  %v3499_v59 = vld [vmem:[%s5437_s1 + $0x104] sm:$0xf] }
  0x93   : > { %2123 = vmatpush.bf16.msra.mxu1 %v2559_v11  ;;  %2135 = vmatpush.bf16.msra.mxu2 %v2631_v21  ;;  %v2599_v11 = vor.u32 %v3505_v1, %v2596_v2  ;;  %v2452_v21 = vld [vmem:[%s5437_s1 + $0x18] sm:$0xf0]  ;;  %v2876_v33 = vld [vmem:[%s5437_s1 + $0x368] sm:$0xf0] }
  0x94   : > { %v2455_v27 = vor.u32 %v3469_v17, %v2452_v21  ;;  %v3577_v17 = vld [vmem:[%s5437_s1 + $0x374] sm:$0xf]  ;;  %v2804_v21 = vld [vmem:[%s5437_s1 + $0x2d8] sm:$0xf0] }
  0x95   : > { %2103 = vmatpush.bf16.msrb.mxu3 %v3403_v25 }
  0x96   : > { %2111 = vmatpush.bf16.msra.mxu0 %v2487_v22  ;;  %v3485_v22 = vld [vmem:[%s5437_s1 + $0x94] sm:$0xf] }
  0x97   : > { %2124 = vmatpush.bf16.msra.mxu1 %v2551_v23  ;;  %2136 = vmatpush.bf16.msra.mxu2 %v2623_v29  ;;  %v2516_v23 = vld [vmem:[%s5437_s1 + $0x98] sm:$0xf0] }
  0x98   : > { %v320_v51 = vld.sshfl [vmem:[#allocation1] sm:$0xff pattern:$0x73625140]  ;;  %v2519_v29 = vor.u32 %v3485_v22, %v2516_v23  ;;  %v2884_v23 = vld [vmem:[%s5437_s1 + $0x378] sm:$0xf0] }
  0x99   : > { %v4702_v56 = vpack.c.bf16 %v320_v51, %v320_v51  ;;  %328 = vst [vmem:[#allocation1] ss:$4 sm:$0xff] %v2432_v32  ;;  %v2591_v32 = vor.u32 %v3503_v14, %v2588_v16  ;;  %v2438_v16 = vld [vmem:[%s4074_s22 + $0x29] sm:$0x3] }
  0x9a   : > { %2112 = vmatpush.bf16.msra.mxu0 %v2479_v38  ;;  %330 = vst [vmem:[#allocation1 + $0x1] ss:$4 sm:$0xff] %v2433_v40  ;;  %v2508_v38 = vld [vmem:[%s5437_s1 + $0x88] sm:$0xf0]  ;;  %v2660_v40 = vld [vmem:[%s5437_s1 + $0x1b8] sm:$0xf0] }
  0x9b   : > { %2125 = vmatpush.bf16.msra.mxu1 %v2543_v41  ;;  %2052 = vmatmul.bf16.vlgmr.msra.gmra.mxu3 %v4702_v56  ;;  %v2447_v41 = vor.u32 %v3467_v34, %v2444_v36  ;;  %v2511_v42 = vor.u32 %v3483_v37, %v2508_v38  ;;  %v2887_v37 = vor.u32 %v3577_v17, %v2884_v23  ;;  %v2772_v17 = vld [vmem:[%s5437_s1 + $0x298] sm:$0xf0]  ;;  %v3569_v23 = vld [vmem:[%s5437_s1 + $0x334] sm:$0xf] }
  0x9c   : > { %2137 = vmatpush.bf16.msra.mxu2 %v2615_v44  ;;  %2148 = vmatpush.bf16.msra.mxu3 %v2695_v52  ;;  %v3545_v44 = vld [vmem:[%s5437_s1 + $0x274] sm:$0xf] }
  0x9d   : > { %v2759_v51 = vor.u32 %v3545_v44, %v2756_v45  ;;  %v3561_v52 = vld [vmem:[%s5437_s1 + $0x2f4] sm:$0xf] }
  0x9e   : > { %2113 = vmatpush.bf16.msra.mxu0 %v2471_v55  ;;  %v2663_v55 = vor.u32 %v3521_v39, %v2660_v40  ;;  %v2823_v1 = vor.u32 %v3561_v52, %v2820_v54  ;;  %v2796_v39 = vld [vmem:[%s5437_s1 + $0x2c8] sm:$0xf0]  ;;  %v3573_v52 = vld [vmem:[%s5437_s1 + $0x354] sm:$0xf]  ;;  %v2868_v54 = vld [vmem:[%s5437_s1 + $0x358] sm:$0xf0] }
  0x9f   : > { %2126 = vmatpush.bf16.msra.mxu1 %v2535_v60  ;;  %v2572_v60 = vld [vmem:[%s5437_s1 + $0x108] sm:$0xf0] }
  0xa0   : > { %2138 = vmatpush.bf16.msra.mxu2 %v2607_v62  ;;  %2149 = vmatpush.bf16.msra.mxu3 %v2687_v63  ;;  %v3543_v62 = vld [vmem:[%s5437_s1 + $0x264] sm:$0xf]  ;;  %v2748_v63 = vld [vmem:[%s5437_s1 + $0x268] sm:$0xf0]  ;;  %v2575_v4 = vor.u32 %v3499_v59, %v2572_v60 }
  0xa1   : > { %v331_v25 = vld.sshfl [vmem:[#allocation1] sm:$0xff pattern:$0x73625140]  ;;  %v2751_v2 = vor.u32 %v3543_v62, %v2748_v63  ;;  %v2716_v59 = vld [vmem:[%s5437_s1 + $0x228] sm:$0xf0]  ;;  %v2871_v62 = vor.u32 %v3573_v52, %v2868_v54 }
  0xa2   : > { %2114 = vmatpush.bf16.msra.mxu0 %v2463_v8  ;;  %v4761_v30 = vpack.c.bf16 %v331_v25, %v331_v25  ;;  %339 = vst [vmem:[#allocation1] ss:$4 sm:$0xff] %v2434_v6  ;;  %v2812_v6 = vld [vmem:[%s5437_s1 + $0x2e8] sm:$0xf0]  ;;  %v3517_v8 = vld [vmem:[%s5437_s1 + $0x194] sm:$0xf] }
  0xa3   : > { %2127 = vmatpush.bf16.msra.mxu1 %v2527_v12  ;;  %341 = vst [vmem:[#allocation1 + $0x1] ss:$4 sm:$0xff] %v2435_v7  ;;  %v2655_v7 = vor.u32 %v3519_v58, %v2652_v61  ;;  %v2815_v12 = vor.u32 %v3559_v5, %v2812_v6  ;;  %v2647_v22 = vor.u32 %v3517_v8, %v2644_v9  ;;  %v3539_v25 = vld [vmem:[%s5437_s1 + $0x244] sm:$0xf]  ;;  %v2860_v5 = vld [vmem:[%s5437_s1 + $0x348] sm:$0xf0] }
  0xa4   : > { %2139 = vmatpush.bf16.msra.mxu2 %v2599_v11  ;;  %2065 = vmatmul.bf16.vlgmr.msrb.gmra.mxu0 %v4761_v30  ;;  %v2740_v11 = vld [vmem:[%s5437_s1 + $0x258] sm:$0xf0]  ;;  %v2735_v38 = vor.u32 %v3539_v25, %v2732_v26  ;;  %v3535_v58 = vld [vmem:[%s5437_s1 + $0x224] sm:$0xf]  ;;  %v2940_v8 = vld [vmem:[%s5437_s1 + $0x3e8] sm:$0xf0] }
  0xa5   : > { %2150 = vmatpush.bf16.msra.mxu3 %v2679_v20  ;;  %v2743_v14 = vor.u32 %v3541_v10, %v2740_v11  ;;  %v3557_v20 = vld [vmem:[%s5437_s1 + $0x2d4] sm:$0xf]  ;;  %v3591_v61 = vld [vmem:[%s5437_s1 + $0x3e4] sm:$0xf]  ;;  %v2719_v6 = vor.u32 %v3535_v58, %v2716_v59  ;;  %v2708_v10 = vld [vmem:[%s5437_s1 + $0x218] sm:$0xf0] }
  0xa6   : > { %2115 = vmatpush.bf16.msra.mxu0 %v2455_v27  ;;  %v2439_v27 = vld [vmem:[%s4074_s22 + $0x2d] sm:$0x3]  ;;  %v2807_v34 = vor.u32 %v3557_v20, %v2804_v21  ;;  %v3571_v63 = vld [vmem:[%s5437_s1 + $0x344] sm:$0xf]  ;;  %v3533_v9 = vld [vmem:[%s5437_s1 + $0x214] sm:$0xf]  ;;  %v2943_v21 = vor.u32 %v3591_v61, %v2940_v8 }
  0xa7   : > { %2128 = vmatpush.bf16.msra.mxu1 %v2519_v29  ;;  %v3515_v29 = vld [vmem:[%s5437_s1 + $0x184] sm:$0xf]  ;;  %v2852_v25 = vld [vmem:[%s5437_s1 + $0x338] sm:$0xf0]  ;;  %v2711_v26 = vor.u32 %v3533_v9, %v2708_v10  ;;  %v3004_v54 = vld [vmem:[%s5437_s1 + $0x468] sm:$0xf0] }
  0xa8   : > { %2140 = vmatpush.bf16.msra.mxu2 %v2591_v32  ;;  %v3575_v32 = vld [vmem:[%s5437_s1 + $0x364] sm:$0xf]  ;;  %v3565_v61 = vld [vmem:[%s5437_s1 + $0x314] sm:$0xf]  ;;  %v2908_v10 = vld [vmem:[%s5437_s1 + $0x3a8] sm:$0xf0] }
  0xa9   : > { %2151 = vmatpush.bf16.msra.mxu3 %v2671_v35  ;;  %v3555_v35 = vld [vmem:[%s5437_s1 + $0x2c4] sm:$0xf]  ;;  %v2879_v45 = vor.u32 %v3575_v32, %v2876_v33  ;;  %v3609_v33 = vld [vmem:[%s5437_s1 + $0x474] sm:$0xf] }
  0xaa   : > { %2116 = vmatpush.bf16.msra.mxu0 %v2447_v41  ;;  %v342_v0 = vld.sshfl [vmem:[#allocation1] sm:$0xff pattern:$0x73625140]  ;;  %v2639_v41 = vor.u32 %v3515_v29, %v2636_v31  ;;  %v2799_v44 = vor.u32 %v3555_v35, %v2796_v39  ;;  %v2700_v31 = vld [vmem:[%s5437_s1 + $0x208] sm:$0xf0]  ;;  %v2855_v35 = vor.u32 %v3569_v23, %v2852_v25 }
  0xab   : > { %2129 = vmatpush.bf16.msra.mxu1 %v2511_v42  ;;  %v4820_v3 = vpack.c.bf16 %v342_v0, %v342_v0  ;;  %349 = vst [vmem:[#allocation1] ss:$4 sm:$0xff] %v2436_v43  ;;  %v3537_v42 = vld [vmem:[%s5437_s1 + $0x234] sm:$0xf]  ;;  %v2724_v43 = vld [vmem:[%s5437_s1 + $0x238] sm:$0xf0] }
  0xac   : > { %2141 = vmatpush.bf16.msra.mxu2 %v2583_v50  ;;  %351 = vst [vmem:[#allocation1 + $0x1] ss:$4 sm:$0xff] %v2437_v46  ;;  %v2727_v46 = vor.u32 %v3537_v42, %v2724_v43  ;;  %v3553_v50 = vld [vmem:[%s5437_s1 + $0x2b4] sm:$0xf]  ;;  %v3551_v0 = vld [vmem:[%s5437_s1 + $0x2a4] sm:$0xf] }
  0xad   : > { %2152 = vmatpush.bf16.msra.mxu3 %v2663_v55  ;;  %2078 = vmatmul.bf16.vlgmr.msrb.gmra.mxu1 %v4820_v3  ;;  %v2948_v55 = vld [vmem:[%s5437_s1 + $0x3f8] sm:$0xf0]  ;;  %v3531_v29 = vld [vmem:[%s5437_s1 + $0x204] sm:$0xf]  ;;  %v3625_v43 = vld [vmem:[%s5437_s1 + $0x4f4] sm:$0xf] }
  0xae   : > { %2161 = vmatpush.bf16.msrb.mxu0 %v2759_v51  ;;  %v2788_v51 = vld [vmem:[%s5437_s1 + $0x2b8] sm:$0xf0]  ;;  %v2703_v42 = vor.u32 %v3531_v29, %v2700_v31  ;;  %v3607_v52 = vld [vmem:[%s5437_s1 + $0x464] sm:$0xf] }
  0xaf   : > { %2174 = vmatpush.bf16.msrb.mxu1 %v2823_v1  ;;  %v2791_v60 = vor.u32 %v3553_v50, %v2788_v51  ;;  %v2780_v1 = vld [vmem:[%s5437_s1 + $0x2a8] sm:$0xf0]  ;;  %v3603_v25 = vld [vmem:[%s5437_s1 + $0x444] sm:$0xf]  ;;  %v2900_v29 = vld [vmem:[%s5437_s1 + $0x398] sm:$0xf0] }
  0xb0   : > { %2142 = vmatpush.bf16.msra.mxu2 %v2575_v4 }
  0xb1   : > { %2153 = vmatpush.bf16.msra.mxu3 %v2655_v7 }
  0xb2   : > { %2162 = vmatpush.bf16.msrb.mxu0 %v2751_v2 }
  0xb3   : > { %2175 = vmatpush.bf16.msrb.mxu1 %v2815_v12  ;;  %v352_v36 = vld.sshfl [vmem:[#allocation1] sm:$0xff pattern:$0x73625140]  ;;  %v2783_v12 = vor.u32 %v3551_v0, %v2780_v1  ;;  %v3007_v0 = vor.u32 %v3607_v52, %v3004_v54  ;;  %v3204_v52 = vld [vmem:[%s5437_s1 + $0x5f8] sm:$0xf0] }
  0xb4   : > { %v4879_v40 = vpack.c.bf16 %v352_v36, %v352_v36  ;;  %359 = vst [vmem:[#allocation1] ss:$4 sm:$0xff] %v2438_v16  ;;  %2117 = vmatmul.bf16.vlgmr.msra.gmra.mxu0 %v4137_v49  ;;  %v3593_v49 = vld [vmem:[%s5437_s1 + $0x3f4] sm:$0xf]  ;;  %v2863_v16 = vor.u32 %v3571_v63, %v2860_v5  ;;  %v3567_v36 = vld [vmem:[%s5437_s1 + $0x324] sm:$0xf] }
  0xb5   : > { %2154 = vmatpush.bf16.msra.mxu3 %v2647_v22  ;;  %361 = vst [vmem:[#allocation1 + $0x1] ss:$4 sm:$0xff] %v2439_v27  ;;  %v2951_v4 = vor.u32 %v3593_v49, %v2948_v55  ;;  %v1910_v11 = vpop.f32.mrf.mxu0  ;;  %v3589_v22 = vld [vmem:[%s5437_s1 + $0x3d4] sm:$0xf]  ;;  %v2932_v27 = vld [vmem:[%s5437_s1 + $0x3d8] sm:$0xf0] }
  0xb6   : > { %2163 = vmatpush.bf16.msrb.mxu0 %v2743_v14  ;;  %2091 = vmatmul.bf16.vlgmr.msrb.gmra.mxu2 %v4879_v40  ;;  %v2935_v39 = vor.u32 %v3589_v22, %v2932_v27  ;;  %v2916_v63 = vld [vmem:[%s5437_s1 + $0x3b8] sm:$0xf0]  ;;  %v3623_v1 = vld [vmem:[%s5437_s1 + $0x4e4] sm:$0xf]  ;;  %v3621_v22 = vld [vmem:[%s5437_s1 + $0x4d4] sm:$0xf] }
  0xb7   : > { %2176 = vmatpush.bf16.msrb.mxu1 %v2807_v34  ;;  %2187 = vmatpush.bf16.msrb.mxu2 %v2887_v37  ;;  %v3012_v34 = vld [vmem:[%s5437_s1 + $0x478] sm:$0xf0]  ;;  %v3547_v37 = vld [vmem:[%s5437_s1 + $0x284] sm:$0xf] }
  0xb8   : > { %v3015_v50 = vor.u32 %v3609_v33, %v3012_v34  ;;  %v2996_v5 = vld [vmem:[%s5437_s1 + $0x458] sm:$0xf0] }
  0xb9   : > { %2155 = vmatpush.bf16.msra.mxu3 %v2639_v41  ;;  %v2844_v41 = vld [vmem:[%s5437_s1 + $0x328] sm:$0xf0] }
  0xba   : > { %2164 = vmatpush.bf16.msrb.mxu0 %v2735_v38  ;;  %v2764_v38 = vld [vmem:[%s5437_s1 + $0x288] sm:$0xf0]  ;;  %v2847_v58 = vor.u32 %v3567_v36, %v2844_v41  ;;  %v3579_v41 = vld [vmem:[%s5437_s1 + $0x384] sm:$0xf] }
  0xbb   : > { %2177 = vmatpush.bf16.msrb.mxu1 %v2799_v44  ;;  %2188 = vmatpush.bf16.msrb.mxu2 %v2879_v45  ;;  %v3076_v44 = vld [vmem:[%s5437_s1 + $0x4f8] sm:$0xf0]  ;;  %v3587_v45 = vld [vmem:[%s5437_s1 + $0x3c4] sm:$0xf]  ;;  %v2767_v49 = vor.u32 %v3547_v37, %v2764_v38  ;;  %v3052_v36 = vld [vmem:[%s5437_s1 + $0x4c8] sm:$0xf0] }
  0xbc   : > { %v362_v2 = vld.sshfl [vmem:[#allocation1] sm:$0xff pattern:$0x73625140]  ;;  %v3079_v59 = vor.u32 %v3625_v43, %v3076_v44  ;;  %v3601_v37 = vld [vmem:[%s5437_s1 + $0x434] sm:$0xf] }
  0xbd   : > { %v4928_v7 = vpack.c.bf16 %v362_v2, %v362_v2  ;;  %2130 = vmatmul.bf16.vlgmr.msra.gmra.mxu1 %v4190_v13  ;;  %v3549_v13 = vld [vmem:[%s5437_s1 + $0x294] sm:$0xf]  ;;  %v1912_v51 = vpop.f32.mrf.mxu0  ;;  %v3068_v2 = vld [vmem:[%s5437_s1 + $0x4e8] sm:$0xf0]  ;;  %v2980_v38 = vld [vmem:[%s5437_s1 + $0x438] sm:$0xf0] }
  0xbe   : > { %2165 = vmatpush.bf16.msrb.mxu0 %v2727_v46  ;;  %v1923_v14 = vpop.f32.mrf.mxu1  ;;  %v2775_v32 = vor.u32 %v3549_v13, %v2772_v17  ;;  %v2924_v46 = vld [vmem:[%s5437_s1 + $0x3c8] sm:$0xf0]  ;;  %v3140_v13 = vld [vmem:[%s5437_s1 + $0x578] sm:$0xf0]  ;;  %v3657_v44 = vld [vmem:[%s5437_s1 + $0x5f4] sm:$0xf] }
  0xbf   : > { %2178 = vmatpush.bf16.msrb.mxu1 %v2791_v60  ;;  %2104 = vmatmul.bf16.vlgmr.msrb.gmra.mxu3 %v4928_v7  ;;  %v4947_v20 = vadd.f32 %v1923_v14, %v1910_v11  ;;  %v2927_v60 = vor.u32 %v3587_v45, %v2924_v46  ;;  %v3563_v11 = vld [vmem:[%s5437_s1 + $0x304] sm:$0xf]  ;;  %v3071_v14 = vor.u32 %v3623_v1, %v3068_v2  ;;  %v3637_v45 = vld [vmem:[%s5437_s1 + $0x554] sm:$0xf]  ;;  %v3124_v46 = vld [vmem:[%s5437_s1 + $0x558] sm:$0xf0] }
  0xc0   : > { %2189 = vmatpush.bf16.msrb.mxu2 %v2871_v62  ;;  %2200 = vmatpush.bf16.msrb.mxu3 %v2951_v4  ;;  %v2836_v62 = vld [vmem:[%s5437_s1 + $0x318] sm:$0xf0]  ;;  %v3605_v4 = vld [vmem:[%s5437_s1 + $0x454] sm:$0xf]  ;;  %v3116_v1 = vld [vmem:[%s5437_s1 + $0x548] sm:$0xf0] }
  0xc1   : > { %v2839_v8 = vor.u32 %v3565_v61, %v2836_v62  ;;  %v3127_v61 = vor.u32 %v3637_v45, %v3124_v46  ;;  %v3207_v62 = vor.u32 %v3657_v44, %v3204_v52  ;;  %v3689_v45 = vld [vmem:[%s5437_s1 + $0x6f4] sm:$0xf]  ;;  %v3332_v46 = vld [vmem:[%s5437_s1 + $0x6f8] sm:$0xf0] }
  0xc2   : > { %2166 = vmatpush.bf16.msrb.mxu0 %v2719_v6  ;;  %v3583_v6 = vld [vmem:[%s5437_s1 + $0x3a4] sm:$0xf] }
  0xc3   : > { %2179 = vmatpush.bf16.msrb.mxu1 %v2783_v12  ;;  %v2828_v12 = vld [vmem:[%s5437_s1 + $0x308] sm:$0xf0] }
  0xc4   : > { %2190 = vmatpush.bf16.msrb.mxu2 %v2863_v16  ;;  %2201 = vmatpush.bf16.msrb.mxu3 %v2943_v21  ;;  %v3641_v16 = vld [vmem:[%s5437_s1 + $0x574] sm:$0xf]  ;;  %v2999_v21 = vor.u32 %v3605_v4, %v2996_v5  ;;  %v2831_v27 = vor.u32 %v3563_v11, %v2828_v12  ;;  %v3196_v5 = vld [vmem:[%s5437_s1 + $0x5e8] sm:$0xf0]  ;;  %v2964_v12 = vld [vmem:[%s5437_s1 + $0x418] sm:$0xf0] }
  0xc5   : > { %v3143_v31 = vor.u32 %v3641_v16, %v3140_v13  ;;  %v3597_v11 = vld [vmem:[%s5437_s1 + $0x414] sm:$0xf] }
  0xc6   : > { %2167 = vmatpush.bf16.msrb.mxu0 %v2711_v26  ;;  %2143 = vmatmul.bf16.vlgmr.msra.gmra.mxu2 %v4213_v28  ;;  %v1925_v55 = vpop.f32.mrf.mxu1  ;;  %v3585_v28 = vld [vmem:[%s5437_s1 + $0x3b4] sm:$0xf]  ;;  %v2988_v26 = vld [vmem:[%s5437_s1 + $0x448] sm:$0xf0] }
  0xc7   : > { %2180 = vmatpush.bf16.msrb.mxu1 %v2775_v32  ;;  %v2919_v9 = vor.u32 %v3585_v28, %v2916_v63  ;;  %v3639_v32 = vld [vmem:[%s5437_s1 + $0x564] sm:$0xf]  ;;  %v2991_v34 = vor.u32 %v3603_v25, %v2988_v26  ;;  %v3617_v55 = vld [vmem:[%s5437_s1 + $0x4b4] sm:$0xf]  ;;  %v2972_v28 = vld [vmem:[%s5437_s1 + $0x428] sm:$0xf0]  ;;  %v2967_v25 = vor.u32 %v3597_v11, %v2964_v12 }
  0xc8   : > { %2191 = vmatpush.bf16.msrb.mxu2 %v2855_v35  ;;  %2202 = vmatpush.bf16.msrb.mxu3 %v2935_v39  ;;  %v3619_v35 = vld [vmem:[%s5437_s1 + $0x4c4] sm:$0xf]  ;;  %v3653_v13 = vld [vmem:[%s5437_s1 + $0x5d4] sm:$0xf] }
  0xc9   : > { %v3655_v63 = vld [vmem:[%s5437_s1 + $0x5e4] sm:$0xf]  ;;  %v3613_v26 = vld [vmem:[%s5437_s1 + $0x494] sm:$0xf] }
  0xca   : > { %2168 = vmatpush.bf16.msrb.mxu0 %v2703_v42  ;;  %v2892_v42 = vld [vmem:[%s5437_s1 + $0x388] sm:$0xf0]  ;;  %v3199_v16 = vor.u32 %v3655_v63, %v3196_v5  ;;  %v3627_v5 = vld [vmem:[%s5437_s1 + $0x504] sm:$0xf] }
  0xcb   : > { %2181 = vmatpush.bf16.msrb.mxu1 %v2767_v49  ;;  %v2983_v49 = vor.u32 %v3601_v37, %v2980_v38  ;;  %v3180_v37 = vld [vmem:[%s5437_s1 + $0x5c8] sm:$0xf0] }
  0xcc   : > { %2192 = vmatpush.bf16.msrb.mxu2 %v2847_v58  ;;  %2203 = vmatpush.bf16.msrb.mxu3 %v2927_v60  ;;  %v3044_v58 = vld [vmem:[%s5437_s1 + $0x4b8] sm:$0xf0]  ;;  %v3599_v60 = vld [vmem:[%s5437_s1 + $0x424] sm:$0xf] }
  0xcd   : > { %2169 = vmatmul.bf16.vlgmr.msrb.gmra.mxu0 %v4307_v15  ;;  %v1936_v17 = vpop.f32.mrf.mxu2  ;;  %v3060_v15 = vld [vmem:[%s5437_s1 + $0x4d8] sm:$0xf0]  ;;  %v3047_v2 = vor.u32 %v3617_v55, %v3044_v58 }
  0xce   : > { %2213 = vmatpush.bf16.msra.mxu0 %v3015_v50  ;;  %2182 = vmatmul.bf16.vlgmr.msrb.gmra.mxu1 %v4378_v53  ;;  %v1937_v23 = vadd.f32 %v1936_v17, %v4947_v20  ;;  %v2911_v53 = vor.u32 %v3583_v6, %v2908_v10  ;;  %v3581_v20 = vld [vmem:[%s5437_s1 + $0x394] sm:$0xf]  ;;  %v3063_v33 = vor.u32 %v3621_v22, %v3060_v15  ;;  %v3036_v10 = vld [vmem:[%s5437_s1 + $0x4a8] sm:$0xf0]  ;;  %v3092_v55 = vld [vmem:[%s5437_s1 + $0x518] sm:$0xf0] }
  0xcf   : > { %2226 = vmatpush.bf16.msra.mxu1 %v3079_v59  ;;  %2156 = vmatmul.bf16.vlgmr.msra.gmra.mxu3 %v4251_v48  ;;  %v3132_v48 = vld [vmem:[%s5437_s1 + $0x568] sm:$0xf0]  ;;  %v2903_v39 = vor.u32 %v3581_v20, %v2900_v29  ;;  %v3055_v50 = vor.u32 %v3619_v35, %v3052_v36  ;;  %v3633_v17 = vld [vmem:[%s5437_s1 + $0x534] sm:$0xf] }
  0xd0   : > { %2193 = vmatpush.bf16.msrb.mxu2 %v2839_v8  ;;  %2204 = vmatpush.bf16.msrb.mxu3 %v2919_v9  ;;  %v3135_v43 = vor.u32 %v3639_v32, %v3132_v48  ;;  %v2975_v8 = vor.u32 %v3599_v60, %v2972_v28  ;;  %v3615_v9 = vld [vmem:[%s5437_s1 + $0x4a4] sm:$0xf]  ;;  %v2956_v20 = vld [vmem:[%s5437_s1 + $0x408] sm:$0xf0]  ;;  %v3268_v32 = vld [vmem:[%s5437_s1 + $0x678] sm:$0xf0]  ;;  %v3335_v28 = vor.u32 %v3689_v45, %v3332_v46 }
  0xd1   : > { %v3039_v22 = vor.u32 %v3615_v9, %v3036_v10  ;;  %v3651_v48 = vld [vmem:[%s5437_s1 + $0x5c4] sm:$0xf]  ;;  %v3172_v60 = vld [vmem:[%s5437_s1 + $0x5b8] sm:$0xf0]  ;;  %v3705_v9 = vld [vmem:[%s5437_s1 + $0x774] sm:$0xf] }
  0xd2   : > { %2214 = vmatpush.bf16.msra.mxu0 %v3007_v0  ;;  %v3635_v0 = vld [vmem:[%s5437_s1 + $0x544] sm:$0xf]  ;;  %v3183_v52 = vor.u32 %v3651_v48, %v3180_v37  ;;  %v3396_v10 = vld [vmem:[%s5437_s1 + $0x778] sm:$0xf0]  ;;  %v3721_v37 = vld [vmem:[%s5437_s1 + $0x7f4] sm:$0xf] }
  0xd3   : > { %2227 = vmatpush.bf16.msra.mxu1 %v3071_v14  ;;  %v3119_v14 = vor.u32 %v3635_v0, %v3116_v1  ;;  %v3669_v0 = vld [vmem:[%s5437_s1 + $0x654] sm:$0xf]  ;;  %v3252_v1 = vld [vmem:[%s5437_s1 + $0x658] sm:$0xf0]  ;;  %v3663_v46 = vld [vmem:[%s5437_s1 + $0x624] sm:$0xf] }
  0xd4   : > { %2194 = vmatpush.bf16.msrb.mxu2 %v2831_v27  ;;  %2205 = vmatpush.bf16.msrb.mxu3 %v2911_v53  ;;  %v3028_v27 = vld [vmem:[%s5437_s1 + $0x498] sm:$0xf0]  ;;  %v3595_v53 = vld [vmem:[%s5437_s1 + $0x404] sm:$0xf] }
  0xd5   : > { %v1938_v51 = vpop.f32.mrf.mxu2  ;;  %v3031_v35 = vor.u32 %v3613_v26, %v3028_v27  ;;  %v3388_v26 = vld [vmem:[%s5437_s1 + $0x768] sm:$0xf0]  ;;  %v3300_v45 = vld [vmem:[%s5437_s1 + $0x6b8] sm:$0xf0] }
  0xd6   : > { %2215 = vmatpush.bf16.msra.mxu0 %v2999_v21  ;;  %v1949_v54 = vpop.f32.mrf.mxu3  ;;  %v3108_v21 = vld [vmem:[%s5437_s1 + $0x538] sm:$0xf0]  ;;  %v3671_v51 = vld [vmem:[%s5437_s1 + $0x664] sm:$0xf] }
  0xd7   : > { %2228 = vmatpush.bf16.msra.mxu1 %v3063_v33  ;;  %2195 = vmatmul.bf16.vlgmr.msrb.gmra.mxu2 %v4425_v18  ;;  %v1950_v59 = vadd.f32 %v1949_v54, %v1937_v23  ;;  %v2895_v18 = vor.u32 %v3579_v41, %v2892_v42  ;;  %v3188_v23 = vld [vmem:[%s5437_s1 + $0x5d8] sm:$0xf0]  ;;  %v3111_v29 = vor.u32 %v3633_v17, %v3108_v21  ;;  %v3631_v33 = vld [vmem:[%s5437_s1 + $0x524] sm:$0xf]  ;;  %v3020_v42 = vld [vmem:[%s5437_s1 + $0x488] sm:$0xf0] }
  0xd8   : > { %2239 = vmatpush.bf16.msra.mxu2 %v3143_v31  ;;  %2206 = vmatpush.bf16.msrb.mxu3 %v2903_v39  ;;  %v3673_v31 = vld [vmem:[%s5437_s1 + $0x674] sm:$0xf]  ;;  %v2959_v39 = vor.u32 %v3595_v53, %v2956_v20  ;;  %v3611_v41 = vld [vmem:[%s5437_s1 + $0x484] sm:$0xf]  ;;  %v3244_v21 = vld [vmem:[%s5437_s1 + $0x648] sm:$0xf0] }
  0xd9   : > { %v1962_v4 = vpop.f32.mrf.mxu0  ;;  %v3271_v44 = vor.u32 %v3673_v31, %v3268_v32  ;;  %v3629_v54 = vld [vmem:[%s5437_s1 + $0x514] sm:$0xf]  ;;  %v3023_v58 = vor.u32 %v3611_v41, %v3020_v42  ;;  %v3683_v20 = vld [vmem:[%s5437_s1 + $0x6c4] sm:$0xf]  ;;  %v3236_v32 = vld [vmem:[%s5437_s1 + $0x638] sm:$0xf0] }
  0xda   : > { %2216 = vmatpush.bf16.msra.mxu0 %v2991_v34  ;;  %v1963_v6 = vadd.f32 %v1962_v4, %v1950_v59  ;;  %v3100_v34 = vld [vmem:[%s5437_s1 + $0x528] sm:$0xf0]  ;;  %v3649_v59 = vld [vmem:[%s5437_s1 + $0x5b4] sm:$0xf]  ;;  %v3095_v63 = vor.u32 %v3629_v54, %v3092_v55  ;;  %v3647_v4 = vld [vmem:[%s5437_s1 + $0x5a4] sm:$0xf] }
  0xdb   : > { %2229 = vmatpush.bf16.msra.mxu1 %v3055_v50  ;;  %v3103_v50 = vor.u32 %v3631_v33, %v3100_v34  ;;  %v3665_v31 = vld [vmem:[%s5437_s1 + $0x634] sm:$0xf]  ;;  %v3643_v33 = vld [vmem:[%s5437_s1 + $0x584] sm:$0xf]  ;;  %v3148_v34 = vld [vmem:[%s5437_s1 + $0x588] sm:$0xf0] }
  0xdc   : > { %2240 = vmatpush.bf16.msra.mxu2 %v3135_v43  ;;  %2207 = vmatpush.bf16.msrb.mxu3 %v2895_v18  ;;  %v3460_v42 = vld [vmem:[%s5437_s1 + $0x7f8] sm:$0xf0]  ;;  %v3699_v54 = vld [vmem:[%s5437_s1 + $0x744] sm:$0xf]  ;;  %v3372_v55 = vld [vmem:[%s5437_s1 + $0x748] sm:$0xf0] }
  0xde   : > { %2217 = vmatpush.bf16.msra.mxu0 %v2983_v49  ;;  %v1951_v15 = vpop.f32.mrf.mxu3  ;;  %v3260_v49 = vld [vmem:[%s5437_s1 + $0x668] sm:$0xf0] }
  0xdf   : > { %2230 = vmatpush.bf16.msra.mxu1 %v3047_v2  ;;  %2208 = vmatmul.bf16.vlgmr.msrb.gmra.mxu3 %v4478_v47  ;;  %v3191_v47 = vor.u32 %v3653_v13, %v3188_v23  ;;  %v3263_v18 = vor.u32 %v3671_v51, %v3260_v49  ;;  %v3175_v2 = vor.u32 %v3649_v59, %v3172_v60  ;;  %v3316_v13 = vld [vmem:[%s5437_s1 + $0x6d8] sm:$0xf0]  ;;  %v3645_v23 = vld [vmem:[%s5437_s1 + $0x594] sm:$0xf]  ;;  %v3452_v59 = vld [vmem:[%s5437_s1 + $0x7e8] sm:$0xf0] }
  0xe0   : > { %2241 = vmatpush.bf16.msra.mxu2 %v3127_v61  ;;  %2252 = vmatpush.bf16.msra.mxu3 %v3207_v62  ;;  %v3687_v61 = vld [vmem:[%s5437_s1 + $0x6e4] sm:$0xf]  ;;  %v3324_v62 = vld [vmem:[%s5437_s1 + $0x6e8] sm:$0xf0]  ;;  %v3399_v15 = vor.u32 %v3705_v9, %v3396_v10  ;;  %v3463_v49 = vor.u32 %v3721_v37, %v3460_v42  ;;  %v3444_v10 = vld [vmem:[%s5437_s1 + $0x7d8] sm:$0xf0] }
  0xe1   : > { %v1964_v36 = vpop.f32.mrf.mxu0  ;;  %v3327_v11 = vor.u32 %v3687_v61, %v3324_v62  ;;  %v3661_v61 = vld [vmem:[%s5437_s1 + $0x614] sm:$0xf]  ;;  %v3220_v62 = vld [vmem:[%s5437_s1 + $0x618] sm:$0xf0] }
  0xe2   : > { %2218 = vmatpush.bf16.msra.mxu0 %v2975_v8  ;;  %v1975_v38 = vpop.f32.mrf.mxu1  ;;  %v3164_v8 = vld [vmem:[%s5437_s1 + $0x5a8] sm:$0xf0] }
  0xe3   : > { %2231 = vmatpush.bf16.msra.mxu1 %v3039_v22  ;;  %v5190_v43 = vadd.f32 %v1975_v38, %v1963_v6  ;;  %v3084_v6 = vld [vmem:[%s5437_s1 + $0x508] sm:$0xf0]  ;;  %v3167_v22 = vor.u32 %v3647_v4, %v3164_v8  ;;  %v3701_v38 = vld [vmem:[%s5437_s1 + $0x754] sm:$0xf] }
  0xe4   : > { %2242 = vmatpush.bf16.msra.mxu2 %v3119_v14  ;;  %2253 = vmatpush.bf16.msra.mxu3 %v3199_v16  ;;  %v3255_v14 = vor.u32 %v3669_v0, %v3252_v1  ;;  %v3685_v16 = vld [vmem:[%s5437_s1 + $0x6d4] sm:$0xf]  ;;  %v3087_v17 = vor.u32 %v3627_v5, %v3084_v6  ;;  %v3364_v6 = vld [vmem:[%s5437_s1 + $0x738] sm:$0xf0] }
  0xe5   : > { %v3319_v27 = vor.u32 %v3685_v16, %v3316_v13  ;;  %v3717_v4 = vld [vmem:[%s5437_s1 + $0x7d4] sm:$0xf]  ;;  %v3659_v16 = vld [vmem:[%s5437_s1 + $0x604] sm:$0xf]  ;;  %v3212_v13 = vld [vmem:[%s5437_s1 + $0x608] sm:$0xf0] }
  0xe6   : > { %2219 = vmatpush.bf16.msra.mxu0 %v2967_v25  ;;  %v3156_v25 = vld [vmem:[%s5437_s1 + $0x598] sm:$0xf0]  ;;  %v3697_v5 = vld [vmem:[%s5437_s1 + $0x734] sm:$0xf] }
  0xe7   : > { %2232 = vmatpush.bf16.msra.mxu1 %v3031_v35  ;;  %v3159_v48 = vor.u32 %v3645_v23, %v3156_v25  ;;  %v3715_v23 = vld [vmem:[%s5437_s1 + $0x7c4] sm:$0xf] }
  0xe8   : > { %2243 = vmatpush.bf16.msra.mxu2 %v3111_v29  ;;  %2254 = vmatpush.bf16.msra.mxu3 %v3191_v47  ;;  %v3308_v29 = vld [vmem:[%s5437_s1 + $0x6c8] sm:$0xf0] }
  0xe9   : > { %v3311_v41 = vor.u32 %v3683_v20, %v3308_v29 }
  0xea   : > { %2220 = vmatpush.bf16.msra.mxu0 %v2959_v39  ;;  %v1977_v12 = vpop.f32.mrf.mxu1  ;;  %v3380_v39 = vld [vmem:[%s5437_s1 + $0x758] sm:$0xf0] }
  0xeb   : > { %2233 = vmatpush.bf16.msra.mxu1 %v3023_v58  ;;  %v3383_v51 = vor.u32 %v3701_v38, %v3380_v39  ;;  %v3677_v12 = vld [vmem:[%s5437_s1 + $0x694] sm:$0xf]  ;;  %v3691_v39 = vld [vmem:[%s5437_s1 + $0x704] sm:$0xf] }
  0xec   : > { %2244 = vmatpush.bf16.msra.mxu2 %v3103_v50  ;;  %2255 = vmatpush.bf16.msra.mxu3 %v3183_v52  ;;  %v3228_v50 = vld [vmem:[%s5437_s1 + $0x628] sm:$0xf0]  ;;  %v3719_v52 = vld [vmem:[%s5437_s1 + $0x7e4] sm:$0xf] }
  0xed   : > { %2221 = vmatmul.bf16.vlgmr.msra.gmra.mxu0 %v4537_v19  ;;  %v3667_v19 = vld [vmem:[%s5437_s1 + $0x644] sm:$0xf]  ;;  %v3231_v60 = vor.u32 %v3663_v46, %v3228_v50  ;;  %v3709_v50 = vld [vmem:[%s5437_s1 + $0x794] sm:$0xf] }
  0xee   : > { %2265 = vmatpush.bf16.msrb.mxu0 %v3271_v44  ;;  %2234 = vmatmul.bf16.vlgmr.msra.gmra.mxu1 %v4602_v57  ;;  %v3703_v57 = vld [vmem:[%s5437_s1 + $0x764] sm:$0xf]  ;;  %v3247_v53 = vor.u32 %v3667_v19, %v3244_v21  ;;  %v3681_v44 = vld [vmem:[%s5437_s1 + $0x6b4] sm:$0xf]  ;;  %v3367_v19 = vor.u32 %v3697_v5, %v3364_v6  ;;  %v3447_v21 = vor.u32 %v3717_v4, %v3444_v10 }
  0xef   : > { %2278 = vmatpush.bf16.msrb.mxu1 %v3335_v28  ;;  %v3391_v35 = vor.u32 %v3703_v57, %v3388_v26  ;;  %v3303_v58 = vor.u32 %v3681_v44, %v3300_v45  ;;  %v3679_v28 = vld [vmem:[%s5437_s1 + $0x6a4] sm:$0xf]  ;;  %v3436_v57 = vld [vmem:[%s5437_s1 + $0x7c8] sm:$0xf0]  ;;  %v3215_v26 = vor.u32 %v3659_v16, %v3212_v13 }
  0xf0   : > { %2245 = vmatpush.bf16.msra.mxu2 %v3095_v63  ;;  %2256 = vmatpush.bf16.msra.mxu3 %v3175_v2  ;;  %v3375_v63 = vor.u32 %v3699_v54, %v3372_v55  ;;  %v3455_v2 = vor.u32 %v3719_v52, %v3452_v59  ;;  %v3439_v29 = vor.u32 %v3715_v23, %v3436_v57  ;;  %v3420_v44 = vld [vmem:[%s5437_s1 + $0x7a8] sm:$0xf0] }
  0xf1   : > { %v1988_v47 = vpop.f32.mrf.mxu2 }
  0xf2   : > { %2266 = vmatpush.bf16.msrb.mxu0 %v3263_v18  ;;  %v1989_v36 = vadd.f32 %v1988_v47, %v5190_v43  ;;  %v3239_v43 = vor.u32 %v3665_v31, %v3236_v32  ;;  %v3292_v18 = vld [vmem:[%s5437_s1 + $0x6a8] sm:$0xf0]  ;;  %v3693_v32 = vld [vmem:[%s5437_s1 + $0x714] sm:$0xf]  ;;  %v3348_v47 = vld [vmem:[%s5437_s1 + $0x718] sm:$0xf0] }
  0xf3   : > { %2279 = vmatpush.bf16.msrb.mxu1 %v3327_v11  ;;  %v3295_v8 = vor.u32 %v3679_v28, %v3292_v18  ;;  %v3223_v11 = vor.u32 %v3661_v61, %v3220_v62 }
  0xf4   : > { %2246 = vmatpush.bf16.msra.mxu2 %v3087_v17  ;;  %2257 = vmatpush.bf16.msra.mxu3 %v3167_v22 }
  0xf6   : > { %2267 = vmatpush.bf16.msrb.mxu0 %v3255_v14  ;;  %v3284_v14 = vld [vmem:[%s5437_s1 + $0x698] sm:$0xf0] }
  0xf7   : > { %2280 = vmatpush.bf16.msrb.mxu1 %v3319_v27  ;;  %2247 = vmatmul.bf16.vlgmr.msra.gmra.mxu2 %v4649_v24  ;;  %v3151_v24 = vor.u32 %v3643_v33, %v3148_v34  ;;  %v3287_v25 = vor.u32 %v3677_v12, %v3284_v14  ;;  %v3675_v27 = vld [vmem:[%s5437_s1 + $0x684] sm:$0xf]  ;;  %v3713_v33 = vld [vmem:[%s5437_s1 + $0x7b4] sm:$0xf]  ;;  %v3428_v34 = vld [vmem:[%s5437_s1 + $0x7b8] sm:$0xf0] }
  0xf8   : > { %2291 = vmatpush.bf16.msrb.mxu2 %v3399_v15  ;;  %2258 = vmatpush.bf16.msra.mxu3 %v3159_v48  ;;  %v3356_v15 = vld [vmem:[%s5437_s1 + $0x728] sm:$0xf0]  ;;  %v3431_v38 = vor.u32 %v3713_v33, %v3428_v34 }
  0xf9   : > { %v1990_v0 = vpop.f32.mrf.mxu2 }
  0xfa   : > { %2268 = vmatpush.bf16.msrb.mxu0 %v3247_v53  ;;  %v2001_v1 = vpop.f32.mrf.mxu3  ;;  %v3276_v53 = vld [vmem:[%s5437_s1 + $0x688] sm:$0xf0] }
  0xfb   : > { %2281 = vmatpush.bf16.msrb.mxu1 %v3311_v41  ;;  %v2002_v9 = vadd.f32 %v2001_v1, %v1989_v36  ;;  %v3279_v48 = vor.u32 %v3675_v27, %v3276_v53  ;;  %v3340_v41 = vld [vmem:[%s5437_s1 + $0x708] sm:$0xf0] }
  0xfc   : > { %2292 = vmatpush.bf16.msrb.mxu2 %v3391_v35  ;;  %2259 = vmatpush.bf16.msra.mxu3 %v3151_v24  ;;  %v3351_v35 = vor.u32 %v3693_v32, %v3348_v47  ;;  %v3343_v45 = vor.u32 %v3691_v39, %v3340_v41  ;;  %v3412_v24 = vld [vmem:[%s5437_s1 + $0x798] sm:$0xf0] }
  0xfd   : > { %v2014_v17 = vpop.f32.mrf.mxu0 }
  0xfe   : > { %2269 = vmatpush.bf16.msrb.mxu0 %v3239_v43  ;;  %v2015_v22 = vadd.f32 %v2014_v17, %v2002_v9  ;;  %v3711_v43 = vld [vmem:[%s5437_s1 + $0x7a4] sm:$0xf] }
  0xff   : > { %2282 = vmatpush.bf16.msrb.mxu1 %v3303_v58  ;;  %2260 = vmatmul.bf16.vlgmr.msra.gmra.mxu3 %v4702_v56  ;;  %v3695_v56 = vld [vmem:[%s5437_s1 + $0x724] sm:$0xf]  ;;  %v3423_v46 = vor.u32 %v3711_v43, %v3420_v44 }
 0x100   : > { %2293 = vmatpush.bf16.msrb.mxu2 %v3383_v51  ;;  %2304 = vmatpush.bf16.msrb.mxu3 %v3463_v49  ;;  %v3359_v20 = vor.u32 %v3695_v56, %v3356_v15  ;;  %v3415_v51 = vor.u32 %v3709_v50, %v3412_v24 }
 0x102   : > { %2270 = vmatpush.bf16.msrb.mxu0 %v3231_v60  ;;  %v2003_v31 = vpop.f32.mrf.mxu3 }
 0x103   : > { %2283 = vmatpush.bf16.msrb.mxu1 %v3295_v8 }
 0x104   : > { %2294 = vmatpush.bf16.msrb.mxu2 %v3375_v63  ;;  %2305 = vmatpush.bf16.msrb.mxu3 %v3455_v2 }
 0x105   : > { %v2016_v36 = vpop.f32.mrf.mxu0 }
 0x106   : > { %2271 = vmatpush.bf16.msrb.mxu0 %v3223_v11  ;;  %v2027_v37 = vpop.f32.mrf.mxu1 }
 0x107   : > { %2284 = vmatpush.bf16.msrb.mxu1 %v3287_v25  ;;  %v2028_v42 = vadd.f32 %v2027_v37, %v2015_v22 }
 0x108   : > { %2295 = vmatpush.bf16.msrb.mxu2 %v3367_v19  ;;  %2306 = vmatpush.bf16.msrb.mxu3 %v3447_v21 }
 0x10a   : > { %2272 = vmatpush.bf16.msrb.mxu0 %v3215_v26 }
 0x10b   : > { %2285 = vmatpush.bf16.msrb.mxu1 %v3279_v48 }
 0x10c   : > { %2296 = vmatpush.bf16.msrb.mxu2 %v3359_v20  ;;  %2307 = vmatpush.bf16.msrb.mxu3 %v3439_v29 }
 0x10d   : > { %2273 = vmatmul.bf16.vlgmr.msrb.gmra.mxu0 %v4761_v30  ;;  %v3707_v30 = vld [vmem:[%s5437_s1 + $0x784] sm:$0xf] }
 0x10e   : > { %2286 = vmatmul.bf16.vlgmr.msrb.gmra.mxu1 %v4820_v3  ;;  %v2029_v49 = vpop.f32.mrf.mxu1  ;;  %v3404_v3 = vld [vmem:[%s5437_s1 + $0x788] sm:$0xf0] }
 0x10f   : > { %v3407_v52 = vor.u32 %v3707_v30, %v3404_v3  ;;  %v2325_v3 = vld [vmem:[%s5439_s3] sm:$0x3] }
 0x110   : > { %2297 = vmatpush.bf16.msrb.mxu2 %v3351_v35  ;;  %2308 = vmatpush.bf16.msrb.mxu3 %v3431_v38 }
 0x114   : > { %2298 = vmatpush.bf16.msrb.mxu2 %v3343_v45  ;;  %2309 = vmatpush.bf16.msrb.mxu3 %v3423_v46 }
 0x115   : > { %v2040_v54 = vpop.f32.mrf.mxu2 }
 0x116   : > { %v2041_v55 = vadd.f32 %v2040_v54, %v2028_v42 }
 0x117   : > { %2299 = vmatmul.bf16.vlgmr.msrb.gmra.mxu2 %v4879_v40 }
 0x118   : > { %2310 = vmatpush.bf16.msrb.mxu3 %v3415_v51  ;;  %v2317_v51 = vld [vmem:[%s5438_s2] sm:$0x3] }
 0x119   : > { %v2319_v49 = vperm.slane %v2317_v51, 0 }
 0x11c   : > { %2311 = vmatpush.bf16.msrb.mxu3 %v3407_v52 }
 0x11d   : > { %v2042_v58 = vpop.f32.mrf.mxu2 }
 0x11e   : > { %v2053_v59 = vpop.f32.mrf.mxu3  ;;  %v2320_v58 = vperm.slane %v2317_v51, 1 }
 0x11f   : > { %2312 = vmatmul.bf16.vlgmr.msrb.gmra.mxu3 %v4928_v7  ;;  %v2054_v60 = vadd.f32 %v2053_v59, %v2041_v55  ;;  %v2327_v55 = vperm.slane %v2325_v3, 0 }
 0x121   : > { %v2066_v28 = vpop.f32.mrf.mxu0 }
 0x122   : > { %v2067_v18 = vadd.f32 %v2066_v28, %v2054_v60 }
 0x126   : > { %v2055_v61 = vpop.f32.mrf.mxu3 }
 0x129   : > { %v2068_v62 = vpop.f32.mrf.mxu0 }
 0x12a   : > { %v2079_v63 = vpop.f32.mrf.mxu1 }
 0x12b   : > { %v2080_v0 = vadd.f32 %v2079_v63, %v2067_v18  ;;  %v2328_v18 = vperm.slane %v2325_v3, 1 }
 0x131   : > { %v2118_v1 = vpop.f32.mrf.mxu0 }
 0x132   : > { %v2081_v2 = vpop.f32.mrf.mxu1 }
 0x139   : > { %v2092_v4 = vpop.f32.mrf.mxu2  ;;  %v2120_v40 = vpop.f32.mrf.mxu0 }
 0x13a   : > { %v2093_v5 = vadd.f32 %v2092_v4, %v2080_v0  ;;  %v2131_v6 = vpop.f32.mrf.mxu1 }
 0x13b   : > { %v2132_v8 = vadd.f32 %v2131_v6, %v2118_v1 }
 0x141   : > { %v2094_v9 = vpop.f32.mrf.mxu2 }
 0x142   : > { %v2105_v10 = vpop.f32.mrf.mxu3  ;;  %v2133_v11 = vpop.f32.mrf.mxu1 }
 0x143   : > { %v2106_v7 = vadd.f32 %v2105_v10, %v2093_v5 }
 0x145   : > { %v2323_v54 = vmul.f32 %v2319_v49, %v2106_v7 }
 0x147   : > { %v2331_v61 = vadd.f32 %v2327_v55, %v2323_v54 }
 0x149   : > { %v2144_v12 = vpop.f32.mrf.mxu2  ;;  %v2333_v0 = vmul.f32 0.2, %v2331_v61 }
 0x14a   : > { %v2170_v14 = vpop.f32.mrf.mxu0  ;;  %v2107_v16 = vpop.f32.mrf.mxu3  ;;  %v2145_v20 = vadd.f32 %v2144_v12, %v2132_v8 }
 0x14b   : > { %v2183_v13 = vpop.f32.mrf.mxu1  ;;  %v2335_v40 = vmax.f32 %v2331_v61, %v2333_v0 }
 0x151   : > { %v2146_v17 = vpop.f32.mrf.mxu2 }
 0x152   : > { %v2172_v19 = vpop.f32.mrf.mxu0  ;;  %v2157_v21 = vpop.f32.mrf.mxu3 }
 0x153   : > { %v2185_v22 = vpop.f32.mrf.mxu1  ;;  %v2158_v31 = vadd.f32 %v2157_v21, %v2145_v20 }
 0x155   : > { %v2171_v47 = vadd.f32 %v2170_v14, %v2158_v31 }
 0x157   : > { %v2184_v48 = vadd.f32 %v2183_v13, %v2171_v47 }
 0x15a   : > { %v2196_v23 = vpop.f32.mrf.mxu2  ;;  %v2159_v56 = vpop.f32.mrf.mxu3 }
 0x15b   : > { %v2197_v35 = vadd.f32 %v2196_v23, %v2184_v48 }
 0x162   : > { %v2198_v15 = vpop.f32.mrf.mxu2  ;;  %v2209_v25 = vpop.f32.mrf.mxu3 }
 0x163   : > { %v2210_v37 = vadd.f32 %v2209_v25, %v2197_v35 }
 0x16a   : > { %v2222_v57 = vpop.f32.mrf.mxu0  ;;  %v2211_v27 = vpop.f32.mrf.mxu3 }
 0x16b   : > { %v2235_v26 = vpop.f32.mrf.mxu1  ;;  %v2223_v39 = vadd.f32 %v2222_v57, %v2210_v37 }
 0x16d   : > { %v2236_v42 = vadd.f32 %v2235_v26, %v2223_v39 }
 0x172   : > { %v2224_v53 = vpop.f32.mrf.mxu0 }
 0x173   : > { %v2237_v29 = vpop.f32.mrf.mxu1 }
 0x17a   : > { %v2248_v32 = vpop.f32.mrf.mxu2 }
 0x17b   : > { %v2249_v44 = vadd.f32 %v2248_v32, %v2236_v42 }
 0x182   : > { %v2250_v33 = vpop.f32.mrf.mxu2  ;;  %v2261_v34 = vpop.f32.mrf.mxu3 }
 0x183   : > { %v2262_v46 = vadd.f32 %v2261_v34, %v2249_v44 }
 0x18a   : > { %v2274_v36 = vpop.f32.mrf.mxu0  ;;  %v2263_v41 = vpop.f32.mrf.mxu3 }
 0x18b   : > { %v2287_v38 = vpop.f32.mrf.mxu1  ;;  %v2275_v50 = vadd.f32 %v2274_v36, %v2262_v46 }
 0x18d   : > { %v2288_v30 = vadd.f32 %v2287_v38, %v2275_v50 }
 0x192   : > { %v2276_v43 = vpop.f32.mrf.mxu0 }
 0x193   : > { %v2289_v45 = vpop.f32.mrf.mxu1 }
 0x19a   : > { %v2300_v24 = vpop.f32.mrf.mxu2 }
 0x19b   : > { %v2301_v52 = vadd.f32 %v2300_v24, %v2288_v30 }
 0x1a2   : > { %v2302_v59 = vpop.f32.mrf.mxu2  ;;  %v2313_v60 = vpop.f32.mrf.mxu3 }
 0x1a3   : > { %v2314_v28 = vadd.f32 %v2313_v60, %v2301_v52 }
 0x1a5   : > { %v2324_v62 = vmul.f32 %v2320_v58, %v2314_v28 }
 0x1a7   : > { %v2332_v63 = vadd.f32 %v2328_v18, %v2324_v62 }
 0x1a9   : > { %v2334_v1 = vmul.f32 0.2, %v2332_v63 }
 0x1aa   : > { %v2315_v2 = vpop.f32.mrf.mxu3 }
 0x1ab   : > { %v2336_v4 = vmax.f32 %v2332_v63, %v2334_v1 }
 0x1ad   : > { %v2339_v5 = vrot.slane %v2336_v4, 6 }
 0x1af   : > { %v2341_v6 = vsel %vm2340_vm0, %v2335_v40, %v2339_v5  ;;  %v2343_v8 = vsel %vm2342_vm1, %v2335_v40, %v2339_v5 }
 0x1b0   : > { %v2344_v9 = vrot.slane %v2343_v8, 2  ;;  %2347 = vst [vmem:[%s197_s14] sm:$0xf] %v2341_v6 }
 0x1b2   : > { %2348 = vst [vmem:[%s197_s14 + $0x4] sm:$0xf] %v2344_v9 }
 0x1b3 PF: > { %s14_s15 = sadd.s32 1, %s3738_s15  }
 0x1b4   : > { %p11_p4 = scmp.ge.s32.totalorder %s14_s15, 4  }
 0x1b6   :  { %13 = sbr.rel (!%p11_p4) target bundleno = 1 (0x1), region = 89 }

// kernel: discriminator_forward.9
= control target key start
LH: loop header
LB: loop body
LE: loop exit
PB: predicated region body
PF: predicated region fallthrough
CT: control target
= control target key end

     0   :  { %s4636_s9 = smov 0   ;;  %s5576_s0 = inlined_call_operand.vmem [shape: f32[2,5,5,256], index: 0, kind: input, shape index: {}]   ;;  %s5577_s1 = inlined_call_operand.vmem [shape: bf16[4096,1], index: 1, kind: input, shape index: {}]   ;;  %s5578_s2 = inlined_call_operand.vmem [shape: f32[2,2,2,1], index: 2, kind: output, shape index: {}]  }
   0x1 LB: > { %s3241_s10 = sadd.s32 4294967295, %s4619_s9   ;;  %p3245_p0 = scmp.ge.s32.totalorder %s4619_s9, 1  ;;  %s4619_s9 = sphi %s4636_s9, %s12_s9  }
   0x2   : > { %p112_p1 = scmp.lt.s32.totalorder %s4619_s9, 3 }
   0x4   : > { %p113_p2 = pnand %p3245_p0, %p112_p1 }
   0x5   : > { %p134_p3 = scmp.lt.s32.totalorder (!%p113_p2), %s3241_s10, 1 }
   0x6   : > { %116 = sbr.rel (%p113_p2) target bundleno = 410 (0x19a), region = 28 }
   0xb   : > { %v4355_v0 = vld [vmem:[%s5577_s1 + $0x38] sm:$0xff]  ;;  %v4354_v4 = vld [vmem:[%s5577_s1 + $0x30] sm:$0xff]  ;;  %v4353_v8 = vld [vmem:[%s5577_s1 + $0x28] sm:$0xff]  ;;  %s5586_s10 = smov (!%p134_p3, %s3241_s10), 1  ;;  %vm182_vm0 = vcmask 1040384   ;;  %vm183_vm1 = vcmask 1042434  }
   0xc   : > { %v4363_v1 = vld [vmem:[%s5577_s1 + $0x78] sm:$0xff]  ;;  %2764 = vmatpush.bf16.msra.mxu0 %v4355_v0  ;;  %v4362_v5 = vld [vmem:[%s5577_s1 + $0x70] sm:$0xff]  ;;  %v4361_v9 = vld [vmem:[%s5577_s1 + $0x68] sm:$0xff]  ;;  %s4604_s13 = smul.u32 80, %s5586_s10  ;;  %vm154_vm2 = vcmask 1041408   ;;  %vm176_vm3 = vcmask 1043458  }
   0xd   : > { %v4371_v2 = vld [vmem:[%s5577_s1 + $0xb8] sm:$0xff]  ;;  %2777 = vmatpush.bf16.msra.mxu1 %v4363_v1  ;;  %v4370_v6 = vld [vmem:[%s5577_s1 + $0xb0] sm:$0xff]  ;;  %v4369_v10 = vld [vmem:[%s5577_s1 + $0xa8] sm:$0xff]  ;;  %vm185_vm5 = vcmask 1044484   ;;  %vm187_vm7 = vcmask 1046534   ;;  %s4347_s25 = sshll.u32 %s5586_s10, 2 }
   0xe   : > { %v4379_v3 = vld [vmem:[%s5577_s1 + $0xf8] sm:$0xff]  ;;  %2790 = vmatpush.bf16.msra.mxu2 %v4371_v2  ;;  %v4378_v7 = vld [vmem:[%s5577_s1 + $0xf0] sm:$0xff]  ;;  %v4377_v11 = vld [vmem:[%s5577_s1 + $0xe8] sm:$0xff]  ;;  %s4704_s24 = scalar_lea.vmem %s5576_s0, %s4604_s13  ;;  %s143_s27 = scalar_lea.vmem %s5578_s2, %s4347_s25  ;;  %vm3183_vm9 = vcmask 1024  }
   0xf   : > { %2803 = vmatpush.bf16.msra.mxu3 %v4379_v3  ;;  %v4352_v12 = vld [vmem:[%s5577_s1 + $0x20] sm:$0xff]  ;;  %v4351_v16 = vld [vmem:[%s5577_s1 + $0x18] sm:$0xff]  ;;  %v4350_v20 = vld [vmem:[%s5577_s1 + $0x10] sm:$0xff] }
  0x10   : > { %2765 = vmatpush.bf16.msra.mxu0 %v4354_v4  ;;  %v4360_v13 = vld [vmem:[%s5577_s1 + $0x60] sm:$0xff]  ;;  %v4359_v17 = vld [vmem:[%s5577_s1 + $0x58] sm:$0xff]  ;;  %v4358_v21 = vld [vmem:[%s5577_s1 + $0x50] sm:$0xff] }
  0x11   : > { %2778 = vmatpush.bf16.msra.mxu1 %v4362_v5  ;;  %v4368_v14 = vld [vmem:[%s5577_s1 + $0xa0] sm:$0xff]  ;;  %v4367_v18 = vld [vmem:[%s5577_s1 + $0x98] sm:$0xff]  ;;  %v4366_v22 = vld [vmem:[%s5577_s1 + $0x90] sm:$0xff] }
  0x12   : > { %2791 = vmatpush.bf16.msra.mxu2 %v4370_v6  ;;  %v4376_v15 = vld [vmem:[%s5577_s1 + $0xe0] sm:$0xff]  ;;  %v4375_v19 = vld [vmem:[%s5577_s1 + $0xd8] sm:$0xff]  ;;  %v145_v24 = vld [vmem:[%s4704_s24 + $0x8] sm:$0x3] }
  0x13   : > { %2804 = vmatpush.bf16.msra.mxu3 %v4378_v7  ;;  %v144_v23 = vld [vmem:[%s4704_s24] sm:$0x3]  ;;  %v146_v25 = vld [vmem:[%s4704_s24 + $0x10] sm:$0x3]  ;;  %v147_v26 = vld [vmem:[%s4704_s24 + $0x18] sm:$0x3] }
  0x14   : > { %2766 = vmatpush.bf16.msra.mxu0 %v4353_v8  ;;  %v152_v27 = vrot.slane %v145_v24, 6  ;;  %vm4725_vm4 = vmor %vm182_vm0, %vm183_vm1  ;;  %v4374_v29 = vld [vmem:[%s5577_s1 + $0xd0] sm:$0xff]  ;;  %v153_v30 = vrot.slane %v147_v26, 6  ;;  %v165_v31 = vld [vmem:[%s4704_s24] sm:$0x6] }
  0x15   : > { %2779 = vmatpush.bf16.msra.mxu1 %v4361_v9  ;;  %v166_v32 = vld [vmem:[%s4704_s24 + $0x8] sm:$0x6]  ;;  %v167_v34 = vld [vmem:[%s4704_s24 + $0x10] sm:$0x6]  ;;  %v168_v35 = vld [vmem:[%s4704_s24 + $0x18] sm:$0x6] }
  0x16   : > { %2792 = vmatpush.bf16.msra.mxu2 %v4369_v10  ;;  %v155_v33 = vsel %vm154_vm2, %v144_v23, %v152_v27  ;;  %v173_v36 = vrot.slane %v166_v32, 6  ;;  %v156_v37 = vsel %vm154_vm2, %v146_v25, %v153_v30  ;;  %v174_v38 = vrot.slane %v168_v35, 6  ;;  %vm4740_vm6 = vmor %vm4725_vm4, %vm185_vm5  ;;  %v4349_v40 = vld [vmem:[%s5577_s1 + $0x8] sm:$0xff]  ;;  %v207_v44 = vld [vmem:[%s4704_s24 + $0x10] sm:$0xc] }
  0x17   : > { %2805 = vmatpush.bf16.msra.mxu3 %v4377_v11  ;;  %157 = vst [vmem:[#allocation1] ss:$4 sm:$0xff] %v155_v33  ;;  %v4357_v41 = vld [vmem:[%s5577_s1 + $0x48] sm:$0xff]  ;;  %v208_v51 = vld [vmem:[%s4704_s24 + $0x18] sm:$0xc]  ;;  %vm4765_vm8 = vmor %vm4740_vm6, %vm187_vm7 }
  0x18   : > { %2767 = vmatpush.bf16.msra.mxu0 %v4352_v12  ;;  %159 = vst [vmem:[#allocation1 + $0x1] ss:$4 sm:$0xff] %v156_v37  ;;  %v175_v42 = vsel %vm154_vm2, %v165_v31, %v173_v36  ;;  %v177_v43 = vsel %vm176_vm3, %v165_v31, %v173_v36  ;;  %v4365_v45 = vld [vmem:[%s5577_s1 + $0x88] sm:$0xff]  ;;  %v179_v47 = vsel %vm154_vm2, %v167_v34, %v174_v38  ;;  %v4348_v55 = vld [vmem:[%s5577_s1] sm:$0xff]  ;;  %v4387_v59 = vld [vmem:[%s5577_s1 + $0x138] sm:$0xff] }
  0x19   : > { %2780 = vmatpush.bf16.msra.mxu1 %v4360_v13  ;;  %v4373_v46 = vld [vmem:[%s5577_s1 + $0xc8] sm:$0xff]  ;;  %v180_v48 = vsel %vm176_vm3, %v167_v34, %v174_v38  ;;  %v3249_v49 = vrot.slane %v175_v42, 9  ;;  %v3250_v50 = vrot.slane %v177_v43, 9  ;;  %v3251_v53 = vrot.slane %v179_v47, 9  ;;  %v4356_v56 = vld [vmem:[%s5577_s1 + $0x40] sm:$0xff]  ;;  %v4395_v61 = vld [vmem:[%s5577_s1 + $0x178] sm:$0xff] }
  0x1a   : > { %2793 = vmatpush.bf16.msra.mxu2 %v4368_v14  ;;  %v3252_v54 = vrot.slane %v180_v48, 9  ;;  %217 = vst.sshfl [vmem:[#allocation1 + $0x20] sm:$0xff pattern:$0x73625140] %v207_v44  ;;  %v4364_v57 = vld [vmem:[%s5577_s1 + $0x80] sm:$0xff]  ;;  %v4403_v62 = vld [vmem:[%s5577_s1 + $0x1b8] sm:$0xff] }
  0x1b   : > { %2806 = vmatpush.bf16.msra.mxu3 %v4376_v15  ;;  %218 = vst.sshfl [vmem:[#allocation1 + $0x28] sm:$0xff pattern:$0x73625140] %v208_v51  ;;  %v4372_v58 = vld [vmem:[%s5577_s1 + $0xc0] sm:$0xff]  ;;  %v192_v60 = vsel %vm4765_vm8, %v3249_v49, %v3250_v50  ;;  %v4411_v63 = vld [vmem:[%s5577_s1 + $0x1f8] sm:$0xff]  ;;  %v4386_v6 = vld [vmem:[%s5577_s1 + $0x130] sm:$0xff] }
  0x1c   : > { %2768 = vmatpush.bf16.msra.mxu0 %v4351_v16  ;;  %v196_v0 = vsel %vm4765_vm8, %v3251_v53, %v3252_v54  ;;  %v231_v3 = vld [vmem:[%s4704_s24 + $0x10] sm:$0x18]  ;;  %v232_v5 = vld [vmem:[%s4704_s24 + $0x18] sm:$0x18]  ;;  %v4385_v15 = vld [vmem:[%s5577_s1 + $0x128] sm:$0xff] }
  0x1d   : > { %2781 = vmatpush.bf16.msra.mxu1 %v4359_v17  ;;  %v4394_v7 = vld [vmem:[%s5577_s1 + $0x170] sm:$0xff]  ;;  %v4393_v16 = vld [vmem:[%s5577_s1 + $0x168] sm:$0xff]  ;;  %v205_v17 = vld [vmem:[%s4704_s24] sm:$0xc] }
  0x1e   : > { %2794 = vmatpush.bf16.msra.mxu2 %v4367_v18  ;;  %v4402_v10 = vld [vmem:[%s5577_s1 + $0x1b0] sm:$0xff]  ;;  %v4401_v18 = vld [vmem:[%s5577_s1 + $0x1a8] sm:$0xff]  ;;  %v4384_v24 = vld [vmem:[%s5577_s1 + $0x120] sm:$0xff] }
  0x1f   : > { %2807 = vmatpush.bf16.msra.mxu3 %v4375_v19  ;;  %v160_v1 = vld.sshfl [vmem:[#allocation1] sm:$0xff pattern:$0x73625140]  ;;  %v161_v2 = vld.sshfl [vmem:[#allocation1 + $0x8] sm:$0xff pattern:$0x73625140] }
  0x20   : > { %2769 = vmatpush.bf16.msra.mxu0 %v4350_v20  ;;  %197 = vst [vmem:[#allocation1] ss:$4 sm:$0xff] %v192_v60  ;;  %v164_v4 = vpack.c.bf16 %v161_v2, %v160_v1  ;;  %v4410_v11 = vld [vmem:[%s5577_s1 + $0x1f0] sm:$0xff]  ;;  %v4409_v19 = vld [vmem:[%s5577_s1 + $0x1e8] sm:$0xff]  ;;  %v4392_v25 = vld [vmem:[%s5577_s1 + $0x160] sm:$0xff] }
  0x21   : > { %2782 = vmatpush.bf16.msra.mxu1 %v4358_v21  ;;  %199 = vst [vmem:[#allocation1 + $0x1] ss:$4 sm:$0xff] %v196_v0  ;;  %v206_v20 = vld [vmem:[%s4704_s24 + $0x8] sm:$0xc]  ;;  %v4400_v26 = vld [vmem:[%s5577_s1 + $0x1a0] sm:$0xff]  ;;  %v4383_v32 = vld [vmem:[%s5577_s1 + $0x118] sm:$0xff] }
  0x22   : > { %2795 = vmatpush.bf16.msra.mxu2 %v4366_v22  ;;  %v220_v8 = vld [vmem:[#allocation1 + $0x21] ss:$4 sm:$0xff]  ;;  %v605_v9 = vunpack.c.l.b16 %v164_v4  ;;  %v606_v12 = vunpack.c.h.b16 %v164_v4 }
  0x23   : > { %2808 = vmatpush.bf16.msra.mxu3 %v4374_v29  ;;  %243 = vst.sshfl [vmem:[#allocation1 + $0x20] sm:$0xff pattern:$0x73625140] %v231_v3  ;;  %v4408_v27 = vld [vmem:[%s5577_s1 + $0x1e0] sm:$0xff]  ;;  %v4391_v33 = vld [vmem:[%s5577_s1 + $0x158] sm:$0xff]  ;;  %v4382_v37 = vld [vmem:[%s5577_s1 + $0x110] sm:$0xff] }
  0x24   : > { %2770 = vmatpush.bf16.msra.mxu0 %v4349_v40  ;;  %244 = vst.sshfl [vmem:[#allocation1 + $0x28] sm:$0xff pattern:$0x73625140] %v232_v5  ;;  %v607_v13 = vpack.c.b16 %v605_v9, %v605_v9  ;;  %v608_v14 = vpack.c.b16 %v606_v12, %v606_v12  ;;  %v4399_v34 = vld [vmem:[%s5577_s1 + $0x198] sm:$0xff]  ;;  %v4390_v38 = vld [vmem:[%s5577_s1 + $0x150] sm:$0xff]  ;;  %v4389_v42 = vld [vmem:[%s5577_s1 + $0x148] sm:$0xff] }
  0x25   : > { %2783 = vmatpush.bf16.msra.mxu1 %v4357_v41  ;;  %v4407_v35 = vld [vmem:[%s5577_s1 + $0x1d8] sm:$0xff]  ;;  %v4398_v39 = vld [vmem:[%s5577_s1 + $0x190] sm:$0xff]  ;;  %v4381_v41 = vld [vmem:[%s5577_s1 + $0x108] sm:$0xff] }
  0x26   : > { %2796 = vmatpush.bf16.msra.mxu2 %v4365_v45  ;;  %v4406_v40 = vld [vmem:[%s5577_s1 + $0x1d0] sm:$0xff]  ;;  %v4397_v43 = vld [vmem:[%s5577_s1 + $0x188] sm:$0xff]  ;;  %v229_v45 = vld [vmem:[%s4704_s24] sm:$0x18] }
  0x27   : > { %2809 = vmatpush.bf16.msra.mxu3 %v4373_v46  ;;  %v4405_v44 = vld [vmem:[%s5577_s1 + $0x1c8] sm:$0xff]  ;;  %v4380_v47 = vld [vmem:[%s5577_s1 + $0x100] sm:$0xff]  ;;  %v4418_v3 = vld [vmem:[%s5577_s1 + $0x230] sm:$0xff] }
  0x28   : > { %2771 = vmatpush.bf16.msra.mxu0 %v4348_v55  ;;  %v200_v21 = vld.sshfl [vmem:[#allocation1] sm:$0xff pattern:$0x73625140]  ;;  %v201_v22 = vld.sshfl [vmem:[#allocation1 + $0x8] sm:$0xff pattern:$0x73625140] }
  0x29   : > { %2784 = vmatpush.bf16.msra.mxu1 %v4356_v56  ;;  %v204_v23 = vpack.c.bf16 %v201_v22, %v200_v21  ;;  %213 = vst.sshfl [vmem:[#allocation1] sm:$0xff pattern:$0x73625140] %v205_v17  ;;  %v230_v46 = vld [vmem:[%s4704_s24 + $0x8] sm:$0x18]  ;;  %v4388_v50 = vld [vmem:[%s5577_s1 + $0x140] sm:$0xff] }
  0x2a   : > { %2797 = vmatpush.bf16.msra.mxu2 %v4364_v57  ;;  %214 = vst.sshfl [vmem:[#allocation1 + $0x8] sm:$0xff pattern:$0x73625140] %v206_v20  ;;  %v4396_v54 = vld [vmem:[%s5577_s1 + $0x180] sm:$0xff]  ;;  %v4419_v57 = vld [vmem:[%s5577_s1 + $0x238] sm:$0xff]  ;;  %v4426_v4 = vld [vmem:[%s5577_s1 + $0x270] sm:$0xff] }
  0x2b   : > { %2810 = vmatpush.bf16.msra.mxu3 %v4372_v58  ;;  %2772 = vmatmul.bf16.vlgmr.msra.gmra.mxu0 %v607_v13  ;;  %v612_v28 = vunpack.c.l.b16 %v204_v23  ;;  %v613_v29 = vunpack.c.h.b16 %v204_v23  ;;  %v246_v48 = vld [vmem:[#allocation1 + $0x21] ss:$4 sm:$0xff]  ;;  %v248_v49 = vld [vmem:[#allocation1 + $0x22] ss:$4 sm:$0xff] }
  0x2c   : > { %2816 = vmatpush.bf16.msrb.mxu0 %v4387_v59  ;;  %2785 = vmatmul.bf16.vlgmr.msra.gmra.mxu1 %v608_v14  ;;  %v4404_v55 = vld [vmem:[%s5577_s1 + $0x1c0] sm:$0xff]  ;;  %v4427_v58 = vld [vmem:[%s5577_s1 + $0x278] sm:$0xff]  ;;  %v3254_v59 = vrot.slane %v246_v48, 9  ;;  %v255_v60 = vrot.slane %v248_v49, 7  ;;  %v3270_v9 = vld [vmem:[%s4704_s24 + $0x28] sm:$0xc] }
  0x2d   : > { %2829 = vmatpush.bf16.msrb.mxu1 %v4395_v61  ;;  %v614_v30 = vpack.c.b16 %v612_v28, %v612_v28  ;;  %v615_v31 = vpack.c.b16 %v613_v29, %v613_v29  ;;  %v4435_v61 = vld [vmem:[%s5577_s1 + $0x2b8] sm:$0xff]  ;;  %v4433_v17 = vld [vmem:[%s5577_s1 + $0x2a8] sm:$0xff]  ;;  %331 = vst.sshfl [vmem:[#allocation1 + $0x28] sm:$0xff pattern:$0x73625140] %v3270_v9  ;;  %v4432_v28 = vld [vmem:[%s5577_s1 + $0x2a0] sm:$0xff] }
  0x2e   : > { %2842 = vmatpush.bf16.msrb.mxu2 %v4403_v62  ;;  %v4443_v62 = vld [vmem:[%s5577_s1 + $0x2f8] sm:$0xff]  ;;  %v256_v5 = vsel %vm4765_vm8, %v3254_v59, %v255_v60  ;;  %v3258_v20 = vld [vmem:[%s4704_s24 + $0x28] sm:$0x3]  ;;  %v4440_v29 = vld [vmem:[%s5577_s1 + $0x2e0] sm:$0xff] }
  0x2f   : > { %2855 = vmatpush.bf16.msrb.mxu3 %v4411_v63  ;;  %2798 = vmatmul.bf16.vlgmr.msra.gmra.mxu2 %v614_v30  ;;  %v3256_v12 = vld [vmem:[%s4704_s24 + $0x18] sm:$0x3]  ;;  %v3262_v22 = vld [vmem:[%s4704_s24 + $0x28] sm:$0x6]  ;;  %v4414_v48 = vld [vmem:[%s5577_s1 + $0x210] sm:$0xff] }
  0x30   : > { %2817 = vmatpush.bf16.msrb.mxu0 %v4386_v6  ;;  %2811 = vmatmul.bf16.vlgmr.msra.gmra.mxu3 %v615_v31  ;;  %v4434_v6 = vld [vmem:[%s5577_s1 + $0x2b0] sm:$0xff]  ;;  %v3260_v21 = vld [vmem:[%s4704_s24 + $0x18] sm:$0x6]  ;;  %v274_v23 = vrot.slane %v3256_v12, 6  ;;  %v3257_v31 = vld [vmem:[%s4704_s24 + $0x20] sm:$0x3] }
  0x31   : > { %2830 = vmatpush.bf16.msrb.mxu1 %v4394_v7  ;;  %v216_v36 = vld [vmem:[#allocation1 + $0x1] ss:$4 sm:$0xff]  ;;  %v294_v30 = vrot.slane %v3260_v21, 6  ;;  %v3273_v60 = vld [vmem:[%s4704_s24 + $0x20] sm:$0x18] }
  0x32   : > { %2843 = vmatpush.bf16.msrb.mxu2 %v4402_v10  ;;  %221 = vst [vmem:[#allocation1] ss:$4 sm:$0xff] %v216_v36  ;;  %v4442_v7 = vld [vmem:[%s5577_s1 + $0x2f0] sm:$0xff]  ;;  %v4415_v36 = vld [vmem:[%s5577_s1 + $0x218] sm:$0xff]  ;;  %v4420_v9 = vld [vmem:[%s5577_s1 + $0x240] sm:$0xff] }
  0x33   : > { %2856 = vmatpush.bf16.msrb.mxu3 %v4410_v11  ;;  %223 = vst [vmem:[#allocation1 + $0x1] ss:$4 sm:$0xff] %v220_v8  ;;  %v3269_v8 = vld [vmem:[%s4704_s24 + $0x20] sm:$0xc]  ;;  %v4422_v49 = vld [vmem:[%s5577_s1 + $0x250] sm:$0xff]  ;;  %v4459_v12 = vld [vmem:[%s5577_s1 + $0x378] sm:$0xff] }
  0x34   : > { %2818 = vmatpush.bf16.msrb.mxu0 %v4385_v15  ;;  %330 = vst.sshfl [vmem:[#allocation1 + $0x20] sm:$0xff pattern:$0x73625140] %v3269_v8  ;;  %v4417_v15 = vld [vmem:[%s5577_s1 + $0x228] sm:$0xff]  ;;  %v4412_v8 = vld [vmem:[%s5577_s1 + $0x200] sm:$0xff]  ;;  %v4450_v21 = vld [vmem:[%s5577_s1 + $0x330] sm:$0xff] }
  0x35   : > { %2831 = vmatpush.bf16.msrb.mxu1 %v4393_v16  ;;  %v4425_v16 = vld [vmem:[%s5577_s1 + $0x268] sm:$0xff] }
  0x36   : > { %2844 = vmatpush.bf16.msrb.mxu2 %v4401_v18  ;;  %v4441_v18 = vld [vmem:[%s5577_s1 + $0x2e8] sm:$0xff] }
  0x37   : > { %2857 = vmatpush.bf16.msrb.mxu3 %v4409_v19 }
  0x38   : > { %2819 = vmatpush.bf16.msrb.mxu0 %v4384_v24  ;;  %v4416_v24 = vld [vmem:[%s5577_s1 + $0x220] sm:$0xff] }
  0x39   : > { %2832 = vmatpush.bf16.msrb.mxu1 %v4392_v25  ;;  %v4424_v25 = vld [vmem:[%s5577_s1 + $0x260] sm:$0xff] }
  0x3a   : > { %2845 = vmatpush.bf16.msrb.mxu2 %v4400_v26  ;;  %v224_v51 = vld.sshfl [vmem:[#allocation1] sm:$0xff pattern:$0x73625140]  ;;  %v225_v53 = vld.sshfl [vmem:[#allocation1 + $0x8] sm:$0xff pattern:$0x73625140] }
  0x3b   : > { %2858 = vmatpush.bf16.msrb.mxu3 %v4408_v27  ;;  %237 = vst.sshfl [vmem:[#allocation1] sm:$0xff pattern:$0x73625140] %v229_v45  ;;  %v228_v56 = vpack.c.bf16 %v225_v53, %v224_v51  ;;  %v3255_v26 = vld [vmem:[%s4704_s24 + $0x10] sm:$0x3]  ;;  %v275_v27 = vrot.slane %v3258_v20, 6 }
  0x3c   : > { %2820 = vmatpush.bf16.msrb.mxu0 %v4383_v32  ;;  %238 = vst.sshfl [vmem:[#allocation1 + $0x8] sm:$0xff pattern:$0x73625140] %v230_v46  ;;  %v3259_v32 = vld [vmem:[%s4704_s24 + $0x10] sm:$0x6] }
  0x3d   : > { %2833 = vmatpush.bf16.msrb.mxu1 %v4391_v33  ;;  %v619_v63 = vunpack.c.l.b16 %v228_v56  ;;  %v620_v0 = vunpack.c.h.b16 %v228_v56  ;;  %v295_v33 = vrot.slane %v3262_v22, 6  ;;  %v4979_v59 = vld [vmem:[#allocation1 + $0x21] ss:$4 sm:$0xff] }
  0x3e   : > { %2846 = vmatpush.bf16.msrb.mxu2 %v4399_v34  ;;  %v3261_v34 = vld [vmem:[%s4704_s24 + $0x20] sm:$0x6]  ;;  %356 = vst.sshfl [vmem:[#allocation1 + $0x20] sm:$0xff pattern:$0x73625140] %v3273_v60  ;;  %v4458_v22 = vld [vmem:[%s5577_s1 + $0x370] sm:$0xff] }
  0x3f   : > { %2859 = vmatpush.bf16.msrb.mxu3 %v4407_v35  ;;  %v621_v1 = vpack.c.b16 %v619_v63, %v619_v63  ;;  %v622_v2 = vpack.c.b16 %v620_v0, %v620_v0  ;;  %v276_v35 = vsel %vm154_vm2, %v3255_v26, %v274_v23  ;;  %v299_v45 = vsel %vm154_vm2, %v3261_v34, %v295_v33  ;;  %v3274_v63 = vld [vmem:[%s4704_s24 + $0x28] sm:$0x18]  ;;  %v3267_v23 = vld [vmem:[%s4704_s24 + $0x10] sm:$0xc] }
  0x40   : > { %2821 = vmatpush.bf16.msrb.mxu0 %v4382_v37  ;;  %v4423_v37 = vld [vmem:[%s5577_s1 + $0x258] sm:$0xff]  ;;  %v3265_v56 = vrot.slane %v299_v45, 9  ;;  %v4413_v0 = vld [vmem:[%s5577_s1 + $0x208] sm:$0xff]  ;;  %357 = vst.sshfl [vmem:[#allocation1 + $0x28] sm:$0xff pattern:$0x73625140] %v3274_v63 }
  0x41   : > { %2834 = vmatpush.bf16.msrb.mxu1 %v4390_v38  ;;  %v277_v38 = vsel %vm154_vm2, %v3257_v31, %v275_v27  ;;  %v4474_v26 = vld [vmem:[%s5577_s1 + $0x3f0] sm:$0xff]  ;;  %v4457_v31 = vld [vmem:[%s5577_s1 + $0x368] sm:$0xff]  ;;  %v4463_v45 = vld [vmem:[%s5577_s1 + $0x398] sm:$0xff] }
  0x42   : > { %2847 = vmatpush.bf16.msrb.mxu2 %v4398_v39  ;;  %v4431_v39 = vld [vmem:[%s5577_s1 + $0x298] sm:$0xff]  ;;  %v4444_v63 = vld [vmem:[%s5577_s1 + $0x300] sm:$0xff] }
  0x43   : > { %2860 = vmatpush.bf16.msrb.mxu3 %v4406_v40  ;;  %v240_v10 = vld [vmem:[#allocation1 + $0x1] ss:$4 sm:$0xff]  ;;  %v242_v11 = vld [vmem:[#allocation1 + $0x2] ss:$4 sm:$0xff] }
  0x44   : > { %2822 = vmatpush.bf16.msrb.mxu0 %v4381_v41  ;;  %v3253_v13 = vrot.slane %v240_v10, 9  ;;  %v251_v14 = vrot.slane %v242_v11, 7  ;;  %259 = vst [vmem:[#allocation1 + $0x1] ss:$4 sm:$0xff] %v256_v5  ;;  %v4439_v40 = vld [vmem:[%s5577_s1 + $0x2d8] sm:$0xff]  ;;  %v296_v41 = vsel %vm154_vm2, %v3259_v32, %v294_v30 }
  0x45   : > { %2835 = vmatpush.bf16.msrb.mxu1 %v4389_v42  ;;  %v4451_v11 = vld [vmem:[%s5577_s1 + $0x338] sm:$0xff] }
  0x46   : > { %2848 = vmatpush.bf16.msrb.mxu2 %v4397_v43  ;;  %v252_v19 = vsel %vm4765_vm8, %v3253_v13, %v251_v14  ;;  %v4428_v13 = vld [vmem:[%s5577_s1 + $0x280] sm:$0xff] }
  0x47   : > { %2861 = vmatpush.bf16.msrb.mxu3 %v4405_v44  ;;  %257 = vst [vmem:[#allocation1] ss:$4 sm:$0xff] %v252_v19  ;;  %v297_v44 = vsel %vm176_vm3, %v3259_v32, %v294_v30  ;;  %v4436_v14 = vld [vmem:[%s5577_s1 + $0x2c0] sm:$0xff]  ;;  %v4449_v30 = vld [vmem:[%s5577_s1 + $0x328] sm:$0xff] }
  0x48   : > { %2823 = vmatpush.bf16.msrb.mxu0 %v4380_v47  ;;  %v300_v47 = vsel %vm176_vm3, %v3261_v34, %v295_v33  ;;  %v4465_v34 = vld [vmem:[%s5577_s1 + $0x3a8] sm:$0xff] }
  0x49   : > { %2836 = vmatpush.bf16.msrb.mxu1 %v4388_v50  ;;  %v3263_v50 = vrot.slane %v296_v41, 9  ;;  %v4472_v41 = vld [vmem:[%s5577_s1 + $0x3e0] sm:$0xff] }
  0x4a   : > { %2849 = vmatpush.bf16.msrb.mxu2 %v4396_v54  ;;  %v4430_v54 = vld [vmem:[%s5577_s1 + $0x290] sm:$0xff] }
  0x4b   : > { %2862 = vmatpush.bf16.msrb.mxu3 %v4404_v55  ;;  %2824 = vmatmul.bf16.vlgmr.msrb.gmra.mxu0 %v621_v1  ;;  %v3264_v55 = vrot.slane %v297_v44, 9  ;;  %v4421_v1 = vld [vmem:[%s5577_s1 + $0x248] sm:$0xff]  ;;  %v4455_v44 = vld [vmem:[%s5577_s1 + $0x358] sm:$0xff] }
  0x4c   : > { %2868 = vmatpush.bf16.msra.mxu0 %v4419_v57  ;;  %2837 = vmatmul.bf16.vlgmr.msrb.gmra.mxu1 %v622_v2  ;;  %v4438_v57 = vld [vmem:[%s5577_s1 + $0x2d0] sm:$0xff] }
  0x4d   : > { %2881 = vmatpush.bf16.msra.mxu1 %v4427_v58  ;;  %v3266_v58 = vrot.slane %v300_v47, 9  ;;  %v305_v2 = vsel %vm4765_vm8, %v3263_v50, %v3264_v55  ;;  %v4446_v47 = vld [vmem:[%s5577_s1 + $0x310] sm:$0xff]  ;;  %v4453_v55 = vld [vmem:[%s5577_s1 + $0x348] sm:$0xff] }
  0x4e   : > { %2894 = vmatpush.bf16.msra.mxu2 %v4435_v61  ;;  %v260_v42 = vld.sshfl [vmem:[#allocation1] sm:$0xff pattern:$0x73625140]  ;;  %v261_v43 = vld.sshfl [vmem:[#allocation1 + $0x8] sm:$0xff pattern:$0x73625140] }
  0x4f   : > { %2907 = vmatpush.bf16.msra.mxu3 %v4443_v62  ;;  %v264_v46 = vpack.c.bf16 %v261_v43, %v260_v42  ;;  %278 = vst [vmem:[#allocation1] ss:$4 sm:$0xff] %v276_v35  ;;  %v309_v5 = vsel %vm4765_vm8, %v3265_v56, %v3266_v58  ;;  %v4473_v35 = vld [vmem:[%s5577_s1 + $0x3e8] sm:$0xff]  ;;  %v4447_v43 = vld [vmem:[%s5577_s1 + $0x318] sm:$0xff]  ;;  %v3271_v50 = vld [vmem:[%s4704_s24 + $0x10] sm:$0x18] }
  0x50   : > { %2869 = vmatpush.bf16.msra.mxu0 %v4418_v3  ;;  %280 = vst [vmem:[#allocation1 + $0x1] ss:$4 sm:$0xff] %v277_v38  ;;  %v4429_v3 = vld [vmem:[%s5577_s1 + $0x288] sm:$0xff]  ;;  %v4448_v38 = vld [vmem:[%s5577_s1 + $0x320] sm:$0xff] }
  0x51   : > { %2882 = vmatpush.bf16.msra.mxu1 %v4426_v4  ;;  %v626_v51 = vunpack.c.l.b16 %v264_v46  ;;  %v627_v53 = vunpack.c.h.b16 %v264_v46  ;;  %v4437_v4 = vld [vmem:[%s5577_s1 + $0x2c8] sm:$0xff]  ;;  %v4471_v46 = vld [vmem:[%s5577_s1 + $0x3d8] sm:$0xff] }
  0x52   : > { %2895 = vmatpush.bf16.msra.mxu2 %v4434_v6  ;;  %v359_v56 = vld [vmem:[#allocation1 + $0x21] ss:$4 sm:$0xff] }
  0x53   : > { %2908 = vmatpush.bf16.msra.mxu3 %v4442_v7  ;;  %v628_v61 = vpack.c.b16 %v626_v51, %v626_v51  ;;  %v629_v62 = vpack.c.b16 %v627_v53, %v627_v53  ;;  %v4470_v51 = vld [vmem:[%s5577_s1 + $0x3d0] sm:$0xff]  ;;  %v4445_v53 = vld [vmem:[%s5577_s1 + $0x308] sm:$0xff] }
  0x54   : > { %2870 = vmatpush.bf16.msra.mxu0 %v4417_v15 }
  0x55   : > { %2883 = vmatpush.bf16.msra.mxu1 %v4425_v16  ;;  %2850 = vmatmul.bf16.vlgmr.msrb.gmra.mxu2 %v628_v61  ;;  %v4461_v61 = vld [vmem:[%s5577_s1 + $0x388] sm:$0xff] }
  0x56   : > { %2896 = vmatpush.bf16.msra.mxu2 %v4433_v17  ;;  %2863 = vmatmul.bf16.vlgmr.msrb.gmra.mxu3 %v629_v62  ;;  %v4467_v17 = vld [vmem:[%s5577_s1 + $0x3b8] sm:$0xff]  ;;  %v4469_v62 = vld [vmem:[%s5577_s1 + $0x3c8] sm:$0xff] }
  0x57   : > { %2909 = vmatpush.bf16.msra.mxu3 %v4441_v18  ;;  %v281_v6 = vld.sshfl [vmem:[#allocation1] sm:$0xff pattern:$0x73625140]  ;;  %v282_v7 = vld.sshfl [vmem:[#allocation1 + $0x8] sm:$0xff pattern:$0x73625140] }
  0x58   : > { %2871 = vmatpush.bf16.msra.mxu0 %v4416_v24  ;;  %v285_v10 = vpack.c.bf16 %v282_v7, %v281_v6  ;;  %310 = vst [vmem:[#allocation1] ss:$4 sm:$0xff] %v305_v2  ;;  %v4475_v18 = vld [vmem:[%s5577_s1 + $0x3f8] sm:$0xff]  ;;  %v4460_v7 = vld [vmem:[%s5577_s1 + $0x380] sm:$0xff] }
  0x59   : > { %2884 = vmatpush.bf16.msra.mxu1 %v4424_v25  ;;  %312 = vst [vmem:[#allocation1 + $0x1] ss:$4 sm:$0xff] %v309_v5  ;;  %v3268_v24 = vld [vmem:[%s4704_s24 + $0x18] sm:$0xc]  ;;  %v4466_v25 = vld [vmem:[%s5577_s1 + $0x3b0] sm:$0xff] }
  0x5a   : > { %2897 = vmatpush.bf16.msra.mxu2 %v4432_v28  ;;  %v633_v15 = vunpack.c.l.b16 %v285_v10  ;;  %v634_v16 = vunpack.c.h.b16 %v285_v10  ;;  %v4507_v10 = vld [vmem:[%s5577_s1 + $0x4f8] sm:$0xff] }
  0x5b   : > { %2910 = vmatpush.bf16.msra.mxu3 %v4440_v29 }
  0x5c   : > { %2872 = vmatpush.bf16.msra.mxu0 %v4415_v36  ;;  %v635_v19 = vpack.c.b16 %v633_v15, %v633_v15  ;;  %v636_v20 = vpack.c.b16 %v634_v16, %v634_v16 }
  0x5d   : > { %2885 = vmatpush.bf16.msra.mxu1 %v4423_v37 }
  0x5e   : > { %2898 = vmatpush.bf16.msra.mxu2 %v4431_v39  ;;  %v4456_v39 = vld [vmem:[%s5577_s1 + $0x360] sm:$0xff] }
  0x5f   : > { %2911 = vmatpush.bf16.msra.mxu3 %v4439_v40  ;;  %v4464_v40 = vld [vmem:[%s5577_s1 + $0x3a0] sm:$0xff] }
  0x60   : > { %2873 = vmatpush.bf16.msra.mxu0 %v4414_v48  ;;  %v313_v27 = vld.sshfl [vmem:[#allocation1] sm:$0xff pattern:$0x73625140]  ;;  %v314_v28 = vld.sshfl [vmem:[#allocation1 + $0x8] sm:$0xff pattern:$0x73625140] }
  0x61   : > { %2886 = vmatpush.bf16.msra.mxu1 %v4422_v49  ;;  %v317_v29 = vpack.c.bf16 %v314_v28, %v313_v27  ;;  %326 = vst.sshfl [vmem:[#allocation1] sm:$0xff pattern:$0x73625140] %v3267_v23  ;;  %v4454_v48 = vld [vmem:[%s5577_s1 + $0x350] sm:$0xff]  ;;  %v4481_v27 = vld [vmem:[%s5577_s1 + $0x428] sm:$0xff] }
  0x62   : > { %2899 = vmatpush.bf16.msra.mxu2 %v4430_v54  ;;  %327 = vst.sshfl [vmem:[#allocation1 + $0x8] sm:$0xff pattern:$0x73625140] %v3268_v24  ;;  %v4462_v49 = vld [vmem:[%s5577_s1 + $0x390] sm:$0xff]  ;;  %v3272_v54 = vld [vmem:[%s4704_s24 + $0x18] sm:$0x18] }
  0x63   : > { %2912 = vmatpush.bf16.msra.mxu3 %v4438_v57  ;;  %v640_v32 = vunpack.c.l.b16 %v317_v29  ;;  %v641_v33 = vunpack.c.h.b16 %v317_v29  ;;  %v361_v57 = vld [vmem:[#allocation1 + $0x22] ss:$4 sm:$0xff] }
  0x64   : > { %2874 = vmatpush.bf16.msra.mxu0 %v4413_v0  ;;  %v4452_v0 = vld [vmem:[%s5577_s1 + $0x340] sm:$0xff]  ;;  %v368_v2 = vrot.slane %v361_v57, 7  ;;  %v4506_v23 = vld [vmem:[%s5577_s1 + $0x4f0] sm:$0xff]  ;;  %v4489_v28 = vld [vmem:[%s5577_s1 + $0x468] sm:$0xff] }
  0x65   : > { %2887 = vmatpush.bf16.msra.mxu1 %v4421_v1  ;;  %v642_v36 = vpack.c.b16 %v640_v32, %v640_v32  ;;  %v643_v37 = vpack.c.b16 %v641_v33, %v641_v33  ;;  %v3276_v1 = vrot.slane %v359_v56, 9  ;;  %v3291_v24 = vld [vmem:[%s4704_s24 + $0x30] sm:$0xc]  ;;  %v3282_v29 = vld [vmem:[%s4704_s24 + $0x28] sm:$0x6]  ;;  %v4487_v56 = vld [vmem:[%s5577_s1 + $0x458] sm:$0xff] }
  0x66   : > { %2900 = vmatpush.bf16.msra.mxu2 %v4429_v3  ;;  %v4483_v3 = vld [vmem:[%s5577_s1 + $0x438] sm:$0xff]  ;;  %443 = vst.sshfl [vmem:[#allocation1 + $0x20] sm:$0xff pattern:$0x73625140] %v3291_v24  ;;  %v3277_v32 = vld [vmem:[%s4704_s24 + $0x20] sm:$0x3] }
  0x67   : > { %2913 = vmatpush.bf16.msra.mxu3 %v4437_v4  ;;  %v4491_v4 = vld [vmem:[%s5577_s1 + $0x478] sm:$0xff] }
  0x68   : > { %2875 = vmatpush.bf16.msra.mxu0 %v4412_v8  ;;  %v4468_v8 = vld [vmem:[%s5577_s1 + $0x3c0] sm:$0xff] }
  0x69   : > { %2888 = vmatpush.bf16.msra.mxu1 %v4420_v9  ;;  %v329_v42 = vld [vmem:[#allocation1 + $0x1] ss:$4 sm:$0xff] }
  0x6a   : > { %2901 = vmatpush.bf16.msra.mxu2 %v4428_v13  ;;  %334 = vst [vmem:[#allocation1] ss:$4 sm:$0xff] %v329_v42  ;;  %v4499_v9 = vld [vmem:[%s5577_s1 + $0x4b8] sm:$0xff]  ;;  %v3283_v42 = vld [vmem:[%s4704_s24 + $0x30] sm:$0x6] }
  0x6b   : > { %2914 = vmatpush.bf16.msra.mxu3 %v4436_v14  ;;  %2876 = vmatmul.bf16.vlgmr.msra.gmra.mxu0 %v635_v19  ;;  %336 = vst [vmem:[#allocation1 + $0x1] ss:$4 sm:$0xff] %v4979_v59  ;;  %v4482_v14 = vld [vmem:[%s5577_s1 + $0x430] sm:$0xff] }
  0x6c   : > { %2920 = vmatpush.bf16.msrb.mxu0 %v4451_v11  ;;  %2889 = vmatmul.bf16.vlgmr.msra.gmra.mxu1 %v636_v20  ;;  %v369_v11 = vsel %vm4765_vm8, %v3276_v1, %v368_v2 }
  0x6d   : > { %2933 = vmatpush.bf16.msrb.mxu1 %v4459_v12  ;;  %2902 = vmatmul.bf16.vlgmr.msra.gmra.mxu2 %v642_v36  ;;  %v3279_v36 = vld [vmem:[%s4704_s24 + $0x30] sm:$0x3] }
  0x6e   : > { %2946 = vmatpush.bf16.msrb.mxu2 %v4467_v17  ;;  %2915 = vmatmul.bf16.vlgmr.msra.gmra.mxu3 %v643_v37  ;;  %v3278_v17 = vld [vmem:[%s4704_s24 + $0x28] sm:$0x3]  ;;  %v407_v37 = vrot.slane %v3282_v29, 6  ;;  %v4539_v29 = vld [vmem:[%s5577_s1 + $0x5f8] sm:$0xff] }
  0x6f   : > { %2959 = vmatpush.bf16.msrb.mxu3 %v4475_v18  ;;  %v4490_v18 = vld [vmem:[%s5577_s1 + $0x470] sm:$0xff] }
  0x70   : > { %2921 = vmatpush.bf16.msrb.mxu0 %v4450_v21  ;;  %v3280_v21 = vld [vmem:[%s4704_s24 + $0x38] sm:$0x3] }
  0x71   : > { %2934 = vmatpush.bf16.msrb.mxu1 %v4458_v22  ;;  %v4498_v22 = vld [vmem:[%s5577_s1 + $0x4b0] sm:$0xff]  ;;  %v388_v33 = vrot.slane %v3280_v21, 6  ;;  %v4515_v21 = vld [vmem:[%s5577_s1 + $0x538] sm:$0xff] }
  0x72   : > { %2947 = vmatpush.bf16.msrb.mxu2 %v4466_v25  ;;  %v337_v58 = vld.sshfl [vmem:[#allocation1] sm:$0xff pattern:$0x73625140]  ;;  %v338_v59 = vld.sshfl [vmem:[#allocation1 + $0x8] sm:$0xff pattern:$0x73625140] }
  0x73   : > { %2960 = vmatpush.bf16.msrb.mxu3 %v4474_v26  ;;  %v341_v60 = vpack.c.bf16 %v338_v59, %v337_v58  ;;  %350 = vst.sshfl [vmem:[#allocation1] sm:$0xff pattern:$0x73625140] %v3271_v50  ;;  %v3292_v26 = vld [vmem:[%s4704_s24 + $0x38] sm:$0xc] }
  0x74   : > { %2922 = vmatpush.bf16.msrb.mxu0 %v4449_v30  ;;  %351 = vst.sshfl [vmem:[#allocation1 + $0x8] sm:$0xff pattern:$0x73625140] %v3272_v54  ;;  %v3284_v30 = vld [vmem:[%s4704_s24 + $0x38] sm:$0x6] }
  0x75   : > { %2935 = vmatpush.bf16.msrb.mxu1 %v4457_v31  ;;  %v647_v5 = vunpack.c.l.b16 %v341_v60  ;;  %v648_v6 = vunpack.c.h.b16 %v341_v60  ;;  %v387_v31 = vrot.slane %v3278_v17, 6  ;;  %444 = vst.sshfl [vmem:[#allocation1 + $0x28] sm:$0xff pattern:$0x73625140] %v3292_v26  ;;  %v4493_v17 = vld [vmem:[%s5577_s1 + $0x488] sm:$0xff]  ;;  %v4500_v26 = vld [vmem:[%s5577_s1 + $0x4c0] sm:$0xff] }
  0x76   : > { %2948 = vmatpush.bf16.msrb.mxu2 %v4465_v34  ;;  %v4497_v34 = vld [vmem:[%s5577_s1 + $0x4a8] sm:$0xff] }
  0x77   : > { %2961 = vmatpush.bf16.msrb.mxu3 %v4473_v35  ;;  %v649_v12 = vpack.c.b16 %v647_v5, %v647_v5  ;;  %v650_v13 = vpack.c.b16 %v648_v6, %v648_v6  ;;  %v4505_v35 = vld [vmem:[%s5577_s1 + $0x4e8] sm:$0xff]  ;;  %v4494_v5 = vld [vmem:[%s5577_s1 + $0x490] sm:$0xff] }
  0x78   : > { %2923 = vmatpush.bf16.msrb.mxu0 %v4448_v38  ;;  %v408_v38 = vrot.slane %v3284_v30, 6  ;;  %v4502_v6 = vld [vmem:[%s5577_s1 + $0x4d0] sm:$0xff]  ;;  %v3290_v30 = vld [vmem:[%s4704_s24 + $0x28] sm:$0xc] }
  0x79   : > { %2936 = vmatpush.bf16.msrb.mxu1 %v4456_v39  ;;  %v4480_v39 = vld [vmem:[%s5577_s1 + $0x420] sm:$0xff] }
  0x7a   : > { %2949 = vmatpush.bf16.msrb.mxu2 %v4464_v40  ;;  %v4488_v40 = vld [vmem:[%s5577_s1 + $0x460] sm:$0xff] }
  0x7b   : > { %2962 = vmatpush.bf16.msrb.mxu3 %v4472_v41  ;;  %v353_v15 = vld [vmem:[#allocation1 + $0x1] ss:$4 sm:$0xff]  ;;  %v355_v16 = vld [vmem:[#allocation1 + $0x2] ss:$4 sm:$0xff] }
  0x7c   : > { %2924 = vmatpush.bf16.msrb.mxu0 %v4447_v43  ;;  %372 = vst [vmem:[#allocation1 + $0x1] ss:$4 sm:$0xff] %v369_v11  ;;  %v3275_v19 = vrot.slane %v353_v15, 9  ;;  %v364_v20 = vrot.slane %v355_v16, 7  ;;  %v3281_v41 = vld [vmem:[%s4704_s24 + $0x20] sm:$0x6]  ;;  %v389_v43 = vsel %vm154_vm2, %v3277_v32, %v387_v31 }
  0x7d   : > { %2937 = vmatpush.bf16.msrb.mxu1 %v4455_v44  ;;  %v390_v44 = vsel %vm154_vm2, %v3279_v36, %v388_v33  ;;  %v410_v50 = vsel %vm176_vm3, %v3281_v41, %v407_v37  ;;  %v3295_v11 = vld [vmem:[%s4704_s24 + $0x30] sm:$0x18]  ;;  %v3296_v15 = vld [vmem:[%s4704_s24 + $0x38] sm:$0x18]  ;;  %v5216_v16 = vld [vmem:[#allocation1 + $0x21] ss:$4 sm:$0xff] }
  0x7e   : > { %2950 = vmatpush.bf16.msrb.mxu2 %v4463_v45  ;;  %v365_v25 = vsel %vm4765_vm8, %v3275_v19, %v364_v20  ;;  %v4496_v45 = vld [vmem:[%s5577_s1 + $0x4a0] sm:$0xff]  ;;  %v3286_v60 = vrot.slane %v410_v50, 9  ;;  %469 = vst.sshfl [vmem:[#allocation1 + $0x20] sm:$0xff pattern:$0x73625140] %v3295_v11  ;;  %v4514_v36 = vld [vmem:[%s5577_s1 + $0x530] sm:$0xff] }
  0x7f   : > { %2963 = vmatpush.bf16.msrb.mxu3 %v4471_v46  ;;  %370 = vst [vmem:[#allocation1] ss:$4 sm:$0xff] %v365_v25  ;;  %v4504_v46 = vld [vmem:[%s5577_s1 + $0x4e0] sm:$0xff] }
  0x80   : > { %2925 = vmatpush.bf16.msrb.mxu0 %v4446_v47  ;;  %v4476_v19 = vld [vmem:[%s5577_s1 + $0x400] sm:$0xff]  ;;  %470 = vst.sshfl [vmem:[#allocation1 + $0x28] sm:$0xff pattern:$0x73625140] %v3296_v15  ;;  %v4533_v15 = vld [vmem:[%s5577_s1 + $0x5c8] sm:$0xff] }
  0x81   : > { %2938 = vmatpush.bf16.msrb.mxu1 %v4454_v48  ;;  %v4484_v20 = vld [vmem:[%s5577_s1 + $0x440] sm:$0xff] }
  0x82   : > { %2951 = vmatpush.bf16.msrb.mxu2 %v4462_v49  ;;  %v409_v49 = vsel %vm154_vm2, %v3281_v41, %v407_v37  ;;  %v4492_v25 = vld [vmem:[%s5577_s1 + $0x480] sm:$0xff]  ;;  %v4522_v37 = vld [vmem:[%s5577_s1 + $0x570] sm:$0xff] }
  0x83   : > { %2964 = vmatpush.bf16.msrb.mxu3 %v4470_v51  ;;  %v412_v51 = vsel %vm154_vm2, %v3283_v42, %v408_v38  ;;  %v3285_v59 = vrot.slane %v409_v49, 9  ;;  %v4538_v41 = vld [vmem:[%s5577_s1 + $0x5f0] sm:$0xff]  ;;  %v4520_v49 = vld [vmem:[%s5577_s1 + $0x560] sm:$0xff] }
  0x84   : > { %2926 = vmatpush.bf16.msrb.mxu0 %v4445_v53  ;;  %v413_v53 = vsel %vm176_vm3, %v3283_v42, %v408_v38 }
  0x85   : > { %2939 = vmatpush.bf16.msrb.mxu1 %v4453_v55  ;;  %v4479_v55 = vld [vmem:[%s5577_s1 + $0x418] sm:$0xff] }
  0x86   : > { %2952 = vmatpush.bf16.msrb.mxu2 %v4461_v61  ;;  %v373_v47 = vld.sshfl [vmem:[#allocation1] sm:$0xff pattern:$0x73625140]  ;;  %v374_v48 = vld.sshfl [vmem:[#allocation1 + $0x8] sm:$0xff pattern:$0x73625140] }
  0x87   : > { %2965 = vmatpush.bf16.msrb.mxu3 %v4469_v62  ;;  %v377_v54 = vpack.c.bf16 %v374_v48, %v373_v47  ;;  %391 = vst [vmem:[#allocation1] ss:$4 sm:$0xff] %v389_v43  ;;  %v3287_v61 = vrot.slane %v412_v51, 9  ;;  %v3288_v62 = vrot.slane %v413_v53, 9  ;;  %v4537_v47 = vld [vmem:[%s5577_s1 + $0x5e8] sm:$0xff]  ;;  %v4512_v48 = vld [vmem:[%s5577_s1 + $0x520] sm:$0xff] }
  0x88   : > { %2927 = vmatpush.bf16.msrb.mxu0 %v4444_v63  ;;  %393 = vst [vmem:[#allocation1 + $0x1] ss:$4 sm:$0xff] %v390_v44  ;;  %v4495_v63 = vld [vmem:[%s5577_s1 + $0x498] sm:$0xff]  ;;  %v4513_v44 = vld [vmem:[%s5577_s1 + $0x528] sm:$0xff]  ;;  %v4528_v51 = vld [vmem:[%s5577_s1 + $0x5a0] sm:$0xff] }
  0x89   : > { %2940 = vmatpush.bf16.msrb.mxu1 %v4452_v0  ;;  %v654_v57 = vunpack.c.l.b16 %v377_v54  ;;  %v655_v58 = vunpack.c.h.b16 %v377_v54  ;;  %v4503_v0 = vld [vmem:[%s5577_s1 + $0x4d8] sm:$0xff]  ;;  %v4536_v53 = vld [vmem:[%s5577_s1 + $0x5e0] sm:$0xff] }
  0x8a   : > { %2953 = vmatpush.bf16.msrb.mxu2 %v4460_v7  ;;  %v418_v7 = vsel %vm4765_vm8, %v3285_v59, %v3286_v60  ;;  %v4511_v54 = vld [vmem:[%s5577_s1 + $0x518] sm:$0xff] }
  0x8b   : > { %2966 = vmatpush.bf16.msrb.mxu3 %v4468_v8  ;;  %2928 = vmatmul.bf16.vlgmr.msrb.gmra.mxu0 %v649_v12  ;;  %v656_v1 = vpack.c.b16 %v654_v57, %v654_v57  ;;  %v657_v2 = vpack.c.b16 %v655_v58, %v655_v58  ;;  %v422_v8 = vsel %vm4765_vm8, %v3287_v61, %v3288_v62  ;;  %v4527_v59 = vld [vmem:[%s5577_s1 + $0x598] sm:$0xff]  ;;  %v4510_v61 = vld [vmem:[%s5577_s1 + $0x510] sm:$0xff] }
  0x8c   : > { %2972 = vmatpush.bf16.msra.mxu0 %v4483_v3  ;;  %2941 = vmatmul.bf16.vlgmr.msrb.gmra.mxu1 %v650_v13  ;;  %v4478_v3 = vld [vmem:[%s5577_s1 + $0x410] sm:$0xff]  ;;  %v4535_v60 = vld [vmem:[%s5577_s1 + $0x5d8] sm:$0xff] }
  0x8d   : > { %2985 = vmatpush.bf16.msra.mxu1 %v4491_v4  ;;  %v4486_v4 = vld [vmem:[%s5577_s1 + $0x450] sm:$0xff]  ;;  %2954 = vmatmul.bf16.vlgmr.msrb.gmra.mxu2 %v656_v1 }
  0x8e   : > { %2998 = vmatpush.bf16.msra.mxu2 %v4499_v9  ;;  %2967 = vmatmul.bf16.vlgmr.msrb.gmra.mxu3 %v657_v2  ;;  %v4477_v9 = vld [vmem:[%s5577_s1 + $0x408] sm:$0xff]  ;;  %v4518_v62 = vld [vmem:[%s5577_s1 + $0x550] sm:$0xff] }
  0x8f   : > { %3011 = vmatpush.bf16.msra.mxu3 %v4507_v10  ;;  %v4485_v10 = vld [vmem:[%s5577_s1 + $0x448] sm:$0xff]  ;;  %v394_v12 = vld.sshfl [vmem:[#allocation1] sm:$0xff pattern:$0x73625140] }
  0x90   : > { %2973 = vmatpush.bf16.msra.mxu0 %v4482_v14  ;;  %v395_v13 = vld.sshfl [vmem:[#allocation1 + $0x8] sm:$0xff pattern:$0x73625140] }
  0x91   : > { %2986 = vmatpush.bf16.msra.mxu1 %v4490_v18  ;;  %v398_v14 = vpack.c.bf16 %v395_v13, %v394_v12  ;;  %423 = vst [vmem:[#allocation1] ss:$4 sm:$0xff] %v418_v7  ;;  %v4501_v18 = vld [vmem:[%s5577_s1 + $0x4c8] sm:$0xff] }
  0x92   : > { %2999 = vmatpush.bf16.msra.mxu2 %v4498_v22  ;;  %425 = vst [vmem:[#allocation1 + $0x1] ss:$4 sm:$0xff] %v422_v8  ;;  %v4523_v22 = vld [vmem:[%s5577_s1 + $0x578] sm:$0xff]  ;;  %v4509_v7 = vld [vmem:[%s5577_s1 + $0x508] sm:$0xff] }
  0x93   : > { %3012 = vmatpush.bf16.msra.mxu3 %v4506_v23  ;;  %v661_v23 = vunpack.c.l.b16 %v398_v14  ;;  %v662_v24 = vunpack.c.h.b16 %v398_v14  ;;  %v472_v1 = vld [vmem:[#allocation1 + $0x21] ss:$4 sm:$0xff]  ;;  %v474_v2 = vld [vmem:[#allocation1 + $0x22] ss:$4 sm:$0xff] }
  0x94   : > { %2974 = vmatpush.bf16.msra.mxu0 %v4481_v27  ;;  %v3289_v27 = vld [vmem:[%s4704_s24 + $0x20] sm:$0xc]  ;;  %v4517_v8 = vld [vmem:[%s5577_s1 + $0x548] sm:$0xff]  ;;  %v481_v11 = vrot.slane %v474_v2, 7 }
  0x95   : > { %2987 = vmatpush.bf16.msra.mxu1 %v4489_v28  ;;  %v4531_v28 = vld [vmem:[%s5577_s1 + $0x5b8] sm:$0xff]  ;;  %v663_v31 = vpack.c.b16 %v661_v23, %v661_v23  ;;  %v4525_v14 = vld [vmem:[%s5577_s1 + $0x588] sm:$0xff] }
  0x96   : > { %3000 = vmatpush.bf16.msra.mxu2 %v4497_v34  ;;  %v664_v34 = vpack.c.b16 %v662_v24, %v662_v24 }
  0x97   : > { %3013 = vmatpush.bf16.msra.mxu3 %v4505_v35 }
  0x98   : > { %2975 = vmatpush.bf16.msra.mxu0 %v4480_v39 }
  0x99   : > { %2988 = vmatpush.bf16.msra.mxu1 %v4488_v40  ;;  %v426_v32 = vld.sshfl [vmem:[#allocation1] sm:$0xff pattern:$0x73625140]  ;;  %v427_v33 = vld.sshfl [vmem:[#allocation1 + $0x8] sm:$0xff pattern:$0x73625140] }
  0x9a   : > { %3001 = vmatpush.bf16.msra.mxu2 %v4496_v45  ;;  %v430_v35 = vpack.c.bf16 %v427_v33, %v426_v32  ;;  %439 = vst.sshfl [vmem:[#allocation1] sm:$0xff pattern:$0x73625140] %v3289_v27  ;;  %v4530_v40 = vld [vmem:[%s5577_s1 + $0x5b0] sm:$0xff]  ;;  %v4521_v45 = vld [vmem:[%s5577_s1 + $0x568] sm:$0xff]  ;;  %v4524_v27 = vld [vmem:[%s5577_s1 + $0x580] sm:$0xff] }
  0x9b   : > { %3014 = vmatpush.bf16.msra.mxu3 %v4504_v46  ;;  %440 = vst.sshfl [vmem:[#allocation1 + $0x8] sm:$0xff pattern:$0x73625140] %v3290_v30  ;;  %v4529_v46 = vld [vmem:[%s5577_s1 + $0x5a8] sm:$0xff]  ;;  %v4563_v32 = vld [vmem:[%s5577_s1 + $0x6b8] sm:$0xff] }
  0x9c   : > { %2976 = vmatpush.bf16.msra.mxu0 %v4479_v55  ;;  %v668_v38 = vunpack.c.l.b16 %v430_v35  ;;  %v669_v39 = vunpack.c.h.b16 %v430_v35  ;;  %v4519_v55 = vld [vmem:[%s5577_s1 + $0x558] sm:$0xff] }
  0x9d   : > { %2989 = vmatpush.bf16.msra.mxu1 %v4487_v56  ;;  %v4571_v33 = vld [vmem:[%s5577_s1 + $0x6f8] sm:$0xff] }
  0x9e   : > { %3002 = vmatpush.bf16.msra.mxu2 %v4495_v63  ;;  %v670_v42 = vpack.c.b16 %v668_v38, %v668_v38  ;;  %v671_v43 = vpack.c.b16 %v669_v39, %v669_v39  ;;  %v3293_v63 = vld [vmem:[%s4704_s24 + $0x20] sm:$0x18]  ;;  %v3300_v35 = vld [vmem:[%s4704_s24 + $0x38] sm:$0x3]  ;;  %v3302_v38 = vld [vmem:[%s4704_s24 + $0x48] sm:$0x3] }
  0x9f   : > { %3015 = vmatpush.bf16.msra.mxu3 %v4503_v0  ;;  %v3294_v0 = vld [vmem:[%s4704_s24 + $0x28] sm:$0x18] }
  0xa0   : > { %2977 = vmatpush.bf16.msra.mxu0 %v4478_v3 }
  0xa1   : > { %2990 = vmatpush.bf16.msra.mxu1 %v4486_v4 }
  0xa2   : > { %3003 = vmatpush.bf16.msra.mxu2 %v4494_v5  ;;  %v442_v50 = vld [vmem:[#allocation1 + $0x1] ss:$4 sm:$0xff] }
  0xa3   : > { %3016 = vmatpush.bf16.msra.mxu3 %v4502_v6  ;;  %447 = vst [vmem:[#allocation1] ss:$4 sm:$0xff] %v442_v50  ;;  %v4526_v5 = vld [vmem:[%s5577_s1 + $0x590] sm:$0xff] }
  0xa4   : > { %2978 = vmatpush.bf16.msra.mxu0 %v4477_v9  ;;  %449 = vst [vmem:[#allocation1 + $0x1] ss:$4 sm:$0xff] %v5216_v16  ;;  %v4534_v6 = vld [vmem:[%s5577_s1 + $0x5d0] sm:$0xff]  ;;  %v4508_v16 = vld [vmem:[%s5577_s1 + $0x500] sm:$0xff] }
  0xa5   : > { %2991 = vmatpush.bf16.msra.mxu1 %v4485_v10  ;;  %v3298_v10 = vrot.slane %v472_v1, 9  ;;  %v4570_v50 = vld [vmem:[%s5577_s1 + $0x6f0] sm:$0xff] }
  0xa6   : > { %3004 = vmatpush.bf16.msra.mxu2 %v4493_v17  ;;  %v4516_v17 = vld [vmem:[%s5577_s1 + $0x540] sm:$0xff] }
  0xa7   : > { %3017 = vmatpush.bf16.msra.mxu3 %v4501_v18 }
  0xa8   : > { %2979 = vmatpush.bf16.msra.mxu0 %v4476_v19  ;;  %v2773_v56 = vpop.f32.mrf.mxu0  ;;  %v482_v19 = vsel %vm4765_vm8, %v3298_v10, %v481_v11 }
  0xa9   : > { %2992 = vmatpush.bf16.msra.mxu1 %v4484_v20  ;;  %v2786_v57 = vpop.f32.mrf.mxu1  ;;  %v4547_v20 = vld [vmem:[%s5577_s1 + $0x638] sm:$0xff] }
  0xaa   : > { %3005 = vmatpush.bf16.msra.mxu2 %v4492_v25  ;;  %v2787_v58 = vadd.f32 %v2786_v57, %v2773_v56  ;;  %v4553_v56 = vld [vmem:[%s5577_s1 + $0x668] sm:$0xff] }
  0xab   : > { %3018 = vmatpush.bf16.msra.mxu3 %v4500_v26  ;;  %2980 = vmatmul.bf16.vlgmr.msra.gmra.mxu0 %v663_v31  ;;  %v450_v3 = vld.sshfl [vmem:[#allocation1] sm:$0xff pattern:$0x73625140]  ;;  %v451_v4 = vld.sshfl [vmem:[#allocation1 + $0x8] sm:$0xff pattern:$0x73625140] }
  0xac   : > { %3024 = vmatpush.bf16.msrb.mxu0 %v4515_v21  ;;  %2993 = vmatmul.bf16.vlgmr.msra.gmra.mxu1 %v664_v34  ;;  %463 = vst.sshfl [vmem:[#allocation1] sm:$0xff pattern:$0x73625140] %v3293_v63  ;;  %v454_v9 = vpack.c.bf16 %v451_v4, %v450_v3  ;;  %v4555_v21 = vld [vmem:[%s5577_s1 + $0x678] sm:$0xff]  ;;  %v4561_v63 = vld [vmem:[%s5577_s1 + $0x6a8] sm:$0xff] }
  0xad   : > { %3037 = vmatpush.bf16.msrb.mxu1 %v4523_v22  ;;  %3006 = vmatmul.bf16.vlgmr.msra.gmra.mxu2 %v670_v42  ;;  %464 = vst.sshfl [vmem:[#allocation1 + $0x8] sm:$0xff pattern:$0x73625140] %v3294_v0  ;;  %v4546_v42 = vld [vmem:[%s5577_s1 + $0x630] sm:$0xff]  ;;  %v4569_v0 = vld [vmem:[%s5577_s1 + $0x6e8] sm:$0xff] }
  0xae   : > { %3050 = vmatpush.bf16.msrb.mxu2 %v4531_v28  ;;  %3019 = vmatmul.bf16.vlgmr.msra.gmra.mxu3 %v671_v43  ;;  %v675_v18 = vunpack.c.l.b16 %v454_v9  ;;  %v676_v22 = vunpack.c.h.b16 %v454_v9  ;;  %v4532_v28 = vld [vmem:[%s5577_s1 + $0x5c0] sm:$0xff]  ;;  %v4554_v43 = vld [vmem:[%s5577_s1 + $0x670] sm:$0xff] }
  0xaf   : > { %3063 = vmatpush.bf16.msrb.mxu3 %v4539_v29  ;;  %v4552_v9 = vld [vmem:[%s5577_s1 + $0x660] sm:$0xff] }
  0xb0   : > { %3025 = vmatpush.bf16.msrb.mxu0 %v4514_v36  ;;  %v2775_v12 = vpop.f32.mrf.mxu0  ;;  %v677_v34 = vpack.c.b16 %v675_v18, %v675_v18  ;;  %v3306_v36 = vld [vmem:[%s4704_s24 + $0x48] sm:$0x6]  ;;  %v678_v39 = vpack.c.b16 %v676_v22, %v676_v22 }
  0xb1   : > { %3038 = vmatpush.bf16.msrb.mxu1 %v4522_v37  ;;  %v2788_v13 = vpop.f32.mrf.mxu1 }
  0xb2   : > { %3051 = vmatpush.bf16.msrb.mxu2 %v4530_v40  ;;  %v2799_v25 = vpop.f32.mrf.mxu2 }
  0xb3   : > { %3064 = vmatpush.bf16.msrb.mxu3 %v4538_v41  ;;  %v2812_v26 = vpop.f32.mrf.mxu3  ;;  %v2800_v31 = vadd.f32 %v2799_v25, %v2787_v58  ;;  %v3299_v41 = vld [vmem:[%s4704_s24 + $0x30] sm:$0x3]  ;;  %v4551_v25 = vld [vmem:[%s5577_s1 + $0x658] sm:$0xff] }
  0xb4   : > { %3026 = vmatpush.bf16.msrb.mxu0 %v4513_v44  ;;  %v466_v23 = vld [vmem:[#allocation1 + $0x1] ss:$4 sm:$0xff]  ;;  %v468_v24 = vld [vmem:[#allocation1 + $0x2] ss:$4 sm:$0xff] }
  0xb5   : > { %3039 = vmatpush.bf16.msrb.mxu1 %v4521_v45  ;;  %v3297_v29 = vrot.slane %v466_v23, 9  ;;  %v477_v30 = vrot.slane %v468_v24, 7  ;;  %485 = vst [vmem:[#allocation1 + $0x1] ss:$4 sm:$0xff] %v482_v19  ;;  %v2813_v40 = vadd.f32 %v2812_v26, %v2800_v31  ;;  %v3304_v44 = vld [vmem:[%s4704_s24 + $0x38] sm:$0x6] }
  0xb6   : > { %3052 = vmatpush.bf16.msrb.mxu2 %v4529_v46  ;;  %v500_v45 = vrot.slane %v3300_v35, 6  ;;  %v3313_v46 = vld [vmem:[%s4704_s24 + $0x40] sm:$0xc]  ;;  %v4543_v24 = vld [vmem:[%s5577_s1 + $0x618] sm:$0xff]  ;;  %v4550_v31 = vld [vmem:[%s5577_s1 + $0x650] sm:$0xff] }
  0xb7   : > { %3065 = vmatpush.bf16.msrb.mxu3 %v4537_v47  ;;  %v478_v37 = vsel %vm4765_vm8, %v3297_v29, %v477_v30  ;;  %v3314_v47 = vld [vmem:[%s4704_s24 + $0x48] sm:$0xc]  ;;  %556 = vst.sshfl [vmem:[#allocation1 + $0x20] sm:$0xff pattern:$0x73625140] %v3313_v46  ;;  %v4560_v19 = vld [vmem:[%s5577_s1 + $0x6a0] sm:$0xff] }
  0xb8   : > { %3027 = vmatpush.bf16.msrb.mxu0 %v4512_v48  ;;  %483 = vst [vmem:[#allocation1] ss:$4 sm:$0xff] %v478_v37  ;;  %v501_v48 = vrot.slane %v3302_v38, 6  ;;  %v4559_v26 = vld [vmem:[%s5577_s1 + $0x698] sm:$0xff]  ;;  %v4542_v30 = vld [vmem:[%s5577_s1 + $0x610] sm:$0xff]  ;;  %v4557_v46 = vld [vmem:[%s5577_s1 + $0x688] sm:$0xff] }
  0xb9   : > { %3040 = vmatpush.bf16.msrb.mxu1 %v4520_v49  ;;  %v4562_v49 = vld [vmem:[%s5577_s1 + $0x6b0] sm:$0xff]  ;;  %557 = vst.sshfl [vmem:[#allocation1 + $0x28] sm:$0xff pattern:$0x73625140] %v3314_v47  ;;  %v4567_v29 = vld [vmem:[%s5577_s1 + $0x6d8] sm:$0xff]  ;;  %v4565_v47 = vld [vmem:[%s5577_s1 + $0x6c8] sm:$0xff] }
  0xba   : > { %3053 = vmatpush.bf16.msrb.mxu2 %v4528_v51  ;;  %v3301_v51 = vld [vmem:[%s4704_s24 + $0x40] sm:$0x3]  ;;  %v2801_v57 = vpop.f32.mrf.mxu2  ;;  %v3318_v38 = vld [vmem:[%s4704_s24 + $0x48] sm:$0x18] }
  0xbb   : > { %3066 = vmatpush.bf16.msrb.mxu3 %v4536_v53  ;;  %v520_v53 = vrot.slane %v3304_v44, 6  ;;  %v2814_v58 = vpop.f32.mrf.mxu3  ;;  %v3311_v44 = vld [vmem:[%s4704_s24 + $0x30] sm:$0xc] }
  0xbc   : > { %3028 = vmatpush.bf16.msrb.mxu0 %v4511_v54  ;;  %v521_v54 = vrot.slane %v3306_v36, 6  ;;  %v3317_v36 = vld [vmem:[%s4704_s24 + $0x40] sm:$0x18] }
  0xbd   : > { %3041 = vmatpush.bf16.msrb.mxu1 %v4519_v55  ;;  %v4545_v55 = vld [vmem:[%s5577_s1 + $0x628] sm:$0xff]  ;;  %v4556_v58 = vld [vmem:[%s5577_s1 + $0x680] sm:$0xff] }
  0xbe   : > { %3054 = vmatpush.bf16.msrb.mxu2 %v4527_v59  ;;  %v3303_v59 = vld [vmem:[%s4704_s24 + $0x30] sm:$0x6] }
  0xbf   : > { %3067 = vmatpush.bf16.msrb.mxu3 %v4535_v60  ;;  %v3305_v60 = vld [vmem:[%s4704_s24 + $0x40] sm:$0x6]  ;;  %v487_v2 = vld.sshfl [vmem:[#allocation1 + $0x8] sm:$0xff pattern:$0x73625140]  ;;  %v522_v3 = vsel %vm154_vm2, %v3303_v59, %v520_v53  ;;  %v523_v4 = vsel %vm176_vm3, %v3303_v59, %v520_v53 }
  0xc0   : > { %3029 = vmatpush.bf16.msrb.mxu0 %v4510_v61  ;;  %v502_v61 = vsel %vm154_vm2, %v3299_v41, %v500_v45  ;;  %v486_v1 = vld.sshfl [vmem:[#allocation1] sm:$0xff pattern:$0x73625140]  ;;  %v4541_v41 = vld [vmem:[%s5577_s1 + $0x608] sm:$0xff]  ;;  %v3312_v45 = vld [vmem:[%s4704_s24 + $0x38] sm:$0xc] }
  0xc1   : > { %3042 = vmatpush.bf16.msrb.mxu1 %v4518_v62  ;;  %v503_v62 = vsel %vm154_vm2, %v3301_v51, %v501_v48  ;;  %504 = vst [vmem:[#allocation1] ss:$4 sm:$0xff] %v502_v61  ;;  %v5430_v37 = vld [vmem:[#allocation1 + $0x21] ss:$4 sm:$0xff] }
  0xc2   : > { %3055 = vmatpush.bf16.msrb.mxu2 %v4526_v5  ;;  %v525_v5 = vsel %vm154_vm2, %v3305_v60, %v521_v54  ;;  %506 = vst [vmem:[#allocation1 + $0x1] ss:$4 sm:$0xff] %v503_v62  ;;  %v4540_v48 = vld [vmem:[%s5577_s1 + $0x600] sm:$0xff]  ;;  %v4587_v51 = vld [vmem:[%s5577_s1 + $0x778] sm:$0xff] }
  0xc3   : > { %3068 = vmatpush.bf16.msrb.mxu3 %v4534_v6  ;;  %v526_v6 = vsel %vm176_vm3, %v3305_v60, %v521_v54  ;;  %582 = vst.sshfl [vmem:[#allocation1 + $0x20] sm:$0xff pattern:$0x73625140] %v3317_v36  ;;  %v4564_v59 = vld [vmem:[%s5577_s1 + $0x6c0] sm:$0xff]  ;;  %v4595_v60 = vld [vmem:[%s5577_s1 + $0x7b8] sm:$0xff] }
  0xc4   : > { %3030 = vmatpush.bf16.msrb.mxu0 %v4509_v7  ;;  %v490_v7 = vpack.c.bf16 %v487_v2, %v486_v1  ;;  %v3310_v18 = vrot.slane %v526_v6, 9  ;;  %583 = vst.sshfl [vmem:[#allocation1 + $0x28] sm:$0xff pattern:$0x73625140] %v3318_v38  ;;  %v4603_v61 = vld [vmem:[%s5577_s1 + $0x7f8] sm:$0xff]  ;;  %v4594_v6 = vld [vmem:[%s5577_s1 + $0x7b0] sm:$0xff] }
  0xc5   : > { %3043 = vmatpush.bf16.msrb.mxu1 %v4517_v8  ;;  %v4544_v8 = vld [vmem:[%s5577_s1 + $0x620] sm:$0xff]  ;;  %v4599_v36 = vld [vmem:[%s5577_s1 + $0x7d8] sm:$0xff] }
  0xc6   : > { %3056 = vmatpush.bf16.msrb.mxu2 %v4525_v14  ;;  %v682_v13 = vunpack.c.l.b16 %v490_v7  ;;  %v683_v14 = vunpack.c.h.b16 %v490_v7  ;;  %v4602_v7 = vld [vmem:[%s5577_s1 + $0x7f0] sm:$0xff] }
  0xc7   : > { %3069 = vmatpush.bf16.msrb.mxu3 %v4533_v15  ;;  %v3307_v15 = vrot.slane %v522_v3, 9 }
  0xc8   : > { %3031 = vmatpush.bf16.msrb.mxu0 %v4508_v16  ;;  %v2825_v10 = vpop.f32.mrf.mxu0  ;;  %v3308_v16 = vrot.slane %v523_v4, 9  ;;  %v684_v22 = vpack.c.b16 %v682_v13, %v682_v13  ;;  %v685_v23 = vpack.c.b16 %v683_v14, %v683_v14  ;;  %v4578_v4 = vld [vmem:[%s5577_s1 + $0x730] sm:$0xff]  ;;  %v4585_v13 = vld [vmem:[%s5577_s1 + $0x768] sm:$0xff] }
  0xc9   : > { %3044 = vmatpush.bf16.msrb.mxu1 %v4516_v17  ;;  %v2838_v11 = vpop.f32.mrf.mxu1  ;;  %v2826_v12 = vadd.f32 %v2825_v10, %v2813_v40  ;;  %v3309_v17 = vrot.slane %v525_v5, 9  ;;  %v4566_v40 = vld [vmem:[%s5577_s1 + $0x6d0] sm:$0xff] }
  0xca   : > { %3057 = vmatpush.bf16.msrb.mxu2 %v4524_v27  ;;  %v531_v27 = vsel %vm4765_vm8, %v3307_v15, %v3308_v16  ;;  %v4586_v5 = vld [vmem:[%s5577_s1 + $0x770] sm:$0xff]  ;;  %v4593_v15 = vld [vmem:[%s5577_s1 + $0x7a8] sm:$0xff] }
  0xcb   : > { %3070 = vmatpush.bf16.msrb.mxu3 %v4532_v28  ;;  %3032 = vmatmul.bf16.vlgmr.msrb.gmra.mxu0 %v677_v34  ;;  %v535_v28 = vsel %vm4765_vm8, %v3309_v17, %v3310_v18  ;;  %v4601_v16 = vld [vmem:[%s5577_s1 + $0x7e8] sm:$0xff] }
  0xcc   : > { %3076 = vmatpush.bf16.msra.mxu0 %v4547_v20  ;;  %3045 = vmatmul.bf16.vlgmr.msrb.gmra.mxu1 %v678_v39  ;;  %v4568_v20 = vld [vmem:[%s5577_s1 + $0x6e0] sm:$0xff]  ;;  %v4558_v39 = vld [vmem:[%s5577_s1 + $0x690] sm:$0xff] }
  0xcd   : > { %3089 = vmatpush.bf16.msra.mxu1 %v4555_v21  ;;  %v5405_v21 = vadd.f32 %v2838_v11, %v2826_v12  ;;  %3058 = vmatmul.bf16.vlgmr.msrb.gmra.mxu2 %v684_v22  ;;  %v4577_v12 = vld [vmem:[%s5577_s1 + $0x728] sm:$0xff]  ;;  %v4592_v22 = vld [vmem:[%s5577_s1 + $0x7a0] sm:$0xff] }
  0xce   : > { %3102 = vmatpush.bf16.msra.mxu2 %v4563_v32  ;;  %3071 = vmatmul.bf16.vlgmr.msrb.gmra.mxu3 %v685_v23  ;;  %v507_v32 = vld.sshfl [vmem:[#allocation1] sm:$0xff pattern:$0x73625140] }
  0xcf   : > { %3115 = vmatpush.bf16.msra.mxu3 %v4571_v33  ;;  %v508_v33 = vld.sshfl [vmem:[#allocation1 + $0x8] sm:$0xff pattern:$0x73625140]  ;;  %v4600_v23 = vld [vmem:[%s5577_s1 + $0x7e0] sm:$0xff] }
  0xd0   : > { %3077 = vmatpush.bf16.msra.mxu0 %v4546_v42  ;;  %v2827_v34 = vpop.f32.mrf.mxu0  ;;  %536 = vst [vmem:[#allocation1] ss:$4 sm:$0xff] %v531_v27  ;;  %v4549_v42 = vld [vmem:[%s5577_s1 + $0x648] sm:$0xff]  ;;  %v4575_v27 = vld [vmem:[%s5577_s1 + $0x718] sm:$0xff] }
  0xd1   : > { %3090 = vmatpush.bf16.msra.mxu1 %v4554_v43  ;;  %v2840_v35 = vpop.f32.mrf.mxu1  ;;  %538 = vst [vmem:[#allocation1 + $0x1] ss:$4 sm:$0xff] %v535_v28  ;;  %v511_v43 = vpack.c.bf16 %v508_v33, %v507_v32  ;;  %v4583_v28 = vld [vmem:[%s5577_s1 + $0x758] sm:$0xff] }
  0xd2   : > { %3103 = vmatpush.bf16.msra.mxu2 %v4562_v49  ;;  %v4548_v49 = vld [vmem:[%s5577_s1 + $0x640] sm:$0xff]  ;;  %v4591_v35 = vld [vmem:[%s5577_s1 + $0x798] sm:$0xff] }
  0xd3   : > { %3116 = vmatpush.bf16.msra.mxu3 %v4570_v50  ;;  %v4579_v50 = vld [vmem:[%s5577_s1 + $0x738] sm:$0xff]  ;;  %v689_v53 = vunpack.c.l.b16 %v511_v43 }
  0xd4   : > { %3078 = vmatpush.bf16.msra.mxu0 %v4545_v55  ;;  %v587_v32 = vld [vmem:[#allocation1 + $0x22] ss:$4 sm:$0xff] }
  0xd5   : > { %3091 = vmatpush.bf16.msra.mxu1 %v4553_v56  ;;  %v690_v56 = vunpack.c.h.b16 %v511_v43  ;;  %v594_v38 = vrot.slane %v587_v32, 7  ;;  %v4590_v43 = vld [vmem:[%s5577_s1 + $0x790] sm:$0xff] }
  0xd6   : > { %3104 = vmatpush.bf16.msra.mxu2 %v4561_v63 }
  0xd7   : > { %3117 = vmatpush.bf16.msra.mxu3 %v4569_v0  ;;  %v691_v0 = vpack.c.b16 %v689_v53, %v689_v53  ;;  %v692_v1 = vpack.c.b16 %v690_v56, %v690_v56 }
  0xd8   : > { %3079 = vmatpush.bf16.msra.mxu0 %v4544_v8  ;;  %v539_v54 = vld.sshfl [vmem:[#allocation1] sm:$0xff pattern:$0x73625140]  ;;  %v540_v55 = vld.sshfl [vmem:[#allocation1 + $0x8] sm:$0xff pattern:$0x73625140]  ;;  %v2851_v8 = vpop.f32.mrf.mxu2 }
  0xd9   : > { %3092 = vmatpush.bf16.msra.mxu1 %v4552_v9  ;;  %v543_v57 = vpack.c.bf16 %v540_v55, %v539_v54  ;;  %552 = vst.sshfl [vmem:[#allocation1] sm:$0xff pattern:$0x73625140] %v3311_v44  ;;  %v2864_v9 = vpop.f32.mrf.mxu3  ;;  %v2852_v10 = vadd.f32 %v2851_v8, %v5405_v21  ;;  %v4584_v21 = vld [vmem:[%s5577_s1 + $0x760] sm:$0xff]  ;;  %v4598_v44 = vld [vmem:[%s5577_s1 + $0x7d0] sm:$0xff]  ;;  %v4597_v54 = vld [vmem:[%s5577_s1 + $0x7c8] sm:$0xff] }
  0xda   : > { %3105 = vmatpush.bf16.msra.mxu2 %v4560_v19  ;;  %553 = vst.sshfl [vmem:[#allocation1 + $0x8] sm:$0xff pattern:$0x73625140] %v3312_v45 }
  0xdb   : > { %3118 = vmatpush.bf16.msra.mxu3 %v4568_v20  ;;  %v696_v62 = vunpack.c.l.b16 %v543_v57  ;;  %v697_v63 = vunpack.c.h.b16 %v543_v57  ;;  %v2865_v14 = vadd.f32 %v2864_v9, %v2852_v10  ;;  %v4576_v20 = vld [vmem:[%s5577_s1 + $0x720] sm:$0xff] }
  0xdc   : > { %3080 = vmatpush.bf16.msra.mxu0 %v4543_v24 }
  0xdd   : > { %3093 = vmatpush.bf16.msra.mxu1 %v4551_v25  ;;  %v698_v2 = vpack.c.b16 %v696_v62, %v696_v62  ;;  %v699_v3 = vpack.c.b16 %v697_v63, %v697_v63  ;;  %v4572_v62 = vld [vmem:[%s5577_s1 + $0x700] sm:$0xff] }
  0xde   : > { %3106 = vmatpush.bf16.msra.mxu2 %v4559_v26  ;;  %v4580_v63 = vld [vmem:[%s5577_s1 + $0x740] sm:$0xff] }
  0xdf   : > { %3119 = vmatpush.bf16.msra.mxu3 %v4567_v29  ;;  %v3315_v29 = vld [vmem:[%s4704_s24 + $0x30] sm:$0x18] }
  0xe0   : > { %3081 = vmatpush.bf16.msra.mxu0 %v4542_v30  ;;  %v2853_v24 = vpop.f32.mrf.mxu2  ;;  %v3316_v30 = vld [vmem:[%s4704_s24 + $0x38] sm:$0x18] }
  0xe1   : > { %3094 = vmatpush.bf16.msra.mxu1 %v4550_v31  ;;  %v555_v11 = vld [vmem:[#allocation1 + $0x1] ss:$4 sm:$0xff]  ;;  %v2866_v25 = vpop.f32.mrf.mxu3 }
  0xe2   : > { %3107 = vmatpush.bf16.msra.mxu2 %v4558_v39  ;;  %560 = vst [vmem:[#allocation1] ss:$4 sm:$0xff] %v555_v11  ;;  %v585_v31 = vld [vmem:[#allocation1 + $0x21] ss:$4 sm:$0xff] }
  0xe3   : > { %3120 = vmatpush.bf16.msra.mxu3 %v4566_v40  ;;  %562 = vst [vmem:[#allocation1 + $0x1] ss:$4 sm:$0xff] %v5430_v37  ;;  %v3320_v37 = vrot.slane %v585_v31, 9 }
  0xe4   : > { %3082 = vmatpush.bf16.msra.mxu0 %v4541_v41  ;;  %v4574_v41 = vld [vmem:[%s5577_s1 + $0x710] sm:$0xff] }
  0xe5   : > { %3095 = vmatpush.bf16.msra.mxu1 %v4549_v42  ;;  %v4582_v42 = vld [vmem:[%s5577_s1 + $0x750] sm:$0xff] }
  0xe6   : > { %3108 = vmatpush.bf16.msra.mxu2 %v4557_v46  ;;  %v595_v46 = vsel %vm4765_vm8, %v3320_v37, %v594_v38 }
  0xe7   : > { %3121 = vmatpush.bf16.msra.mxu3 %v4565_v47 }
  0xe8   : > { %3083 = vmatpush.bf16.msra.mxu0 %v4540_v48  ;;  %v2877_v17 = vpop.f32.mrf.mxu0 }
  0xe9   : > { %3096 = vmatpush.bf16.msra.mxu1 %v4548_v49  ;;  %v2890_v18 = vpop.f32.mrf.mxu1  ;;  %v2878_v19 = vadd.f32 %v2877_v17, %v2865_v14  ;;  %v4573_v49 = vld [vmem:[%s5577_s1 + $0x708] sm:$0xff] }
  0xea   : > { %3109 = vmatpush.bf16.msra.mxu2 %v4556_v58  ;;  %v563_v33 = vld.sshfl [vmem:[#allocation1] sm:$0xff pattern:$0x73625140]  ;;  %v564_v34 = vld.sshfl [vmem:[#allocation1 + $0x8] sm:$0xff pattern:$0x73625140] }
  0xeb   : > { %3122 = vmatpush.bf16.msra.mxu3 %v4564_v59  ;;  %3084 = vmatmul.bf16.vlgmr.msra.gmra.mxu0 %v691_v0  ;;  %v2891_v26 = vadd.f32 %v2890_v18, %v2878_v19  ;;  %576 = vst.sshfl [vmem:[#allocation1] sm:$0xff pattern:$0x73625140] %v3315_v29  ;;  %v567_v45 = vpack.c.bf16 %v564_v34, %v563_v33 }
  0xec   : > { %3128 = vmatpush.bf16.msrb.mxu0 %v4579_v50  ;;  %3097 = vmatmul.bf16.vlgmr.msra.gmra.mxu1 %v692_v1  ;;  %577 = vst.sshfl [vmem:[#allocation1 + $0x8] sm:$0xff pattern:$0x73625140] %v3316_v30  ;;  %v4581_v50 = vld [vmem:[%s5577_s1 + $0x748] sm:$0xff]  ;;  %v4588_v1 = vld [vmem:[%s5577_s1 + $0x780] sm:$0xff] }
  0xed   : > { %3141 = vmatpush.bf16.msrb.mxu1 %v4587_v51  ;;  %3110 = vmatmul.bf16.vlgmr.msra.gmra.mxu2 %v698_v2  ;;  %v4589_v51 = vld [vmem:[%s5577_s1 + $0x788] sm:$0xff]  ;;  %v4596_v2 = vld [vmem:[%s5577_s1 + $0x7c0] sm:$0xff] }
  0xee   : > { %3154 = vmatpush.bf16.msrb.mxu2 %v4595_v60  ;;  %3123 = vmatmul.bf16.vlgmr.msra.gmra.mxu3 %v699_v3  ;;  %v703_v60 = vunpack.c.l.b16 %v567_v45 }
  0xef   : > { %3167 = vmatpush.bf16.msrb.mxu3 %v4603_v61  ;;  %v704_v61 = vunpack.c.h.b16 %v567_v45 }
  0xf0   : > { %3129 = vmatpush.bf16.msrb.mxu0 %v4578_v4  ;;  %v2879_v39 = vpop.f32.mrf.mxu0  ;;  %v2903_v47 = vpop.f32.mrf.mxu2  ;;  %v705_v3 = vpack.c.b16 %v703_v60, %v703_v60 }
  0xf1   : > { %3142 = vmatpush.bf16.msrb.mxu1 %v4586_v5  ;;  %v2892_v40 = vpop.f32.mrf.mxu1  ;;  %v2916_v48 = vpop.f32.mrf.mxu3  ;;  %v2904_v53 = vadd.f32 %v2903_v47, %v2891_v26  ;;  %v706_v4 = vpack.c.b16 %v704_v61, %v704_v61 }
  0xf2   : > { %3155 = vmatpush.bf16.msrb.mxu2 %v4594_v6 }
  0xf3   : > { %3168 = vmatpush.bf16.msrb.mxu3 %v4602_v7  ;;  %v579_v55 = vld [vmem:[#allocation1 + $0x1] ss:$4 sm:$0xff]  ;;  %v581_v56 = vld [vmem:[#allocation1 + $0x2] ss:$4 sm:$0xff]  ;;  %v2917_v59 = vadd.f32 %v2916_v48, %v2904_v53 }
  0xf4   : > { %3130 = vmatpush.bf16.msrb.mxu0 %v4577_v12  ;;  %v3319_v57 = vrot.slane %v579_v55, 9  ;;  %v590_v58 = vrot.slane %v581_v56, 7  ;;  %598 = vst [vmem:[#allocation1 + $0x1] ss:$4 sm:$0xff] %v595_v46 }
  0xf5   : > { %3143 = vmatpush.bf16.msrb.mxu1 %v4585_v13 }
  0xf6   : > { %3156 = vmatpush.bf16.msrb.mxu2 %v4593_v15  ;;  %v591_v0 = vsel %vm4765_vm8, %v3319_v57, %v590_v58 }
  0xf7   : > { %3169 = vmatpush.bf16.msrb.mxu3 %v4601_v16  ;;  %596 = vst [vmem:[#allocation1] ss:$4 sm:$0xff] %v591_v0 }
  0xf8   : > { %3131 = vmatpush.bf16.msrb.mxu0 %v4576_v20  ;;  %v2905_v5 = vpop.f32.mrf.mxu2 }
  0xf9   : > { %3144 = vmatpush.bf16.msrb.mxu1 %v4584_v21  ;;  %v2918_v6 = vpop.f32.mrf.mxu3 }
  0xfa   : > { %3157 = vmatpush.bf16.msrb.mxu2 %v4592_v22 }
  0xfb   : > { %3170 = vmatpush.bf16.msrb.mxu3 %v4600_v23 }
  0xfc   : > { %3132 = vmatpush.bf16.msrb.mxu0 %v4575_v27 }
  0xfd   : > { %3145 = vmatpush.bf16.msrb.mxu1 %v4583_v28 }
  0xfe   : > { %3158 = vmatpush.bf16.msrb.mxu2 %v4591_v35  ;;  %v599_v52 = vld.sshfl [vmem:[#allocation1] sm:$0xff pattern:$0x73625140]  ;;  %v600_v7 = vld.sshfl [vmem:[#allocation1 + $0x8] sm:$0xff pattern:$0x73625140] }
  0xff   : > { %3171 = vmatpush.bf16.msrb.mxu3 %v4599_v36  ;;  %v603_v8 = vpack.c.bf16 %v600_v7, %v599_v52 }
 0x100   : > { %3133 = vmatpush.bf16.msrb.mxu0 %v4574_v41 }
 0x101   : > { %3146 = vmatpush.bf16.msrb.mxu1 %v4582_v42  ;;  %v710_v9 = vunpack.c.l.b16 %v603_v8  ;;  %v711_v10 = vunpack.c.h.b16 %v603_v8 }
 0x102   : > { %3159 = vmatpush.bf16.msrb.mxu2 %v4590_v43 }
 0x103   : > { %3172 = vmatpush.bf16.msrb.mxu3 %v4598_v44  ;;  %v712_v11 = vpack.c.b16 %v710_v9, %v710_v9  ;;  %v713_v12 = vpack.c.b16 %v711_v10, %v711_v10 }
 0x104   : > { %3134 = vmatpush.bf16.msrb.mxu0 %v4573_v49 }
 0x105   : > { %3147 = vmatpush.bf16.msrb.mxu1 %v4581_v50 }
 0x106   : > { %3160 = vmatpush.bf16.msrb.mxu2 %v4589_v51 }
 0x107   : > { %3173 = vmatpush.bf16.msrb.mxu3 %v4597_v54 }
 0x108   : > { %3135 = vmatpush.bf16.msrb.mxu0 %v4572_v62  ;;  %v2929_v13 = vpop.f32.mrf.mxu0 }
 0x109   : > { %3148 = vmatpush.bf16.msrb.mxu1 %v4580_v63  ;;  %v2942_v14 = vpop.f32.mrf.mxu1  ;;  %v2930_v15 = vadd.f32 %v2929_v13, %v2917_v59 }
 0x10a   : > { %3161 = vmatpush.bf16.msrb.mxu2 %v4588_v1 }
 0x10b   : > { %3174 = vmatpush.bf16.msrb.mxu3 %v4596_v2  ;;  %3136 = vmatmul.bf16.vlgmr.msrb.gmra.mxu0 %v705_v3  ;;  %v2943_v16 = vadd.f32 %v2942_v14, %v2930_v15 }
 0x10c   : > { %3149 = vmatmul.bf16.vlgmr.msrb.gmra.mxu1 %v706_v4 }
 0x10d   : > { %3162 = vmatmul.bf16.vlgmr.msrb.gmra.mxu2 %v712_v11 }
 0x10e   : > { %3175 = vmatmul.bf16.vlgmr.msrb.gmra.mxu3 %v713_v12 }
 0x110   : > { %v2931_v17 = vpop.f32.mrf.mxu0  ;;  %v2955_v19 = vpop.f32.mrf.mxu2 }
 0x111   : > { %v2944_v18 = vpop.f32.mrf.mxu1  ;;  %v2968_v20 = vpop.f32.mrf.mxu3  ;;  %v2956_v21 = vadd.f32 %v2955_v19, %v2943_v16 }
 0x113   : > { %v2969_v22 = vadd.f32 %v2968_v20, %v2956_v21 }
 0x118   : > { %v2957_v23 = vpop.f32.mrf.mxu2 }
 0x119   : > { %v2970_v24 = vpop.f32.mrf.mxu3 }
 0x128   : > { %v2981_v25 = vpop.f32.mrf.mxu0 }
 0x129   : > { %v2994_v26 = vpop.f32.mrf.mxu1  ;;  %v2982_v27 = vadd.f32 %v2981_v25, %v2969_v22 }
 0x12b   : > { %v2995_v28 = vadd.f32 %v2994_v26, %v2982_v27 }
 0x130   : > { %v2983_v29 = vpop.f32.mrf.mxu0  ;;  %v3007_v31 = vpop.f32.mrf.mxu2 }
 0x131   : > { %v2996_v30 = vpop.f32.mrf.mxu1  ;;  %v3020_v32 = vpop.f32.mrf.mxu3  ;;  %v3008_v33 = vadd.f32 %v3007_v31, %v2995_v28 }
 0x133   : > { %v3021_v34 = vadd.f32 %v3020_v32, %v3008_v33 }
 0x138   : > { %v3009_v35 = vpop.f32.mrf.mxu2 }
 0x139   : > { %v3022_v36 = vpop.f32.mrf.mxu3 }
 0x148   : > { %v3033_v37 = vpop.f32.mrf.mxu0 }
 0x149   : > { %v3046_v38 = vpop.f32.mrf.mxu1  ;;  %v3034_v51 = vadd.f32 %v3033_v37, %v3021_v34 }
 0x14b   : > { %v3047_v55 = vadd.f32 %v3046_v38, %v3034_v51 }
 0x150   : > { %v3035_v39 = vpop.f32.mrf.mxu0  ;;  %v3059_v41 = vpop.f32.mrf.mxu2 }
 0x151   : > { %v3048_v40 = vpop.f32.mrf.mxu1  ;;  %v3072_v42 = vpop.f32.mrf.mxu3  ;;  %v3060_v56 = vadd.f32 %v3059_v41, %v3047_v55 }
 0x153   : > { %v3073_v57 = vadd.f32 %v3072_v42, %v3060_v56 }
 0x158   : > { %v3061_v43 = vpop.f32.mrf.mxu2 }
 0x159   : > { %v3074_v44 = vpop.f32.mrf.mxu3 }
 0x168   : > { %v3085_v45 = vpop.f32.mrf.mxu0 }
 0x169   : > { %v3098_v46 = vpop.f32.mrf.mxu1  ;;  %v3086_v58 = vadd.f32 %v3085_v45, %v3073_v57 }
 0x16b   : > { %v3099_v61 = vadd.f32 %v3098_v46, %v3086_v58 }
 0x170   : > { %v3111_v47 = vpop.f32.mrf.mxu2  ;;  %v3087_v49 = vpop.f32.mrf.mxu0 }
 0x171   : > { %v3124_v48 = vpop.f32.mrf.mxu3  ;;  %v3100_v50 = vpop.f32.mrf.mxu1  ;;  %v3112_v62 = vadd.f32 %v3111_v47, %v3099_v61 }
 0x173   : > { %v3125_v63 = vadd.f32 %v3124_v48, %v3112_v62 }
 0x178   : > { %v3113_v53 = vpop.f32.mrf.mxu2 }
 0x179   : > { %v3126_v54 = vpop.f32.mrf.mxu3 }
 0x188   : > { %v3137_v59 = vpop.f32.mrf.mxu0 }
 0x189   : > { %v3150_v60 = vpop.f32.mrf.mxu1  ;;  %v3138_v2 = vadd.f32 %v3137_v59, %v3125_v63 }
 0x18b   : > { %v3151_v3 = vadd.f32 %v3150_v60, %v3138_v2 }
 0x190   : > { %v3139_v0 = vpop.f32.mrf.mxu0  ;;  %v3163_v4 = vpop.f32.mrf.mxu2 }
 0x191   : > { %v3152_v1 = vpop.f32.mrf.mxu1  ;;  %v3176_v5 = vpop.f32.mrf.mxu3  ;;  %v3164_v6 = vadd.f32 %v3163_v4, %v3151_v3 }
 0x193   : > { %v3177_v52 = vadd.f32 %v3176_v5, %v3164_v6 }
 0x195   : > { %v3181_v7 = vrot.slane %v3177_v52, 2  ;;  %3184 = vst.msk [vmem:[%s143_s27] sm:$0x3] %vm3183_vm9, %v3177_v52 }
 0x197   : > { %3185 = vst.msk [vmem:[%s143_s27 + $0x2] sm:$0x3] %vm3183_vm9, %v3181_v7 }
 0x198   : > { %v3165_v8 = vpop.f32.mrf.mxu2 }
 0x199   : > { %v3178_v9 = vpop.f32.mrf.mxu3 }
 0x19a PF: > { %s12_s9 = sadd.s32 1, %s4619_s9  }
 0x19b   : > { %p9_p4 = scmp.ge.s32.totalorder %s12_s9, 4  }
 0x19d   :  { %11 = sbr.rel (!%p9_p4) target bundleno = 1 (0x1), region = 101 }

</bundles_post_ra>
